<compile_context>
chip_gen: v6e
topology: v6e:2x2x1
jax: 0.10.0
libtpu: 0.0.40
codegen_flags: <defaults>
</compile_context>

<pallas_src>
import functools

import jax
import jax.numpy as jnp
import numpy as np
from jax import lax
from jax.experimental import pallas as pl
from jax.experimental.pallas import tpu as pltpu

_HI = lax.Precision.HIGHEST   # f32-accurate matmuls (GN amplifies matmul error)


# --------------------------------- the kernel --------------------------------

def _rtb_kernel(xs_ref, t_ref, w0_ref, w1_ref, wt_ref, wr_ref,
                pc_ref, agg_ref, segT_ref, mask_ref, out_ref,
                *, K, pad, cin_p, identity_res):
    f32 = jnp.float32
    xs = xs_ref[0]                 # [K*C_in_p, N] precomputed shifted/masked x taps
    t = t_ref[0].astype(f32)       # [E, Bt]
    segT = segT_ref[...]           # [Bt, N]  segT[b, n] = 1 iff lane n in sample b
    mask = mask_ref[...]           # [K, N]   per-tap shift-validity mask
    agg = agg_ref[...]             # [C, C]   block-diag group agg, pre-scaled by 1/(cg*H)
    pc = pc_ref[...]               # [C, 8]   packed per-channel params
    C = pc.shape[0]

    b0, g0, be0 = pc[:, 0:1], pc[:, 1:2], pc[:, 2:3]
    b1, g1, be1 = pc[:, 3:4], pc[:, 4:5], pc[:, 5:6]
    lb, rb = pc[:, 6:7], pc[:, 7:8]

    def mish(v):
        # mish(x) = x*tanh(softplus(x)) = x*(e^2+2e)/(e^2+2e+2), e = exp(x).
        # Exact division keeps this within ~1e-6 of the f32 reference; for x > 20
        # mish(x) ~= x (and exp(x)^2 would blow up), so clamp + select.
        e = jnp.exp(jnp.minimum(v, 20.0))
        num = e * (e + 2.0)
        return jnp.where(v > 20.0, v, v * num / (num + 2.0))

    def expand(cols):
        # [C, Bt] per-sample columns -> [C, N] (broadcast over the horizon lanes).
        return jnp.dot(cols, segT, precision=_HI, preferred_element_type=f32)

    def gn_mish(hh, gamma, beta):
        # Per-sample, per-group statistics via matmuls (no in-kernel reshapes,
        # no concat copies): contract the lane axis against segT (NT matmul),
        # then block-diagonal channel aggregation.
        dn = (((1,), (1,)), ((), ()))
        s1 = lax.dot_general(hh, segT, dn, precision=_HI,
                             preferred_element_type=f32)                 # [C, Bt]
        s2 = lax.dot_general(hh * hh, segT, dn, precision=_HI,
                             preferred_element_type=f32)                 # [C, Bt]
        mean = jnp.dot(agg, s1, precision=_HI, preferred_element_type=f32)
        ex2 = jnp.dot(agg, s2, precision=_HI, preferred_element_type=f32)
        var = jnp.maximum(ex2 - mean * mean, 0.0)                        # clamp >= 0
        inv = lax.rsqrt(var + 1e-5)
        scale = inv * gamma                                              # [C, Bt]
        shift = beta - mean * scale                                      # [C, Bt]
        return mish(hh * expand(scale) + expand(shift))

    def shifted_stack(v):
        # K shifted copies of v stacked along channels -> [K*C, N].  Rolls wrap
        # across sample boundaries, but those lanes are exactly the ones zeroed
        # by the precomputed mask (h + off outside [0, H)).
        parts = []
        for k in range(K):
            off = k - pad
            if off == 0:
                parts.append(v)
            else:
                parts.append(jnp.roll(v, -off, axis=1) * mask[k:k + 1, :])
        return jnp.concatenate(parts, axis=0)

    # ---- Conv1dBlock 0: Conv1d (fused K-tap matmul) -> GroupNorm -> Mish
    h = jnp.dot(w0_ref[...], xs, precision=_HI, preferred_element_type=f32) + b0
    h = gn_mish(h, g0, be0)

    # ---- time_mlp: Mish -> Linear -> broadcast over horizon
    tm = mish(t).astype(wt_ref.dtype)                                    # [E, Bt]
    tcol = jnp.dot(wt_ref[...], tm, precision=_HI,
                   preferred_element_type=f32) + lb                      # [C, Bt]
    h = h + expand(tcol)

    # ---- Conv1dBlock 1: Conv1d -> GroupNorm -> Mish
    st1 = shifted_stack(h).astype(w1_ref.dtype)
    h = jnp.dot(w1_ref[...], st1, precision=_HI, preferred_element_type=f32) + b1
    h = gn_mish(h, g1, be1)

    # ---- residual: 1x1 conv, or plain add when inp_channels == out_channels
    x_mid = xs[pad * cin_p:(pad + 1) * cin_p, :]       # unshifted x (centre tap)
    if identity_res:
        res = x_mid[:C, :].astype(f32) + rb            # rb == 0 for nn.Identity
    else:
        res = jnp.dot(wr_ref[...], x_mid, precision=_HI,
                      preferred_element_type=f32) + rb

    out_ref[0] = (h + res).astype(out_ref.dtype)


# --------------------------------- wrapper ------------------------------------

def residual_temporal_block(x, t, params, *, kernel_size=5, n_groups=8,
                            mxu_dtype=jnp.float32):
    f32 = jnp.float32
    B, C_in, H = x.shape
    E = t.shape[1]
    C_out = params["conv0_w"].shape[0]
    K = kernel_size
    pad = K // 2
    cg = C_out // n_groups
    identity_res = (C_in == C_out)

    # ---- tile geometry: lane dim N = Bt*H, target >= 512 lanes, capped by batch
    Bt = min(B, max(1, -(-512 // H)))
    N = Bt * H
    Gt = -(-B // Bt)            # grid steps (batch axis, "parallel")
    Bp = Gt * Bt                # padded batch
    C_in_p = -(-C_in // 8) * 8  # sublane-aligned input channels

    # ---- fused conv weights: w_fused[o, k*Cin_p + c] = conv_w[o, c, k]
    def fuse_conv(w, cin_pad):
        co, ci, k = w.shape
        w = jnp.pad(w.astype(f32), ((0, 0), (0, cin_pad - ci), (0, 0)))
        return jnp.transpose(w, (0, 2, 1)).reshape(co, k * cin_pad)

    w0f = fuse_conv(params["conv0_w"], C_in_p).astype(mxu_dtype)   # [C, K*C_in_p]
    w1f = fuse_conv(params["conv1_w"], C_out).astype(mxu_dtype)    # [C, K*C]
    wt = params["lin_w"].astype(mxu_dtype)                         # [C, E]

    if identity_res:
        wr = jnp.zeros((8, 128), mxu_dtype)        # dummy, never read in-kernel
        rb_vec = jnp.zeros((C_out,), f32)
    else:
        wr = jnp.pad(params["res_w"].astype(f32),
                     ((0, 0), (0, C_in_p - C_in))).astype(mxu_dtype)
        rb_vec = params["res_b"].astype(f32)

    # ---- packed per-channel params: [C_out, 8]
    pc = jnp.stack([params["conv0_b"], params["gn0_g"], params["gn0_b"],
                    params["conv1_b"], params["gn1_g"], params["gn1_b"],
                    params["lin_b"], rb_vec], axis=1).astype(f32)

    # ---- block-diagonal group aggregation with 1/(cg*H) folded in
    idx = jnp.arange(C_out)
    agg = (idx[:, None] // cg == idx[None, :] // cg).astype(f32) / float(cg * H)

    # ---- lane bookkeeping: per-sample segment matrix and per-tap shift masks
    n_idx = jnp.arange(N)
    h_of = n_idx % H
    segT = (jnp.arange(Bt)[:, None] == (n_idx // H)[None, :]).astype(f32)  # [Bt, N]
    tap = jnp.arange(K) - pad
    mask = ((h_of[None, :] + tap[:, None] >= 0) &
            (h_of[None, :] + tap[:, None] < H)).astype(f32)                # [K, N]

    # ---- repack inputs; conv0's shifted/masked tap stack is built here
    xp = jnp.pad(x.astype(f32), ((0, Bp - B), (0, C_in_p - C_in), (0, 0)))
    x_r = xp.reshape(Gt, Bt, C_in_p, H).transpose(0, 2, 1, 3).reshape(Gt, C_in_p, N)
    parts = []
    for k in range(K):
        off = k - pad
        if off == 0:
            parts.append(x_r)
        else:
            parts.append(jnp.roll(x_r, -off, axis=2) * mask[k, :][None, None, :])
    x_stack = jnp.concatenate(parts, axis=1).astype(mxu_dtype)   # [Gt, K*C_in_p, N]

    tp = jnp.pad(t.astype(f32), ((0, Bp - B), (0, 0)))
    t_r = tp.reshape(Gt, Bt, E).transpose(0, 2, 1).astype(mxu_dtype)   # [Gt, E, Bt]

    kernel = functools.partial(_rtb_kernel, K=K, pad=pad, cin_p=C_in_p,
                               identity_res=identity_res)

    def rep(shape):
        zeros = (0,) * len(shape)
        idx_map = lambda g: zeros
        try:
            # Replicated constants never change block index -> single buffer.
            return pl.BlockSpec(shape, idx_map, pipeline_mode=pl.Buffered(1))
        except Exception:   # older jax without pipeline_mode / Buffered
            return pl.BlockSpec(shape, idx_map)

    in_specs = [
        pl.BlockSpec((1, K * C_in_p, N), lambda g: (g, 0, 0)),   # x tap stack
        pl.BlockSpec((1, E, Bt), lambda g: (g, 0, 0)),           # t (transposed)
        rep(w0f.shape), rep(w1f.shape), rep(wt.shape), rep(wr.shape),
        rep(pc.shape), rep(agg.shape), rep(segT.shape), rep(mask.shape),
    ]

    # ---- VMEM budget: 2x per-step tiles + single-buffered constants + headroom,
    #      capped below v7x's 64 MiB physical VMEM.
    itm = jnp.dtype(mxu_dtype).itemsize
    step_bytes = (K * C_in_p * N * itm) + (E * Bt * itm) + (C_out * N * 4)
    const_bytes = sum(int(np.prod(a.shape)) * a.dtype.itemsize
                      for a in (w0f, w1f, wt, wr, pc, agg, segT, mask))
    vmem_limit = int(min(max(2 * step_bytes + const_bytes + (8 << 20), 16 << 20),
                         48 << 20))

    grid_spec = pltpu.PrefetchScalarGridSpec(
        num_scalar_prefetch=0,
        grid=(Gt,),
        in_specs=in_specs,
        out_specs=pl.BlockSpec((1, C_out, N), lambda g: (g, 0, 0)),
    )

    out_r = pl.pallas_call(
        kernel,
        out_shape=jax.ShapeDtypeStruct((Gt, C_out, N), f32),
        grid_spec=grid_spec,
        compiler_params=pltpu.CompilerParams(
            # TODO(synk): on v7x, pltpu.CORE_PARALLEL / pl.core_map on this axis
            # shards the Gt steps across both TensorCores.
            dimension_semantics=("parallel",),
            vmem_limit_bytes=vmem_limit,
        ),
    )(x_stack, t_r, w0f, w1f, wt, wr, pc, agg, segT, mask)

    out = out_r.reshape(Gt, C_out, Bt, H).transpose(0, 2, 1, 3).reshape(Bp, C_out, H)
    return out[:B]


# ------------------------- pure-JAX reference (check) -------------------------

def _reference(x, t, params, *, kernel_size=5, n_groups=8):
    pad = kernel_size // 2

    def mish(v):
        return v * jnp.tanh(jax.nn.softplus(v))

    def conv1d(h, w, b):
        B, C, H = h.shape
        hp = jnp.pad(h, ((0, 0), (0, 0), (pad, pad)))
        out = jnp.zeros((B, w.shape[0], H), jnp.float32) + b[None, :, None]
        for k in range(w.shape[2]):
            out = out + jnp.einsum("oc,bch->boh", w[:, :, k], hp[:, :, k:k + H],
                                   precision=_HI)
        return out

    def gn(h, g, bta):
        B, C, H = h.shape
        cg = C // n_groups
        hr = h.reshape(B, n_groups, cg * H)
        m = hr.mean(axis=2, keepdims=True)
        v = hr.var(axis=2, keepdims=True)
        hn = ((hr - m) / jnp.sqrt(v + 1e-5)).reshape(B, C, H)
        return hn * g[None, :, None] + bta[None, :, None]

    h = mish(gn(conv1d(x, params["conv0_w"], params["conv0_b"]),
                params["gn0_g"], params["gn0_b"]))
    tt = jnp.dot(mish(t), params["lin_w"].T, precision=_HI) + params["lin_b"]
    h = h + tt[:, :, None]
    h = mish(gn(conv1d(h, params["conv1_w"], params["conv1_b"]),
                params["gn1_g"], params["gn1_b"]))
    if "res_w" in params:
        res = (jnp.einsum("oc,bch->boh", params["res_w"], x, precision=_HI)
               + params["res_b"][None, :, None])
    else:
        res = x
    return h + res


# ----------------------------------- main -------------------------------------

if __name__ == "__main__":
    # B=64, H=16 -> Bt=32 samples per tile (N=512 lanes), Gt=2 parallel grid steps.
    B, C_in, C_out, H, E, K, G = 64, 4, 16, 16, 32, 5, 8

    key = jax.random.PRNGKey(0)
    keys = jax.random.split(key, 16)
    f32 = jnp.float32
    params = {
        "conv0_w": 0.1 * jax.random.normal(keys[0], (C_out, C_in, K), f32),
        "conv0_b": 0.1 * jax.random.normal(keys[1], (C_out,), f32),
        "gn0_g":   1.0 + 0.1 * jax.random.normal(keys[2], (C_out,), f32),
        "gn0_b":   0.1 * jax.random.normal(keys[3], (C_out,), f32),
        "conv1_w": 0.1 * jax.random.normal(keys[4], (C_out, C_out, K), f32),
        "conv1_b": 0.1 * jax.random.normal(keys[5], (C_out,), f32),
        "gn1_g":   1.0 + 0.1 * jax.random.normal(keys[6], (C_out,), f32),
        "gn1_b":   0.1 * jax.random.normal(keys[7], (C_out,), f32),
        "lin_w":   0.1 * jax.random.normal(keys[8], (C_out, E), f32),
        "lin_b":   0.1 * jax.random.normal(keys[9], (C_out,), f32),
        # residual 1x1 conv weight stored as [C_out, C_in] (size-1 kernel dim squeezed)
        "res_w":   0.1 * jax.random.normal(keys[10], (C_out, C_in), f32),
        "res_b":   0.1 * jax.random.normal(keys[11], (C_out,), f32),
    }

    x = jax.random.normal(keys[12], (B, C_in, H), f32)
    t = jax.random.normal(keys[13], (B, E), f32)

    out = residual_temporal_block(x, t, params, kernel_size=K, n_groups=G)
    out = jax.block_until_ready(out)
    assert out.shape == (B, C_out, H)

    ref = _reference(x, t, params, kernel_size=K, n_groups=G)
    np.testing.assert_allclose(np.asarray(out), np.asarray(ref), rtol=2e-3, atol=2e-3)

    print("KERNEL_OK")
</pallas_src>

<mosaic_0001>
module attributes {stable_mosaic.version = 11 : i64} {
  func.func @_rtb_kernel(%arg0: i32, %arg1: memref<1x40x512xf32, #tpu.memory_space<vmem>>, %arg2: memref<1x32x32xf32, #tpu.memory_space<vmem>>, %arg3: memref<16x40xf32, #tpu.memory_space<vmem>>, %arg4: memref<16x80xf32, #tpu.memory_space<vmem>>, %arg5: memref<16x32xf32, #tpu.memory_space<vmem>>, %arg6: memref<16x8xf32, #tpu.memory_space<vmem>>, %arg7: memref<16x8xf32, #tpu.memory_space<vmem>>, %arg8: memref<16x16xf32, #tpu.memory_space<vmem>>, %arg9: memref<32x512xf32, #tpu.memory_space<vmem>>, %arg10: memref<5x512xf32, #tpu.memory_space<vmem>>, %arg11: memref<1x16x512xf32, #tpu.memory_space<vmem>>) attributes {dimension_semantics = [#tpu.dimension_semantics<parallel>], iteration_bounds = array<i64: 2>, scalar_prefetch = 0 : i64, scratch_operands = 0 : i64, tpu.core_type = #tpu.core_type<tc>, window_params = [{transform_indices = @transform_0, window_bounds = array<i64: 1, 40, 512>}, {transform_indices = @transform_1, window_bounds = array<i64: 1, 32, 32>}, {pipeline_mode = #tpu.pipeline_mode<synchronous>, transform_indices = @transform_2, window_bounds = array<i64: 16, 40>}, {pipeline_mode = #tpu.pipeline_mode<synchronous>, transform_indices = @transform_3, window_bounds = array<i64: 16, 80>}, {pipeline_mode = #tpu.pipeline_mode<synchronous>, transform_indices = @transform_4, window_bounds = array<i64: 16, 32>}, {pipeline_mode = #tpu.pipeline_mode<synchronous>, transform_indices = @transform_5, window_bounds = array<i64: 16, 8>}, {pipeline_mode = #tpu.pipeline_mode<synchronous>, transform_indices = @transform_6, window_bounds = array<i64: 16, 8>}, {pipeline_mode = #tpu.pipeline_mode<synchronous>, transform_indices = @transform_7, window_bounds = array<i64: 16, 16>}, {pipeline_mode = #tpu.pipeline_mode<synchronous>, transform_indices = @transform_8, window_bounds = array<i64: 32, 512>}, {pipeline_mode = #tpu.pipeline_mode<synchronous>, transform_indices = @transform_9, window_bounds = array<i64: 5, 512>}, {transform_indices = @transform_10, window_bounds = array<i64: 1, 16, 512>}]} {
    %c0 = arith.constant 0 : index
    %c0_0 = arith.constant 0 : index
    %c0_1 = arith.constant 0 : index
    %0 = vector.load %arg1[%c0, %c0_0, %c0_1] : memref<1x40x512xf32, #tpu.memory_space<vmem>>, vector<1x40x512xf32>
    %1 = vector.shape_cast %0 : vector<1x40x512xf32> to vector<40x512xf32>
    %c0_2 = arith.constant 0 : index
    %c0_3 = arith.constant 0 : index
    %c0_4 = arith.constant 0 : index
    %2 = vector.load %arg2[%c0_2, %c0_3, %c0_4] : memref<1x32x32xf32, #tpu.memory_space<vmem>>, vector<1x32x32xf32>
    %3 = vector.shape_cast %2 : vector<1x32x32xf32> to vector<32x32xf32>
    %c0_5 = arith.constant 0 : index
    %c0_6 = arith.constant 0 : index
    %4 = vector.load %arg9[%c0_5, %c0_6] : memref<32x512xf32, #tpu.memory_space<vmem>>, vector<32x512xf32>
    %c0_7 = arith.constant 0 : index
    %c0_8 = arith.constant 0 : index
    %5 = vector.load %arg10[%c0_7, %c0_8] : memref<5x512xf32, #tpu.memory_space<vmem>>, vector<5x512xf32>
    %c0_9 = arith.constant 0 : index
    %c0_10 = arith.constant 0 : index
    %6 = vector.load %arg8[%c0_9, %c0_10] : memref<16x16xf32, #tpu.memory_space<vmem>>, vector<16x16xf32>
    %c0_11 = arith.constant 0 : index
    %c0_12 = arith.constant 0 : index
    %7 = vector.load %arg7[%c0_11, %c0_12] : memref<16x8xf32, #tpu.memory_space<vmem>>, vector<16x8xf32>
    %8 = vector.extract_strided_slice %7 {offsets = [0, 0], sizes = [16, 1], strides = [1, 1]} : vector<16x8xf32> to vector<16x1xf32>
    %9 = vector.extract_strided_slice %7 {offsets = [0, 1], sizes = [16, 1], strides = [1, 1]} : vector<16x8xf32> to vector<16x1xf32>
    %10 = vector.extract_strided_slice %7 {offsets = [0, 2], sizes = [16, 1], strides = [1, 1]} : vector<16x8xf32> to vector<16x1xf32>
    %11 = vector.extract_strided_slice %7 {offsets = [0, 3], sizes = [16, 1], strides = [1, 1]} : vector<16x8xf32> to vector<16x1xf32>
    %12 = vector.extract_strided_slice %7 {offsets = [0, 4], sizes = [16, 1], strides = [1, 1]} : vector<16x8xf32> to vector<16x1xf32>
    %13 = vector.extract_strided_slice %7 {offsets = [0, 5], sizes = [16, 1], strides = [1, 1]} : vector<16x8xf32> to vector<16x1xf32>
    %14 = vector.extract_strided_slice %7 {offsets = [0, 6], sizes = [16, 1], strides = [1, 1]} : vector<16x8xf32> to vector<16x1xf32>
    %15 = vector.extract_strided_slice %7 {offsets = [0, 7], sizes = [16, 1], strides = [1, 1]} : vector<16x8xf32> to vector<16x1xf32>
    %c0_13 = arith.constant 0 : index
    %c0_14 = arith.constant 0 : index
    %16 = vector.load %arg3[%c0_13, %c0_14] : memref<16x40xf32, #tpu.memory_space<vmem>>, vector<16x40xf32>
    %cst = arith.constant dense<0.000000e+00> : vector<16x512xf32>
    %17 = tpu.matmul %16, %1, %cst {dimension_numbers = #tpu.dot_dimension_numbers<[1], [0], [0], [1], [0, 0, 1, 1], [], []>, precision = #tpu.contract_precision<fp32>} : vector<16x40xf32>, vector<40x512xf32>, vector<16x512xf32> -> vector<16x512xf32>
    %18 = vector.broadcast %8 : vector<16x1xf32> to vector<16x512xf32>
    %19 = arith.addf %17, %18 : vector<16x512xf32>
    %cst_15 = arith.constant dense<0.000000e+00> : vector<16x32xf32>
    %20 = tpu.matmul %19, %4, %cst_15 {dimension_numbers = #tpu.dot_dimension_numbers<[1], [1], [0], [0], [0, 0, 1, 0], [], []>, precision = #tpu.contract_precision<fp32>} : vector<16x512xf32>, vector<32x512xf32>, vector<16x32xf32> -> vector<16x32xf32>
    %21 = arith.mulf %19, %19 : vector<16x512xf32>
    %cst_16 = arith.constant dense<0.000000e+00> : vector<16x32xf32>
    %22 = tpu.matmul %21, %4, %cst_16 {dimension_numbers = #tpu.dot_dimension_numbers<[1], [1], [0], [0], [0, 0, 1, 0], [], []>, precision = #tpu.contract_precision<fp32>} : vector<16x512xf32>, vector<32x512xf32>, vector<16x32xf32> -> vector<16x32xf32>
    %cst_17 = arith.constant dense<0.000000e+00> : vector<16x32xf32>
    %23 = tpu.matmul %6, %20, %cst_17 {dimension_numbers = #tpu.dot_dimension_numbers<[1], [0], [0], [1], [0, 0, 1, 1], [], []>, precision = #tpu.contract_precision<fp32>} : vector<16x16xf32>, vector<16x32xf32>, vector<16x32xf32> -> vector<16x32xf32>
    %cst_18 = arith.constant dense<0.000000e+00> : vector<16x32xf32>
    %24 = tpu.matmul %6, %22, %cst_18 {dimension_numbers = #tpu.dot_dimension_numbers<[1], [0], [0], [1], [0, 0, 1, 1], [], []>, precision = #tpu.contract_precision<fp32>} : vector<16x16xf32>, vector<16x32xf32>, vector<16x32xf32> -> vector<16x32xf32>
    %25 = arith.mulf %23, %23 : vector<16x32xf32>
    %26 = arith.subf %24, %25 : vector<16x32xf32>
    %cst_19 = arith.constant 0.000000e+00 : f32
    %27 = vector.broadcast %cst_19 : f32 to vector<16x32xf32>
    %28 = arith.maximumf %26, %27 : vector<16x32xf32>
    %cst_20 = arith.constant 9.99999974E-6 : f32
    %29 = vector.broadcast %cst_20 : f32 to vector<16x32xf32>
    %30 = arith.addf %28, %29 : vector<16x32xf32>
    %31 = math.rsqrt %30 : vector<16x32xf32>
    %32 = vector.broadcast %9 : vector<16x1xf32> to vector<16x32xf32>
    %33 = arith.mulf %31, %32 : vector<16x32xf32>
    %34 = arith.mulf %23, %33 : vector<16x32xf32>
    %35 = vector.broadcast %10 : vector<16x1xf32> to vector<16x32xf32>
    %36 = arith.subf %35, %34 : vector<16x32xf32>
    %cst_21 = arith.constant dense<0.000000e+00> : vector<16x512xf32>
    %37 = tpu.matmul %33, %4, %cst_21 {dimension_numbers = #tpu.dot_dimension_numbers<[1], [0], [0], [1], [0, 0, 1, 1], [], []>, precision = #tpu.contract_precision<fp32>} : vector<16x32xf32>, vector<32x512xf32>, vector<16x512xf32> -> vector<16x512xf32>
    %38 = arith.mulf %19, %37 : vector<16x512xf32>
    %cst_22 = arith.constant dense<0.000000e+00> : vector<16x512xf32>
    %39 = tpu.matmul %36, %4, %cst_22 {dimension_numbers = #tpu.dot_dimension_numbers<[1], [0], [0], [1], [0, 0, 1, 1], [], []>, precision = #tpu.contract_precision<fp32>} : vector<16x32xf32>, vector<32x512xf32>, vector<16x512xf32> -> vector<16x512xf32>
    %40 = arith.addf %38, %39 : vector<16x512xf32>
    %cst_23 = arith.constant 2.000000e+01 : f32
    %41 = vector.broadcast %cst_23 : f32 to vector<16x512xf32>
    %42 = arith.minimumf %40, %41 : vector<16x512xf32>
    %43 = math.exp %42 : vector<16x512xf32>
    %cst_24 = arith.constant 2.000000e+00 : f32
    %44 = vector.broadcast %cst_24 : f32 to vector<16x512xf32>
    %45 = arith.addf %43, %44 : vector<16x512xf32>
    %46 = arith.mulf %43, %45 : vector<16x512xf32>
    %cst_25 = arith.constant 2.000000e+01 : f32
    %47 = vector.broadcast %cst_25 : f32 to vector<16x512xf32>
    %48 = arith.cmpf ogt, %40, %47 : vector<16x512xf32>
    %49 = arith.mulf %40, %46 : vector<16x512xf32>
    %cst_26 = arith.constant 2.000000e+00 : f32
    %50 = vector.broadcast %cst_26 : f32 to vector<16x512xf32>
    %51 = arith.addf %46, %50 : vector<16x512xf32>
    %52 = arith.divf %49, %51 : vector<16x512xf32>
    %53 = arith.select %48, %40, %52 : vector<16x512xi1>, vector<16x512xf32>
    %cst_27 = arith.constant 2.000000e+01 : f32
    %54 = vector.broadcast %cst_27 : f32 to vector<32x32xf32>
    %55 = arith.minimumf %3, %54 : vector<32x32xf32>
    %56 = math.exp %55 : vector<32x32xf32>
    %cst_28 = arith.constant 2.000000e+00 : f32
    %57 = vector.broadcast %cst_28 : f32 to vector<32x32xf32>
    %58 = arith.addf %56, %57 : vector<32x32xf32>
    %59 = arith.mulf %56, %58 : vector<32x32xf32>
    %cst_29 = arith.constant 2.000000e+01 : f32
    %60 = vector.broadcast %cst_29 : f32 to vector<32x32xf32>
    %61 = arith.cmpf ogt, %3, %60 : vector<32x32xf32>
    %62 = arith.mulf %3, %59 : vector<32x32xf32>
    %cst_30 = arith.constant 2.000000e+00 : f32
    %63 = vector.broadcast %cst_30 : f32 to vector<32x32xf32>
    %64 = arith.addf %59, %63 : vector<32x32xf32>
    %65 = arith.divf %62, %64 : vector<32x32xf32>
    %66 = arith.select %61, %3, %65 : vector<32x32xi1>, vector<32x32xf32>
    %c0_31 = arith.constant 0 : index
    %c0_32 = arith.constant 0 : index
    %67 = vector.load %arg5[%c0_31, %c0_32] : memref<16x32xf32, #tpu.memory_space<vmem>>, vector<16x32xf32>
    %cst_33 = arith.constant dense<0.000000e+00> : vector<16x32xf32>
    %68 = tpu.matmul %67, %66, %cst_33 {dimension_numbers = #tpu.dot_dimension_numbers<[1], [0], [0], [1], [0, 0, 1, 1], [], []>, precision = #tpu.contract_precision<fp32>} : vector<16x32xf32>, vector<32x32xf32>, vector<16x32xf32> -> vector<16x32xf32>
    %69 = vector.broadcast %14 : vector<16x1xf32> to vector<16x32xf32>
    %70 = arith.addf %68, %69 : vector<16x32xf32>
    %cst_34 = arith.constant dense<0.000000e+00> : vector<16x512xf32>
    %71 = tpu.matmul %70, %4, %cst_34 {dimension_numbers = #tpu.dot_dimension_numbers<[1], [0], [0], [1], [0, 0, 1, 1], [], []>, precision = #tpu.contract_precision<fp32>} : vector<16x32xf32>, vector<32x512xf32>, vector<16x512xf32> -> vector<16x512xf32>
    %72 = arith.addf %53, %71 : vector<16x512xf32>
    %73 = vector.extract_strided_slice %72 {offsets = [0, 510], sizes = [16, 2], strides = [1, 1]} : vector<16x512xf32> to vector<16x2xf32>
    %74 = vector.extract_strided_slice %72 {offsets = [0, 0], sizes = [16, 510], strides = [1, 1]} : vector<16x512xf32> to vector<16x510xf32>
    %75 = tpu.concatenate %73, %74 in 1 : vector<16x2xf32>, vector<16x510xf32> -> vector<16x512xf32>
    %76 = vector.extract_strided_slice %5 {offsets = [0, 0], sizes = [1, 512], strides = [1, 1]} : vector<5x512xf32> to vector<1x512xf32>
    %77 = vector.broadcast %76 : vector<1x512xf32> to vector<16x512xf32>
    %78 = arith.mulf %75, %77 : vector<16x512xf32>
    %79 = vector.extract_strided_slice %72 {offsets = [0, 511], sizes = [16, 1], strides = [1, 1]} : vector<16x512xf32> to vector<16x1xf32>
    %80 = vector.extract_strided_slice %72 {offsets = [0, 0], sizes = [16, 511], strides = [1, 1]} : vector<16x512xf32> to vector<16x511xf32>
    %81 = tpu.concatenate %79, %80 in 1 : vector<16x1xf32>, vector<16x511xf32> -> vector<16x512xf32>
    %82 = vector.extract_strided_slice %5 {offsets = [1, 0], sizes = [1, 512], strides = [1, 1]} : vector<5x512xf32> to vector<1x512xf32>
    %83 = vector.broadcast %82 : vector<1x512xf32> to vector<16x512xf32>
    %84 = arith.mulf %81, %83 : vector<16x512xf32>
    %85 = vector.extract_strided_slice %72 {offsets = [0, 1], sizes = [16, 511], strides = [1, 1]} : vector<16x512xf32> to vector<16x511xf32>
    %86 = vector.extract_strided_slice %72 {offsets = [0, 0], sizes = [16, 1], strides = [1, 1]} : vector<16x512xf32> to vector<16x1xf32>
    %87 = tpu.concatenate %85, %86 in 1 : vector<16x511xf32>, vector<16x1xf32> -> vector<16x512xf32>
    %88 = vector.extract_strided_slice %5 {offsets = [3, 0], sizes = [1, 512], strides = [1, 1]} : vector<5x512xf32> to vector<1x512xf32>
    %89 = vector.broadcast %88 : vector<1x512xf32> to vector<16x512xf32>
    %90 = arith.mulf %87, %89 : vector<16x512xf32>
    %91 = vector.extract_strided_slice %72 {offsets = [0, 2], sizes = [16, 510], strides = [1, 1]} : vector<16x512xf32> to vector<16x510xf32>
    %92 = vector.extract_strided_slice %72 {offsets = [0, 0], sizes = [16, 2], strides = [1, 1]} : vector<16x512xf32> to vector<16x2xf32>
    %93 = tpu.concatenate %91, %92 in 1 : vector<16x510xf32>, vector<16x2xf32> -> vector<16x512xf32>
    %94 = vector.extract_strided_slice %5 {offsets = [4, 0], sizes = [1, 512], strides = [1, 1]} : vector<5x512xf32> to vector<1x512xf32>
    %95 = vector.broadcast %94 : vector<1x512xf32> to vector<16x512xf32>
    %96 = arith.mulf %93, %95 : vector<16x512xf32>
    %97 = tpu.concatenate %78, %84, %72, %90, %96 in 0 : vector<16x512xf32>, vector<16x512xf32>, vector<16x512xf32>, vector<16x512xf32>, vector<16x512xf32> -> vector<80x512xf32>
    %c0_35 = arith.constant 0 : index
    %c0_36 = arith.constant 0 : index
    %98 = vector.load %arg4[%c0_35, %c0_36] : memref<16x80xf32, #tpu.memory_space<vmem>>, vector<16x80xf32>
    %cst_37 = arith.constant dense<0.000000e+00> : vector<16x512xf32>
    %99 = tpu.matmul %98, %97, %cst_37 {dimension_numbers = #tpu.dot_dimension_numbers<[1], [0], [0], [1], [0, 0, 1, 1], [], []>, precision = #tpu.contract_precision<fp32>} : vector<16x80xf32>, vector<80x512xf32>, vector<16x512xf32> -> vector<16x512xf32>
    %100 = vector.broadcast %11 : vector<16x1xf32> to vector<16x512xf32>
    %101 = arith.addf %99, %100 : vector<16x512xf32>
    %cst_38 = arith.constant dense<0.000000e+00> : vector<16x32xf32>
    %102 = tpu.matmul %101, %4, %cst_38 {dimension_numbers = #tpu.dot_dimension_numbers<[1], [1], [0], [0], [0, 0, 1, 0], [], []>, precision = #tpu.contract_precision<fp32>} : vector<16x512xf32>, vector<32x512xf32>, vector<16x32xf32> -> vector<16x32xf32>
    %103 = arith.mulf %101, %101 : vector<16x512xf32>
    %cst_39 = arith.constant dense<0.000000e+00> : vector<16x32xf32>
    %104 = tpu.matmul %103, %4, %cst_39 {dimension_numbers = #tpu.dot_dimension_numbers<[1], [1], [0], [0], [0, 0, 1, 0], [], []>, precision = #tpu.contract_precision<fp32>} : vector<16x512xf32>, vector<32x512xf32>, vector<16x32xf32> -> vector<16x32xf32>
    %cst_40 = arith.constant dense<0.000000e+00> : vector<16x32xf32>
    %105 = tpu.matmul %6, %102, %cst_40 {dimension_numbers = #tpu.dot_dimension_numbers<[1], [0], [0], [1], [0, 0, 1, 1], [], []>, precision = #tpu.contract_precision<fp32>} : vector<16x16xf32>, vector<16x32xf32>, vector<16x32xf32> -> vector<16x32xf32>
    %cst_41 = arith.constant dense<0.000000e+00> : vector<16x32xf32>
    %106 = tpu.matmul %6, %104, %cst_41 {dimension_numbers = #tpu.dot_dimension_numbers<[1], [0], [0], [1], [0, 0, 1, 1], [], []>, precision = #tpu.contract_precision<fp32>} : vector<16x16xf32>, vector<16x32xf32>, vector<16x32xf32> -> vector<16x32xf32>
    %107 = arith.mulf %105, %105 : vector<16x32xf32>
    %108 = arith.subf %106, %107 : vector<16x32xf32>
    %cst_42 = arith.constant 0.000000e+00 : f32
    %109 = vector.broadcast %cst_42 : f32 to vector<16x32xf32>
    %110 = arith.maximumf %108, %109 : vector<16x32xf32>
    %cst_43 = arith.constant 9.99999974E-6 : f32
    %111 = vector.broadcast %cst_43 : f32 to vector<16x32xf32>
    %112 = arith.addf %110, %111 : vector<16x32xf32>
    %113 = math.rsqrt %112 : vector<16x32xf32>
    %114 = vector.broadcast %12 : vector<16x1xf32> to vector<16x32xf32>
    %115 = arith.mulf %113, %114 : vector<16x32xf32>
    %116 = arith.mulf %105, %115 : vector<16x32xf32>
    %117 = vector.broadcast %13 : vector<16x1xf32> to vector<16x32xf32>
    %118 = arith.subf %117, %116 : vector<16x32xf32>
    %cst_44 = arith.constant dense<0.000000e+00> : vector<16x512xf32>
    %119 = tpu.matmul %115, %4, %cst_44 {dimension_numbers = #tpu.dot_dimension_numbers<[1], [0], [0], [1], [0, 0, 1, 1], [], []>, precision = #tpu.contract_precision<fp32>} : vector<16x32xf32>, vector<32x512xf32>, vector<16x512xf32> -> vector<16x512xf32>
    %120 = arith.mulf %101, %119 : vector<16x512xf32>
    %cst_45 = arith.constant dense<0.000000e+00> : vector<16x512xf32>
    %121 = tpu.matmul %118, %4, %cst_45 {dimension_numbers = #tpu.dot_dimension_numbers<[1], [0], [0], [1], [0, 0, 1, 1], [], []>, precision = #tpu.contract_precision<fp32>} : vector<16x32xf32>, vector<32x512xf32>, vector<16x512xf32> -> vector<16x512xf32>
    %122 = arith.addf %120, %121 : vector<16x512xf32>
    %cst_46 = arith.constant 2.000000e+01 : f32
    %123 = vector.broadcast %cst_46 : f32 to vector<16x512xf32>
    %124 = arith.minimumf %122, %123 : vector<16x512xf32>
    %125 = math.exp %124 : vector<16x512xf32>
    %cst_47 = arith.constant 2.000000e+00 : f32
    %126 = vector.broadcast %cst_47 : f32 to vector<16x512xf32>
    %127 = arith.addf %125, %126 : vector<16x512xf32>
    %128 = arith.mulf %125, %127 : vector<16x512xf32>
    %cst_48 = arith.constant 2.000000e+01 : f32
    %129 = vector.broadcast %cst_48 : f32 to vector<16x512xf32>
    %130 = arith.cmpf ogt, %122, %129 : vector<16x512xf32>
    %131 = arith.mulf %122, %128 : vector<16x512xf32>
    %cst_49 = arith.constant 2.000000e+00 : f32
    %132 = vector.broadcast %cst_49 : f32 to vector<16x512xf32>
    %133 = arith.addf %128, %132 : vector<16x512xf32>
    %134 = arith.divf %131, %133 : vector<16x512xf32>
    %135 = arith.select %130, %122, %134 : vector<16x512xi1>, vector<16x512xf32>
    %136 = vector.extract_strided_slice %1 {offsets = [16, 0], sizes = [8, 512], strides = [1, 1]} : vector<40x512xf32> to vector<8x512xf32>
    %c0_50 = arith.constant 0 : index
    %c0_51 = arith.constant 0 : index
    %137 = vector.load %arg6[%c0_50, %c0_51] : memref<16x8xf32, #tpu.memory_space<vmem>>, vector<16x8xf32>
    %cst_52 = arith.constant dense<0.000000e+00> : vector<16x512xf32>
    %138 = tpu.matmul %137, %136, %cst_52 {dimension_numbers = #tpu.dot_dimension_numbers<[1], [0], [0], [1], [0, 0, 1, 1], [], []>, precision = #tpu.contract_precision<fp32>} : vector<16x8xf32>, vector<8x512xf32>, vector<16x512xf32> -> vector<16x512xf32>
    %139 = vector.broadcast %15 : vector<16x1xf32> to vector<16x512xf32>
    %140 = arith.addf %138, %139 : vector<16x512xf32>
    %141 = arith.addf %135, %140 : vector<16x512xf32>
    %c0_53 = arith.constant 0 : index
    %c0_54 = arith.constant 0 : index
    %c0_55 = arith.constant 0 : index
    %142 = vector.load %arg11[%c0_53, %c0_54, %c0_55] : memref<1x16x512xf32, #tpu.memory_space<vmem>>, vector<1x16x512xf32>
    %143 = vector.shape_cast %142 : vector<1x16x512xf32> to vector<16x512xf32>
    %144 = vector.shape_cast %141 : vector<16x512xf32> to vector<1x16x512xf32>
    tpu.vector_store %arg11[%c0_53, %c0_54, %c0_55], %144 {strides = array<i32>} : memref<1x16x512xf32, #tpu.memory_space<vmem>>, vector<1x16x512xf32>,
    return
  }
  func.func @transform_0(%arg0: i32) -> (i32, i32, i32) {
    %c0_i32 = arith.constant 0 : i32
    %c0_i32_0 = arith.constant 0 : i32
    %c0_i32_1 = arith.constant 0 : i32
    return %arg0, %c0_i32, %c0_i32_0 : i32, i32, i32
  }
  func.func @transform_1(%arg0: i32) -> (i32, i32, i32) {
    %c0_i32 = arith.constant 0 : i32
    %c0_i32_0 = arith.constant 0 : i32
    %c0_i32_1 = arith.constant 0 : i32
    return %arg0, %c0_i32, %c0_i32_0 : i32, i32, i32
  }
  func.func @transform_2(%arg0: i32) -> (i32, i32) {
    %c0_i32 = arith.constant 0 : i32
    %c0_i32_0 = arith.constant 0 : i32
    %c0_i32_1 = arith.constant 0 : i32
    return %c0_i32, %c0_i32_0 : i32, i32
  }
  func.func @transform_3(%arg0: i32) -> (i32, i32) {
    %c0_i32 = arith.constant 0 : i32
    %c0_i32_0 = arith.constant 0 : i32
    %c0_i32_1 = arith.constant 0 : i32
    return %c0_i32, %c0_i32_0 : i32, i32
  }
  func.func @transform_4(%arg0: i32) -> (i32, i32) {
    %c0_i32 = arith.constant 0 : i32
    %c0_i32_0 = arith.constant 0 : i32
    %c0_i32_1 = arith.constant 0 : i32
    return %c0_i32, %c0_i32_0 : i32, i32
  }
  func.func @transform_5(%arg0: i32) -> (i32, i32) {
    %c0_i32 = arith.constant 0 : i32
    %c0_i32_0 = arith.constant 0 : i32
    %c0_i32_1 = arith.constant 0 : i32
    return %c0_i32, %c0_i32_0 : i32, i32
  }
  func.func @transform_6(%arg0: i32) -> (i32, i32) {
    %c0_i32 = arith.constant 0 : i32
    %c0_i32_0 = arith.constant 0 : i32
    %c0_i32_1 = arith.constant 0 : i32
    return %c0_i32, %c0_i32_0 : i32, i32
  }
  func.func @transform_7(%arg0: i32) -> (i32, i32) {
    %c0_i32 = arith.constant 0 : i32
    %c0_i32_0 = arith.constant 0 : i32
    %c0_i32_1 = arith.constant 0 : i32
    return %c0_i32, %c0_i32_0 : i32, i32
  }
  func.func @transform_8(%arg0: i32) -> (i32, i32) {
    %c0_i32 = arith.constant 0 : i32
    %c0_i32_0 = arith.constant 0 : i32
    %c0_i32_1 = arith.constant 0 : i32
    return %c0_i32, %c0_i32_0 : i32, i32
  }
  func.func @transform_9(%arg0: i32) -> (i32, i32) {
    %c0_i32 = arith.constant 0 : i32
    %c0_i32_0 = arith.constant 0 : i32
    %c0_i32_1 = arith.constant 0 : i32
    return %c0_i32, %c0_i32_0 : i32, i32
  }
  func.func @transform_10(%arg0: i32) -> (i32, i32, i32) {
    %c0_i32 = arith.constant 0 : i32
    %c0_i32_0 = arith.constant 0 : i32
    %c0_i32_1 = arith.constant 0 : i32
    return %arg0, %c0_i32, %c0_i32_0 : i32, i32, i32
  }
}

</mosaic_0001>

<bundles_post_ra>
// kernel: tpu_custom_call.1
= control target key start
LH: loop header
LB: loop body
LE: loop exit
PB: predicated region body
PF: predicated region fallthrough
CT: control target
= control target key end

     0   :  { %s23692_s0 = inlined_call_operand.hbm [shape: f32[2,40,512], index: 0, kind: input, shape index: {}]   ;;  %s23693_s1 = inlined_call_operand.hbm [shape: f32[2,32,32], index: 1, kind: input, shape index: {}]   ;;  %s23694_s2 = inlined_call_operand.vmem [shape: f32[16,40], index: 2, kind: input, shape index: {}]   ;;  %s23695_s3 = inlined_call_operand.vmem [shape: f32[16,80], index: 3, kind: input, shape index: {}]   ;;  %s23696_s4 = inlined_call_operand.hbm [shape: f32[16,32], index: 4, kind: input, shape index: {}]   ;;  %s23697_s5 = inlined_call_operand.vmem [shape: f32[16,8], index: 5, kind: input, shape index: {}]   ;;  %s23698_s6 = inlined_call_operand.vmem [shape: f32[16,8], index: 6, kind: input, shape index: {}]   ;;  %s23699_s7 = inlined_call_operand.hbm [shape: f32[16,16], index: 7, kind: input, shape index: {}]   ;;  %s23700_s8 = inlined_call_operand.hbm [shape: f32[32,512], index: 8, kind: input, shape index: {}]   ;;  %s23701_s9 = inlined_call_operand.vmem [shape: f32[5,512], index: 9, kind: input, shape index: {}]   ;;  %s23702_s10 = inlined_call_operand.hbm [shape: f32[2,16,512], index: 10, kind: output, shape index: {}]  }
   0x1   :  { %24048 = sst [smem:[#allocation160_spill]] %s23692_s0 }
   0x2   :  { %24049 = sst [smem:[#allocation161_spill]] %s23696_s4 }
   0x3   :  { %24050 = sst [smem:[#allocation162_spill]] %s23699_s7 }
   0x4   :  { %24051 = sst [smem:[#allocation163_spill]] %s23700_s8 }
   0x5   :  { %15 = vsyncpa [#allocation3], 0 }
   0x6   :  { %17 = vsyncpa [#allocation3 + $0x1], 0 }
   0x7   :  { %18 = vsyncpa [#allocation6], 0 }
   0x8   :  { %20 = vsyncpa [#allocation6 + $0x1], 0 }
   0x9   :  { %21 = vsyncpa [#allocation9], 0 }
   0xa   :  { %22 = vsyncpa [#allocation4], 0 }
   0xb   :  { %24 = vsyncpa [#allocation4 + $0x1], 0  ;;  %s19314_s13 = smov 0   ;;  %s19316_s14 = smov 0  }
   0xc   :  { %s19318_s15 = smov 0   ;;  %s19320_s16 = smov 0  }
   0xd LB: > { %24052 = sst [smem:[#allocation17_spill]] %s19228_s15  ;;  %s19335_s17 = sadd.s32 4294967295, %s19232_s16   ;;  %s19232_s16 = sphi %s19320_s16, %s24699_s16   ;;  %s19228_s15 = sphi %s19318_s15, %s24701_s15   ;;  %s19224_s14 = sphi %s19316_s14, %s24703_s14   ;;  %s19220_s13 = sphi %s19314_s13, %s24702_s13  }
   0xe   : > { %s18418_s18 = sadd.s32 4294967294, %s19232_s16   ;;  %p50_p0 = scmp.ne.s32.totalorder %s19224_s14, %s19220_s13 }
   0xf   : > { %p23703_p1 = scmp.eq.s32.totalorder %s19335_s17, 0  ;;  %p268_p2 = scmp.eq.s32.totalorder %s19335_s17, 1 }
  0x10   : > { %p274_p3 = scmp.eq.s32.totalorder %s18418_s18, 1  ;;  %p18419_p5 = scmp.ge.s32.totalorder %s19232_s16, 1 }
  0x11   : > { %p19344_p4 = por %p23703_p1, %p50_p0  ;;  %p281_p7 = scmp.lt.s32.totalorder %s19232_s16, 3 }
  0x12   : > { %p19349_p6 = por %p274_p3, %p50_p0  ;;  %s19234_s22 = smov [#allocation7]  }
  0x13   : > { %s24053_s19 = scalar_select %p19344_p4, 1, 0 }
  0x14   : > { %s24054_s20 = scalar_select %p19349_p6, 1, 0 }
  0x15   : > { %p19354_p8 = pnand %p18419_p5, %p281_p7  ;;  %s299_s23 = sshll.u32 %s19234_s22, 4  ;;  %s300_s23 = int_to_ptr.vmem [resolvable:$true] %s299_s23 }
  0x16   : > { %24055 = sst [smem:[#allocation18_spill]] %s24054_s20  ;;  %s19235_s25 = smov [#allocation8]  }
  0x17   : > { %p18828_p9 = pneg %p19354_p8  ;;  %s318_s26 = sshll.u32 %s19235_s25, 4  ;;  %s319_s26 = int_to_ptr.vmem [resolvable:$true] %s318_s26 }
  0x18   : > { %s19236_s27 = smov [#allocation10]   ;;  %s19033_s29 = scalar_lea.vmem %s300_s23, 256 }
  0x19   : > { %p19363_p11 = pnand %p18828_p9, %p23703_p1  ;;  %s331_s28 = sshll.u32 %s19236_s27, 4  ;;  %s332_s28 = int_to_ptr.vmem [resolvable:$true] %s331_s28 }
  0x1a   : > { %p19034_p13 = scmp.ne.s32.totalorder %s300_s23, %s19033_s29  ;;  %p19041_p5 = scmp.lt.s32.totalorder %s300_s23, %s300_s23 }
  0x1b   : > { %p19024_p12 = pneg %p19363_p11  ;;  %p19042_p7 = scmp.lt.s32.totalorder %s19033_s29, %s19033_s29 }
  0x1d   : > { %p19036_p0 = pnand %p19034_p13, %p19024_p12  ;;  %p19043_p9 = por %p19042_p7, %p19041_p5 }
  0x1f   : > { %p19037_p3 = pneg %p19036_p0 }
  0x21   : > { %p19044_p10 = pnand %p19043_p9, %p19037_p3 }
  0x23   : > { %19047 = shalt.err (!%p19044_p10)
}
  0x24   : > { %s23704_s30 = smov 128   ;;  %s23705_s11 = smov 8  }
  0x25   : > { %s24058_s4 = sld [smem:[#allocation161_spill]]  ;;  %s19059_s22 = scalar_lea.vmem %s319_s26, 256 }
  0x26   : > { %p19060_p13 = scmp.ne.s32.totalorder %s319_s26, %s19059_s22  ;;  %p19067_p3 = scmp.lt.s32.totalorder %s319_s26, %s319_s26 }
  0x27   : > { %p19068_p10 = scmp.lt.s32.totalorder %s19059_s22, %s19059_s22 }
  0x28   : > { %p19062_p0 = pnand %p19060_p13, %p19024_p12 }
  0x29   : > { %p19069_p7 = por %p19068_p10, %p19067_p3 }
  0x2a   : > { %p19063_p5 = pneg %p19062_p0 }
  0x2b   : > { %18831 = dma.hbm_to_vmem [thread:$0]  (!%p19363_p11), %s24058_s4, 256, %s300_s23, [#allocation6], %s23704_s30, %s23704_s30, %s23705_s11  }
  0x2c   : > { %p19070_p9 = pnand %p19069_p7, %p19063_p5 }
  0x2e   : > { %19073 = shalt.err (!%p19070_p9)
}
  0x2f   : > { %s24059_s7 = sld [smem:[#allocation162_spill]]  ;;  %s19085_s23 = scalar_lea.vmem %s332_s28, 2048 }
  0x30   : > { %p19086_p1 = scmp.ne.s32.totalorder %s332_s28, %s19085_s23  ;;  %p19093_p3 = scmp.lt.s32.totalorder %s332_s28, %s332_s28 }
  0x31   : > { %p19094_p5 = scmp.lt.s32.totalorder %s19085_s23, %s19085_s23 }
  0x32   : > { %p19088_p13 = pnand %p19086_p1, %p19024_p12 }
  0x33   : > { %p19095_p10 = por %p19094_p5, %p19093_p3 }
  0x34   : > { %p19089_p0 = pneg %p19088_p13 }
  0x35   : > { %18834 = dma.hbm_to_vmem [thread:$0]  (!%p19363_p11), %s24059_s7, 256, %s319_s26, [#allocation9], %s23704_s30, %s23704_s30, %s23705_s11  }
  0x36   : > { %p19096_p7 = pnand %p19095_p10, %p19089_p0 }
  0x38   : > { %19099 = shalt.err (!%p19096_p7)
}
  0x39   : > { %s23706_s29 = smov 512   ;;  %s23707_s26 = smov 32  }
  0x3a   : > { %s24060_s8 = sld [smem:[#allocation163_spill]]  ;;  %s19403_s22 = sadd.s32 1, %s19232_s16  }
  0x3b   : > { %24061 = sst [smem:[#allocation19_spill]] %s19403_s22  ;;  %s34_s25 = ssub.s32 %s19232_s16, %s19403_s22 }
  0x3c   : > { %s37_s27 = sadd.s32 1, %s19228_s15  ;;  %p35_p1 = scmp.eq.s32.totalorder %s34_s25, 0 }
  0x3d   : > { %p44_p12 = scmp.ne.s32.totalorder %s19228_s15, %s19224_s14  ;;  %p45_p9 = scmp.eq.s32.totalorder %s19232_s16, 0 }
  0x3e   : > { %p18852_p13 = scmp.lt.s32.totalorder %s19232_s16, 2  ;;  %s19422_s12 = sand.u32 1, %s19228_s15  }
  0x3f   : > { %s19413_s23 = scalar_select %p35_p1, %s19228_s15, %s37_s27  }
  0x40   : > { %18837 = dma.hbm_to_vmem [thread:$0]  (!%p19363_p11), %s24060_s8, 2048, %s332_s28, [#allocation9], %s23706_s29, %s23706_s29, %s23707_s26  }
  0x41   : > { %24062 = sst [smem:[#allocation20_spill]] %s19413_s23  ;;  %p46_p0 = por %p45_p9, %p44_p12 }
  0x42   : > { %p19417_p3 = por %p268_p2, %p44_p12  ;;  %s18808_s28 = smul.u32 2560, %s19232_s16 }
  0x43   : > { %s18807_s18 = smul.u32 160, %s19422_s12  ;;  %s24064_s0 = sld [smem:[#allocation160_spill]] }
  0x44   : > { %s24063_s24 = scalar_select %p19417_p3, 1, 0 }
  0x45   : > { %p19431_p11 = pnand %p18852_p13, %p46_p0  ;;  %s352_s26 = scalar_lea.vmem [#allocation2], %s18807_s18 }
  0x46   : > { %s359_s4 = sshll.u32 %s352_s26, 4  ;;  %s349_s7 = scalar_lea.sflag [#allocation3], %s19422_s12  ;;  %s19436_s4 = int_to_ptr.vmem [resolvable:$true] %s359_s4 }
  0x47   : > { %p19102_p5 = pneg %p19431_p11 }
  0x49   : > { %s19429_s25 = scalar_lea.hbm %s24064_s0, %s18808_s28  ;;  %s19105_s28 = scalar_lea.hbm %s24064_s0, 5120 }
  0x4a   : > { %s19100_s8 = scalar_lea.hbm %s19429_s25, 2560  ;;  %p19106_p1 = scmp.lt.s32.totalorder %s19429_s25, %s24064_s0 }
  0x4b   : > { %p19101_p2 = scmp.ne.s32.totalorder %s19429_s25, %s19100_s8  ;;  %p19107_p12 = scmp.lt.s32.totalorder %s19105_s28, %s19100_s8 }
  0x4d   : > { %p19103_p10 = pnand %p19102_p5, %p19101_p2  ;;  %p19108_p9 = por %p19107_p12, %p19106_p1 }
  0x4f   : > { %p19104_p7 = pneg %p19103_p10 }
  0x51   : > { %p19109_p13 = pnand %p19108_p9, %p19104_p7 }
  0x53   : > { %19112 = shalt.err (!%p19109_p13)
}
  0x54   : > { %s19113_s26 = scalar_lea.vmem %s19436_s4, 2560  ;;  %s19241_s18 = smov [#allocation2]  }
  0x55   : > { %p19114_p0 = scmp.ne.s32.totalorder %s19436_s4, %s19113_s26  ;;  %s19118_s30 = sshll.u32 %s19241_s18, 4  ;;  %s19119_s30 = int_to_ptr.vmem [resolvable:$false] %s19118_s30 }
  0x56   : > { %s19120_s11 = scalar_lea.vmem %s19119_s30, 5120  ;;  %p19121_p6 = scmp.lt.s32.totalorder %s19436_s4, %s19119_s30 }
  0x57   : > { %p19116_p2 = pnand %p19114_p0, %p19102_p5  ;;  %p19122_p3 = scmp.lt.s32.totalorder %s19120_s11, %s19113_s26 }
  0x59   : > { %p19117_p10 = pneg %p19116_p2  ;;  %p19123_p4 = por %p19122_p3, %p19121_p6 }
  0x5b   : > { %p19124_p1 = pnand %p19123_p4, %p19117_p10 }
  0x5d   : > { %19127 = shalt.err (!%p19124_p1)
}
  0x5e   : > { %s24066_s8 = smov 32   ;;  %s24067_s15 = smov 512  }
  0x5f   : > { %18841 = dma.hbm_to_vmem [thread:$0]  (!%p19431_p11), %s19429_s25, 2560, %s19436_s4, %s349_s7, %s24067_s15, %s24067_s15, %s24066_s8  }
  0x60   : > { %s18425_s23 = sshll.u32 %s19422_s12, 5  ;;  %s18439_s28 = sshll.u32 %s19232_s16, 9 }
  0x61   : > { %s19473_s30 = scalar_lea.hbm %s23693_s1, %s18439_s28  ;;  %s373_s11 = scalar_lea.vmem [#allocation5], %s18425_s23 }
  0x62   : > { %s380_s29 = sshll.u32 %s373_s11, 4  ;;  %s24068_s0 = sand.u32 1, %s19232_s16   ;;  %s19475_s29 = int_to_ptr.vmem [resolvable:$true] %s380_s29 }
  0x63   : > { %s370_s22 = scalar_lea.sflag [#allocation6], %s24068_s0  ;;  %s19128_s20 = scalar_lea.hbm %s19473_s30, 512 }
  0x64   : > { %p19129_p4 = scmp.ne.s32.totalorder %s19473_s30, %s19128_s20  ;;  %s19133_s12 = scalar_lea.hbm %s23693_s1, 1024 }
  0x65   : > { %p19134_p7 = scmp.lt.s32.totalorder %s19473_s30, %s23693_s1  ;;  %p19135_p12 = scmp.lt.s32.totalorder %s19133_s12, %s19128_s20 }
  0x66   : > { %p19131_p6 = pnand %p19129_p4, %p19102_p5 }
  0x67   : > { %p19136_p9 = por %p19135_p12, %p19134_p7 }
  0x68   : > { %p19132_p3 = pneg %p19131_p6 }
  0x6a   : > { %p19137_p13 = pnand %p19136_p9, %p19132_p3 }
  0x6c   : > { %19140 = shalt.err (!%p19137_p13)
}
  0x6d   : > { %s19141_s0 = scalar_lea.vmem %s19475_s29, 512  ;;  %s19242_s15 = smov [#allocation5]  }
  0x6e   : > { %p19142_p0 = scmp.ne.s32.totalorder %s19475_s29, %s19141_s0  ;;  %s19146_s23 = sshll.u32 %s19242_s15, 4  ;;  %s19147_s23 = int_to_ptr.vmem [resolvable:$false] %s19146_s23 }
  0x6f   : > { %s19148_s28 = scalar_lea.vmem %s19147_s23, 1024  ;;  %p19149_p1 = scmp.lt.s32.totalorder %s19475_s29, %s19147_s23 }
  0x70   : > { %p19144_p2 = pnand %p19142_p0, %p19102_p5  ;;  %p19150_p4 = scmp.lt.s32.totalorder %s19148_s28, %s19141_s0 }
  0x72   : > { %p19145_p10 = pneg %p19144_p2  ;;  %p19151_p6 = por %p19150_p4, %p19149_p1 }
  0x74   : > { %p19152_p7 = pnand %p19151_p6, %p19145_p10 }
  0x76   : > { %19155 = shalt.err (!%p19152_p7)
}
  0x77   : > { %s24069_s20 = smov 8   ;;  %s24070_s26 = smov 128  }
  0x78   : > { %18844 = dma.hbm_to_vmem [thread:$0]  (!%p19431_p11), %s19473_s30, 512, %s19475_s29, %s370_s22, %s24070_s26, %s24070_s26, %s24069_s20  }
  0x79   : > { %392 = sbr.rel (%p19354_p8) target bundleno = 3114 (0xc2a), region = 60 }
  0x7e   : > { %s19507_s18 = sand.u32 1, %s19224_s14   ;;  %p24071_p5 = scmp.ne.s32.totalorder %s24053_s19, 0 }
  0x7f   : > { %s18809_s11 = smul.u32 160, %s19507_s18  ;;  %s395_s4 = scalar_lea.sflag [#allocation3], %s19507_s18 }
  0x81   : > { %s19511_s7 = scalar_lea.vmem [#allocation2], %s18809_s11 }
  0x82   : > { %19199 = dma.done.wait (%p24071_p5), %s395_s4, 2560  }
  0x83   : > { %19201 = vsyncadd (%p24071_p5), %s395_s4, 4294964736  ;;  %s403_s21 = sand.u32 1, %s19335_s17   ;;  %s18429_s29 = sshll.u32 %s19507_s18, 5 }
  0x84   : > { %s404_s22 = scalar_lea.sflag [#allocation6], %s403_s21  ;;  %s19519_s27 = scalar_lea.vmem [#allocation5], %s18429_s29 }
  0x85   : > { %19203 = dma.done.wait (%p24071_p5), %s404_s22, 512  }
  0x86   : > { %19205 = vsyncadd (%p24071_p5), %s404_s22, 4294966784  ;;  %p24072_p8 = scmp.eq.s32.totalorder %s19335_s17, 0 }
  0x88   : > { %19207 = dma.done.wait (%p24072_p8), [#allocation6], 256   ;;  %p24073_p11 = pmov %p24072_p8 }
  0x89   : > { %p24074_p3 = pmov %p24072_p8 }
  0x8a   : > { %19209 = vsyncadd (%p24073_p11), [#allocation6], 4294967040 }
  0x8b   : > { %19211 = dma.done.wait (%p24074_p3), [#allocation9], 2304   ;;  %p24075_p12 = pmov %p24074_p3 }
  0x8c   : > { %v23714_v0 = vmov 0.0   ;;  %v19244_v1 = vmov 0   ;;  %v478_v2 = vld [vmem:[%s19511_s7 + $0x88] sm:$0xff]  ;;  %v477_v3 = vld [vmem:[%s19511_s7 + $0x80] sm:$0xff]  ;;  %vm521_vm0 = vcmask 326656   ;;  %vm4196_vm1 = vcmask 130048  }
  0x8d   : > { %19213 = vsyncadd (%p24075_p12), [#allocation9], 4294964992  ;;  %602 = vmatprep.mubr.f32.mxu0 %v23714_v0  ;;  %739 = vmatprep.mubr.f32.mxu1 %v23714_v0  ;;  %v474_v4 = vld [vmem:[%s19511_s7 + $0x68] sm:$0xff]  ;;  %v19538_v5 = vand.u32 4294901760, %v478_v2  ;;  %v19540_v6 = vand.u32 4294901760, %v477_v3  ;;  %v473_v8 = vld [vmem:[%s19511_s7 + $0x60] sm:$0xff] }
  0x8e   : > { %18911 = vset.pattern.permute.xlu0 %v19244_v1  ;;  %v19542_v7 = vand.u32 4294901760, %v474_v4  ;;  %v470_v9 = vld [vmem:[%s19511_s7 + $0x48] sm:$0xff]  ;;  %v469_v10 = vld [vmem:[%s19511_s7 + $0x40] sm:$0xff]  ;;  %v19547_v11 = vand.u32 4294901760, %v473_v8  ;;  %vm5239_vm2 = vcmask 261120   ;;  %s19248_s22 = smov 126  }
  0x8f   : > { %v19549_v12 = vand.u32 4294901760, %v470_v9  ;;  %v19551_v13 = vand.u32 4294901760, %v469_v10  ;;  %v466_v14 = vld [vmem:[%s19511_s7 + $0x28] sm:$0xff]  ;;  %v465_v15 = vld [vmem:[%s19511_s7 + $0x20] sm:$0xff]  ;;  %551 = vmatprep.subr.mxu0 %v19538_v5  ;;  %v19564_v20 = vsub.f32 %v478_v2, %v19538_v5  ;;  %v19574_v24 = vsub.f32 %v477_v3, %v19540_v6  ;;  %s19250_s19 = smov 127   ;;  %s19251_s30 = smov 2  }
  0x90   : > { %v462_v16 = vld [vmem:[%s19511_s7 + $0x8] sm:$0xff]  ;;  %v19557_v17 = vand.u32 4294901760, %v466_v14  ;;  %v19559_v18 = vand.u32 4294901760, %v465_v15  ;;  %v461_v21 = vld [vmem:[%s19511_s7] sm:$0xff]  ;;  %553 = vmatpush1.msra.mxu0 %v19540_v6  ;;  %v19577_v25 = vsub.f32 %v474_v4, %v19542_v7  ;;  %v19585_v29 = vsub.f32 %v473_v8, %v19547_v11  ;;  %s18433_s4 = sshll.u32 %s19507_s18, 6  ;;  %s18440_s29 = sshll.u32 %s19335_s17, 10 }
  0x91   : > { %24076 = vst [vmem:[#allocation21_spill] sm:$0xff] %v19549_v12  ;;  %24077 = vst [vmem:[#allocation22_spill] sm:$0xff] %v19551_v13  ;;  %v19561_v19 = vand.u32 4294901760, %v462_v16  ;;  %v509_v22 = vld [vmem:[%s23694_s2] sm:$0xff]  ;;  %v19571_v23 = vand.u32 4294901760, %v461_v21  ;;  %555 = vmatprep.subr.mxu0 %v19542_v7  ;;  %v649_v27 = vand.u32 4294901760, %v19564_v20  ;;  %v19588_v30 = vsub.f32 %v470_v9, %v19549_v12  ;;  %s23647_s17 = scalar_lea.hbm %s23702_s10, %s18440_s29 }
  0x92   : > { %v523_v26 = vsel %vm521_vm0, %v509_v22, 0  ;;  %557 = vmatpush1.msra.mxu0 %v19547_v11  ;;  %v655_v31 = vand.u32 4294901760, %v19574_v24  ;;  %v661_v32 = vand.u32 4294901760, %v19577_v25  ;;  %v19594_v33 = vsub.f32 %v469_v10, %v19551_v13  ;;  %v507_v39 = vld [vmem:[%s23698_s6] sm:$0xff]  ;;  %v510_v48 = vld [vmem:[%s23694_s2 + $0x8] sm:$0xff]  ;;  %p24695_p13 = scmp.ne.s32.totalorder %s24063_s24, 0 }
  0x93   : > { %v19582_v28 = vand.u32 4294901760, %v523_v26  ;;  %24078 = vst [vmem:[#allocation23_spill] sm:$0xff] %v19588_v30  ;;  %v19597_v34 = vsub.f32 %v466_v14, %v19557_v17  ;;  %559 = vmatprep.subr.mxu0 %v19549_v12  ;;  %v650_v35 = vsub.f32 %v19564_v20, %v649_v27  ;;  %v667_v37 = vand.u32 4294901760, %v19585_v29  ;;  %513 = vperm.xlu0 %18911, %v507_v39   ;;  %v508_v57 = vld [vmem:[%s23698_s6 + $0x8] sm:$0xff]  ;;  %v480_v39 = vld [vmem:[%s19511_s7 + $0x98] sm:$0xff]  ;;  %s19256_s12 = smov [#allocation11]  }
  0x94   : > { %24079 = vst [vmem:[#allocation24_spill] sm:$0xff] %v19594_v33  ;;  %v19608_v38 = vand.u32 4294901760, %v19588_v30  ;;  %561 = vmatpush1.msra.mxu0 %v19551_v13  ;;  %v656_v40 = vsub.f32 %v19574_v24, %v655_v31  ;;  %v662_v41 = vsub.f32 %v19577_v25, %v661_v32  ;;  %v19621_v42 = vand.u32 4294901760, %v19594_v33  ;;  %s19160_s25 = sshll.u32 %s19256_s12, 4  ;;  %s19161_s25 = int_to_ptr.vmem [resolvable:$false] %s19160_s25 }
  0x95   : > { %v19604_v36 = vsub.f32 %v523_v26, %v19582_v28  ;;  %v685_v43 = vand.u32 4294901760, %v19597_v34  ;;  %563 = vmatprep.subr.mxu0 %v19557_v17  ;;  %v651_v44 = vand.u32 4294901760, %v650_v35  ;;  %v668_v46 = vsub.f32 %v19585_v29, %v667_v37  ;;  %s19162_s8 = scalar_lea.vmem %s19161_s25, 2048 }
  0x96   : > { %24080 = vst [vmem:[#allocation25_spill] sm:$0xff] %v19608_v38  ;;  %24081 = vst [vmem:[#allocation26_spill] sm:$0xff] %v19621_v42  ;;  %v674_v47 = vsub.f32 %v19588_v30, %v19608_v38  ;;  %565 = vmatpush1.msra.mxu0 %v19559_v18  ;;  %v657_v49 = vand.u32 4294901760, %v656_v40  ;;  %v663_v50 = vand.u32 4294901760, %v662_v41  ;;  %v680_v51 = vsub.f32 %v19594_v33, %v19621_v42  ;;  %v471_v40 = vld [vmem:[%s19511_s7 + $0x50] sm:$0xff] }
  0x97   : > { %v19626_v45 = vand.u32 4294901760, %v19604_v36  ;;  %v686_v52 = vsub.f32 %v19597_v34, %v685_v43  ;;  %567 = vmatprep.subr.mxu0 %v19561_v19  ;;  %652 = vmatprep.subr.mxu1 %v651_v44  ;;  %v669_v54 = vand.u32 4294901760, %v668_v46  ;;  %v19648_v56 = vsub.f32 %v465_v15, %v19559_v18  ;;  %v468_v44 = vld [vmem:[%s19511_s7 + $0x38] sm:$0xff]  ;;  %v467_v46 = vld [vmem:[%s19511_s7 + $0x30] sm:$0xff] }
  0x98   : > { %v19645_v55 = vand.u32 4294901760, %v674_v47  ;;  %569 = vmatpush1.msra.mxu0 %v19571_v23  ;;  %658 = vmatpush1.msra.mxu1 %v657_v49  ;;  %v19654_v58 = vand.u32 4294901760, %v680_v51  ;;  %v526_v60 = vsel %vm521_vm0, %v510_v48, 0  ;;  %v19658_v61 = vsub.f32 %v462_v16, %v19561_v19  ;;  %v464_v49 = vld [vmem:[%s19511_s7 + $0x18] sm:$0xff] }
  0x99   : > { %v606_v53 = vsub.f32 %v19604_v36, %v19626_v45  ;;  %v687_v59 = vand.u32 4294901760, %v686_v52  ;;  %664 = vmatprep.subr.mxu1 %v663_v50  ;;  %778 = vmatprep.subr.mxu0 %v19564_v20  ;;  %v691_v63 = vand.u32 4294901760, %v19648_v56  ;;  %v19664_v1 = vand.u32 4294901760, %v526_v60  ;;  %v479_v20 = vld [vmem:[%s19511_s7 + $0x90] sm:$0xff] }
  0x9a   : > { %24082 = vst [vmem:[#allocation27_spill] sm:$0xff] %v19645_v55  ;;  %24083 = vst [vmem:[#allocation28_spill] sm:$0xff] %v19654_v58  ;;  %v19667_v2 = vsub.f32 %v461_v21, %v19571_v23  ;;  %670 = vmatpush1.msra.mxu1 %v669_v54  ;;  %v697_v3 = vand.u32 4294901760, %v19658_v61  ;;  %518 = vperm.xlu0 %18911, %v508_v57   ;;  %v19771_v48 = vand.u32 4294901760, %v471_v40  ;;  %v19779_v50 = vand.u32 4294901760, %v468_v44  ;;  %v463_v52 = vld [vmem:[%s19511_s7 + $0x10] sm:$0xff] }
  0x9b   : > { %v19661_v62 = vand.u32 4294901760, %v606_v53  ;;  %676 = vmatprep.subr.mxu1 %v19645_v55  ;;  %v692_v4 = vsub.f32 %v19648_v56, %v691_v63  ;;  %v19676_v8 = vsub.f32 %v526_v60, %v19664_v1  ;;  %v19798_v57 = vand.u32 4294901760, %v463_v52 }
  0x9c   : > { %v703_v9 = vand.u32 4294901760, %v19667_v2  ;;  %682 = vmatpush1.msra.mxu1 %v19654_v58  ;;  %v698_v10 = vsub.f32 %v19658_v61, %v697_v3  ;;  %24085 = vst [vmem:[#allocation30_spill] sm:$0xff] %v19771_v48  ;;  %vm9711_vm15 = vcmask 1031168   ;;  %vm9652_vm0 = vcmask 1039360  }
  0x9d   : > { %608 = vmatmul.mubr.f32.vlgmr.msra.gmra.mxu0 %v19661_v62  ;;  %688 = vmatprep.subr.mxu1 %v687_v59  ;;  %v693_v14 = vand.u32 4294901760, %v692_v4  ;;  %v19686_v15 = vand.u32 4294901760, %v19676_v8  ;;  %v19801_v59 = vsub.f32 %v471_v40, %v19771_v48 }
  0x9e   : > { %781 = vmatpush1.msra.mxu0 %v19574_v24  ;;  %v704_v16 = vsub.f32 %v19667_v2, %v703_v9  ;;  %613 = vmatprep.mubr.f32.mxu0 %v23714_v0  ;;  %v699_v21 = vand.u32 4294901760, %v698_v10  ;;  %v476_v24 = vld [vmem:[%s19511_s7 + $0x78] sm:$0xff]  ;;  %v19834_v10 = vsub.f32 %v463_v52, %v19798_v57 }
  0x9f   : > { %784 = vmatprep.subr.mxu0 %v19577_v25  ;;  %694 = vmatpush1.msra.mxu1 %v693_v14  ;;  %v617_v22 = vsub.f32 %v19676_v8, %v19686_v15  ;;  %v19729_v25 = vand.u32 4294901760, %v480_v39  ;;  %24087 = vst [vmem:[#allocation32_spill] sm:$0xff] %v19801_v59  ;;  %v19837_v14 = vand.u32 4294901760, %v19801_v59 }
  0xa0   : > { %787 = vmatpush1.msra.mxu0 %v19585_v29  ;;  %v705_v26 = vand.u32 4294901760, %v704_v16  ;;  %700 = vmatprep.subr.mxu1 %v699_v21  ;;  %v475_v29 = vld [vmem:[%s19511_s7 + $0x70] sm:$0xff] }
  0xa1   : > { %790 = vmatprep.subr.mxu0 %v19588_v30  ;;  %v19697_v35 = vand.u32 4294901760, %v617_v22  ;;  %v19751_v41 = vsub.f32 %v480_v39, %v19729_v25  ;;  %24089 = vst [vmem:[#allocation34_spill] sm:$0xff] %v19837_v14 }
  0xa2   : > { %793 = vmatpush1.msra.mxu0 %v19594_v33  ;;  %706 = vmatpush1.msra.mxu1 %v705_v26 }
  0xa3   : > { %796 = vmatprep.subr.mxu0 %v19597_v34  ;;  %741 = vmatmul.mubr.f32.vlgmr.msra.gmra.mxu1 %v19582_v28  ;;  %v1267_v51 = vand.u32 4294901760, %v19751_v41 }
  0xa4   : > { %799 = vmatpush1.msra.mxu0 %v19648_v56  ;;  %878 = vmatprep.subr.mxu1 %v19538_v5 }
  0xa5   : > { %619 = vmatmul.mubr.f32.gmra.mxu0 %v19697_v35  ;;  %802 = vmatprep.subr.mxu0 %v19658_v61  ;;  %v19810_v61 = vsub.f32 %v468_v44, %v19779_v50 }
  0xa6   : > { %805 = vmatpush1.msra.mxu0 %v19667_v2  ;;  %838 = vmatprep.mubr.f32.mxu0 %v23714_v0 }
  0xa7   : > { %880 = vmatpush1.msra.mxu1 %v19540_v6  ;;  %973 = vmatprep.subr.mxu0 %v649_v27  ;;  %v19733_v27 = vand.u32 4294901760, %v479_v20  ;;  %v1303_v21 = vand.u32 4294901760, %v19810_v61 }
  0xa8   : > { %882 = vmatprep.subr.mxu1 %v19542_v7  ;;  %746 = vmatprep.mubr.f32.mxu1 %v23714_v0 }
  0xa9   : > { %841 = vmatmul.mubr.f32.vlgmr.msra.gmra.mxu0 %v19604_v36  ;;  %884 = vmatpush1.msra.mxu1 %v19547_v11  ;;  %v19757_v34 = vsub.f32 %v479_v20, %v19733_v27  ;;  %v1321_v20 = vand.u32 4294901760, %v19834_v10 }
  0xaa   : > { %977 = vmatpush1.msra.mxu0 %v655_v31  ;;  %886 = vmatprep.subr.mxu1 %v19549_v12  ;;  %v19738_v31 = vand.u32 4294901760, %v476_v24 }
  0xab   : > { %981 = vmatprep.subr.mxu0 %v661_v32  ;;  %748 = vmatmul.mubr.f32.gmra.mxu1 %v19664_v1  ;;  %v472_v32 = vld [vmem:[%s19511_s7 + $0x58] sm:$0xff]  ;;  %v1273_v53 = vand.u32 4294901760, %v19757_v34  ;;  %s23610_s7 = scalar_lea.vmem [#allocation11], %s18433_s4 }
  0xac   : > { %985 = vmatpush1.msra.mxu0 %v667_v37  ;;  %888 = vmatpush1.msra.mxu1 %v19551_v13  ;;  %v19747_v37 = vand.u32 4294901760, %v475_v29  ;;  %v19767_v47 = vsub.f32 %v476_v24, %v19738_v31  ;;  %s18294_s21 = sshll.u32 %s23610_s7, 4  ;;  %s23639_s21 = int_to_ptr.vmem [resolvable:$true] %s18294_s21 }
  0xad   : > { %846 = vmatprep.mubr.f32.mxu0 %v23714_v0  ;;  %890 = vmatprep.subr.mxu1 %v19557_v17  ;;  %v1274_v2 = vsub.f32 %v19757_v34, %v1273_v53  ;;  %p19163_p10 = scmp.lt.s32.totalorder %s23639_s21, %s19161_s25 }
  0xae   : > { %989 = vmatprep.subr.mxu0 %v19608_v38  ;;  %849 = vmatmul.mubr.f32.gmra.mxu0 %v19676_v8  ;;  %v1279_v56 = vand.u32 4294901760, %v19767_v47 }
  0xaf   : > { %892 = vmatpush1.msra.mxu1 %v19559_v18  ;;  %993 = vmatpush1.msra.mxu0 %v19621_v42 }
  0xb0   : > { %894 = vmatprep.subr.mxu1 %v19561_v19  ;;  %997 = vmatprep.subr.mxu0 %v685_v43  ;;  %v19759_v43 = vand.u32 4294901760, %v472_v32  ;;  %v1280_v4 = vsub.f32 %v19767_v47, %v1279_v56 }
  0xb1   : > { %896 = vmatpush1.msra.mxu1 %v19571_v23  ;;  %929 = vmatprep.mubr.f32.mxu1 %v23714_v0 }
  0xb2   : > { %1001 = vmatpush1.msra.mxu0 %v691_v63  ;;  %933 = vmatmul.mubr.f32.vlgmr.msra.gmra.mxu1 %v19626_v45  ;;  %24084 = vst [vmem:[#allocation29_spill] sm:$0xff] %v19759_v43  ;;  %v19789_v54 = vsub.f32 %v472_v32, %v19759_v43 }
  0xb3   : > { %1005 = vmatprep.subr.mxu0 %v697_v3  ;;  %1080 = vmatprep.subr.mxu1 %v19538_v5  ;;  %v19777_v5 = vsub.f32 %v475_v29, %v19747_v37  ;;  %v1304_v29 = vsub.f32 %v19810_v61, %v1303_v21 }
  0xb4   : > { %1009 = vmatpush1.msra.mxu0 %v703_v9  ;;  %1042 = vmatprep.mubr.f32.mxu0 %v23714_v0  ;;  %24086 = vst [vmem:[#allocation31_spill] sm:$0xff] %v19789_v54  ;;  %v19821_v3 = vand.u32 4294901760, %v19789_v54 }
  0xb5   : > { %1082 = vmatpush1.msra.mxu1 %v19540_v6  ;;  %1044 = vmatmul.mubr.f32.vlgmr.msra.gmra.mxu0 %v19582_v28  ;;  %v19785_v6 = vand.u32 4294901760, %v467_v46  ;;  %v1285_v60 = vand.u32 4294901760, %v19777_v5  ;;  %v1305_v52 = vand.u32 4294901760, %v1304_v29 }
  0xb6   : > { %1084 = vmatprep.subr.mxu1 %v19542_v7  ;;  %1169 = vmatprep.subr.mxu0 %v19729_v25  ;;  %v19793_v7 = vand.u32 4294901760, %v464_v49  ;;  %24088 = vst [vmem:[#allocation33_spill] sm:$0xff] %v19821_v3  ;;  %v1292_v22 = vsub.f32 %v19789_v54, %v19821_v3 }
  0xb7   : > { %938 = vmatprep.mubr.f32.mxu1 %v23714_v0  ;;  %1086 = vmatpush1.msra.mxu1 %v19547_v11  ;;  %v1268_v11 = vsub.f32 %v19751_v41, %v1267_v51  ;;  %v19815_v63 = vsub.f32 %v467_v46, %v19785_v6  ;;  %v1286_v16 = vsub.f32 %v19777_v5, %v1285_v60 }
  0xb8   : > { %1171 = vmatpush1.msra.mxu0 %v19733_v27  ;;  %942 = vmatmul.mubr.f32.gmra.mxu1 %v19686_v15  ;;  %v19829_v9 = vsub.f32 %v464_v49, %v19793_v7  ;;  %v19863_v32 = vand.u32 4294901760, %v1292_v22  ;;  %v1322_v49 = vsub.f32 %v19834_v10, %v1321_v20  ;;  %v485_v22 = vld [vmem:[#allocation10] sm:$0xff] }
  0xb9   : > { %1088 = vmatprep.subr.mxu1 %v19549_v12  ;;  %1173 = vmatprep.subr.mxu0 %v19738_v31  ;;  %v1309_v26 = vand.u32 4294901760, %v19815_v63  ;;  %v1287_v24 = vand.u32 4294901760, %v1286_v16 }
  0xba   : > { %1049 = vmatprep.mubr.f32.mxu0 %v23714_v0  ;;  %1090 = vmatpush1.msra.mxu1 %v19551_v13  ;;  %v1315_v39 = vand.u32 4294901760, %v19829_v9  ;;  %24090 = vst [vmem:[#allocation35_spill] sm:$0xff] %v19863_v32 }
  0xbb   : > { %1175 = vmatpush1.msra.mxu0 %v19747_v37  ;;  %1092 = vmatprep.subr.mxu1 %v19557_v17  ;;  %v1269_v17 = vand.u32 4294901760, %v1268_v11  ;;  %v1310_v40 = vsub.f32 %v19815_v63, %v1309_v26 }
  0xbc   : > { %1051 = vmatmul.mubr.f32.gmra.mxu0 %v19664_v1  ;;  %1177 = vmatprep.subr.mxu0 %v19759_v43  ;;  %v1316_v44 = vsub.f32 %v19829_v9, %v1315_v39 }
  0xbd   : > { %1094 = vmatpush1.msra.mxu1 %v19559_v18  ;;  %1179 = vmatpush1.msra.mxu0 %v19771_v48  ;;  %v1275_v18 = vand.u32 4294901760, %v1274_v2  ;;  %v1323_v2 = vand.u32 4294901760, %v1322_v49 }
  0xbe   : > { %1096 = vmatprep.subr.mxu1 %v19561_v19  ;;  %1181 = vmatprep.subr.mxu0 %v19779_v50  ;;  %v1281_v19 = vand.u32 4294901760, %v1280_v4  ;;  %v1317_v11 = vand.u32 4294901760, %v1316_v44 }
  0xbf   : > { %1098 = vmatpush1.msra.mxu1 %v19571_v23  ;;  %1131 = vmatprep.mubr.f32.mxu1 %v23714_v0  ;;  %v1298_v23 = vsub.f32 %v19801_v59, %v19837_v14 }
  0xc0   : > { %1183 = vmatpush1.msra.mxu0 %v19785_v6  ;;  %1133 = vmatmul.mubr.f32.vlgmr.msra.gmra.mxu1 %v19582_v28 }
  0xc1   : > { %1185 = vmatprep.subr.mxu0 %v19793_v7  ;;  %1270 = vmatprep.subr.mxu1 %v1269_v17  ;;  %v19874_v46 = vand.u32 4294901760, %v1298_v23  ;;  %v486_v17 = vld [vmem:[#allocation10 + $0x8] sm:$0xff] }
  0xc2   : > { %1187 = vmatpush1.msra.mxu0 %v19798_v57  ;;  %1220 = vmatprep.mubr.f32.mxu0 %v23714_v0 }
  0xc3   : > { %1276 = vmatpush1.msra.mxu1 %v1275_v18  ;;  %1226 = vmatmul.mubr.f32.vlgmr.msra.gmra.mxu0 %v19661_v62  ;;  %24091 = vst [vmem:[#allocation36_spill] sm:$0xff] %v19874_v46  ;;  %v1311_v62 = vand.u32 4294901760, %v1310_v40  ;;  %v20018_v18 = vand.u32 4294901760, %v486_v17 }
  0xc4   : > { %1282 = vmatprep.subr.mxu1 %v1281_v19  ;;  %1396 = vmatprep.subr.mxu0 %v19751_v41 }
  0xc5   : > { %1138 = vmatprep.mubr.f32.mxu1 %v23714_v0  ;;  %1288 = vmatpush1.msra.mxu1 %v1287_v24  ;;  %24112 = vst [vmem:[#allocation57_spill] sm:$0xff] %v20018_v18 }
  0xc6   : > { %1399 = vmatpush1.msra.mxu0 %v19757_v34  ;;  %1140 = vmatmul.mubr.f32.gmra.mxu1 %v19664_v1 }
  0xc7   : > { %1294 = vmatprep.subr.mxu1 %v19863_v32  ;;  %1402 = vmatprep.subr.mxu0 %v19767_v47 }
  0xc8   : > { %1231 = vmatprep.mubr.f32.mxu0 %v23714_v0  ;;  %1300 = vmatpush1.msra.mxu1 %v19874_v46 }
  0xc9   : > { %1405 = vmatpush1.msra.mxu0 %v19777_v5  ;;  %1306 = vmatprep.subr.mxu1 %v1305_v52 }
  0xca   : > { %1237 = vmatmul.mubr.f32.gmra.mxu0 %v19697_v35  ;;  %1408 = vmatprep.subr.mxu0 %v19789_v54 }
  0xcb   : > { %1312 = vmatpush1.msra.mxu1 %v1311_v62  ;;  %1411 = vmatpush1.msra.mxu0 %v19801_v59 }
  0xcc   : > { %1318 = vmatprep.subr.mxu1 %v1317_v11  ;;  %1414 = vmatprep.subr.mxu0 %v19810_v61 }
  0xcd   : > { %1324 = vmatpush1.msra.mxu1 %v1323_v2  ;;  %1357 = vmatprep.mubr.f32.mxu1 %v23714_v0 }
  0xce   : > { %1417 = vmatpush1.msra.mxu0 %v19815_v63  ;;  %1359 = vmatmul.mubr.f32.vlgmr.msra.gmra.mxu1 %v19582_v28 }
  0xcf   : > { %1420 = vmatprep.subr.mxu0 %v19829_v9  ;;  %1496 = vmatprep.subr.mxu1 %v19729_v25 }
  0xd0   : > { %1423 = vmatpush1.msra.mxu0 %v19834_v10  ;;  %1456 = vmatprep.mubr.f32.mxu0 %v23714_v0 }
  0xd1   : > { %1498 = vmatpush1.msra.mxu1 %v19733_v27  ;;  %1459 = vmatmul.mubr.f32.vlgmr.msra.gmra.mxu0 %v19604_v36  ;;  %v498_v36 = vld [vmem:[#allocation10 + $0x68] sm:$0xff] }
  0xd2   : > { %1500 = vmatprep.subr.mxu1 %v19738_v31  ;;  %1591 = vmatprep.subr.mxu0 %v1267_v51 }
  0xd3   : > { %1364 = vmatprep.mubr.f32.mxu1 %v23714_v0  ;;  %1502 = vmatpush1.msra.mxu1 %v19747_v37 }
  0xd4   : > { %1595 = vmatpush1.msra.mxu0 %v1273_v53  ;;  %1366 = vmatmul.mubr.f32.gmra.mxu1 %v19664_v1 }
  0xd5   : > { %1504 = vmatprep.subr.mxu1 %v19759_v43  ;;  %1599 = vmatprep.subr.mxu0 %v1279_v56  ;;  %v489_v56 = vld [vmem:[#allocation10 + $0x20] sm:$0xff] }
  0xd6   : > { %1464 = vmatprep.mubr.f32.mxu0 %v23714_v0  ;;  %1506 = vmatpush1.msra.mxu1 %v19771_v48  ;;  %v19998_v61 = vand.u32 4294901760, %v489_v56 }
  0xd7   : > { %1603 = vmatpush1.msra.mxu0 %v1285_v60  ;;  %1508 = vmatprep.subr.mxu1 %v19779_v50 }
  0xd8   : > { %1467 = vmatmul.mubr.f32.gmra.mxu0 %v19676_v8  ;;  %1607 = vmatprep.subr.mxu0 %v19821_v3  ;;  %24107 = vst [vmem:[#allocation52_spill] sm:$0xff] %v19998_v61  ;;  %v20010_v10 = vsub.f32 %v489_v56, %v19998_v61 }
  0xd9   : > { %1510 = vmatpush1.msra.mxu1 %v19785_v6  ;;  %1611 = vmatpush1.msra.mxu0 %v19837_v14 }
  0xda   : > { %1512 = vmatprep.subr.mxu1 %v19793_v7  ;;  %1615 = vmatprep.subr.mxu0 %v1303_v21  ;;  %24109 = vst [vmem:[#allocation54_spill] sm:$0xff] %v20010_v10  ;;  %v20023_v19 = vand.u32 4294901760, %v20010_v10 }
  0xdb   : > { %1514 = vmatpush1.msra.mxu1 %v19798_v57  ;;  %1547 = vmatprep.mubr.f32.mxu1 %v23714_v0 }
  0xdc   : > { %1619 = vmatpush1.msra.mxu0 %v1309_v26  ;;  %1551 = vmatmul.mubr.f32.vlgmr.msra.gmra.mxu1 %v19626_v45  ;;  %v19951_v45 = vand.u32 4294901760, %v498_v36  ;;  %24114 = vst [vmem:[#allocation59_spill] sm:$0xff] %v20023_v19  ;;  %v1924_v24 = vsub.f32 %v20010_v10, %v20023_v19 }
  0xdd   : > { %1623 = vmatprep.subr.mxu0 %v1315_v39  ;;  %1698 = vmatprep.subr.mxu1 %v19729_v25  ;;  %v20025_v39 = vand.u32 4294901760, %v485_v22 }
  0xde   : > { %1627 = vmatpush1.msra.mxu0 %v1321_v20  ;;  %1660 = vmatprep.mubr.f32.mxu0 %v23714_v0  ;;  %24092 = vst [vmem:[#allocation37_spill] sm:$0xff] %v19951_v45  ;;  %v19954_v8 = vsub.f32 %v498_v36, %v19951_v45  ;;  %v20031_v20 = vsub.f32 %v486_v17, %v20018_v18  ;;  %v20047_v49 = vand.u32 4294901760, %v1924_v24 }
  0xdf   : > { %1700 = vmatpush1.msra.mxu1 %v19733_v27  ;;  %1662 = vmatmul.mubr.f32.vlgmr.msra.gmra.mxu0 %v19582_v28  ;;  %v494_v27 = vld [vmem:[#allocation10 + $0x48] sm:$0xff]  ;;  %24115 = vst [vmem:[#allocation60_spill] sm:$0xff] %v20025_v39  ;;  %v20038_v29 = vsub.f32 %v485_v22, %v20025_v39 }
  0xe0   : > { %1702 = vmatprep.subr.mxu1 %v19738_v31  ;;  %1556 = vmatprep.mubr.f32.mxu1 %v23714_v0  ;;  %24093 = vst [vmem:[#allocation38_spill] sm:$0xff] %v19954_v8  ;;  %v19960_v25 = vand.u32 4294901760, %v19954_v8  ;;  %v19968_v31 = vand.u32 4294901760, %v494_v27  ;;  %24116 = vst [vmem:[#allocation61_spill] sm:$0xff] %v20031_v20  ;;  %v20044_v44 = vand.u32 4294901760, %v20031_v20 }
  0xe1   : > { %1704 = vmatpush1.msra.mxu1 %v19747_v37  ;;  %1667 = vmatprep.mubr.f32.mxu0 %v23714_v0  ;;  %v493_v37 = vld [vmem:[#allocation10 + $0x40] sm:$0xff]  ;;  %24117 = vst [vmem:[#allocation62_spill] sm:$0xff] %v20038_v29  ;;  %24120 = vst [vmem:[#allocation65_spill] sm:$0xff] %v20047_v49  ;;  %v20050_v52 = vand.u32 4294901760, %v20038_v29 }
  0xe2   : > { %1560 = vmatmul.mubr.f32.gmra.mxu1 %v19686_v15  ;;  %1706 = vmatprep.subr.mxu1 %v19759_v43  ;;  %v497_v15 = vld [vmem:[#allocation10 + $0x60] sm:$0xff]  ;;  %24095 = vst [vmem:[#allocation40_spill] sm:$0xff] %v19960_v25  ;;  %24097 = vst [vmem:[#allocation42_spill] sm:$0xff] %v19968_v31  ;;  %v19973_v34 = vand.u32 4294901760, %v493_v37  ;;  %v19978_v5 = vsub.f32 %v494_v27, %v19968_v31  ;;  %v1930_v62 = vsub.f32 %v20031_v20, %v20044_v44 }
  0xe3   : > { %1708 = vmatpush1.msra.mxu1 %v19771_v48  ;;  %1669 = vmatmul.mubr.f32.gmra.mxu0 %v19664_v1  ;;  %v19957_v35 = vand.u32 4294901760, %v497_v15  ;;  %24119 = vst [vmem:[#allocation64_spill] sm:$0xff] %v20044_v44  ;;  %24121 = vst [vmem:[#allocation66_spill] sm:$0xff] %v20050_v52  ;;  %v1936_v11 = vsub.f32 %v20038_v29, %v20050_v52 }
  0xe4   : > { %1710 = vmatprep.subr.mxu1 %v19779_v50  ;;  %1749 = vmatprep.mubr.f32.mxu1 %v23714_v0  ;;  %24099 = vst [vmem:[#allocation44_spill] sm:$0xff] %v19973_v34  ;;  %24101 = vst [vmem:[#allocation46_spill] sm:$0xff] %v19978_v5  ;;  %v19984_v51 = vsub.f32 %v493_v37, %v19973_v34  ;;  %v19989_v53 = vand.u32 4294901760, %v19978_v5  ;;  %v20058_v2 = vand.u32 4294901760, %v1930_v62 }
  0xe5   : > { %1712 = vmatpush1.msra.mxu1 %v19785_v6  ;;  %1789 = vmatprep.subr.mxu0 %v19951_v45  ;;  %24094 = vst [vmem:[#allocation39_spill] sm:$0xff] %v19957_v35  ;;  %v490_v6 = vld [vmem:[#allocation10 + $0x28] sm:$0xff]  ;;  %v20060_v36 = vand.u32 4294901760, %v1936_v11 }
  0xe6   : > { %1714 = vmatprep.subr.mxu1 %v19793_v7  ;;  %1791 = vmatpush1.xpose.msra.mxu0 %v19957_v35  ;;  %24102 = vst [vmem:[#allocation47_spill] sm:$0xff] %v19984_v51  ;;  %24103 = vst [vmem:[#allocation48_spill] sm:$0xff] %v19989_v53  ;;  %v19991_v7 = vand.u32 4294901760, %v490_v6  ;;  %v19996_v60 = vand.u32 4294901760, %v19984_v51  ;;  %v1906_v63 = vsub.f32 %v19978_v5, %v19989_v53 }
  0xe7   : > { %1716 = vmatpush1.msra.mxu1 %v19798_v57  ;;  %1793 = vmatprep.subr.mxu0 %v19968_v31  ;;  %24122 = vst [vmem:[#allocation67_spill] sm:$0xff] %v20058_v2  ;;  %24123 = vst [vmem:[#allocation68_spill] sm:$0xff] %v20060_v36 }
  0xe8   : > { %1751 = vmatmul.mubr.f32.vlgmr.msra.gmra.mxu1 %v19582_v28  ;;  %v19963_v28 = vsub.f32 %v497_v15, %v19957_v35  ;;  %24104 = vst [vmem:[#allocation49_spill] sm:$0xff] %v19991_v7  ;;  %24106 = vst [vmem:[#allocation51_spill] sm:$0xff] %v19996_v60  ;;  %v20003_v4 = vsub.f32 %v490_v6, %v19991_v7  ;;  %v1912_v9 = vsub.f32 %v19984_v51, %v19996_v60 }
  0xe9   : > { %1756 = vmatprep.mubr.f32.mxu1 %v23714_v0  ;;  %v20013_v16 = vand.u32 4294901760, %v1906_v63 }
  0xea   : > { %24096 = vst [vmem:[#allocation41_spill] sm:$0xff] %v19963_v28  ;;  %v19971_v41 = vand.u32 4294901760, %v19963_v28  ;;  %1795 = vmatpush1.xpose.msra.mxu0 %v19973_v34  ;;  %24108 = vst [vmem:[#allocation53_spill] sm:$0xff] %v20003_v4  ;;  %v20016_v21 = vand.u32 4294901760, %v20003_v4  ;;  %v20020_v26 = vand.u32 4294901760, %v1912_v9 }
  0xeb   : > { %1797 = vmatprep.subr.mxu0 %v19991_v7  ;;  %24110 = vst [vmem:[#allocation55_spill] sm:$0xff] %v20013_v16 }
  0xec   : > { %1758 = vmatmul.mubr.f32.gmra.mxu1 %v19664_v1  ;;  %v1894_v1 = vsub.f32 %v19954_v8, %v19960_v25  ;;  %24098 = vst [vmem:[#allocation43_spill] sm:$0xff] %v19971_v41  ;;  %v1900_v50 = vsub.f32 %v19963_v28, %v19971_v41  ;;  %24111 = vst [vmem:[#allocation56_spill] sm:$0xff] %v20016_v21  ;;  %v1918_v23 = vsub.f32 %v20003_v4, %v20016_v21 }
  0xed   : > { %24113 = vst [vmem:[#allocation58_spill] sm:$0xff] %v20020_v26 }
  0xee   : > { %v19975_v47 = vand.u32 4294901760, %v1894_v1  ;;  %v19993_v57 = vand.u32 4294901760, %v1900_v50  ;;  %1799 = vmatpush1.xpose.msra.mxu0 %v19998_v61  ;;  %v20041_v40 = vand.u32 4294901760, %v1918_v23 }
  0xef   : > { %1801 = vmatprep.subr.mxu0 %v20018_v18 }
  0xf0   : > { %24100 = vst [vmem:[#allocation45_spill] sm:$0xff] %v19975_v47  ;;  %1896 = vmatprep.subr.mxu1 %v19975_v47  ;;  %24105 = vst [vmem:[#allocation50_spill] sm:$0xff] %v19993_v57 }
  0xf1   : > { %1902 = vmatpush1.xpose.msra.mxu1 %v19993_v57  ;;  %24118 = vst [vmem:[#allocation63_spill] sm:$0xff] %v20041_v40 }
  0xf2   : > { %1908 = vmatprep.subr.mxu1 %v20013_v16  ;;  %1803 = vmatpush1.xpose.msra.mxu0 %v20025_v39 }
  0xf3   : > { %2012 = vmatprep.subr.mxu0 %v19954_v8 }
  0xf5   : > { %1914 = vmatpush1.xpose.msra.mxu1 %v20020_v26 }
  0xf6   : > { %1920 = vmatprep.subr.mxu1 %v20041_v40 }
  0xf9   : > { %1926 = vmatpush1.xpose.msra.mxu1 %v20047_v49 }
  0xfa   : > { %1932 = vmatprep.subr.mxu1 %v20058_v2 }
  0xfd   : > { %1938 = vmatpush1.xpose.msra.mxu1 %v20060_v36 }
  0xfe   : > { %2110 = vmatprep.subr.mxu1 %v19951_v45 }
 0x10e   : > { %v20065_v17 = vpop.permute.xlu0 %513 }
 0x115   : > { %v20069_v14 = vpop.permute.xlu0 %518 }
 0x15d   : > { %v609_v15 = vpop.f32.mrf.mxu0 }
 0x15e   : > { %v610_v24 = vadd.f32 %v609_v15, %v20065_v17 }
 0x15f   : > { %v611_v27 = vpop.f32.mrf.mxu0 }
 0x160   : > { %v612_v0 = vadd.f32 %v611_v27, %v20065_v17 }
 0x163   : > { %v742_v1 = vpop.f32.mrf.mxu1 }
 0x164   : > { %v743_v3 = vadd.f32 %v742_v1, %v610_v24 }
 0x165   : > { %v620_v37 = vpop.f32.mrf.mxu0  ;;  %v744_v6 = vpop.f32.mrf.mxu1 }
 0x166   : > { %v745_v48 = vadd.f32 %v744_v6, %v612_v0  ;;  %v621_v46 = vadd.f32 %v620_v37, %v20069_v14 }
 0x167   : > { %v622_v50 = vpop.f32.mrf.mxu0 }
 0x168   : > { %v623_v42 = vadd.f32 %v622_v50, %v20069_v14 }
 0x169   : > { %v842_v56 = vpop.f32.mrf.mxu0 }
 0x16a   : > { %v843_v43 = vadd.f32 %v842_v56, %v743_v3 }
 0x16b   : > { %v844_v63 = vpop.f32.mrf.mxu0  ;;  %v749_v9 = vpop.f32.mrf.mxu1 }
 0x16c   : > { %v845_v33 = vadd.f32 %v844_v63, %v745_v48  ;;  %v750_v30 = vadd.f32 %v749_v9, %v621_v46 }
 0x16d   : > { %v751_v22 = vpop.f32.mrf.mxu1 }
 0x16e   : > { %v850_v23 = vpop.f32.mrf.mxu0  ;;  %v752_v13 = vadd.f32 %v751_v22, %v623_v42 }
 0x16f   : > { %v851_v55 = vadd.f32 %v850_v23, %v750_v30 }
 0x170   : > { %v852_v62 = vpop.f32.mrf.mxu0 }
 0x171   : > { %v853_v24 = vadd.f32 %v852_v62, %v752_v13 }
 0x172   : > { %v934_v11 = vpop.f32.mrf.mxu1 }
 0x173   : > { %v935_v15 = vadd.f32 %v934_v11, %v843_v43 }
 0x174   : > { %v936_v54 = vpop.f32.mrf.mxu1 }
 0x175   : > { %v1045_v59 = vpop.f32.mrf.mxu0  ;;  %v937_v12 = vadd.f32 %v936_v54, %v845_v33 }
 0x176   : > { %v1046_v8 = vadd.f32 %v1045_v59, %v935_v15 }
 0x177   : > { %v1047_v32 = vpop.f32.mrf.mxu0 }
 0x178   : > { %v943_v38 = vpop.f32.mrf.mxu1  ;;  %v1048_v0 = vadd.f32 %v1047_v32, %v937_v12 }
 0x179   : > { %v944_v36 = vadd.f32 %v943_v38, %v851_v55 }
 0x17a   : > { %v945_v27 = vpop.f32.mrf.mxu1 }
 0x17b   : > { %v946_v50 = vadd.f32 %v945_v27, %v853_v24 }
 0x17c   : > { %v1052_v58 = vpop.f32.mrf.mxu0 }
 0x17d   : > { %v1053_v33 = vadd.f32 %v1052_v58, %v944_v36 }
 0x17e   : > { %v1054_v6 = vpop.f32.mrf.mxu0 }
 0x17f   : > { %v1055_v38 = vadd.f32 %v1054_v6, %v946_v50 }
 0x180   : > { %v1134_v1 = vpop.f32.mrf.mxu1 }
 0x181   : > { %v20073_v37 = vadd.f32 %v1134_v1, %v1046_v8 }
 0x182   : > { %v1136_v3 = vpop.f32.mrf.mxu1 }
 0x183   : > { %24124 = vst [vmem:[#allocation69_spill] sm:$0xff] %v20073_v37  ;;  %v20076_v56 = vand.u32 4294901760, %v20073_v37  ;;  %v20078_v48 = vadd.f32 %v1136_v3, %v1048_v0  ;;  %v20080_v42 = vpop.f32.mrf.mxu0  ;;  %v500_v3 = vld [vmem:[#allocation10 + $0x78] sm:$0xff] }
 0x185   : > { %24125 = vst [vmem:[#allocation70_spill] sm:$0xff] %v20078_v48  ;;  %v20084_v30 = vsub.f32 %v20073_v37, %v20076_v56  ;;  %v20087_v13 = vand.u32 4294901760, %v20078_v48  ;;  %v20092_v54 = vpop.f32.mrf.mxu0 }
 0x186   : > { %v1141_v12 = vpop.f32.mrf.mxu1 }
 0x187   : > { %v1844_v55 = vand.u32 4294901760, %v20084_v30  ;;  %v20090_v43 = vadd.f32 %v1141_v12, %v1053_v33  ;;  %1972 = vmatprep.mubr.f32.mxu1 %v20087_v13  ;;  %v1837_v58 = vsub.f32 %v20078_v48, %v20087_v13 }
 0x188   : > { %v1143_v59 = vpop.f32.mrf.mxu1  ;;  %1974 = vmatmul.mubr.f32.vlgmr.msra.gmra.mxu1 %v20076_v56 }
 0x189   : > { %24126 = vst [vmem:[#allocation71_spill] sm:$0xff] %v20090_v43  ;;  %v20098_v32 = vadd.f32 %v1143_v59, %v1055_v38  ;;  %2112 = vmatpush1.xpose.msra.mxu1 %v19957_v35  ;;  %v20102_v46 = vand.u32 4294901760, %v20090_v43  ;;  %v1838_v8 = vand.u32 4294901760, %v1837_v58  ;;  %v1845_v36 = vsub.f32 %v20084_v30, %v1844_v55  ;;  %v499_v38 = vld [vmem:[#allocation10 + $0x70] sm:$0xff] }
 0x18a   : > { %2114 = vmatprep.subr.mxu1 %v19968_v31  ;;  %v20106_v63 = vpop.f32.mrf.mxu0 }
 0x18b   : > { %24127 = vst [vmem:[#allocation72_spill] sm:$0xff] %v20098_v32  ;;  %v20109_v9 = vand.u32 4294901760, %v20098_v32  ;;  %v1839_v22 = vsub.f32 %v1837_v58, %v1838_v8  ;;  %v20113_v23 = vsub.f32 %v20090_v43, %v20102_v46  ;;  %v1846_v1 = vand.u32 4294901760, %v1845_v36 }
 0x18c   : > { %v20124_v24 = vpop.f32.mrf.mxu0 }
 0x18d   : > { %1979 = vmatprep.mubr.f32.mxu1 %v20109_v9  ;;  %2116 = vmatpush1.xpose.msra.mxu1 %v19973_v34  ;;  %v1840_v62 = vand.u32 4294901760, %v1839_v22  ;;  %v20119_v11 = vsub.f32 %v20098_v32, %v20109_v9  ;;  %v1859_v15 = vand.u32 4294901760, %v20113_v23  ;;  %v496_v22 = vld [vmem:[#allocation10 + $0x58] sm:$0xff] }
 0x18e   : > { %v1360_v27 = vpop.f32.mrf.mxu1  ;;  %1981 = vmatmul.mubr.f32.gmra.mxu1 %v20102_v46  ;;  %2118 = vmatprep.subr.mxu1 %v19991_v7 }
 0x18f   : > { %2160 = vmatprep.mubr.f32.mxu1 %v1838_v8  ;;  %1841 = vmatprep.mubr.f32.mxu0 %v1840_v62  ;;  %v1853_v0 = vand.u32 4294901760, %v20119_v11  ;;  %v1860_v6 = vsub.f32 %v20113_v23, %v1859_v15  ;;  %v20135_v8 = vand.u32 4294901760, %v500_v3 }
 0x190   : > { %1847 = vmatmul.mubr.f32.vlgmr.msra.gmra.mxu0 %v1846_v1  ;;  %v1362_v12 = vpop.f32.mrf.mxu1  ;;  %v20140_v1 = vand.u32 4294901760, %v499_v38 }
 0x191   : > { %v20128_v50 = vpop.f32.mrf.mxu0  ;;  %2015 = vmatpush1.xpose.msra.mxu0 %v19963_v28  ;;  %2120 = vmatpush1.xpose.msra.mxu1 %v19998_v61  ;;  %v1854_v33 = vsub.f32 %v20119_v11, %v1853_v0  ;;  %24128 = vst [vmem:[#allocation73_spill] sm:$0xff] %v20135_v8  ;;  %v1861_v36 = vand.u32 4294901760, %v1860_v6  ;;  %v20147_v6 = vand.u32 4294901760, %v496_v22 }
 0x192   : > { %2018 = vmatprep.subr.mxu0 %v19978_v5  ;;  %2122 = vmatprep.subr.mxu1 %v20018_v18  ;;  %24129 = vst [vmem:[#allocation74_spill] sm:$0xff] %v20140_v1  ;;  %v495_v5 = vld [vmem:[#allocation10 + $0x50] sm:$0xff] }
 0x193   : > { %v1855_v59 = vand.u32 4294901760, %v1854_v33  ;;  %v20137_v62 = vpop.f32.mrf.mxu0  ;;  %v20145_v33 = vsub.f32 %v500_v3, %v20135_v8  ;;  %24131 = vst [vmem:[#allocation76_spill] sm:$0xff] %v20147_v6  ;;  %v491_v3 = vld [vmem:[#allocation10 + $0x30] sm:$0xff] }
 0x194   : > { %v1367_v28 = vpop.f32.mrf.mxu1 }
 0x195   : > { %1856 = vmatprep.mubr.f32.mxu0 %v1855_v59  ;;  %2021 = vmatpush1.xpose.msra.mxu0 %v19984_v51  ;;  %24130 = vst [vmem:[#allocation75_spill] sm:$0xff] %v20145_v33  ;;  %v492_v59 = vld [vmem:[#allocation10 + $0x38] sm:$0xff]  ;;  %v20156_v51 = vand.u32 4294901760, %v495_v5 }
 0x196   : > { %1862 = vmatmul.mubr.f32.gmra.mxu0 %v1861_v36  ;;  %2124 = vmatpush1.xpose.msra.mxu1 %v20025_v39  ;;  %v20154_v36 = vsub.f32 %v499_v38, %v20140_v1  ;;  %v20167_v38 = vsub.f32 %v496_v22, %v20147_v6  ;;  %v20180_v22 = vand.u32 4294901760, %v491_v3 }
 0x197   : > { %2068 = vmatprep.mubr.f32.mxu0 %v1837_v58  ;;  %2024 = vmatprep.subr.mxu0 %v20003_v4  ;;  %24133 = vst [vmem:[#allocation78_spill] sm:$0xff] %v20156_v51  ;;  %v1369_v58 = vpop.f32.mrf.mxu1  ;;  %v1228_v4 = vadd.f32 %v20080_v42, %v20065_v17 }
 0x198   : > { %2308 = vmatprep.subr.mxu1 %v19951_v45  ;;  %v20150_v2 = vpop.f32.mrf.mxu0  ;;  %24132 = vst [vmem:[#allocation77_spill] sm:$0xff] %v20154_v36  ;;  %24135 = vst [vmem:[#allocation80_spill] sm:$0xff] %v20167_v38  ;;  %v20175_v42 = vand.u32 4294901760, %v20154_v36 }
 0x199   : > { %2164 = vmatmul.mubr.f32.vlgmr.msra.gmra.mxu1 %v1844_v55  ;;  %2027 = vmatpush1.xpose.msra.mxu0 %v20010_v10  ;;  %v20164_v55 = vand.u32 4294901760, %v20145_v33  ;;  %v20169_v10 = vand.u32 4294901760, %v492_v59  ;;  %v1361_v40 = vadd.f32 %v1360_v27, %v1228_v4  ;;  %24139 = vst [vmem:[#allocation84_spill] sm:$0xff] %v20180_v22  ;;  %v487_v27 = vld [vmem:[#allocation10 + $0x10] sm:$0xff] }
 0x19a   : > { %2171 = vmatprep.mubr.f32.mxu1 %v1853_v0  ;;  %2310 = vmatpush1.xpose.msra.mxu1 %v19957_v35  ;;  %v1230_v0 = vadd.f32 %v20092_v54, %v20065_v17  ;;  %v488_v35 = vld [vmem:[#allocation10 + $0x18] sm:$0xff]  ;;  %v1470_v45 = vpop.f32.mrf.mxu0  ;;  %24137 = vst [vmem:[#allocation82_spill] sm:$0xff] %v20175_v42  ;;  %v20189_v54 = vand.u32 4294901760, %v20167_v38 }
 0x19b   : > { %2030 = vmatprep.subr.mxu0 %v20031_v20  ;;  %2312 = vmatprep.subr.mxu1 %v19968_v31  ;;  %24134 = vst [vmem:[#allocation79_spill] sm:$0xff] %v20164_v55  ;;  %24136 = vst [vmem:[#allocation81_spill] sm:$0xff] %v20169_v10  ;;  %v20178_v20 = vsub.f32 %v495_v5, %v20156_v51  ;;  %v2500_v4 = vsub.f32 %v20145_v33, %v20164_v55 }
 0x19c   : > { %v1552_v49 = vpop.f32.mrf.mxu1  ;;  %v1363_v31 = vadd.f32 %v1362_v12, %v1230_v0  ;;  %24140 = vst [vmem:[#allocation85_spill] sm:$0xff] %v20189_v54  ;;  %v20192_v5 = vsub.f32 %v492_v59, %v20169_v10  ;;  %v1239_v12 = vadd.f32 %v20106_v63, %v20069_v14  ;;  %v1241_v0 = vadd.f32 %v20124_v24, %v20069_v14 }
 0x19d   : > { %2175 = vmatmul.mubr.f32.gmra.mxu1 %v1859_v15  ;;  %2033 = vmatpush1.xpose.msra.mxu0 %v20038_v29  ;;  %24138 = vst [vmem:[#allocation83_spill] sm:$0xff] %v20178_v20  ;;  %v20194_v15 = vand.u32 4294901760, %v488_v35  ;;  %v2506_v59 = vsub.f32 %v20154_v36, %v20175_v42  ;;  %v20210_v63 = vsub.f32 %v491_v3, %v20180_v22 }
 0x19e   : > { %v1554_v26 = vpop.f32.mrf.mxu1  ;;  %2314 = vmatpush1.xpose.msra.mxu1 %v19973_v34  ;;  %2356 = vmatprep.mubr.f32.mxu1 %v20087_v13  ;;  %24141 = vst [vmem:[#allocation86_spill] sm:$0xff] %v20192_v5  ;;  %v20207_v34 = vand.u32 4294901760, %v20178_v20  ;;  %v1368_v14 = vadd.f32 %v1367_v28, %v1239_v12  ;;  %v1370_v24 = vadd.f32 %v1369_v58, %v1241_v0  ;;  %v20223_v3 = vand.u32 4294901760, %v20192_v5 }
 0x19f   : > { %v1663_v17 = vpop.f32.mrf.mxu0  ;;  %2207 = vmatprep.subr.mxu0 %v19960_v25  ;;  %2316 = vmatprep.subr.mxu1 %v19991_v7  ;;  %24142 = vst [vmem:[#allocation87_spill] sm:$0xff] %v20194_v15  ;;  %v1461_v25 = vadd.f32 %v20128_v50, %v1361_v40  ;;  %24144 = vst [vmem:[#allocation89_spill] sm:$0xff] %v20210_v63  ;;  %v20215_v40 = vand.u32 4294901760, %v487_v27  ;;  %v2512_v50 = vsub.f32 %v20167_v38, %v20189_v54 }
 0x1a0   : > { %2071 = vmatmul.mubr.f32.vlgmr.msra.gmra.mxu0 %v20084_v30  ;;  %24143 = vst [vmem:[#allocation88_spill] sm:$0xff] %v20207_v34  ;;  %v1463_v30 = vadd.f32 %v20137_v62, %v1363_v31  ;;  %24147 = vst [vmem:[#allocation92_spill] sm:$0xff] %v20223_v3  ;;  %v20226_v28 = vsub.f32 %v488_v35, %v20194_v15  ;;  %v20234_v0 = vand.u32 4294901760, %v20210_v63 }
 0x1a1   : > { %v1665_v7 = vpop.f32.mrf.mxu0  ;;  %2077 = vmatprep.mubr.f32.mxu0 %v20119_v11  ;;  %2211 = vmatpush1.xpose.msra.mxu0 %v19971_v41  ;;  %24145 = vst [vmem:[#allocation90_spill] sm:$0xff] %v20215_v40  ;;  %v20218_v11 = vand.u32 4294901760, %v2500_v4  ;;  %v1553_v31 = vadd.f32 %v1552_v49, %v1461_v25  ;;  %v2518_v4 = vsub.f32 %v20178_v20, %v20207_v34  ;;  %v20239_v25 = vand.u32 4294901760, %v2506_v59 }
 0x1a2   : > { %v1561_v29 = vpop.f32.mrf.mxu1  ;;  %2318 = vmatpush1.xpose.msra.mxu1 %v19998_v61  ;;  %2215 = vmatprep.subr.mxu0 %v19989_v53  ;;  %24148 = vst [vmem:[#allocation93_spill] sm:$0xff] %v20226_v28  ;;  %v1555_v62 = vadd.f32 %v1554_v26, %v1463_v30  ;;  %24149 = vst [vmem:[#allocation94_spill] sm:$0xff] %v20234_v0  ;;  %v1469_v53 = vadd.f32 %v20150_v2, %v1368_v14  ;;  %v20250_v2 = vand.u32 4294901760, %v20226_v28 }
 0x1a3   : > { %2320 = vmatprep.subr.mxu1 %v20018_v18  ;;  %24146 = vst [vmem:[#allocation91_spill] sm:$0xff] %v20218_v11  ;;  %v1670_v12 = vpop.f32.mrf.mxu0  ;;  %v1471_v35 = vadd.f32 %v1470_v45, %v1370_v24  ;;  %24150 = vst [vmem:[#allocation95_spill] sm:$0xff] %v20239_v25  ;;  %v20242_v26 = vsub.f32 %v487_v27, %v20215_v40  ;;  %v1664_v45 = vadd.f32 %v1663_v17, %v1553_v31 }
 0x1a4   : > { %2080 = vmatmul.mubr.f32.gmra.mxu0 %v20113_v23  ;;  %v1563_v58 = vpop.f32.mrf.mxu1  ;;  %v2524_v23 = vsub.f32 %v20192_v5, %v20223_v3  ;;  %24153 = vst [vmem:[#allocation98_spill] sm:$0xff] %v20250_v2  ;;  %v1562_v14 = vadd.f32 %v1561_v29, %v1469_v53  ;;  %v1666_v30 = vadd.f32 %v1665_v7, %v1555_v62  ;;  %v20262_v53 = vand.u32 4294901760, %v2518_v4 }
 0x1a5   : > { %2219 = vmatpush1.xpose.msra.mxu0 %v19996_v60  ;;  %2269 = vmatprep.mubr.f32.mxu0 %v20087_v13  ;;  %24151 = vst [vmem:[#allocation96_spill] sm:$0xff] %v20242_v26  ;;  %v20245_v13 = vand.u32 4294901760, %v2512_v50  ;;  %v1564_v24 = vadd.f32 %v1563_v58, %v1471_v35  ;;  %v1672_v59 = vpop.f32.mrf.mxu0  ;;  %v2530_v27 = vsub.f32 %v20210_v63, %v20234_v0  ;;  %v20265_v7 = vand.u32 4294901760, %v20242_v26 }
 0x1a6   : > { %2322 = vmatpush1.xpose.msra.mxu1 %v20025_v39  ;;  %2223 = vmatprep.subr.mxu0 %v20016_v21  ;;  %24156 = vst [vmem:[#allocation101_spill] sm:$0xff] %v20262_v53  ;;  %v20269_v17 = vand.u32 4294901760, %v2524_v23  ;;  %v1671_v31 = vadd.f32 %v1670_v12, %v1562_v14 }
 0x1a7   : > { %2502 = vmatprep.subr.mxu1 %v20218_v11  ;;  %24152 = vst [vmem:[#allocation97_spill] sm:$0xff] %v20245_v13  ;;  %24157 = vst [vmem:[#allocation102_spill] sm:$0xff] %v20265_v7  ;;  %v1673_v62 = vadd.f32 %v1672_v59, %v1564_v24  ;;  %v20278_v35 = vand.u32 4294901760, %v2530_v27  ;;  %v2542_v12 = vsub.f32 %v20242_v26, %v20265_v7 }
 0x1a8   : > { %v1752_v49 = vpop.f32.mrf.mxu1  ;;  %24158 = vst [vmem:[#allocation103_spill] sm:$0xff] %v20269_v17 }
 0x1a9   : > { %2358 = vmatmul.mubr.f32.vlgmr.msra.gmra.mxu1 %v20076_v56  ;;  %2227 = vmatpush1.xpose.msra.mxu0 %v20023_v19  ;;  %v20256_v50 = vadd.f32 %v1752_v49, %v1664_v45  ;;  %24159 = vst [vmem:[#allocation104_spill] sm:$0xff] %v20278_v35 }
 0x1aa   : > { %v1754_v21 = vpop.f32.mrf.mxu1  ;;  %2363 = vmatprep.mubr.f32.mxu1 %v20109_v9  ;;  %2508 = vmatpush1.xpose.msra.mxu1 %v20239_v25 }
 0x1ab   : > { %24154 = vst [vmem:[#allocation99_spill] sm:$0xff] %v20256_v50  ;;  %v20258_v11 = vadd.f32 %v1754_v21, %v1666_v30  ;;  %2231 = vmatprep.subr.mxu0 %v20044_v44  ;;  %2514 = vmatprep.subr.mxu1 %v20245_v13  ;;  %v2536_v21 = vsub.f32 %v20226_v28, %v20250_v2  ;;  %v20281_v49 = vand.u32 4294901760, %v20256_v50 }
 0x1ac   : > { %v1759_v29 = vpop.f32.mrf.mxu1 }
 0x1ad   : > { %24155 = vst [vmem:[#allocation100_spill] sm:$0xff] %v20258_v11  ;;  %v20274_v58 = vand.u32 4294901760, %v20258_v11  ;;  %2365 = vmatmul.mubr.f32.gmra.mxu1 %v20102_v46  ;;  %2235 = vmatpush1.xpose.msra.mxu0 %v20050_v52  ;;  %v20283_v23 = vadd.f32 %v1759_v29, %v1671_v31  ;;  %v20293_v14 = vand.u32 4294901760, %v2536_v21  ;;  %v2449_v27 = vsub.f32 %v20256_v50, %v20281_v49 }
 0x1ae   : > { %v1761_v4 = vpop.f32.mrf.mxu1  ;;  %2520 = vmatpush1.xpose.msra.mxu1 %v20262_v53  ;;  %2395 = vmatprep.subr.mxu0 %v20135_v8  ;;  %v20307_v29 = vand.u32 4294901760, %v2542_v12 }
 0x1af   : > { %24160 = vst [vmem:[#allocation105_spill] sm:$0xff] %v20283_v23  ;;  %v20285_v45 = vadd.f32 %v1761_v4, %v1673_v62  ;;  %2578 = vmatprep.mubr.f32.mxu1 %v20274_v58  ;;  %2526 = vmatprep.subr.mxu1 %v20269_v17  ;;  %24162 = vst [vmem:[#allocation107_spill] sm:$0xff] %v20293_v14  ;;  %v2443_v30 = vsub.f32 %v20258_v11, %v20274_v58  ;;  %v20310_v21 = vand.u32 4294901760, %v20283_v23 }
 0x1b0   : > { %2271 = vmatmul.mubr.f32.vlgmr.msra.gmra.mxu0 %v20076_v56  ;;  %24163 = vst [vmem:[#allocation108_spill] sm:$0xff] %v20307_v29  ;;  %v2450_v62 = vand.u32 4294901760, %v2449_v27 }
 0x1b1   : > { %24161 = vst [vmem:[#allocation106_spill] sm:$0xff] %v20285_v45  ;;  %v20299_v24 = vand.u32 4294901760, %v20285_v45  ;;  %2276 = vmatprep.mubr.f32.mxu0 %v20109_v9  ;;  %2397 = vmatpush1.xpose.msra.mxu0 %v20140_v1  ;;  %v2444_v59 = vand.u32 4294901760, %v2443_v30  ;;  %v2464_v4 = vsub.f32 %v20283_v23, %v20310_v21 }
 0x1b2   : > { %2532 = vmatpush1.xpose.msra.mxu1 %v20278_v35  ;;  %2399 = vmatprep.subr.mxu0 %v20147_v6 }
 0x1b3   : > { %2538 = vmatprep.subr.mxu1 %v20293_v14  ;;  %v2445_v56 = vsub.f32 %v2443_v30, %v2444_v59  ;;  %v2458_v9 = vsub.f32 %v20285_v45, %v20299_v24 }
 0x1b4   : > { %2278 = vmatmul.mubr.f32.gmra.mxu0 %v20102_v46  ;;  %v2451_v46 = vsub.f32 %v2449_v27, %v2450_v62 }
 0x1b5   : > { %2401 = vmatpush1.xpose.msra.mxu0 %v20156_v51  ;;  %v2446_v31 = vand.u32 4294901760, %v2445_v56  ;;  %v2459_v12 = vand.u32 4294901760, %v2458_v9  ;;  %v2465_v56 = vand.u32 4294901760, %v2464_v4 }
 0x1b6   : > { %2544 = vmatpush1.xpose.msra.mxu1 %v20307_v29  ;;  %2403 = vmatprep.subr.mxu0 %v20169_v10 }
 0x1b7   : > { %2447 = vmatprep.mubr.f32.mxu0 %v2446_v31  ;;  %2716 = vmatprep.subr.mxu1 %v20135_v8  ;;  %v2460_v29 = vsub.f32 %v2458_v9, %v2459_v12  ;;  %v2452_v31 = vand.u32 4294901760, %v2451_v46  ;;  %v2466_v14 = vsub.f32 %v2464_v4, %v2465_v56 }
 0x1b9   : > { %2580 = vmatmul.mubr.f32.vlgmr.msra.gmra.mxu1 %v20281_v49  ;;  %2405 = vmatpush1.xpose.msra.mxu0 %v20180_v22  ;;  %v2461_v35 = vand.u32 4294901760, %v2460_v29  ;;  %v2467_v17 = vand.u32 4294901760, %v2466_v14  ;;  %v2980_v29 = vmul.f32 %v20090_v43, %v20090_v43  ;;  %v24170_v43 = vld [vmem:[#allocation67_spill] sm:$0xff] }
 0x1ba   : > { %2585 = vmatprep.mubr.f32.mxu1 %v20299_v24  ;;  %2718 = vmatpush1.xpose.msra.mxu1 %v20140_v1 }
 0x1bb   : > { %2407 = vmatprep.subr.mxu0 %v20194_v15  ;;  %2720 = vmatprep.subr.mxu1 %v20147_v6 }
 0x1bd   : > { %2587 = vmatmul.mubr.f32.gmra.mxu1 %v20310_v21  ;;  %2409 = vmatpush1.xpose.msra.mxu0 %v20215_v40 }
 0x1be   : > { %2722 = vmatpush1.xpose.msra.mxu1 %v20156_v51  ;;  %2766 = vmatprep.mubr.f32.mxu1 %v2444_v59  ;;  %v2981_v59 = vmul.f32 %v20098_v32, %v20098_v32  ;;  %v24169_v32 = vld [vmem:[#allocation42_spill] sm:$0xff] }
 0x1bf   : > { %2618 = vmatprep.subr.mxu0 %v20145_v33  ;;  %2724 = vmatprep.subr.mxu1 %v20169_v10 }
 0x1c0   : > { %2453 = vmatmul.mubr.f32.vlgmr.msra.gmra.mxu0 %v2452_v31  ;;  %v20388_v46 = vand.u32 4294901760, %v2981_v59 }
 0x1c1   : > { %2462 = vmatprep.mubr.f32.mxu0 %v2461_v35  ;;  %2621 = vmatpush1.xpose.msra.mxu0 %v20154_v36 }
 0x1c2   : > { %2726 = vmatpush1.xpose.msra.mxu1 %v20180_v22  ;;  %2624 = vmatprep.subr.mxu0 %v20167_v38 }
 0x1c3   : > { %2728 = vmatprep.subr.mxu1 %v20194_v15 }
 0x1c4   : > { %2468 = vmatmul.mubr.f32.gmra.mxu0 %v2467_v17  ;;  %v2977_v17 = vmul.f32 %v20078_v48, %v20078_v48  ;;  %v20396_v48 = vand.u32 4294901760, %v2980_v29 }
 0x1c5   : > { %2627 = vmatpush1.xpose.msra.mxu0 %v20178_v20  ;;  %2674 = vmatprep.mubr.f32.mxu0 %v2443_v30  ;;  %v2976_v30 = vmul.f32 %v20073_v37, %v20073_v37 }
 0x1c6   : > { %2730 = vmatpush1.xpose.msra.mxu1 %v20215_v40  ;;  %2630 = vmatprep.subr.mxu0 %v20192_v5  ;;  %v20356_v35 = vand.u32 4294901760, %v2977_v17 }
 0x1c7   : > { %2914 = vmatprep.subr.mxu1 %v20135_v8 }
 0x1c8   : > { %v20364_v14 = vsub.f32 %v2977_v17, %v20356_v35  ;;  %v24168_v17 = vld [vmem:[#allocation65_spill] sm:$0xff] }
 0x1c9   : > { %2770 = vmatmul.mubr.f32.vlgmr.msra.gmra.mxu1 %v2450_v62  ;;  %2633 = vmatpush1.xpose.msra.mxu0 %v20210_v63  ;;  %v24165_v62 = vld [vmem:[#allocation37_spill] sm:$0xff] }
 0x1ca   : > { %2777 = vmatprep.mubr.f32.mxu1 %v2459_v12  ;;  %2916 = vmatpush1.xpose.msra.mxu1 %v20140_v1 }
 0x1cb   : > { %2636 = vmatprep.subr.mxu0 %v20226_v28  ;;  %2918 = vmatprep.subr.mxu1 %v20147_v6 }
 0x1cd   : > { %2781 = vmatmul.mubr.f32.gmra.mxu1 %v2465_v56  ;;  %2639 = vmatpush1.xpose.msra.mxu0 %v20242_v26  ;;  %v24167_v56 = vld [vmem:[#allocation39_spill] sm:$0xff] }
 0x1ce   : > { %2920 = vmatpush1.xpose.msra.mxu1 %v20156_v51  ;;  %2962 = vmatprep.mubr.f32.mxu1 %v20274_v58 }
 0x1cf   : > { %2813 = vmatprep.subr.mxu0 %v20164_v55  ;;  %2922 = vmatprep.subr.mxu1 %v20169_v10 }
 0x1d0   : > { %2677 = vmatmul.mubr.f32.vlgmr.msra.gmra.mxu0 %v2449_v27  ;;  %v20379_v27 = vand.u32 4294901760, %v2976_v30 }
 0x1d1   : > { %2683 = vmatprep.mubr.f32.mxu0 %v2458_v9  ;;  %2817 = vmatpush1.xpose.msra.mxu0 %v20175_v42  ;;  %v24164_v9 = vld [vmem:[#allocation58_spill] sm:$0xff] }
 0x1d2   : > { %2924 = vmatpush1.xpose.msra.mxu1 %v20180_v22  ;;  %2821 = vmatprep.subr.mxu0 %v20189_v54  ;;  %v3063_v31 = vsub.f32 %v2976_v30, %v20379_v27 }
 0x1d3   : > { %2926 = vmatprep.subr.mxu1 %v20194_v15 }
 0x1d4   : > { %2686 = vmatmul.mubr.f32.gmra.mxu0 %v2464_v4  ;;  %v24166_v4 = vld [vmem:[#allocation63_spill] sm:$0xff]  ;;  %v3064_v30 = vand.u32 4294901760, %v3063_v31 }
 0x1d5   : > { %2825 = vmatpush1.xpose.msra.mxu0 %v20207_v34  ;;  %2875 = vmatprep.mubr.f32.mxu0 %v20274_v58  ;;  %v3058_v58 = vand.u32 4294901760, %v20364_v14 }
 0x1d6   : > { %2928 = vmatpush1.xpose.msra.mxu1 %v20215_v40  ;;  %2829 = vmatprep.subr.mxu0 %v20223_v3 }
 0x1d7   : > { %3116 = vmatprep.subr.mxu1 %v19975_v47  ;;  %v3059_v12 = vsub.f32 %v20364_v14, %v3058_v58 }
 0x1d9   : > { %2964 = vmatmul.mubr.f32.vlgmr.msra.gmra.mxu1 %v20281_v49  ;;  %2833 = vmatpush1.xpose.msra.mxu0 %v20234_v0  ;;  %v3060_v37 = vand.u32 4294901760, %v3059_v12 }
 0x1da   : > { %2969 = vmatprep.mubr.f32.mxu1 %v20299_v24  ;;  %3122 = vmatpush1.xpose.msra.mxu1 %v19993_v57  ;;  %v24175_v57 = vld [vmem:[#allocation41_spill] sm:$0xff] }
 0x1db   : > { %2837 = vmatprep.subr.mxu0 %v20250_v2  ;;  %3128 = vmatprep.subr.mxu1 %v20013_v16 }
 0x1dd   : > { %2971 = vmatmul.mubr.f32.gmra.mxu1 %v20310_v21  ;;  %2841 = vmatpush1.xpose.msra.mxu0 %v20265_v7  ;;  %v24176_v7 = vld [vmem:[#allocation46_spill] sm:$0xff] }
 0x1de   : > { %3134 = vmatpush1.xpose.msra.mxu1 %v24164_v9  ;;  %3192 = vmatprep.mubr.f32.mxu1 %v20356_v35  ;;  %v24173_v9 = vld [vmem:[#allocation49_spill] sm:$0xff] }
 0x1df   : > { %3009 = vmatprep.subr.mxu0 %v24165_v62  ;;  %3140 = vmatprep.subr.mxu1 %v24166_v4  ;;  %v3072_v4 = vsub.f32 %v2981_v59, %v20388_v46 }
 0x1e0   : > { %2877 = vmatmul.mubr.f32.vlgmr.msra.gmra.mxu0 %v20281_v49  ;;  %v24171_v49 = vld [vmem:[#allocation44_spill] sm:$0xff] }
 0x1e1   : > { %2882 = vmatprep.mubr.f32.mxu0 %v20299_v24  ;;  %3011 = vmatpush1.xpose.msra.mxu0 %v24167_v56  ;;  %v24172_v24 = vld [vmem:[#allocation68_spill] sm:$0xff]  ;;  %v3073_v16 = vand.u32 4294901760, %v3072_v4 }
 0x1e2   : > { %3146 = vmatpush1.xpose.msra.mxu1 %v24168_v17  ;;  %3013 = vmatprep.subr.mxu0 %v24169_v32  ;;  %v3078_v17 = vsub.f32 %v2980_v29, %v20396_v48 }
 0x1e3   : > { %3152 = vmatprep.subr.mxu1 %v24170_v43  ;;  %v3074_v59 = vsub.f32 %v3072_v4, %v3073_v16 }
 0x1e4   : > { %2884 = vmatmul.mubr.f32.gmra.mxu0 %v20310_v21  ;;  %v3065_v21 = vsub.f32 %v3063_v31, %v3064_v30 }
 0x1e5   : > { %3015 = vmatpush1.xpose.msra.mxu0 %v24171_v49  ;;  %3061 = vmatprep.mubr.f32.mxu0 %v3060_v37  ;;  %v3079_v37 = vand.u32 4294901760, %v3078_v17  ;;  %v3075_v43 = vand.u32 4294901760, %v3074_v59  ;;  %v24180_v59 = vld [vmem:[#allocation61_spill] sm:$0xff] }
 0x1e6   : > { %3158 = vmatpush1.xpose.msra.mxu1 %v24172_v24  ;;  %3017 = vmatprep.subr.mxu0 %v24173_v9  ;;  %v3066_v29 = vand.u32 4294901760, %v3065_v21  ;;  %v24174_v24 = vld [vmem:[#allocation38_spill] sm:$0xff]  ;;  %v24178_v21 = vld [vmem:[#allocation53_spill] sm:$0xff] }
 0x1e7   : > { %3330 = vmatprep.subr.mxu1 %v24165_v62  ;;  %v3080_v12 = vsub.f32 %v3078_v17, %v3079_v37 }
 0x1e9   : > { %3194 = vmatmul.mubr.f32.vlgmr.msra.gmra.mxu1 %v20379_v27  ;;  %3019 = vmatpush1.xpose.msra.mxu0 %v19998_v61  ;;  %v3081_v47 = vand.u32 4294901760, %v3080_v12  ;;  %v2983_v12 = vmul.f32 %v20285_v45, %v20285_v45 }
 0x1ea   : > { %3199 = vmatprep.mubr.f32.mxu1 %v20388_v46  ;;  %3332 = vmatpush1.xpose.msra.mxu1 %v24167_v56 }
 0x1eb   : > { %3021 = vmatprep.subr.mxu0 %v20018_v18  ;;  %3334 = vmatprep.subr.mxu1 %v24169_v32  ;;  %v20473_v45 = vand.u32 4294901760, %v2983_v12 }
 0x1ed   : > { %3201 = vmatmul.mubr.f32.gmra.mxu1 %v20396_v48  ;;  %3023 = vmatpush1.xpose.msra.mxu0 %v20025_v39 }
 0x1ee   : > { %3336 = vmatpush1.xpose.msra.mxu1 %v24171_v49  ;;  %3380 = vmatprep.mubr.f32.mxu1 %v3058_v58  ;;  %v24177_v58 = vld [vmem:[#allocation47_spill] sm:$0xff] }
 0x1ef   : > { %3232 = vmatprep.subr.mxu0 %v24174_v24  ;;  %3338 = vmatprep.subr.mxu1 %v24173_v9 }
 0x1f0   : > { %3067 = vmatmul.mubr.f32.vlgmr.msra.gmra.mxu0 %v3066_v29  ;;  %v24184_v29 = vld [vmem:[#allocation56_spill] sm:$0xff] }
 0x1f1   : > { %3076 = vmatprep.mubr.f32.mxu0 %v3075_v43  ;;  %3235 = vmatpush1.xpose.msra.mxu0 %v24175_v57  ;;  %v24179_v43 = vld [vmem:[#allocation54_spill] sm:$0xff] }
 0x1f2   : > { %3340 = vmatpush1.xpose.msra.mxu1 %v19998_v61  ;;  %3238 = vmatprep.subr.mxu0 %v24176_v7 }
 0x1f3   : > { %3342 = vmatprep.subr.mxu1 %v20018_v18 }
 0x1f4   : > { %3082 = vmatmul.mubr.f32.gmra.mxu0 %v3081_v47  ;;  %v24181_v47 = vld [vmem:[#allocation62_spill] sm:$0xff] }
 0x1f5   : > { %3241 = vmatpush1.xpose.msra.mxu0 %v24177_v58  ;;  %3288 = vmatprep.mubr.f32.mxu0 %v20364_v14  ;;  %v24182_v14 = vld [vmem:[#allocation40_spill] sm:$0xff] }
 0x1f6   : > { %3344 = vmatpush1.xpose.msra.mxu1 %v20025_v39  ;;  %3244 = vmatprep.subr.mxu0 %v24178_v21 }
 0x1f7   : > { %3528 = vmatprep.subr.mxu1 %v24165_v62 }
 0x1f9   : > { %3384 = vmatmul.mubr.f32.vlgmr.msra.gmra.mxu1 %v3064_v30  ;;  %3247 = vmatpush1.xpose.msra.mxu0 %v24179_v43  ;;  %v24183_v30 = vld [vmem:[#allocation48_spill] sm:$0xff] }
 0x1fa   : > { %3391 = vmatprep.mubr.f32.mxu1 %v3073_v16  ;;  %3530 = vmatpush1.xpose.msra.mxu1 %v24167_v56  ;;  %v2979_v16 = vmul.f32 %v20258_v11, %v20258_v11  ;;  %v2982_v11 = vmul.f32 %v20283_v23, %v20283_v23 }
 0x1fb   : > { %3250 = vmatprep.subr.mxu0 %v24180_v59  ;;  %3532 = vmatprep.subr.mxu1 %v24169_v32 }
 0x1fd   : > { %3395 = vmatmul.mubr.f32.gmra.mxu1 %v3079_v37  ;;  %3253 = vmatpush1.xpose.msra.mxu0 %v24181_v47  ;;  %v20441_v37 = vand.u32 4294901760, %v2979_v16 }
 0x1fe   : > { %3534 = vmatpush1.xpose.msra.mxu1 %v24171_v49  ;;  %3576 = vmatprep.mubr.f32.mxu1 %v20356_v35 }
 0x1ff   : > { %3427 = vmatprep.subr.mxu0 %v24182_v14  ;;  %3536 = vmatprep.subr.mxu1 %v24173_v9 }
 0x200   : > { %3291 = vmatmul.mubr.f32.vlgmr.msra.gmra.mxu0 %v3063_v31  ;;  %v20449_v31 = vsub.f32 %v2979_v16, %v20441_v37 }
 0x201   : > { %3297 = vmatprep.mubr.f32.mxu0 %v3072_v4  ;;  %3431 = vmatpush1.xpose.msra.mxu0 %v19971_v41  ;;  %v24185_v4 = vld [vmem:[#allocation91_spill] sm:$0xff] }
 0x202   : > { %3538 = vmatpush1.xpose.msra.mxu1 %v19998_v61  ;;  %3435 = vmatprep.subr.mxu0 %v24183_v30 }
 0x203   : > { %3540 = vmatprep.subr.mxu1 %v20018_v18 }
 0x204   : > { %3300 = vmatmul.mubr.f32.gmra.mxu0 %v3078_v17  ;;  %v2978_v17 = vmul.f32 %v20256_v50, %v20256_v50  ;;  %v24186_v50 = vld [vmem:[#allocation103_spill] sm:$0xff] }
 0x205   : > { %3439 = vmatpush1.xpose.msra.mxu0 %v19996_v60  ;;  %3489 = vmatprep.mubr.f32.mxu0 %v20356_v35  ;;  %v3664_v35 = vand.u32 4294901760, %v20449_v31 }
 0x206   : > { %3542 = vmatpush1.xpose.msra.mxu1 %v20025_v39  ;;  %3443 = vmatprep.subr.mxu0 %v24184_v29  ;;  %v20464_v16 = vand.u32 4294901760, %v2978_v17  ;;  %v3678_v29 = vsub.f32 %v2983_v12, %v20473_v45 }
 0x207   : > { %3722 = vmatprep.subr.mxu1 %v24185_v4 }
 0x208   : > { %v3669_v23 = vsub.f32 %v2978_v17, %v20464_v16 }
 0x209   : > { %3578 = vmatmul.mubr.f32.vlgmr.msra.gmra.mxu1 %v20379_v27  ;;  %3447 = vmatpush1.xpose.msra.mxu0 %v20023_v19  ;;  %v20481_v19 = vand.u32 4294901760, %v2982_v11 }
 0x20a   : > { %3583 = vmatprep.mubr.f32.mxu1 %v20388_v46  ;;  %3728 = vmatpush1.xpose.msra.mxu1 %v20239_v25 }
 0x20b   : > { %3451 = vmatprep.subr.mxu0 %v20044_v44  ;;  %3734 = vmatprep.subr.mxu1 %v20245_v13  ;;  %v3665_v44 = vsub.f32 %v20449_v31, %v3664_v35  ;;  %v3684_v17 = vsub.f32 %v2982_v11, %v20481_v19 }
 0x20d   : > { %3585 = vmatmul.mubr.f32.gmra.mxu1 %v20396_v48  ;;  %3455 = vmatpush1.xpose.msra.mxu0 %v20050_v52  ;;  %v24187_v52 = vld [vmem:[#allocation104_spill] sm:$0xff] }
 0x20e   : > { %3740 = vmatpush1.xpose.msra.mxu1 %v20262_v53  ;;  %3798 = vmatprep.mubr.f32.mxu1 %v20441_v37  ;;  %v24188_v53 = vld [vmem:[#allocation107_spill] sm:$0xff] }
 0x20f   : > { %3615 = vmatprep.subr.mxu0 %v20135_v8  ;;  %3746 = vmatprep.subr.mxu1 %v24186_v50  ;;  %v3666_v50 = vand.u32 4294901760, %v3665_v44 }
 0x210   : > { %3491 = vmatmul.mubr.f32.vlgmr.msra.gmra.mxu0 %v20379_v27  ;;  %v24189_v27 = vld [vmem:[#allocation108_spill] sm:$0xff] }
 0x211   : > { %3496 = vmatprep.mubr.f32.mxu0 %v20388_v46  ;;  %3617 = vmatpush1.xpose.msra.mxu0 %v20140_v1  ;;  %v3670_v46 = vand.u32 4294901760, %v3669_v23 }
 0x212   : > { %3752 = vmatpush1.xpose.msra.mxu1 %v24187_v52  ;;  %3619 = vmatprep.subr.mxu0 %v20147_v6  ;;  %v3679_v52 = vand.u32 4294901760, %v3678_v29 }
 0x213   : > { %3758 = vmatprep.subr.mxu1 %v24188_v53  ;;  %v3671_v44 = vsub.f32 %v3669_v23, %v3670_v46 }
 0x214   : > { %3498 = vmatmul.mubr.f32.gmra.mxu0 %v20396_v48  ;;  %v3685_v48 = vand.u32 4294901760, %v3684_v17 }
 0x215   : > { %3621 = vmatpush1.xpose.msra.mxu0 %v20156_v51  ;;  %3667 = vmatprep.mubr.f32.mxu0 %v3666_v50  ;;  %v3680_v50 = vsub.f32 %v3678_v29, %v3679_v52  ;;  %v3672_v11 = vand.u32 4294901760, %v3671_v44 }
 0x216   : > { %3764 = vmatpush1.xpose.msra.mxu1 %v24189_v27  ;;  %3623 = vmatprep.subr.mxu0 %v20169_v10  ;;  %v3686_v12 = vsub.f32 %v3684_v17, %v3685_v48 }
 0x217   : > { %3936 = vmatprep.subr.mxu1 %v20135_v8  ;;  %v3681_v27 = vand.u32 4294901760, %v3680_v50 }
 0x218   : > { %v3687_v53 = vand.u32 4294901760, %v3686_v12 }
 0x219   : > { %3800 = vmatmul.mubr.f32.vlgmr.msra.gmra.mxu1 %v20464_v16  ;;  %3625 = vmatpush1.xpose.msra.mxu0 %v20180_v22 }
 0x21a   : > { %3805 = vmatprep.mubr.f32.mxu1 %v20473_v45  ;;  %3938 = vmatpush1.xpose.msra.mxu1 %v20140_v1 }
 0x21b   : > { %3627 = vmatprep.subr.mxu0 %v20194_v15  ;;  %3940 = vmatprep.subr.mxu1 %v20147_v6 }
 0x21d   : > { %3807 = vmatmul.mubr.f32.gmra.mxu1 %v20481_v19  ;;  %3629 = vmatpush1.xpose.msra.mxu0 %v20215_v40 }
 0x21e   : > { %3942 = vmatpush1.xpose.msra.mxu1 %v20156_v51  ;;  %3986 = vmatprep.mubr.f32.mxu1 %v3664_v35 }
 0x21f   : > { %3838 = vmatprep.subr.mxu0 %v20145_v33  ;;  %3944 = vmatprep.subr.mxu1 %v20169_v10 }
 0x220   : > { %3673 = vmatmul.mubr.f32.vlgmr.msra.gmra.mxu0 %v3672_v11 }
 0x221   : > { %3682 = vmatprep.mubr.f32.mxu0 %v3681_v27  ;;  %3841 = vmatpush1.xpose.msra.mxu0 %v20154_v36 }
 0x222   : > { %3946 = vmatpush1.xpose.msra.mxu1 %v20180_v22  ;;  %3844 = vmatprep.subr.mxu0 %v20167_v38 }
 0x223   : > { %3948 = vmatprep.subr.mxu1 %v20194_v15 }
 0x224   : > { %3688 = vmatmul.mubr.f32.gmra.mxu0 %v3687_v53  ;;  %v505_v53 = vld [vmem:[#allocation8] sm:$0xff] }
 0x225   : > { %3847 = vmatpush1.xpose.msra.mxu0 %v20178_v20  ;;  %3894 = vmatprep.mubr.f32.mxu0 %v20449_v31  ;;  %v4198_v31 = vsel %vm4196_vm1, %v505_v53, 0 }
 0x226   : > { %3950 = vmatpush1.xpose.msra.mxu1 %v20215_v40  ;;  %3850 = vmatprep.subr.mxu0 %v20192_v5 }
 0x227   : > { %4134 = vmatprep.subr.mxu1 %v20135_v8 }
 0x229   : > { %3990 = vmatmul.mubr.f32.vlgmr.msra.gmra.mxu1 %v3670_v46  ;;  %3853 = vmatpush1.xpose.msra.mxu0 %v20210_v63 }
 0x22a   : > { %3997 = vmatprep.mubr.f32.mxu1 %v3679_v52  ;;  %4136 = vmatpush1.xpose.msra.mxu1 %v20140_v1  ;;  %v20522_v52 = vand.u32 4294901760, %v4198_v31 }
 0x22b   : > { %3856 = vmatprep.subr.mxu0 %v20226_v28  ;;  %4138 = vmatprep.subr.mxu1 %v20147_v6 }
 0x22c   : > { %24190 = vst [vmem:[#allocation109_spill] sm:$0xff] %v20522_v52  ;;  %v20530_v35 = vsub.f32 %v4198_v31, %v20522_v52 }
 0x22d   : > { %4001 = vmatmul.mubr.f32.gmra.mxu1 %v3685_v48  ;;  %3859 = vmatpush1.xpose.msra.mxu0 %v20242_v26 }
 0x22e   : > { %4140 = vmatpush1.xpose.msra.mxu1 %v20156_v51  ;;  %4182 = vmatprep.mubr.f32.mxu1 %v20441_v37  ;;  %24191 = vst [vmem:[#allocation110_spill] sm:$0xff] %v20530_v35  ;;  %v506_v51 = vld [vmem:[#allocation8 + $0x8] sm:$0xff] }
 0x22f   : > { %4033 = vmatprep.subr.mxu0 %v20164_v55  ;;  %4142 = vmatprep.subr.mxu1 %v20169_v10 }
 0x230   : > { %3897 = vmatmul.mubr.f32.vlgmr.msra.gmra.mxu0 %v3669_v23  ;;  %v20537_v23 = vand.u32 4294901760, %v20530_v35 }
 0x231   : > { %3903 = vmatprep.mubr.f32.mxu0 %v3678_v29  ;;  %4037 = vmatpush1.xpose.msra.mxu0 %v20175_v42 }
 0x232   : > { %4144 = vmatpush1.xpose.msra.mxu1 %v20180_v22  ;;  %4041 = vmatprep.subr.mxu0 %v20189_v54  ;;  %24192 = vst [vmem:[#allocation111_spill] sm:$0xff] %v20537_v23  ;;  %v4273_v29 = vsub.f32 %v20530_v35, %v20537_v23 }
 0x233   : > { %4146 = vmatprep.subr.mxu1 %v20194_v15 }
 0x234   : > { %3906 = vmatmul.mubr.f32.gmra.mxu0 %v3684_v17  ;;  %v20548_v27 = vand.u32 4294901760, %v4273_v29 }
 0x235   : > { %4045 = vmatpush1.xpose.msra.mxu0 %v20207_v34  ;;  %4095 = vmatprep.mubr.f32.mxu0 %v20441_v37  ;;  %v24193_v37 = vld [vmem:[#allocation102_spill] sm:$0xff] }
 0x236   : > { %4148 = vmatpush1.xpose.msra.mxu1 %v20215_v40  ;;  %4049 = vmatprep.subr.mxu0 %v20223_v3  ;;  %24194 = vst [vmem:[#allocation112_spill] sm:$0xff] %v20548_v27 }
 0x239   : > { %4184 = vmatmul.mubr.f32.vlgmr.msra.gmra.mxu1 %v20464_v16  ;;  %4053 = vmatpush1.xpose.msra.mxu0 %v20234_v0 }
 0x23a   : > { %4189 = vmatprep.mubr.f32.mxu1 %v20473_v45  ;;  %4057 = vmatprep.subr.mxu0 %v20250_v2 }
 0x23d   : > { %4191 = vmatmul.mubr.f32.gmra.mxu1 %v20481_v19  ;;  %4061 = vmatpush1.xpose.msra.mxu0 %v24193_v37 }
 0x23e   : > { %18584 = vmatprep.mubr.f32.mxu1 %v20522_v52 }
 0x240   : > { %4097 = vmatmul.mubr.f32.vlgmr.msra.gmra.mxu0 %v20464_v16 }
 0x241   : > { %4102 = vmatprep.mubr.f32.mxu0 %v20473_v45 }
 0x244   : > { %4104 = vmatmul.mubr.f32.gmra.mxu0 %v20481_v19 }
 0x245   : > { %18577 = vmatprep.mubr.f32.mxu0 %v20548_v27 }
 0x248   : > { %v1975_v46 = vpop.f32.mrf.mxu1 }
 0x24a   : > { %v1977_v17 = vpop.f32.mrf.mxu1 }
 0x24e   : > { %v1982_v44 = vpop.f32.mrf.mxu1 }
 0x250   : > { %v1984_v48 = vpop.f32.mrf.mxu1  ;;  %v1848_v50 = vpop.f32.mrf.mxu0 }
 0x251   : > { %v1976_v11 = vadd.f32 %v1975_v46, %v1848_v50 }
 0x252   : > { %v1850_v12 = vpop.f32.mrf.mxu0 }
 0x256   : > { %v1863_v53 = vpop.f32.mrf.mxu0 }
 0x257   : > { %v1983_v38 = vadd.f32 %v1982_v44, %v1863_v53 }
 0x258   : > { %v1865_v31 = vpop.f32.mrf.mxu0 }
 0x259   : > { %v2165_v37 = vpop.f32.mrf.mxu1 }
 0x25b   : > { %v2167_v2 = vpop.f32.mrf.mxu1 }
 0x25d   : > { %v2176_v16 = vpop.f32.mrf.mxu1 }
 0x25f   : > { %v2178_v0 = vpop.f32.mrf.mxu1 }
 0x260   : > { %v2072_v45 = vpop.f32.mrf.mxu0 }
 0x261   : > { %v2073_v20 = vadd.f32 %v2072_v45, %v1976_v11  ;;  %v4201_v11 = vsel %vm4196_vm1, %v506_v51, 0  ;;  %v19246_v51 = vmov 2   ;;  %vm9764_vm1 = vcmask 654336  }
 0x262   : > { %v2074_v29 = vpop.f32.mrf.mxu0  ;;  %18913 = vset.pattern.permute.xlu0 %v19246_v51 }
 0x264   : > { %v2081_v3 = vpop.f32.mrf.mxu0 }
 0x265   : > { %v2082_v36 = vadd.f32 %v2081_v3, %v1983_v38  ;;  %v20553_v3 = vand.u32 4294901760, %v4201_v11 }
 0x266   : > { %v2083_v34 = vpop.f32.mrf.mxu0 }
 0x267   : > { %v2177_v15 = vadd.f32 %v2176_v16, %v2082_v36  ;;  %24195 = vst [vmem:[#allocation113_spill] sm:$0xff] %v20553_v3 }
 0x269   : > { %v2359_v19 = vpop.f32.mrf.mxu1 }
 0x26b   : > { %v2361_v54 = vpop.f32.mrf.mxu1 }
 0x26c   : > { %v2166_v54 = vadd.f32 %v2165_v37, %v2073_v20 }
 0x26d   : > { %v2366_v42 = vpop.f32.mrf.mxu1 }
 0x26f   : > { %v2368_v55 = vpop.f32.mrf.mxu1 }
 0x270   : > { %v2272_v17 = vpop.f32.mrf.mxu0 }
 0x271   : > { %v2273_v55 = vadd.f32 %v2272_v17, %v2166_v54 }
 0x272   : > { %v2274_v26 = vpop.f32.mrf.mxu0 }
 0x274   : > { %v2279_v48 = vpop.f32.mrf.mxu0 }
 0x275   : > { %v2280_v22 = vadd.f32 %v2279_v48, %v2177_v15 }
 0x276   : > { %v2281_v28 = vpop.f32.mrf.mxu0 }
 0x277   : > { %v2367_v6 = vadd.f32 %v2366_v42, %v2280_v22  ;;  %v19245_v42 = vmov 1   ;;  %v19012_v22 = vld [vmem:[%s23698_s6] sm:$0xff] }
 0x278   : > { %18912 = vset.pattern.permute.xlu1 %v19245_v42  ;;  %5230 = vperm.xlu0 %18913, %v19012_v22  }
 0x279   : > { %v2581_v46 = vpop.f32.mrf.mxu1  ;;  %5218 = vperm.xlu1 %18912, %v19012_v22  }
 0x27b   : > { %v2583_v50 = vpop.f32.mrf.mxu1 }
 0x27c   : > { %v2360_v50 = vadd.f32 %v2359_v19, %v2273_v55  ;;  %v20556_v19 = vsub.f32 %v4201_v11, %v20553_v3 }
 0x27d   : > { %v2588_v12 = vpop.f32.mrf.mxu1 }
 0x27e   : > { %24196 = vst [vmem:[#allocation114_spill] sm:$0xff] %v20556_v19  ;;  %v20562_v48 = vand.u32 4294901760, %v20556_v19 }
 0x27f   : > { %v2590_v31 = vpop.f32.mrf.mxu1 }
 0x280   : > { %v2454_v63 = vpop.f32.mrf.mxu0  ;;  %24197 = vst [vmem:[#allocation115_spill] sm:$0xff] %v20562_v48 }
 0x281   : > { %v2455_v31 = vadd.f32 %v2454_v63, %v2360_v50 }
 0x282   : > { %v2456_v2 = vpop.f32.mrf.mxu0 }
 0x283   : > { %v2582_v44 = vadd.f32 %v2581_v46, %v2455_v31 }
 0x284   : > { %v2469_v5 = vpop.f32.mrf.mxu0 }
 0x285   : > { %v2470_v45 = vadd.f32 %v2469_v5, %v2367_v6 }
 0x286   : > { %v2471_v0 = vpop.f32.mrf.mxu0 }
 0x289   : > { %v2771_v29 = vpop.f32.mrf.mxu1 }
 0x28b   : > { %v2773_v34 = vpop.f32.mrf.mxu1 }
 0x28c   : > { %v19013_v34 = vld [vmem:[%s23698_s6 + $0x8] sm:$0xff] }
 0x28d   : > { %v2782_v33 = vpop.f32.mrf.mxu1  ;;  %5222 = vperm.xlu1 %18912, %v19013_v34  }
 0x28f   : > { %v2784_v40 = vpop.f32.mrf.mxu1 }
 0x290   : > { %v2678_v26 = vpop.f32.mrf.mxu0  ;;  %v2589_v40 = vadd.f32 %v2588_v12, %v2470_v45 }
 0x291   : > { %v2679_v38 = vadd.f32 %v2678_v26, %v2582_v44  ;;  %v4283_v26 = vsub.f32 %v20556_v19, %v20562_v48  ;;  %18914 = vset.pattern.permute.xlu1 %v19246_v51 }
 0x292   : > { %v2680_v28 = vpop.f32.mrf.mxu0  ;;  %5234 = vperm.xlu1 %18914, %v19013_v34  }
 0x293   : > { %v2772_v15 = vadd.f32 %v2771_v29, %v2679_v38 }
 0x294   : > { %v2687_v10 = vpop.f32.mrf.mxu0 }
 0x295   : > { %v2688_v36 = vadd.f32 %v2687_v10, %v2589_v40 }
 0x296   : > { %v2689_v2 = vpop.f32.mrf.mxu0 }
 0x297   : > { %v2783_v10 = vadd.f32 %v2782_v33, %v2688_v36  ;;  %v20572_v2 = vand.u32 4294901760, %v4283_v26 }
 0x299   : > { %v2965_v53 = vpop.f32.mrf.mxu1  ;;  %24198 = vst [vmem:[#allocation116_spill] sm:$0xff] %v20572_v2 }
 0x29b   : > { %v2967_v20 = vpop.f32.mrf.mxu1 }
 0x29d   : > { %v2972_v37 = vpop.f32.mrf.mxu1 }
 0x29f   : > { %v2974_v16 = vpop.f32.mrf.mxu1 }
 0x2a0   : > { %v2878_v63 = vpop.f32.mrf.mxu0 }
 0x2a1   : > { %v2879_v17 = vadd.f32 %v2878_v63, %v2772_v15 }
 0x2a2   : > { %v2880_v6 = vpop.f32.mrf.mxu0 }
 0x2a3   : > { %v2966_v5 = vadd.f32 %v2965_v53, %v2879_v17 }
 0x2a4   : > { %v2885_v46 = vpop.f32.mrf.mxu0 }
 0x2a5   : > { %v20564_v12 = vand.u32 4294901760, %v2966_v5  ;;  %v2886_v0 = vadd.f32 %v2885_v46, %v2783_v10 }
 0x2a6   : > { %v2887_v29 = vpop.f32.mrf.mxu0 }
 0x2a7   : > { %v4327_v54 = vsub.f32 %v2966_v5, %v20564_v12  ;;  %v2973_v55 = vadd.f32 %v2972_v37, %v2886_v0 }
 0x2a9   : > { %v4232_v33 = vand.u32 4294901760, %v2973_v55  ;;  %v3195_v28 = vpop.f32.mrf.mxu1  ;;  %v4328_v11 = vand.u32 4294901760, %v4327_v54 }
 0x2ab   : > { %v4320_v50 = vsub.f32 %v2973_v55, %v4232_v33  ;;  %v3197_v31 = vpop.f32.mrf.mxu1  ;;  %18573 = vmatprep.subr.mxu0 %v4232_v33  ;;  %v4329_v20 = vsub.f32 %v4327_v54, %v4328_v11 }
 0x2ac   : > { %18574 = vmatpush3.msra.mxu0 %v4232_v33 }
 0x2ad   : > { %v20574_v45 = vpop.f32.mrf.mxu1  ;;  %18575 = vmatprep.subr.mxu0 %v20564_v12  ;;  %v4321_v44 = vand.u32 4294901760, %v4320_v50  ;;  %v4330_v15 = vand.u32 4294901760, %v4329_v20 }
 0x2ae   : > { %18576 = vmatpush3.msra.mxu0 %v20564_v12 }
 0x2af   : > { %v3204_v53 = vpop.f32.mrf.mxu1  ;;  %18587 = vmatprep.subr.mxu0 %v4320_v50  ;;  %18578 = vmatmul.mubr.f32.vlgmr.msra.gmra.mxu0 %v20572_v2  ;;  %v4322_v38 = vsub.f32 %v4320_v50, %v4321_v44 }
 0x2b0   : > { %v3068_v40 = vpop.f32.mrf.mxu0  ;;  %18588 = vmatpush3.msra.mxu0 %v4320_v50  ;;  %18591 = vmatprep.mubr.f32.mxu0 %v20530_v35 }
 0x2b1   : > { %v3196_v37 = vadd.f32 %v3195_v28, %v3068_v40  ;;  %18589 = vmatprep.subr.mxu0 %v4327_v54  ;;  %v4323_v36 = vand.u32 4294901760, %v4322_v38 }
 0x2b2   : > { %v3070_v16 = vpop.f32.mrf.mxu0  ;;  %18590 = vmatpush3.msra.mxu0 %v4327_v54 }
 0x2b3   : > { %18580 = vmatprep.subr.mxu1 %v4323_v36  ;;  %18601 = vmatprep.subr.mxu0 %v4321_v44 }
 0x2b4   : > { %v3083_v63 = vpop.f32.mrf.mxu0  ;;  %18581 = vmatpush3.msra.mxu1 %v4323_v36  ;;  %18592 = vmatmul.mubr.f32.vlgmr.msra.gmra.mxu0 %v20556_v19 }
 0x2b5   : > { %18602 = vmatpush3.msra.mxu0 %v4321_v44  ;;  %18582 = vmatprep.subr.mxu1 %v4330_v15 }
 0x2b6   : > { %18603 = vmatprep.subr.mxu0 %v4328_v11  ;;  %v3085_v17 = vpop.f32.mrf.mxu0  ;;  %18583 = vmatpush3.msra.mxu1 %v4330_v15  ;;  %v3203_v15 = vadd.f32 %v20574_v45, %v3083_v63 }
 0x2b7   : > { %18604 = vmatpush3.msra.mxu0 %v4328_v11  ;;  %18594 = vmatprep.subr.mxu1 %v4232_v33 }
 0x2b8   : > { %18585 = vmatmul.mubr.f32.vlgmr.msra.gmra.mxu1 %v20553_v3  ;;  %18605 = vmatprep.mubr.f32.mxu0 %v20522_v52 }
 0x2b9   : > { %v3385_v42 = vpop.f32.mrf.mxu1  ;;  %18595 = vmatpush3.msra.mxu1 %v4232_v33  ;;  %18598 = vmatprep.mubr.f32.mxu1 %v20537_v23 }
 0x2ba   : > { %18596 = vmatprep.subr.mxu1 %v20564_v12  ;;  %18606 = vmatmul.mubr.f32.vlgmr.msra.gmra.mxu0 %v20553_v3 }
 0x2bb   : > { %v3387_v51 = vpop.f32.mrf.mxu1  ;;  %18597 = vmatpush3.msra.mxu1 %v20564_v12  ;;  %18619 = vmatprep.mubr.f32.mxu0 %v20548_v27 }
 0x2bc   : > { %18608 = vmatprep.subr.mxu1 %v4232_v33  ;;  %18599 = vmatmul.mubr.f32.vlgmr.msra.gmra.mxu1 %v20562_v48 }
 0x2bd   : > { %v3396_v6 = vpop.f32.mrf.mxu1  ;;  %18609 = vmatpush3.msra.mxu1 %v4232_v33  ;;  %18612 = vmatprep.mubr.f32.mxu1 %v20522_v52 }
 0x2be   : > { %18610 = vmatprep.subr.mxu1 %v20564_v12 }
 0x2bf   : > { %v3398_v22 = vpop.f32.mrf.mxu1  ;;  %18611 = vmatpush3.msra.mxu1 %v20564_v12 }
 0x2c0   : > { %v3292_v5 = vpop.f32.mrf.mxu0  ;;  %18613 = vmatmul.mubr.f32.vlgmr.msra.gmra.mxu1 %v20553_v3 }
 0x2c1   : > { %18626 = vmatprep.mubr.f32.mxu1 %v20522_v52  ;;  %v3293_v36 = vadd.f32 %v3292_v5, %v3196_v37 }
 0x2c2   : > { %v3294_v10 = vpop.f32.mrf.mxu0 }
 0x2c3   : > { %v3386_v22 = vadd.f32 %v3385_v42, %v3293_v36 }
 0x2c4   : > { %v3301_v46 = vpop.f32.mrf.mxu0 }
 0x2c5   : > { %v3302_v51 = vadd.f32 %v3301_v46, %v3203_v15 }
 0x2c6   : > { %v3303_v0 = vpop.f32.mrf.mxu0 }
 0x2c9   : > { %v3579_v29 = vpop.f32.mrf.mxu1 }
 0x2cb   : > { %v3581_v34 = vpop.f32.mrf.mxu1 }
 0x2cd   : > { %v3586_v54 = vpop.f32.mrf.mxu1 }
 0x2cf   : > { %v3588_v55 = vpop.f32.mrf.mxu1 }
 0x2d0   : > { %v3492_v26 = vpop.f32.mrf.mxu0 }
 0x2d1   : > { %v3493_v0 = vadd.f32 %v3492_v26, %v3386_v22 }
 0x2d2   : > { %v3494_v33 = vpop.f32.mrf.mxu0 }
 0x2d3   : > { %v3397_v33 = vadd.f32 %v3396_v6, %v3302_v51  ;;  %v3580_v27 = vadd.f32 %v3579_v29, %v3493_v0 }
 0x2d4   : > { %v3499_v28 = vpop.f32.mrf.mxu0 }
 0x2d6   : > { %v3501_v50 = vpop.f32.mrf.mxu0 }
 0x2d9   : > { %v3801_v31 = vpop.f32.mrf.mxu1 }
 0x2db   : > { %v3803_v11 = vpop.f32.mrf.mxu1 }
 0x2dc   : > { %v3500_v11 = vadd.f32 %v3499_v28, %v3397_v33  ;;  %v24201_v33 = vmov 0.0  }
 0x2dd   : > { %v3808_v44 = vpop.f32.mrf.mxu1 }
 0x2de   : > { %v3587_v8 = vadd.f32 %v3586_v54, %v3500_v11  ;;  %v24203_v11 = vld [vmem:[#allocation58_spill] sm:$0xff] }
 0x2df   : > { %v3810_v12 = vpop.f32.mrf.mxu1 }
 0x2e0   : > { %v3674_v53 = vpop.f32.mrf.mxu0 }
 0x2e1   : > { %v3675_v1 = vadd.f32 %v3674_v53, %v3580_v27 }
 0x2e2   : > { %v3676_v38 = vpop.f32.mrf.mxu0 }
 0x2e3   : > { %v3802_v37 = vadd.f32 %v3801_v31, %v3675_v1 }
 0x2e4   : > { %v3689_v20 = vpop.f32.mrf.mxu0 }
 0x2e6   : > { %v3691_v40 = vpop.f32.mrf.mxu0 }
 0x2e7   : > { %v3690_v40 = vadd.f32 %v3689_v20, %v3587_v8 }
 0x2e9   : > { %v3991_v16 = vpop.f32.mrf.mxu1  ;;  %v3809_v63 = vadd.f32 %v3808_v44, %v3690_v40  ;;  %v24206_v40 = vld [vmem:[#allocation67_spill] sm:$0xff] }
 0x2eb   : > { %v3993_v17 = vpop.f32.mrf.mxu1 }
 0x2ed   : > { %v4002_v10 = vpop.f32.mrf.mxu1 }
 0x2ef   : > { %v4004_v34 = vpop.f32.mrf.mxu1 }
 0x2f0   : > { %v3898_v55 = vpop.f32.mrf.mxu0  ;;  %v24199_v34 = vld [vmem:[#allocation45_spill] sm:$0xff] }
 0x2f1   : > { %v3899_v13 = vadd.f32 %v3898_v55, %v3802_v37  ;;  %v24200_v55 = vld [vmem:[#allocation50_spill] sm:$0xff]  ;;  %v24207_v37 = vld [vmem:[#allocation68_spill] sm:$0xff] }
 0x2f2   : > { %v3900_v50 = vpop.f32.mrf.mxu0 }
 0x2f3   : > { %v3992_v26 = vadd.f32 %v3991_v16, %v3899_v13  ;;  %v24202_v50 = vld [vmem:[#allocation55_spill] sm:$0xff] }
 0x2f4   : > { %v3907_v12 = vpop.f32.mrf.mxu0 }
 0x2f5   : > { %v3908_v42 = vadd.f32 %v3907_v12, %v3809_v63  ;;  %v24204_v12 = vld [vmem:[#allocation63_spill] sm:$0xff] }
 0x2f6   : > { %v3909_v38 = vpop.f32.mrf.mxu0 }
 0x2f7   : > { %v4003_v28 = vadd.f32 %v4002_v10, %v3908_v42  ;;  %v24205_v38 = vld [vmem:[#allocation65_spill] sm:$0xff] }
 0x2f9   : > { %v4185_v5 = vpop.f32.mrf.mxu1 }
 0x2fb   : > { %v4187_v45 = vpop.f32.mrf.mxu1 }
 0x2fd   : > { %v4192_v46 = vpop.f32.mrf.mxu1 }
 0x2ff   : > { %v4194_v36 = vpop.f32.mrf.mxu1 }
 0x300   : > { %v4098_v15 = vpop.f32.mrf.mxu0 }
 0x301   : > { %v4099_v17 = vadd.f32 %v4098_v15, %v3992_v26 }
 0x302   : > { %v4100_v6 = vpop.f32.mrf.mxu0 }
 0x303   : > { %v4186_v51 = vadd.f32 %v4185_v5, %v4099_v17 }
 0x304   : > { %v4105_v29 = vpop.f32.mrf.mxu0 }
 0x305   : > { %v4737_v22 = vand.u32 4294901760, %v4186_v51  ;;  %v4106_v27 = vadd.f32 %v4105_v29, %v4003_v28 }
 0x306   : > { %v4107_v53 = vpop.f32.mrf.mxu0 }
 0x307   : > { %v4829_v54 = vsub.f32 %v4186_v51, %v4737_v22  ;;  %v4193_v8 = vadd.f32 %v4192_v46, %v4106_v27 }
 0x309   : > { %v4734_v1 = vand.u32 4294901760, %v4193_v8  ;;  %v4830_v20 = vand.u32 4294901760, %v4829_v54 }
 0x30b   : > { %v4822_v31 = vsub.f32 %v4193_v8, %v4734_v1  ;;  %18615 = vmatprep.subr.mxu0 %v4734_v1  ;;  %v4831_v16 = vsub.f32 %v4829_v54, %v4830_v20 }
 0x30c   : > { %18616 = vmatpush3.msra.mxu0 %v4734_v1 }
 0x30d   : > { %18617 = vmatprep.subr.mxu0 %v4737_v22  ;;  %v4823_v44 = vand.u32 4294901760, %v4822_v31  ;;  %v4832_v0 = vand.u32 4294901760, %v4831_v16 }
 0x30e   : > { %18618 = vmatpush3.msra.mxu0 %v4737_v22 }
 0x30f   : > { %18629 = vmatprep.subr.mxu0 %v4822_v31  ;;  %18620 = vmatmul.mubr.f32.vlgmr.msra.gmra.mxu0 %v20572_v2  ;;  %v4824_v13 = vsub.f32 %v4822_v31, %v4823_v44  ;;  %v24227_v2 = vld [vmem:[#allocation77_spill] sm:$0xff] }
 0x310   : > { %18630 = vmatpush3.msra.mxu0 %v4822_v31  ;;  %18633 = vmatprep.mubr.f32.mxu0 %v20530_v35  ;;  %v24226_v35 = vld [vmem:[#allocation75_spill] sm:$0xff] }
 0x311   : > { %18631 = vmatprep.subr.mxu0 %v4829_v54  ;;  %v4825_v10 = vand.u32 4294901760, %v4824_v13 }
 0x312   : > { %18632 = vmatpush3.msra.mxu0 %v4829_v54 }
 0x313   : > { %18622 = vmatprep.subr.mxu1 %v4825_v10  ;;  %18643 = vmatprep.subr.mxu0 %v4823_v44 }
 0x314   : > { %18623 = vmatpush3.msra.mxu1 %v4825_v10  ;;  %18634 = vmatmul.mubr.f32.vlgmr.msra.gmra.mxu0 %v20556_v19  ;;  %v24225_v19 = vld [vmem:[#allocation90_spill] sm:$0xff] }
 0x315   : > { %18644 = vmatpush3.msra.mxu0 %v4823_v44  ;;  %18624 = vmatprep.subr.mxu1 %v4832_v0 }
 0x316   : > { %18645 = vmatprep.subr.mxu0 %v4830_v20  ;;  %18625 = vmatpush3.msra.mxu1 %v4832_v0 }
 0x317   : > { %18646 = vmatpush3.msra.mxu0 %v4830_v20  ;;  %18627 = vmatmul.mubr.f32.vlgmr.msra.gmra.mxu1 %v20553_v3 }
 0x318   : > { %18636 = vmatprep.subr.mxu1 %v4734_v1  ;;  %18640 = vmatprep.mubr.f32.mxu1 %v20537_v23 }
 0x319   : > { %18637 = vmatpush3.msra.mxu1 %v4734_v1  ;;  %18647 = vmatprep.mubr.f32.mxu0 %v20522_v52 }
 0x31a   : > { %18638 = vmatprep.subr.mxu1 %v4737_v22  ;;  %18648 = vmatmul.mubr.f32.vlgmr.msra.gmra.mxu0 %v20553_v3 }
 0x31b   : > { %18639 = vmatpush3.msra.mxu1 %v4737_v22  ;;  %5271 = vmatprep.subr.mxu0 %v24165_v62 }
 0x31c   : > { %18641 = vmatmul.mubr.f32.vlgmr.msra.gmra.mxu1 %v20562_v48  ;;  %18650 = vmatprep.subr.mxu1 %v4734_v1 }
 0x31d   : > { %18651 = vmatpush3.msra.mxu1 %v4734_v1  ;;  %18654 = vmatprep.mubr.f32.mxu1 %v20522_v52  ;;  %v24228_v52 = vld [vmem:[#allocation80_spill] sm:$0xff] }
 0x31e   : > { %18652 = vmatprep.subr.mxu1 %v4737_v22  ;;  %5273 = vmatpush1.msra.mxu0 %v24167_v56 }
 0x31f   : > { %18653 = vmatpush3.msra.mxu1 %v4737_v22  ;;  %5275 = vmatprep.subr.mxu0 %v24169_v32 }
 0x320   : > { %18655 = vmatmul.mubr.f32.vlgmr.msra.gmra.mxu1 %v20553_v3  ;;  %5370 = vmatprep.subr.mxu1 %v24199_v34 }
 0x321   : > { %5376 = vmatpush1.msra.mxu1 %v24200_v55  ;;  %5445 = vmatprep.mubr.f32.mxu1 %v24201_v33 }
 0x322   : > { %5382 = vmatprep.subr.mxu1 %v24202_v50  ;;  %5277 = vmatpush1.msra.mxu0 %v24171_v49 }
 0x323   : > { %5388 = vmatpush1.msra.mxu1 %v24203_v11  ;;  %5279 = vmatprep.subr.mxu0 %v24173_v9 }
 0x324   : > { %5394 = vmatprep.subr.mxu1 %v24204_v12  ;;  %5281 = vmatpush1.msra.mxu0 %v19998_v61 }
 0x325   : > { %5400 = vmatpush1.msra.mxu1 %v24205_v38  ;;  %5283 = vmatprep.subr.mxu0 %v20018_v18 }
 0x326   : > { %5406 = vmatprep.subr.mxu1 %v24206_v40  ;;  %5285 = vmatpush1.msra.mxu0 %v20025_v39 }
 0x327   : > { %5412 = vmatpush1.msra.mxu1 %v24207_v37  ;;  %5318 = vmatprep.mubr.f32.mxu0 %v24201_v33 }
 0x328   : > { %5582 = vmatprep.subr.mxu1 %v24165_v62  ;;  %5486 = vmatprep.subr.mxu0 %v24174_v24 }
 0x36f   : > { %v18579_v5 = vpop.f32.mrf.mxu0 }
 0x371   : > { %v4276_v45 = vpop.f32.mrf.mxu0 }
 0x374   : > { %v18593_v46 = vpop.f32.mrf.mxu0 }
 0x376   : > { %v4449_v36 = vpop.f32.mrf.mxu0 }
 0x378   : > { %v18586_v63 = vpop.f32.mrf.mxu1 }
 0x379   : > { %v4374_v17 = vadd.f32 %v18586_v63, %v18579_v5 }
 0x37a   : > { %v4367_v42 = vpop.f32.mrf.mxu1  ;;  %v18607_v15 = vpop.f32.mrf.mxu0 }
 0x37b   : > { %v4368_v28 = vadd.f32 %v4367_v42, %v4276_v45  ;;  %v4457_v22 = vadd.f32 %v18593_v46, %v4374_v17 }
 0x37c   : > { %v18600_v26 = vpop.f32.mrf.mxu1  ;;  %v4616_v51 = vpop.f32.mrf.mxu0 }
 0x37d   : > { %v4450_v54 = vadd.f32 %v4449_v36, %v4368_v28  ;;  %v4540_v1 = vadd.f32 %v18600_v26, %v4457_v22 }
 0x37e   : > { %v4531_v6 = vpop.f32.mrf.mxu1 }
 0x37f   : > { %v4532_v20 = vadd.f32 %v4531_v6, %v4450_v54  ;;  %v4623_v10 = vadd.f32 %v18607_v15, %v4540_v1 }
 0x380   : > { %v18614_v27 = vpop.f32.mrf.mxu1 }
 0x381   : > { %v4617_v5 = vadd.f32 %v4616_v51, %v4532_v20  ;;  %v20625_v42 = vadd.f32 %v18614_v27, %v4623_v10  ;;  %v5219_v20 = vpop.permute.xlu1 %5218 }
 0x382   : > { %v4695_v31 = vpop.f32.mrf.mxu1 }
 0x383   : > { %v20627_v36 = vadd.f32 %v4695_v31, %v4617_v5  ;;  %v5208_v15 = vmul.f32 %v20625_v42, %v20625_v42 }
 0x3cf   : > { %v18621_v29 = vpop.f32.mrf.mxu0 }
 0x3d1   : > { %v4778_v53 = vpop.f32.mrf.mxu0 }
 0x3d4   : > { %v18635_v8 = vpop.f32.mrf.mxu0 }
 0x3d6   : > { %v4951_v16 = vpop.f32.mrf.mxu0 }
 0x3d7   : > { %v18628_v44 = vpop.f32.mrf.mxu1 }
 0x3d8   : > { %v4876_v13 = vadd.f32 %v18628_v44, %v18621_v29  ;;  %v5223_v44 = vpop.permute.xlu1 %5222 }
 0x3d9   : > { %v4869_v0 = vpop.f32.mrf.mxu1 }
 0x3da   : > { %v4959_v48 = vadd.f32 %v18635_v8, %v4876_v13  ;;  %v4870_v23 = vadd.f32 %v4869_v0, %v4778_v53  ;;  %v18649_v45 = vpop.f32.mrf.mxu0 }
 0x3dc   : > { %v4952_v63 = vadd.f32 %v4951_v16, %v4870_v23  ;;  %v18642_v3 = vpop.f32.mrf.mxu1  ;;  %v5118_v6 = vpop.f32.mrf.mxu0  ;;  %v5207_v23 = vmul.f32 %v20627_v36, %v20627_v36 }
 0x3dd   : > { %v5042_v46 = vadd.f32 %v18642_v3, %v4959_v48 }
 0x3de   : > { %v5033_v17 = vpop.f32.mrf.mxu1 }
 0x3df   : > { %v5125_v26 = vadd.f32 %v18649_v45, %v5042_v46  ;;  %v5034_v28 = vadd.f32 %v5033_v17, %v4952_v63 }
 0x3e0   : > { %v18656_v22 = vpop.f32.mrf.mxu1 }
 0x3e1   : > { %v5119_v29 = vadd.f32 %v5118_v6, %v5034_v28  ;;  %v5204_v54 = vadd.f32 %v18656_v22, %v5125_v26 }
 0x3e2   : > { %v5197_v53 = vpop.f32.mrf.mxu1 }
 0x3e3   : > { %v5210_v51 = vsub.f32 %v5204_v54, %v5208_v15  ;;  %v5198_v27 = vadd.f32 %v5197_v53, %v5119_v29  ;;  %v24208_v53 = vld [vmem:[#allocation97_spill] sm:$0xff] }
 0x3e5   : > { %v5212_v8 = vmax.f32 %v5210_v51, 0.0  ;;  %v5209_v3 = vsub.f32 %v5198_v27, %v5207_v23  ;;  %v24209_v23 = vld [vmem:[#allocation56_spill] sm:$0xff]  ;;  %v24210_v51 = vld [vmem:[#allocation101_spill] sm:$0xff]  ;;  %v24211_v27 = vld [vmem:[#allocation59_spill] sm:$0xff] }
 0x3e7   : > { %v5214_v48 = vadd.f32 1e-05, %v5212_v8  ;;  %v5211_v1 = vmax.f32 %v5209_v3, 0.0  ;;  %v24212_v8 = vld [vmem:[#allocation103_spill] sm:$0xff]  ;;  %v24213_v3 = vld [vmem:[#allocation64_spill] sm:$0xff] }
 0x3e9   : > { %18924 = vrsqrt.f32 %v5214_v48  ;;  %v5213_v31 = vadd.f32 1e-05, %v5211_v1  ;;  %v24214_v48 = vld [vmem:[#allocation104_spill] sm:$0xff]  ;;  %v24215_v1 = vld [vmem:[#allocation66_spill] sm:$0xff] }
 0x3eb   : > { %18926 = vrsqrt.f32 %v5213_v31  ;;  %v24216_v31 = vld [vmem:[#allocation107_spill] sm:$0xff] }
 0x3f6   : > { %v18925_v13 = vpop.eup %18924 }
 0x3f7   : > { %v20633_v16 = vmul.f32 %v18925_v13, %v5223_v44  ;;  %v24218_v44 = vld [vmem:[#allocation108_spill] sm:$0xff]  ;;  %v24219_v13 = vld [vmem:[#allocation74_spill] sm:$0xff] }
 0x3f8   : > { %v18927_v10 = vpop.eup %18926 }
 0x3f9   : > { %v20635_v0 = vmul.f32 %v18927_v10, %v5219_v20  ;;  %v5244_v5 = vsel %vm5239_vm2, %v20633_v16, 0  ;;  %v24217_v20 = vld [vmem:[#allocation73_spill] sm:$0xff]  ;;  %v24220_v10 = vld [vmem:[#allocation76_spill] sm:$0xff] }
 0x3fa   : > { %v20639_v63 = vand.u32 4294901760, %v5244_v5 }
 0x3fb   : > { %v5241_v45 = vsel %vm5239_vm2, %v20635_v0, 0 }
 0x3fc   : > { %v20643_v46 = vand.u32 4294901760, %v5241_v45  ;;  %v20649_v26 = vsub.f32 %v5244_v5, %v20639_v63  ;;  %v24221_v5 = vld [vmem:[#allocation78_spill] sm:$0xff] }
 0x3fe   : > { %v20646_v17 = vsub.f32 %v5241_v45, %v20643_v46  ;;  %5447 = vmatmul.mubr.f32.vlgmr.msra.gmra.mxu1 %v20643_v46  ;;  %v20664_v22 = vand.u32 4294901760, %v20649_v26  ;;  %v24222_v45 = vld [vmem:[#allocation81_spill] sm:$0xff] }
 0x3ff   : > { %5584 = vmatpush1.msra.mxu1 %v24167_v56  ;;  %5452 = vmatprep.mubr.f32.mxu1 %v24201_v33 }
 0x400   : > { %v20655_v28 = vand.u32 4294901760, %v20646_v17  ;;  %5586 = vmatprep.subr.mxu1 %v24169_v32  ;;  %v5333_v29 = vsub.f32 %v20649_v26, %v20664_v22 }
 0x401   : > { %5588 = vmatpush1.msra.mxu1 %v24171_v49 }
 0x402   : > { %5454 = vmatmul.mubr.f32.gmra.mxu1 %v20639_v63  ;;  %5590 = vmatprep.subr.mxu1 %v24173_v9  ;;  %v5322_v6 = vsub.f32 %v20646_v17, %v20655_v28  ;;  %v20684_v54 = vand.u32 4294901760, %v5333_v29  ;;  %v24224_v29 = vld [vmem:[#allocation87_spill] sm:$0xff] }
 0x403   : > { %5592 = vmatpush1.msra.mxu1 %v19998_v61  ;;  %5629 = vmatprep.mubr.f32.mxu1 %v24201_v33 }
 0x404   : > { %5594 = vmatprep.subr.mxu1 %v20018_v18  ;;  %v20669_v15 = vand.u32 4294901760, %v5322_v6  ;;  %v24223_v6 = vld [vmem:[#allocation84_spill] sm:$0xff] }
 0x405   : > { %5596 = vmatpush1.msra.mxu1 %v20025_v39 }
 0x406   : > { %5324 = vmatmul.mubr.f32.vlgmr.msra.gmra.mxu0 %v20669_v15  ;;  %5633 = vmatmul.mubr.f32.vlgmr.msra.gmra.mxu1 %v20655_v28 }
 0x407   : > { %5489 = vmatpush1.msra.mxu0 %v24175_v57  ;;  %5776 = vmatprep.subr.mxu1 %v24165_v62 }
 0x408   : > { %5492 = vmatprep.subr.mxu0 %v24176_v7  ;;  %5778 = vmatpush1.msra.mxu1 %v24167_v56 }
 0x409   : > { %5495 = vmatpush1.msra.mxu0 %v24177_v58  ;;  %5780 = vmatprep.subr.mxu1 %v24169_v32 }
 0x40a   : > { %5329 = vmatprep.mubr.f32.mxu0 %v24201_v33  ;;  %5498 = vmatprep.subr.mxu0 %v24178_v21 }
 0x40b   : > { %5638 = vmatprep.mubr.f32.mxu1 %v24201_v33  ;;  %5782 = vmatpush1.msra.mxu1 %v24171_v49 }
 0x40c   : > { %5335 = vmatmul.mubr.f32.gmra.mxu0 %v20684_v54  ;;  %5642 = vmatmul.mubr.f32.gmra.mxu1 %v20664_v22 }
 0x40d   : > { %5501 = vmatpush1.msra.mxu0 %v24179_v43  ;;  %5784 = vmatprep.subr.mxu1 %v24173_v9 }
 0x40e   : > { %5504 = vmatprep.subr.mxu0 %v24180_v59  ;;  %5786 = vmatpush1.msra.mxu1 %v19998_v61 }
 0x40f   : > { %5507 = vmatpush1.msra.mxu0 %v24181_v47  ;;  %5788 = vmatprep.subr.mxu1 %v20018_v18 }
 0x410   : > { %5540 = vmatprep.mubr.f32.mxu0 %v24201_v33  ;;  %5675 = vmatprep.subr.mxu0 %v24182_v14 }
 0x411   : > { %5790 = vmatpush1.msra.mxu1 %v20025_v39  ;;  %5823 = vmatprep.mubr.f32.mxu1 %v24201_v33 }
 0x412   : > { %5543 = vmatmul.mubr.f32.vlgmr.msra.gmra.mxu0 %v20646_v17  ;;  %5825 = vmatmul.mubr.f32.vlgmr.msra.gmra.mxu1 %v20643_v46 }
 0x413   : > { %5679 = vmatpush1.msra.mxu0 %v19971_v41  ;;  %5962 = vmatprep.subr.mxu1 %v24185_v4 }
 0x414   : > { %5683 = vmatprep.subr.mxu0 %v24183_v30  ;;  %5968 = vmatpush1.msra.mxu1 %v20239_v25 }
 0x415   : > { %5687 = vmatpush1.msra.mxu0 %v19996_v60  ;;  %5974 = vmatprep.subr.mxu1 %v24208_v53 }
 0x416   : > { %5548 = vmatprep.mubr.f32.mxu0 %v24201_v33  ;;  %5691 = vmatprep.subr.mxu0 %v24209_v23 }
 0x417   : > { %5830 = vmatprep.mubr.f32.mxu1 %v24201_v33  ;;  %5980 = vmatpush1.msra.mxu1 %v24210_v51 }
 0x418   : > { %5551 = vmatmul.mubr.f32.gmra.mxu0 %v20649_v26  ;;  %5832 = vmatmul.mubr.f32.gmra.mxu1 %v20639_v63 }
 0x419   : > { %5695 = vmatpush1.msra.mxu0 %v24211_v27  ;;  %5986 = vmatprep.subr.mxu1 %v24212_v8 }
 0x41a   : > { %5699 = vmatprep.subr.mxu0 %v24213_v3  ;;  %5992 = vmatpush1.msra.mxu1 %v24214_v48 }
 0x41b   : > { %5703 = vmatpush1.msra.mxu0 %v24215_v1  ;;  %5998 = vmatprep.subr.mxu1 %v24216_v31 }
 0x41c   : > { %5736 = vmatprep.mubr.f32.mxu0 %v24201_v33  ;;  %5863 = vmatprep.subr.mxu0 %v24217_v20 }
 0x41d   : > { %6004 = vmatpush1.msra.mxu1 %v24218_v44  ;;  %6037 = vmatprep.mubr.f32.mxu1 %v24201_v33  ;;  %v24229_v44 = vld [vmem:[#allocation83_spill] sm:$0xff] }
 0x41e   : > { %5738 = vmatmul.mubr.f32.vlgmr.msra.gmra.mxu0 %v20643_v46  ;;  %6039 = vmatmul.mubr.f32.vlgmr.msra.gmra.mxu1 %v20643_v46 }
 0x41f   : > { %5865 = vmatpush1.msra.mxu0 %v24219_v13  ;;  %6174 = vmatprep.subr.mxu1 %v24217_v20 }
 0x420   : > { %5867 = vmatprep.subr.mxu0 %v24220_v10  ;;  %6176 = vmatpush1.msra.mxu1 %v24219_v13 }
 0x421   : > { %5869 = vmatpush1.msra.mxu0 %v24221_v5  ;;  %6178 = vmatprep.subr.mxu1 %v24220_v10 }
 0x422   : > { %5743 = vmatprep.mubr.f32.mxu0 %v24201_v33  ;;  %5871 = vmatprep.subr.mxu0 %v24222_v45 }
 0x423   : > { %6044 = vmatprep.mubr.f32.mxu1 %v24201_v33  ;;  %6180 = vmatpush1.msra.mxu1 %v24221_v5 }
 0x424   : > { %5745 = vmatmul.mubr.f32.gmra.mxu0 %v20639_v63  ;;  %6046 = vmatmul.mubr.f32.gmra.mxu1 %v20639_v63 }
 0x425   : > { %5873 = vmatpush1.msra.mxu0 %v24223_v6  ;;  %6182 = vmatprep.subr.mxu1 %v24222_v45 }
 0x426   : > { %5875 = vmatprep.subr.mxu0 %v24224_v29  ;;  %6184 = vmatpush1.msra.mxu1 %v24223_v6 }
 0x427   : > { %5877 = vmatpush1.msra.mxu0 %v24225_v19  ;;  %6186 = vmatprep.subr.mxu1 %v24224_v29 }
 0x428   : > { %5910 = vmatprep.mubr.f32.mxu0 %v24201_v33  ;;  %6078 = vmatprep.subr.mxu0 %v24226_v35  ;;  %v24230_v35 = vld [vmem:[#allocation86_spill] sm:$0xff] }
 0x429   : > { %6188 = vmatpush1.msra.mxu1 %v24225_v19  ;;  %6221 = vmatprep.mubr.f32.mxu1 %v24201_v33 }
 0x42a   : > { %5916 = vmatmul.mubr.f32.vlgmr.msra.gmra.mxu0 %v20669_v15  ;;  %6225 = vmatmul.mubr.f32.vlgmr.msra.gmra.mxu1 %v20655_v28  ;;  %v20761_v28 = vld [vmem:[%s19519_s27 + $0x18] sm:$0xff]  ;;  %v5227_v15 = vmul.f32 %v20635_v0, %v20627_v36  ;;  %v20779_v0 = vld [vmem:[%s19519_s27 + $0x10] sm:$0xff] }
 0x42b   : > { %6081 = vmatpush1.msra.mxu0 %v24227_v2  ;;  %6368 = vmatprep.subr.mxu1 %v24217_v20  ;;  %v7727_v2 = vmin.f32 %v20761_v28, 20.0  ;;  %vm7747_vm3 = vcmp.gt.f32.partialorder %v20761_v28, 20.0  ;;  %vm7746_vm4 = vcmp.gt.f32.partialorder %v20779_v0, 20.0 }
 0x42c   : > { %6084 = vmatprep.subr.mxu0 %v24228_v52  ;;  %6370 = vmatpush1.msra.mxu1 %v24219_v13  ;;  %v5231_v52 = vpop.permute.xlu0 %5230 }
 0x42d   : > { %6087 = vmatpush1.msra.mxu0 %v24229_v44  ;;  %6372 = vmatprep.subr.mxu1 %v24220_v10  ;;  %v24231_v44 = vld [vmem:[#allocation89_spill] sm:$0xff]  ;;  %v5237_v36 = vsub.f32 %v5231_v52, %v5227_v15  ;;  %v5235_v52 = vpop.permute.xlu1 %5234 }
 0x42e   : > { %5921 = vmatprep.mubr.f32.mxu0 %v24201_v33  ;;  %6090 = vmatprep.subr.mxu0 %v24230_v35  ;;  %v24232_v35 = vld [vmem:[#allocation93_spill] sm:$0xff] }
 0x42f   : > { %6230 = vmatprep.mubr.f32.mxu1 %v24201_v33  ;;  %6374 = vmatpush1.msra.mxu1 %v24221_v5  ;;  %v24233_v5 = vld [vmem:[#allocation96_spill] sm:$0xff]  ;;  %v24236_v15 = vld [vmem:[#allocation85_spill] sm:$0xff] }
 0x430   : > { %5927 = vmatmul.mubr.f32.gmra.mxu0 %v20684_v54  ;;  %6234 = vmatmul.mubr.f32.gmra.mxu1 %v20664_v22  ;;  %v24234_v22 = vld [vmem:[#allocation79_spill] sm:$0xff]  ;;  %v7734_v54 = vmul.f32 1.442695, %v7727_v2  ;;  %v24238_v2 = vld [vmem:[#allocation92_spill] sm:$0xff] }
 0x431   : > { %6093 = vmatpush1.msra.mxu0 %v24231_v44  ;;  %6376 = vmatprep.subr.mxu1 %v24222_v45  ;;  %v20791_v44 = vld [vmem:[%s19519_s27 + $0x8] sm:$0xff] }
 0x432   : > { %6096 = vmatprep.subr.mxu0 %v24232_v35  ;;  %6378 = vmatpush1.msra.mxu1 %v24223_v6  ;;  %v24235_v35 = vld [vmem:[#allocation82_spill] sm:$0xff]  ;;  %18928 = vpow2.f32 %v7734_v54  ;;  %vm7745_vm5 = vcmp.gt.f32.partialorder %v20791_v44, 20.0 }
 0x433   : > { %6099 = vmatpush1.msra.mxu0 %v24233_v5  ;;  %6380 = vmatprep.subr.mxu1 %v24224_v29  ;;  %v5228_v5 = vmul.f32 %v20633_v16, %v20625_v42  ;;  %v20799_v42 = vld [vmem:[%s19519_s27] sm:$0xff]  ;;  %s19249_s27 = smov 1  }
 0x434   : > { %6132 = vmatprep.mubr.f32.mxu0 %v24201_v33  ;;  %6267 = vmatprep.subr.mxu0 %v24234_v22  ;;  %v7726_v22 = vmin.f32 %v20779_v0, 20.0  ;;  %v7724_v54 = vmin.f32 %v20799_v42, 20.0  ;;  %vm7744_vm6 = vcmp.gt.f32.partialorder %v20799_v42, 20.0 }
 0x435   : > { %6382 = vmatpush1.msra.mxu1 %v24225_v19  ;;  %6415 = vmatprep.mubr.f32.mxu1 %v24201_v33  ;;  %v24237_v19 = vld [vmem:[#allocation88_spill] sm:$0xff]  ;;  %v5238_v16 = vsub.f32 %v5235_v52, %v5228_v5  ;;  %v24240_v5 = vld [vmem:[#allocation98_spill] sm:$0xff] }
 0x436   : > { %6135 = vmatmul.mubr.f32.vlgmr.msra.gmra.mxu0 %v20646_v17  ;;  %6417 = vmatmul.mubr.f32.vlgmr.msra.gmra.mxu1 %v20643_v46  ;;  %v6439_v17 = vsel %vm5239_vm2, %v5237_v36, 0  ;;  %v7732_v36 = vmul.f32 1.442695, %v7726_v22  ;;  %v7728_v22 = vmul.f32 1.442695, %v7724_v54 }
 0x437   : > { %6271 = vmatpush1.msra.mxu0 %v24235_v35  ;;  %6568 = vmatprep.subr.mxu1 %v24199_v34  ;;  %v20804_v34 = vand.u32 4294901760, %v6439_v17  ;;  %v6442_v52 = vsel %vm5239_vm2, %v5238_v16, 0 }
 0x438   : > { %6275 = vmatprep.subr.mxu0 %v24236_v15  ;;  %6574 = vmatpush1.msra.mxu1 %v24200_v55  ;;  %v7725_v55 = vmin.f32 %v20791_v44, 20.0  ;;  %18930 = vpow2.f32 %v7732_v36 }
 0x439   : > { %6279 = vmatpush1.msra.mxu0 %v24237_v19  ;;  %6580 = vmatprep.subr.mxu1 %v24202_v50  ;;  %v24239_v50 = vld [vmem:[#allocation94_spill] sm:$0xff] }
 0x43a   : > { %6140 = vmatprep.mubr.f32.mxu0 %v24201_v33  ;;  %6283 = vmatprep.subr.mxu0 %v24238_v2  ;;  %v20817_v2 = vsub.f32 %v6439_v17, %v20804_v34 }
 0x43b   : > { %6422 = vmatprep.mubr.f32.mxu1 %v24201_v33  ;;  %6586 = vmatpush1.msra.mxu1 %v24203_v11  ;;  %v24241_v11 = vld [vmem:[#allocation102_spill] sm:$0xff] }
 0x43c   : > { %6143 = vmatmul.mubr.f32.gmra.mxu0 %v20649_v26  ;;  %6424 = vmatmul.mubr.f32.gmra.mxu1 %v20639_v63  ;;  %v7730_v26 = vmul.f32 1.442695, %v7725_v55  ;;  %v20830_v55 = vand.u32 4294901760, %v20817_v2 }
 0x43d   : > { %6287 = vmatpush1.msra.mxu0 %v24239_v50  ;;  %6592 = vmatprep.subr.mxu1 %v24204_v12 }
 0x43e   : > { %6291 = vmatprep.subr.mxu0 %v24240_v5  ;;  %6598 = vmatpush1.msra.mxu1 %v24205_v38  ;;  %v20823_v38 = vand.u32 4294901760, %v6442_v52  ;;  %18932 = vpow2.f32 %v7730_v26  ;;  %v6520_v16 = vsub.f32 %v20817_v2, %v20830_v55 }
 0x43f   : > { %6295 = vmatpush1.msra.mxu0 %v24241_v11  ;;  %6604 = vmatprep.subr.mxu1 %v24206_v40  ;;  %18934 = vpow2.f32 %v7728_v22  ;;  %v18929_v17 = vpop.eup %18928 }
 0x440   : > { %6328 = vmatprep.mubr.f32.mxu0 %v24201_v33  ;;  %6469 = vmatprep.subr.mxu0 %v24165_v62  ;;  %v7739_v54 = vadd.f32 2.0, %v18929_v17 }
 0x441   : > { %6610 = vmatpush1.msra.mxu1 %v24207_v37  ;;  %6643 = vmatprep.mubr.f32.mxu1 %v24201_v33 }
 0x442   : > { %6330 = vmatmul.mubr.f32.vlgmr.msra.gmra.mxu0 %v20643_v46  ;;  %6645 = vmatmul.mubr.f32.vlgmr.msra.gmra.mxu1 %v20804_v34  ;;  %v20837_v46 = vsub.f32 %v6442_v52, %v20823_v38  ;;  %v7743_v22 = vmul.f32 %v18929_v17, %v7739_v54 }
 0x443   : > { %6471 = vmatpush1.msra.mxu0 %v24167_v56  ;;  %6780 = vmatprep.subr.mxu1 %v24165_v62 }
 0x444   : > { %6473 = vmatprep.subr.mxu0 %v24169_v32  ;;  %6782 = vmatpush1.msra.mxu1 %v24167_v56  ;;  %v20852_v36 = vand.u32 4294901760, %v20837_v46  ;;  %v7755_v54 = vadd.f32 2.0, %v7743_v22 }
 0x445   : > { %6475 = vmatpush1.msra.mxu0 %v24171_v49  ;;  %6784 = vmatprep.subr.mxu1 %v24169_v32  ;;  %v18931_v52 = vpop.eup %18930 }
 0x446   : > { %6335 = vmatprep.mubr.f32.mxu0 %v24201_v33  ;;  %6477 = vmatprep.subr.mxu0 %v24173_v9  ;;  %v6531_v26 = vsub.f32 %v20837_v46, %v20852_v36  ;;  %18936 = vrcp.f32 %v7755_v54 }
 0x447   : > { %6650 = vmatprep.mubr.f32.mxu1 %v24201_v33  ;;  %6786 = vmatpush1.msra.mxu1 %v24171_v49 }
 0x448   : > { %6337 = vmatmul.mubr.f32.gmra.mxu0 %v20639_v63  ;;  %6652 = vmatmul.mubr.f32.gmra.mxu1 %v20823_v38  ;;  %v20858_v63 = vand.u32 4294901760, %v6520_v16  ;;  %v7738_v16 = vadd.f32 2.0, %v18931_v52  ;;  %v20874_v17 = vand.u32 4294901760, %v6531_v26 }
 0x449   : > { %6479 = vmatpush1.msra.mxu0 %v19998_v61  ;;  %6788 = vmatprep.subr.mxu1 %v24173_v9 }
 0x44a   : > { %6481 = vmatprep.subr.mxu0 %v20018_v18  ;;  %6790 = vmatpush1.msra.mxu1 %v19998_v61 }
 0x44b   : > { %6483 = vmatpush1.msra.mxu0 %v20025_v39  ;;  %6792 = vmatprep.subr.mxu1 %v20018_v18 }
 0x44c   : > { %6516 = vmatprep.mubr.f32.mxu0 %v24201_v33  ;;  %6684 = vmatprep.subr.mxu0 %v24174_v24  ;;  %v18933_v24 = vpop.eup %18932 }
 0x44d   : > { %6794 = vmatpush1.msra.mxu1 %v20025_v39  ;;  %6827 = vmatprep.mubr.f32.mxu1 %v24201_v33  ;;  %v18935_v37 = vpop.eup %18934 }
 0x44e   : > { %6522 = vmatmul.mubr.f32.vlgmr.msra.gmra.mxu0 %v20858_v63  ;;  %6831 = vmatmul.mubr.f32.vlgmr.msra.gmra.mxu1 %v20830_v55 }
 0x44f   : > { %6687 = vmatpush1.msra.mxu0 %v24175_v57  ;;  %6974 = vmatprep.subr.mxu1 %v24165_v62  ;;  %v7736_v57 = vadd.f32 2.0, %v18935_v37 }
 0x450   : > { %6690 = vmatprep.subr.mxu0 %v24176_v7  ;;  %6976 = vmatpush1.msra.mxu1 %v24167_v56  ;;  %v7737_v7 = vadd.f32 2.0, %v18933_v24 }
 0x451   : > { %6693 = vmatpush1.msra.mxu0 %v24177_v58  ;;  %6978 = vmatprep.subr.mxu1 %v24169_v32  ;;  %v7742_v58 = vmul.f32 %v18931_v52, %v7738_v16  ;;  %v7740_v16 = vmul.f32 %v18935_v37, %v7736_v57  ;;  %v7751_v57 = vmul.f32 %v7743_v22, %v20761_v28  ;;  %v24242_v37 = vld [vmem:[#allocation108_spill] sm:$0xff] }
 0x452   : > { %6527 = vmatprep.mubr.f32.mxu0 %v24201_v33  ;;  %6696 = vmatprep.subr.mxu0 %v24178_v21  ;;  %v7741_v26 = vmul.f32 %v18933_v24, %v7737_v7 }
 0x453   : > { %6836 = vmatprep.mubr.f32.mxu1 %v24201_v33  ;;  %6980 = vmatpush1.msra.mxu1 %v24171_v49  ;;  %v7754_v52 = vadd.f32 2.0, %v7742_v58  ;;  %v7752_v7 = vadd.f32 2.0, %v7740_v16  ;;  %v18937_v24 = vpop.eup %18936  ;;  %v7750_v22 = vmul.f32 %v7742_v58, %v20779_v0 }
 0x454   : > { %6533 = vmatmul.mubr.f32.gmra.mxu0 %v20874_v17  ;;  %6840 = vmatmul.mubr.f32.gmra.mxu1 %v20852_v36  ;;  %v7753_v54 = vadd.f32 2.0, %v7741_v26 }
 0x455   : > { %6699 = vmatpush1.msra.mxu0 %v24179_v43  ;;  %6982 = vmatprep.subr.mxu1 %v24173_v9  ;;  %18938 = vrcp.f32 %v7754_v52  ;;  %v7763_v52 = vmul.f32 %v18937_v24, %v7751_v57  ;;  %v7749_v24 = vmul.f32 %v7741_v26, %v20791_v44  ;;  %v24244_v26 = vld [vmem:[#allocation90_spill] sm:$0xff] }
 0x456   : > { %6702 = vmatprep.subr.mxu0 %v24180_v59  ;;  %6984 = vmatpush1.msra.mxu1 %v19998_v61  ;;  %18940 = vrcp.f32 %v7753_v54 }
 0x457   : > { %6705 = vmatpush1.msra.mxu0 %v24181_v47  ;;  %6986 = vmatprep.subr.mxu1 %v20018_v18  ;;  %18942 = vrcp.f32 %v7752_v7  ;;  %v24243_v7 = vld [vmem:[#allocation78_spill] sm:$0xff]  ;;  %v7767_v57 = vsel %vm7747_vm3, %v20761_v28, %v7763_v52  ;;  %v7748_v28 = vmul.f32 %v7740_v16, %v20799_v42  ;;  %vm9595_vm3 = vcmask 7168  }
 0x458   : > { %6738 = vmatprep.mubr.f32.mxu0 %v24201_v33  ;;  %6873 = vmatprep.subr.mxu0 %v24182_v14 }
 0x459   : > { %6988 = vmatpush1.msra.mxu1 %v20025_v39  ;;  %7021 = vmatprep.mubr.f32.mxu1 %v24201_v33 }
 0x45a   : > { %6741 = vmatmul.mubr.f32.vlgmr.msra.gmra.mxu0 %v20817_v2  ;;  %7023 = vmatmul.mubr.f32.vlgmr.msra.gmra.mxu1 %v20804_v34 }
 0x45b   : > { %6877 = vmatpush1.msra.mxu0 %v19971_v41  ;;  %7160 = vmatprep.subr.mxu1 %v24185_v4 }
 0x45c   : > { %6881 = vmatprep.subr.mxu0 %v24183_v30  ;;  %7166 = vmatpush1.msra.mxu1 %v20239_v25 }
 0x45d   : > { %6885 = vmatpush1.msra.mxu0 %v19996_v60  ;;  %7172 = vmatprep.subr.mxu1 %v24208_v53 }
 0x45e   : > { %6746 = vmatprep.mubr.f32.mxu0 %v24201_v33  ;;  %6889 = vmatprep.subr.mxu0 %v24209_v23 }
 0x45f   : > { %7028 = vmatprep.mubr.f32.mxu1 %v24201_v33  ;;  %7178 = vmatpush1.msra.mxu1 %v24210_v51 }
 0x460   : > { %6749 = vmatmul.mubr.f32.gmra.mxu0 %v20837_v46  ;;  %7030 = vmatmul.mubr.f32.gmra.mxu1 %v20823_v38 }
 0x461   : > { %6893 = vmatpush1.msra.mxu0 %v24211_v27  ;;  %7184 = vmatprep.subr.mxu1 %v24212_v8 }
 0x462   : > { %6897 = vmatprep.subr.mxu0 %v24213_v3  ;;  %7190 = vmatpush1.msra.mxu1 %v24214_v48  ;;  %v18939_v54 = vpop.eup %18938 }
 0x463   : > { %6901 = vmatpush1.msra.mxu0 %v24215_v1  ;;  %7196 = vmatprep.subr.mxu1 %v24216_v31  ;;  %v7761_v58 = vmul.f32 %v18939_v54, %v7750_v22  ;;  %v20935_v1 = vand.u32 4294901760, %v7767_v57  ;;  %v24245_v54 = vld [vmem:[#allocation75_spill] sm:$0xff] }
 0x464   : > { %6934 = vmatprep.mubr.f32.mxu0 %v24201_v33  ;;  %7061 = vmatprep.subr.mxu0 %v24217_v20 }
 0x465   : > { %7202 = vmatpush1.msra.mxu1 %v24242_v37  ;;  %7235 = vmatprep.mubr.f32.mxu1 %v24201_v33  ;;  %v18941_v37 = vpop.eup %18940  ;;  %v7766_v31 = vsel %vm7746_vm4, %v20779_v0, %v7761_v58  ;;  %v20950_v16 = vsub.f32 %v7767_v57, %v20935_v1  ;;  %v24247_v58 = vld [vmem:[#allocation80_spill] sm:$0xff]  ;;  %v7768_v57 = vld [vmem:[#allocation7] sm:$0xff]  ;;  %vm9536_vm4 = vcmask 15360  }
 0x466   : > { %6936 = vmatmul.mubr.f32.vlgmr.msra.gmra.mxu0 %v20804_v34  ;;  %7237 = vmatmul.mubr.f32.vlgmr.msra.gmra.mxu1 %v20804_v34  ;;  %v18943_v52 = vpop.eup %18942  ;;  %v7759_v22 = vmul.f32 %v18941_v37, %v7749_v24  ;;  %v24246_v37 = vld [vmem:[#allocation77_spill] sm:$0xff]  ;;  %v20957_v0 = vand.u32 4294901760, %v7766_v31 }
 0x467   : > { %7063 = vmatpush1.msra.mxu0 %v24219_v13  ;;  %7372 = vmatprep.subr.mxu1 %v24217_v20  ;;  %v7757_v3 = vmul.f32 %v18943_v52, %v7748_v28  ;;  %v24248_v28 = vld [vmem:[#allocation83_spill] sm:$0xff]  ;;  %v24249_v52 = vld [vmem:[#allocation86_spill] sm:$0xff] }
 0x468   : > { %7065 = vmatprep.subr.mxu0 %v24220_v10  ;;  %7374 = vmatpush1.msra.mxu1 %v24219_v13  ;;  %v7765_v24 = vsel %vm7745_vm5, %v20791_v44, %v7759_v22  ;;  %v7769_v44 = vld [vmem:[#allocation7 + $0x8] sm:$0xff]  ;;  %v20975_v22 = vsub.f32 %v7766_v31, %v20957_v0 }
 0x469   : > { %7067 = vmatpush1.msra.mxu0 %v24243_v7  ;;  %7376 = vmatprep.subr.mxu1 %v24220_v10 }
 0x46a   : > { %6941 = vmatprep.mubr.f32.mxu0 %v24201_v33  ;;  %7069 = vmatprep.subr.mxu0 %v24222_v45 }
 0x46b   : > { %7242 = vmatprep.mubr.f32.mxu1 %v24201_v33  ;;  %7378 = vmatpush1.msra.mxu1 %v24243_v7 }
 0x46c   : > { %6943 = vmatmul.mubr.f32.gmra.mxu0 %v20823_v38  ;;  %7244 = vmatmul.mubr.f32.gmra.mxu1 %v20823_v38 }
 0x46d   : > { %7071 = vmatpush1.msra.mxu0 %v24223_v6  ;;  %7380 = vmatprep.subr.mxu1 %v24222_v45 }
 0x46e   : > { %7073 = vmatprep.subr.mxu0 %v24224_v29  ;;  %7382 = vmatpush1.msra.mxu1 %v24223_v6 }
 0x46f   : > { %7075 = vmatpush1.msra.mxu0 %v24244_v26  ;;  %7384 = vmatprep.subr.mxu1 %v24224_v29 }
 0x470   : > { %7108 = vmatprep.mubr.f32.mxu0 %v24201_v33  ;;  %7276 = vmatprep.subr.mxu0 %v24245_v54  ;;  %v24251_v54 = vld [vmem:[#allocation93_spill] sm:$0xff] }
 0x471   : > { %7386 = vmatpush1.msra.mxu1 %v24244_v26  ;;  %7419 = vmatprep.mubr.f32.mxu1 %v24201_v33 }
 0x472   : > { %7114 = vmatmul.mubr.f32.vlgmr.msra.gmra.mxu0 %v20858_v63  ;;  %7423 = vmatmul.mubr.f32.vlgmr.msra.gmra.mxu1 %v20830_v55  ;;  %v20965_v55 = vand.u32 4294901760, %v20950_v16  ;;  %v7764_v63 = vsel %vm7744_vm6, %v20799_v42, %v7757_v3  ;;  %v24250_v42 = vld [vmem:[#allocation89_spill] sm:$0xff] }
 0x473   : > { %7279 = vmatpush1.msra.mxu0 %v24246_v37  ;;  %7566 = vmatprep.subr.mxu1 %v24217_v20  ;;  %v20970_v37 = vand.u32 4294901760, %v7765_v24  ;;  %v20980_v3 = vand.u32 4294901760, %v7764_v63 }
 0x474   : > { %7282 = vmatprep.subr.mxu0 %v24247_v58  ;;  %7568 = vmatpush1.msra.mxu1 %v24219_v13  ;;  %v7782_v58 = vsel %vm5239_vm2, %v7769_v44, 0 }
 0x475   : > { %7285 = vmatpush1.msra.mxu0 %v24248_v28  ;;  %7570 = vmatprep.subr.mxu1 %v24220_v10  ;;  %v7779_v28 = vsel %vm5239_vm2, %v7768_v57, 0  ;;  %v20990_v31 = vsub.f32 %v7765_v24, %v20970_v37  ;;  %v20997_v57 = vand.u32 4294901760, %v20975_v22  ;;  %v21002_v44 = vsub.f32 %v7764_v63, %v20980_v3 }
 0x476   : > { %7119 = vmatprep.mubr.f32.mxu0 %v24201_v33  ;;  %7288 = vmatprep.subr.mxu0 %v24249_v52  ;;  %v7901_v52 = vsub.f32 %v20950_v16, %v20965_v55 }
 0x477   : > { %7428 = vmatprep.mubr.f32.mxu1 %v24201_v33  ;;  %7572 = vmatpush1.msra.mxu1 %v24243_v7  ;;  %v7908_v63 = vsub.f32 %v20975_v22, %v20997_v57 }
 0x478   : > { %7125 = vmatmul.mubr.f32.gmra.mxu0 %v20874_v17  ;;  %7432 = vmatmul.mubr.f32.gmra.mxu1 %v20852_v36  ;;  %v20992_v17 = vand.u32 4294901760, %v7779_v28  ;;  %v24252_v36 = vld [vmem:[#allocation96_spill] sm:$0xff]  ;;  %v7902_v24 = vand.u32 4294901760, %v7901_v52 }
 0x479   : > { %7291 = vmatpush1.msra.mxu0 %v24250_v42  ;;  %7574 = vmatprep.subr.mxu1 %v24222_v45  ;;  %v24253_v42 = vld [vmem:[#allocation79_spill] sm:$0xff] }
 0x47a   : > { %7294 = vmatprep.subr.mxu0 %v24251_v54  ;;  %7576 = vmatpush1.msra.mxu1 %v24223_v6  ;;  %v21004_v54 = vand.u32 4294901760, %v7782_v58 }
 0x47b   : > { %7297 = vmatpush1.msra.mxu0 %v24252_v36  ;;  %7578 = vmatprep.subr.mxu1 %v24224_v29  ;;  %v21011_v36 = vand.u32 4294901760, %v20990_v31  ;;  %v21014_v29 = vsub.f32 %v7779_v28, %v20992_v17  ;;  %v24254_v28 = vld [vmem:[#allocation92_spill] sm:$0xff] }
 0x47c   : > { %7330 = vmatprep.mubr.f32.mxu0 %v24201_v33  ;;  %7465 = vmatprep.subr.mxu0 %v24253_v42  ;;  %v21026_v52 = vsub.f32 %v7782_v58, %v21004_v54  ;;  %v7909_v42 = vand.u32 4294901760, %v7908_v63 }
 0x47d   : > { %7580 = vmatpush1.msra.mxu1 %v24244_v26  ;;  %7613 = vmatprep.mubr.f32.mxu1 %v24201_v33 }
 0x47e   : > { %7333 = vmatmul.mubr.f32.vlgmr.msra.gmra.mxu0 %v20817_v2  ;;  %7615 = vmatmul.mubr.f32.vlgmr.msra.gmra.mxu1 %v20804_v34  ;;  %v21023_v2 = vand.u32 4294901760, %v21002_v44 }
 0x47f   : > { %7469 = vmatpush1.msra.mxu0 %v24235_v35  ;;  %7338 = vmatprep.mubr.f32.mxu0 %v24201_v33  ;;  %v7915_v35 = vsub.f32 %v20990_v31, %v21011_v36 }
 0x480   : > { %7473 = vmatprep.subr.mxu0 %v24236_v15  ;;  %7620 = vmatprep.mubr.f32.mxu1 %v24201_v33  ;;  %v7855_v15 = vand.u32 4294901760, %v21014_v29  ;;  %v7922_v58 = vsub.f32 %v21002_v44, %v21023_v2 }
 0x481   : > { %7477 = vmatpush1.msra.mxu0 %v24237_v19  ;;  %18668 = vmatprep.subr.mxu1 %v7902_v24 }
 0x482   : > { %7481 = vmatprep.subr.mxu0 %v24254_v28  ;;  %7341 = vmatmul.mubr.f32.gmra.mxu0 %v20837_v46  ;;  %v7865_v28 = vand.u32 4294901760, %v21026_v52  ;;  %v7916_v46 = vand.u32 4294901760, %v7915_v35  ;;  %v7923_v63 = vand.u32 4294901760, %v7922_v58 }
 0x483   : > { %7485 = vmatpush1.msra.mxu0 %v24239_v50  ;;  %7622 = vmatmul.mubr.f32.gmra.mxu1 %v20823_v38  ;;  %v7856_v50 = vsub.f32 %v21014_v29, %v7855_v15 }
 0x484   : > { %7489 = vmatprep.subr.mxu0 %v24240_v5  ;;  %7526 = vmatprep.mubr.f32.mxu0 %v24201_v33  ;;  %v7866_v5 = vsub.f32 %v21026_v52, %v7865_v28 }
 0x485   : > { %7493 = vmatpush1.msra.mxu0 %v24241_v11  ;;  %18669 = vmatpush3.msra.mxu1 %v7902_v24 }
 0x486   : > { %18657 = vmatprep.subr.mxu0 %v20935_v1  ;;  %7528 = vmatmul.mubr.f32.vlgmr.msra.gmra.mxu0 %v20804_v34  ;;  %v7857_v34 = vand.u32 4294901760, %v7856_v50  ;;  %v7867_v35 = vand.u32 4294901760, %v7866_v5  ;;  %v19247_v50 = vmov 6   ;;  %v24257_v5 = vld [vmem:[#allocation55_spill] sm:$0xff] }
 0x487   : > { %18658 = vmatpush3.msra.mxu0 %v20935_v1  ;;  %18670 = vmatprep.subr.mxu1 %v7909_v42 }
 0x488   : > { %18659 = vmatprep.subr.mxu0 %v20957_v0  ;;  %18671 = vmatpush3.msra.mxu1 %v7909_v42 }
 0x489   : > { %18660 = vmatpush3.msra.mxu0 %v20957_v0  ;;  %7533 = vmatprep.mubr.f32.mxu0 %v24201_v33 }
 0x48a   : > { %18661 = vmatprep.subr.mxu0 %v20970_v37  ;;  %18672 = vmatprep.subr.mxu1 %v7916_v46 }
 0x48b   : > { %7535 = vmatmul.mubr.f32.gmra.mxu0 %v20823_v38  ;;  %18673 = vmatpush3.msra.mxu1 %v7916_v46  ;;  %v19014_v38 = vld [vmem:[%s23698_s6 + $0x8] sm:$0xff] }
 0x48c   : > { %18662 = vmatpush3.msra.mxu0 %v20970_v37  ;;  %18674 = vmatprep.subr.mxu1 %v7923_v63 }
 0x48d   : > { %18663 = vmatprep.subr.mxu0 %v20980_v3  ;;  %18675 = vmatpush3.msra.mxu1 %v7923_v63 }
 0x48e   : > { %18664 = vmatpush3.msra.mxu0 %v20980_v3  ;;  %18665 = vmatprep.mubr.f32.mxu0 %v7857_v34 }
 0x48f   : > { %18676 = vmatprep.mubr.f32.mxu1 %v20992_v17  ;;  %18679 = vmatprep.subr.mxu0 %v20950_v16 }
 0x490   : > { %18690 = vmatprep.subr.mxu1 %v20935_v1  ;;  %18666 = vmatmul.mubr.f32.vlgmr.msra.gmra.mxu0 %v7867_v35 }
 0x491   : > { %18677 = vmatmul.mubr.f32.vlgmr.msra.gmra.mxu1 %v21004_v54  ;;  %18680 = vmatpush3.msra.mxu0 %v20950_v16  ;;  %v24259_v16 = vld [vmem:[#allocation65_spill] sm:$0xff] }
 0x492   : > { %18691 = vmatpush3.msra.mxu1 %v20935_v1  ;;  %18681 = vmatprep.subr.mxu0 %v20975_v22 }
 0x493   : > { %18692 = vmatprep.subr.mxu1 %v20957_v0  ;;  %18682 = vmatpush3.msra.mxu0 %v20975_v22 }
 0x494   : > { %18693 = vmatpush3.msra.mxu1 %v20957_v0  ;;  %18683 = vmatprep.subr.mxu0 %v20990_v31 }
 0x495   : > { %18694 = vmatprep.subr.mxu1 %v20970_v37  ;;  %18684 = vmatpush3.msra.mxu0 %v20990_v31 }
 0x496   : > { %18695 = vmatpush3.msra.mxu1 %v20970_v37  ;;  %18685 = vmatprep.subr.mxu0 %v21002_v44 }
 0x497   : > { %18696 = vmatprep.subr.mxu1 %v20980_v3  ;;  %18686 = vmatpush3.msra.mxu0 %v21002_v44 }
 0x498   : > { %18687 = vmatprep.mubr.f32.mxu0 %v21014_v29  ;;  %18697 = vmatpush3.msra.mxu1 %v20980_v3  ;;  %v24255_v29 = vld [vmem:[#allocation45_spill] sm:$0xff] }
 0x499   : > { %18688 = vmatmul.mubr.f32.vlgmr.msra.gmra.mxu0 %v21026_v52  ;;  %18698 = vmatprep.mubr.f32.mxu1 %v7855_v15  ;;  %v24256_v15 = vld [vmem:[#allocation50_spill] sm:$0xff] }
 0x49a   : > { %18701 = vmatprep.subr.mxu0 %v20965_v55  ;;  %18712 = vmatprep.subr.mxu1 %v20935_v1 }
 0x49b   : > { %18699 = vmatmul.mubr.f32.vlgmr.msra.gmra.mxu1 %v7865_v28  ;;  %18702 = vmatpush3.msra.mxu0 %v20965_v55 }
 0x49c   : > { %18713 = vmatpush3.msra.mxu1 %v20935_v1  ;;  %18703 = vmatprep.subr.mxu0 %v20997_v57  ;;  %v19015_v1 = vld [vmem:[%s23698_s6] sm:$0xff] }
 0x49d   : > { %18714 = vmatprep.subr.mxu1 %v20957_v0  ;;  %18704 = vmatpush3.msra.mxu0 %v20997_v57 }
 0x49e   : > { %18715 = vmatpush3.msra.mxu1 %v20957_v0  ;;  %18705 = vmatprep.subr.mxu0 %v21011_v36  ;;  %v24261_v0 = vld [vmem:[#allocation38_spill] sm:$0xff] }
 0x49f   : > { %18716 = vmatprep.subr.mxu1 %v20970_v37  ;;  %18706 = vmatpush3.msra.mxu0 %v21011_v36 }
 0x4a0   : > { %18717 = vmatpush3.msra.mxu1 %v20970_v37  ;;  %18707 = vmatprep.subr.mxu0 %v21023_v2  ;;  %v24260_v37 = vld [vmem:[#allocation68_spill] sm:$0xff] }
 0x4a1   : > { %18718 = vmatprep.subr.mxu1 %v20980_v3  ;;  %18708 = vmatpush3.msra.mxu0 %v21023_v2 }
 0x4a2   : > { %18709 = vmatprep.mubr.f32.mxu0 %v20992_v17  ;;  %18719 = vmatpush3.msra.mxu1 %v20980_v3 }
 0x4a3   : > { %18720 = vmatprep.mubr.f32.mxu1 %v20992_v17  ;;  %18710 = vmatmul.mubr.f32.vlgmr.msra.gmra.mxu0 %v21004_v54 }
 0x4a4   : > { %18721 = vmatmul.mubr.f32.vlgmr.msra.gmra.mxu1 %v21004_v54  ;;  %18916 = vset.pattern.permute.xlu0 %v19247_v50  ;;  %v24258_v54 = vld [vmem:[#allocation58_spill] sm:$0xff] }
 0x4a5   : > { %7775 = vperm.xlu0 %18916, %v19014_v38   ;;  %18915 = vset.pattern.permute.xlu1 %v19247_v50 }
 0x4a6   : > { %7771 = vperm.xlu1 %18915, %v19015_v1   ;;  %8442 = vmatprep.subr.mxu1 %v24255_v29 }
 0x4a7   : > { %8448 = vmatpush1.msra.mxu1 %v24256_v15  ;;  %8517 = vmatprep.mubr.f32.mxu1 %v24201_v33 }
 0x4a8   : > { %8454 = vmatprep.subr.mxu1 %v24257_v5  ;;  %8343 = vmatprep.subr.mxu0 %v24165_v62 }
 0x4a9   : > { %8460 = vmatpush1.msra.mxu1 %v24258_v54  ;;  %8345 = vmatpush1.msra.mxu0 %v24167_v56 }
 0x4aa   : > { %8466 = vmatprep.subr.mxu1 %v24204_v12  ;;  %8347 = vmatprep.subr.mxu0 %v24169_v32 }
 0x4ab   : > { %8472 = vmatpush1.msra.mxu1 %v24259_v16  ;;  %8349 = vmatpush1.msra.mxu0 %v24171_v49 }
 0x4ac   : > { %8478 = vmatprep.subr.mxu1 %v24206_v40  ;;  %8351 = vmatprep.subr.mxu0 %v24173_v9 }
 0x4ad   : > { %8484 = vmatpush1.msra.mxu1 %v24260_v37  ;;  %8353 = vmatpush1.msra.mxu0 %v19998_v61 }
 0x4ae   : > { %8654 = vmatprep.subr.mxu1 %v24165_v62  ;;  %8355 = vmatprep.subr.mxu0 %v20018_v18 }
 0x4af   : > { %8357 = vmatpush1.msra.mxu0 %v20025_v39  ;;  %8390 = vmatprep.mubr.f32.mxu0 %v24201_v33 }
 0x4b0   : > { %8558 = vmatprep.subr.mxu0 %v24261_v0 }
 0x4be   : > { %v5448_v55 = vpop.f32.mrf.mxu1 }
 0x4c0   : > { %v21121_v22 = vpop.f32.mrf.mxu1 }
 0x4c2   : > { %v5455_v3 = vpop.f32.mrf.mxu1 }
 0x4c4   : > { %v21123_v42 = vpop.f32.mrf.mxu1 }
 0x4c5   : > { %24262 = vst [vmem:[#allocation117_spill] sm:$0xff] %v21123_v42 }
 0x4c6   : > { %v5325_v31 = vpop.f32.mrf.mxu0  ;;  %v5634_v17 = vpop.f32.mrf.mxu1 }
 0x4c7   : > { %v5449_v36 = vadd.f32 %v5448_v55, %v5325_v31 }
 0x4c8   : > { %v21125_v57 = vpop.f32.mrf.mxu0  ;;  %v21127_v44 = vpop.f32.mrf.mxu1 }
 0x4c9   : > { %24263 = vst [vmem:[#allocation118_spill] sm:$0xff] %v21127_v44  ;;  %v24292_v44 = vld [vmem:[#allocation69_spill] sm:$0xff] }
 0x4cc   : > { %v5336_v24 = vpop.f32.mrf.mxu0  ;;  %v5643_v2 = vpop.f32.mrf.mxu1 }
 0x4cd   : > { %v5456_v52 = vadd.f32 %v5455_v3, %v5336_v24 }
 0x4ce   : > { %v21129_v28 = vpop.f32.mrf.mxu0  ;;  %v21131_v58 = vpop.f32.mrf.mxu1 }
 0x4cf   : > { %24264 = vst [vmem:[#allocation119_spill] sm:$0xff] %v21129_v28  ;;  %24265 = vst [vmem:[#allocation120_spill] sm:$0xff] %v21131_v58 }
 0x4d2   : > { %v5544_v46 = vpop.f32.mrf.mxu0  ;;  %v5826_v63 = vpop.f32.mrf.mxu1 }
 0x4d3   : > { %v5545_v34 = vadd.f32 %v5544_v46, %v5449_v36 }
 0x4d4   : > { %v21133_v35 = vpop.f32.mrf.mxu0  ;;  %v21135_v50 = vpop.f32.mrf.mxu1 }
 0x4d5   : > { %24266 = vst [vmem:[#allocation121_spill] sm:$0xff] %v21135_v50  ;;  %v5635_v38 = vadd.f32 %v5634_v17, %v5545_v34 }
 0x4d8   : > { %v5552_v1 = vpop.f32.mrf.mxu0  ;;  %v5833_v55 = vpop.f32.mrf.mxu1 }
 0x4d9   : > { %v5553_v31 = vadd.f32 %v5552_v1, %v5456_v52 }
 0x4da   : > { %v21137_v37 = vpop.f32.mrf.mxu0  ;;  %v21139_v0 = vpop.f32.mrf.mxu1 }
 0x4db   : > { %24267 = vst [vmem:[#allocation122_spill] sm:$0xff] %v21137_v37  ;;  %24268 = vst [vmem:[#allocation123_spill] sm:$0xff] %v21139_v0  ;;  %v5644_v3 = vadd.f32 %v5643_v2, %v5553_v31 }
 0x4de   : > { %v5739_v24 = vpop.f32.mrf.mxu0  ;;  %v6040_v40 = vpop.f32.mrf.mxu1 }
 0x4df   : > { %v5740_v16 = vadd.f32 %v5739_v24, %v5635_v38 }
 0x4e0   : > { %v21141_v12 = vpop.f32.mrf.mxu0  ;;  %v21143_v54 = vpop.f32.mrf.mxu1 }
 0x4e1   : > { %24269 = vst [vmem:[#allocation124_spill] sm:$0xff] %v21141_v12  ;;  %24270 = vst [vmem:[#allocation125_spill] sm:$0xff] %v21143_v54  ;;  %v21145_v36 = vadd.f32 %v5826_v63, %v5740_v16 }
 0x4e4   : > { %v5746_v46 = vpop.f32.mrf.mxu0  ;;  %v6047_v5 = vpop.f32.mrf.mxu1 }
 0x4e5   : > { %v5747_v17 = vadd.f32 %v5746_v46, %v5644_v3 }
 0x4e6   : > { %v21147_v34 = vpop.f32.mrf.mxu0  ;;  %v21149_v52 = vpop.f32.mrf.mxu1 }
 0x4e7   : > { %24271 = vst [vmem:[#allocation126_spill] sm:$0xff] %v21147_v34  ;;  %24272 = vst [vmem:[#allocation127_spill] sm:$0xff] %v21149_v52  ;;  %v21151_v1 = vadd.f32 %v5833_v55, %v5747_v17 }
 0x4ea   : > { %v5917_v15 = vpop.f32.mrf.mxu0  ;;  %v6226_v2 = vpop.f32.mrf.mxu1 }
 0x4eb   : > { %v6041_v31 = vadd.f32 %v6040_v40, %v5917_v15 }
 0x4ec   : > { %v21153_v29 = vpop.f32.mrf.mxu0  ;;  %v21155_v38 = vpop.f32.mrf.mxu1 }
 0x4ed   : > { %24273 = vst [vmem:[#allocation128_spill] sm:$0xff] %v21153_v29  ;;  %24274 = vst [vmem:[#allocation129_spill] sm:$0xff] %v21155_v38 }
 0x4f0   : > { %v5928_v24 = vpop.f32.mrf.mxu0  ;;  %v6235_v54 = vpop.f32.mrf.mxu1 }
 0x4f1   : > { %v6048_v16 = vadd.f32 %v6047_v5, %v5928_v24 }
 0x4f2   : > { %v21157_v63 = vpop.f32.mrf.mxu0  ;;  %v21159_v0 = vpop.f32.mrf.mxu1 }
 0x4f3   : > { %24275 = vst [vmem:[#allocation130_spill] sm:$0xff] %v21157_v63  ;;  %24276 = vst [vmem:[#allocation131_spill] sm:$0xff] %v21159_v0 }
 0x4f6   : > { %v6136_v3 = vpop.f32.mrf.mxu0  ;;  %v6418_v46 = vpop.f32.mrf.mxu1 }
 0x4f7   : > { %v6137_v34 = vadd.f32 %v6136_v3, %v6041_v31 }
 0x4f8   : > { %v21161_v52 = vpop.f32.mrf.mxu0  ;;  %v21163_v55 = vpop.f32.mrf.mxu1 }
 0x4f9   : > { %24277 = vst [vmem:[#allocation132_spill] sm:$0xff] %v21161_v52  ;;  %24278 = vst [vmem:[#allocation133_spill] sm:$0xff] %v21163_v55  ;;  %v6227_v17 = vadd.f32 %v6226_v2, %v6137_v34 }
 0x4fc   : > { %v6144_v40 = vpop.f32.mrf.mxu0  ;;  %v6425_v15 = vpop.f32.mrf.mxu1 }
 0x4fd   : > { %v6145_v29 = vadd.f32 %v6144_v40, %v6048_v16 }
 0x4fe   : > { %v21165_v58 = vpop.f32.mrf.mxu0  ;;  %v21167_v38 = vpop.f32.mrf.mxu1 }
 0x4ff   : > { %24279 = vst [vmem:[#allocation134_spill] sm:$0xff] %v21165_v58  ;;  %24280 = vst [vmem:[#allocation135_spill] sm:$0xff] %v21167_v38  ;;  %v6236_v5 = vadd.f32 %v6235_v54, %v6145_v29 }
 0x502   : > { %v6331_v24 = vpop.f32.mrf.mxu0  ;;  %v6646_v63 = vpop.f32.mrf.mxu1 }
 0x503   : > { %v6332_v37 = vadd.f32 %v6331_v24, %v6227_v17 }
 0x504   : > { %v21169_v0 = vpop.f32.mrf.mxu0  ;;  %v21171_v42 = vpop.f32.mrf.mxu1 }
 0x505   : > { %24281 = vst [vmem:[#allocation136_spill] sm:$0xff] %v21169_v0  ;;  %v21173_v31 = vadd.f32 %v6418_v46, %v6332_v37 }
 0x508   : > { %v6338_v3 = vpop.f32.mrf.mxu0  ;;  %v6653_v55 = vpop.f32.mrf.mxu1 }
 0x509   : > { %v6339_v34 = vadd.f32 %v6338_v3, %v6236_v5 }
 0x50a   : > { %v21175_v2 = vpop.f32.mrf.mxu0  ;;  %v21177_v16 = vpop.f32.mrf.mxu1 }
 0x50b   : > { %24282 = vst [vmem:[#allocation137_spill] sm:$0xff] %v21175_v2  ;;  %24283 = vst [vmem:[#allocation138_spill] sm:$0xff] %v21177_v16  ;;  %v21179_v40 = vadd.f32 %v6425_v15, %v6339_v34 }
 0x50e   : > { %v6523_v38 = vpop.f32.mrf.mxu0  ;;  %v6832_v29 = vpop.f32.mrf.mxu1 }
 0x50f   : > { %v6647_v54 = vadd.f32 %v6646_v63, %v6523_v38 }
 0x510   : > { %v21181_v58 = vpop.f32.mrf.mxu0  ;;  %v21183_v17 = vpop.f32.mrf.mxu1 }
 0x511   : > { %24284 = vst [vmem:[#allocation139_spill] sm:$0xff] %v21183_v17 }
 0x514   : > { %v6534_v24 = vpop.f32.mrf.mxu0  ;;  %v6841_v0 = vpop.f32.mrf.mxu1 }
 0x515   : > { %v6654_v37 = vadd.f32 %v6653_v55, %v6534_v24 }
 0x516   : > { %v21185_v46 = vpop.f32.mrf.mxu0  ;;  %v21187_v52 = vpop.f32.mrf.mxu1 }
 0x517   : > { %24285 = vst [vmem:[#allocation140_spill] sm:$0xff] %v21185_v46  ;;  %24286 = vst [vmem:[#allocation141_spill] sm:$0xff] %v21187_v52 }
 0x51a   : > { %v6742_v5 = vpop.f32.mrf.mxu0  ;;  %v7024_v3 = vpop.f32.mrf.mxu1 }
 0x51b   : > { %v6743_v2 = vadd.f32 %v6742_v5, %v6647_v54  ;;  %v6430_v54 = vmul.f32 %v21145_v36, %v24292_v44 }
 0x51c   : > { %v21189_v16 = vpop.f32.mrf.mxu0  ;;  %v21191_v15 = vpop.f32.mrf.mxu1 }
 0x51d   : > { %24287 = vst [vmem:[#allocation142_spill] sm:$0xff] %v21189_v16  ;;  %24288 = vst [vmem:[#allocation143_spill] sm:$0xff] %v21191_v15  ;;  %v6833_v34 = vadd.f32 %v6832_v29, %v6743_v2 }
 0x520   : > { %v6750_v38 = vpop.f32.mrf.mxu0  ;;  %v7031_v63 = vpop.f32.mrf.mxu1 }
 0x521   : > { %v6751_v28 = vadd.f32 %v6750_v38, %v6654_v37 }
 0x522   : > { %v21193_v50 = vpop.f32.mrf.mxu0  ;;  %v21195_v17 = vpop.f32.mrf.mxu1 }
 0x523   : > { %24289 = vst [vmem:[#allocation144_spill] sm:$0xff] %v21193_v50  ;;  %24290 = vst [vmem:[#allocation145_spill] sm:$0xff] %v21195_v17  ;;  %v6842_v55 = vadd.f32 %v6841_v0, %v6751_v28  ;;  %v24296_v17 = vld [vmem:[#allocation71_spill] sm:$0xff] }
 0x524   : > { %v6434_v0 = vmul.f32 %v21151_v1, %v24296_v17 }
 0x526   : > { %v6937_v24 = vpop.f32.mrf.mxu0  ;;  %v7238_v46 = vpop.f32.mrf.mxu1 }
 0x527   : > { %v6938_v12 = vadd.f32 %v6937_v24, %v6833_v34 }
 0x528   : > { %v21197_v52 = vpop.f32.mrf.mxu0  ;;  %v21201_v16 = vpop.f32.mrf.mxu1 }
 0x529   : > { %24291 = vst [vmem:[#allocation146_spill] sm:$0xff] %v21197_v52  ;;  %v7025_v5 = vadd.f32 %v7024_v3, %v6938_v12  ;;  %24293 = vst [vmem:[#allocation69_spill] sm:$0xff] %v21201_v16 }
 0x52b   : > { %v21203_v2 = vadd.f32 %v7025_v5, %v6430_v54 }
 0x52c   : > { %v6944_v29 = vpop.f32.mrf.mxu0  ;;  %v7245_v38 = vpop.f32.mrf.mxu1 }
 0x52d   : > { %24294 = vst [vmem:[#allocation147_spill] sm:$0xff] %v21203_v2  ;;  %v6945_v37 = vadd.f32 %v6944_v29, %v6842_v55 }
 0x52e   : > { %v21205_v50 = vpop.f32.mrf.mxu0  ;;  %v21211_v24 = vpop.f32.mrf.mxu1 }
 0x52f   : > { %24295 = vst [vmem:[#allocation148_spill] sm:$0xff] %v21205_v50  ;;  %v7032_v28 = vadd.f32 %v7031_v63, %v6945_v37  ;;  %24298 = vst [vmem:[#allocation149_spill] sm:$0xff] %v21211_v24 }
 0x531   : > { %v21209_v34 = vadd.f32 %v7032_v28, %v6434_v0 }
 0x532   : > { %v7115_v15 = vpop.f32.mrf.mxu0  ;;  %v7424_v36 = vpop.f32.mrf.mxu1 }
 0x533   : > { %24297 = vst [vmem:[#allocation71_spill] sm:$0xff] %v21209_v34  ;;  %v7239_v44 = vadd.f32 %v7238_v46, %v7115_v15 }
 0x534   : > { %v21213_v12 = vpop.f32.mrf.mxu0  ;;  %v21215_v54 = vpop.f32.mrf.mxu1 }
 0x535   : > { %24299 = vst [vmem:[#allocation150_spill] sm:$0xff] %v21213_v12  ;;  %24300 = vst [vmem:[#allocation151_spill] sm:$0xff] %v21215_v54 }
 0x538   : > { %v7126_v3 = vpop.f32.mrf.mxu0  ;;  %v7433_v29 = vpop.f32.mrf.mxu1 }
 0x539   : > { %v7246_v55 = vadd.f32 %v7245_v38, %v7126_v3  ;;  %v24306_v38 = vld [vmem:[#allocation99_spill] sm:$0xff] }
 0x53a   : > { %v21217_v5 = vpop.f32.mrf.mxu0  ;;  %v21221_v17 = vpop.f32.mrf.mxu1  ;;  %v6432_v3 = vmul.f32 %v21173_v31, %v24306_v38 }
 0x53b   : > { %24301 = vst [vmem:[#allocation152_spill] sm:$0xff] %v21217_v5  ;;  %24303 = vst [vmem:[#allocation154_spill] sm:$0xff] %v21221_v17  ;;  %v7776_v31 = vpop.permute.xlu0 %7775  ;;  %v7772_v38 = vpop.permute.xlu1 %7771 }
 0x53e   : > { %v7334_v16 = vpop.f32.mrf.mxu0  ;;  %v7616_v15 = vpop.f32.mrf.mxu1 }
 0x53f   : > { %v7335_v50 = vadd.f32 %v7334_v16, %v7239_v44 }
 0x540   : > { %v21219_v1 = vpop.f32.mrf.mxu0  ;;  %v21229_v5 = vpop.f32.mrf.mxu1 }
 0x541   : > { %24302 = vst [vmem:[#allocation153_spill] sm:$0xff] %v21219_v1  ;;  %v7425_v63 = vadd.f32 %v7424_v36, %v7335_v50  ;;  %24307 = vst [vmem:[#allocation99_spill] sm:$0xff] %v21229_v5 }
 0x542   : > { %v7342_v37 = vpop.f32.mrf.mxu0 }
 0x543   : > { %v7343_v0 = vadd.f32 %v7342_v37, %v7246_v55  ;;  %v7623_v36 = vpop.f32.mrf.mxu1  ;;  %v24309_v55 = vld [vmem:[#allocation105_spill] sm:$0xff] }
 0x544   : > { %v21223_v46 = vpop.f32.mrf.mxu0  ;;  %v6436_v37 = vmul.f32 %v21179_v40, %v24309_v55 }
 0x545   : > { %24304 = vst [vmem:[#allocation155_spill] sm:$0xff] %v21223_v46  ;;  %v7434_v28 = vadd.f32 %v7433_v29, %v7343_v0  ;;  %v21239_v0 = vpop.f32.mrf.mxu1 }
 0x546   : > { %v7529_v24 = vpop.f32.mrf.mxu0  ;;  %24312 = vst [vmem:[#allocation159_spill] sm:$0xff] %v21239_v0 }
 0x547   : > { %v7530_v12 = vadd.f32 %v7529_v24, %v7425_v63 }
 0x548   : > { %v21225_v54 = vpop.f32.mrf.mxu0 }
 0x549   : > { %24305 = vst [vmem:[#allocation156_spill] sm:$0xff] %v21225_v54  ;;  %v7617_v16 = vadd.f32 %v7616_v15, %v7530_v12 }
 0x54b   : > { %v21231_v44 = vadd.f32 %v7617_v16, %v6432_v3  ;;  %v7536_v17 = vpop.f32.mrf.mxu0 }
 0x54c   : > { %v7537_v50 = vadd.f32 %v7536_v17, %v7434_v28 }
 0x54d   : > { %24308 = vst [vmem:[#allocation157_spill] sm:$0xff] %v21231_v44  ;;  %v21235_v29 = vpop.f32.mrf.mxu0 }
 0x54e   : > { %v7624_v46 = vadd.f32 %v7623_v36, %v7537_v50  ;;  %24310 = vst [vmem:[#allocation105_spill] sm:$0xff] %v21235_v29 }
 0x550   : > { %v21237_v24 = vadd.f32 %v7624_v46, %v6436_v37  ;;  %v18667_v63 = vpop.f32.mrf.mxu0 }
 0x551   : > { %v18678_v5 = vpop.f32.mrf.mxu1  ;;  %v7870_v15 = vadd.f32 %v18667_v63, %v7776_v31 }
 0x552   : > { %24311 = vst [vmem:[#allocation158_spill] sm:$0xff] %v21237_v24  ;;  %v7859_v12 = vpop.f32.mrf.mxu0 }
 0x553   : > { %v7860_v16 = vadd.f32 %v7859_v12, %v7772_v38  ;;  %v7960_v17 = vpop.f32.mrf.mxu1  ;;  %v7967_v28 = vadd.f32 %v18678_v5, %v7870_v15 }
 0x555   : > { %v7961_v40 = vadd.f32 %v7960_v17, %v7860_v16  ;;  %v24316_v16 = vld [vmem:[#allocation64_spill] sm:$0xff]  ;;  %v24317_v17 = vld [vmem:[#allocation107_spill] sm:$0xff] }
 0x559   : > { %v18689_v3 = vpop.f32.mrf.mxu0 }
 0x55a   : > { %v8054_v50 = vadd.f32 %v18689_v3, %v7967_v28  ;;  %v24315_v3 = vld [vmem:[#allocation47_spill] sm:$0xff]  ;;  %v24318_v28 = vld [vmem:[#allocation66_spill] sm:$0xff] }
 0x55b   : > { %v18700_v44 = vpop.f32.mrf.mxu1  ;;  %v8046_v54 = vpop.f32.mrf.mxu0 }
 0x55c   : > { %v8047_v36 = vadd.f32 %v8046_v54, %v7961_v40  ;;  %v8139_v46 = vadd.f32 %v18700_v44, %v8054_v50  ;;  %v24319_v40 = vld [vmem:[#allocation108_spill] sm:$0xff]  ;;  %v24320_v50 = vld [vmem:[#allocation87_spill] sm:$0xff] }
 0x55d   : > { %v8130_v55 = vpop.f32.mrf.mxu1 }
 0x55e   : > { %v8131_v24 = vadd.f32 %v8130_v55, %v8047_v36  ;;  %v24321_v36 = vld [vmem:[#allocation75_spill] sm:$0xff]  ;;  %v24322_v55 = vld [vmem:[#allocation77_spill] sm:$0xff] }
 0x563   : > { %v18711_v37 = vpop.f32.mrf.mxu0 }
 0x564   : > { %v8228_v29 = vadd.f32 %v18711_v37, %v8139_v46  ;;  %v18722_v0 = vpop.f32.mrf.mxu1  ;;  %v24323_v46 = vld [vmem:[#allocation80_spill] sm:$0xff]  ;;  %v24324_v37 = vld [vmem:[#allocation83_spill] sm:$0xff] }
 0x565   : > { %v8221_v1 = vpop.f32.mrf.mxu0 }
 0x566   : > { %v8309_v34 = vadd.f32 %v18722_v0, %v8228_v29  ;;  %v8222_v2 = vadd.f32 %v8221_v1, %v8131_v24  ;;  %v8302_v52 = vpop.f32.mrf.mxu1  ;;  %v24313_v24 = vld [vmem:[#allocation41_spill] sm:$0xff]  ;;  %v24314_v0 = vld [vmem:[#allocation46_spill] sm:$0xff] }
 0x568   : > { %v8316_v63 = vsel %vm5239_vm2, %v8309_v34, 0  ;;  %v8303_v31 = vadd.f32 %v8302_v52, %v8222_v2 }
 0x569   : > { %v21242_v38 = vand.u32 4294901760, %v8316_v63 }
 0x56a   : > { %v8313_v5 = vsel %vm5239_vm2, %v8303_v31, 0  ;;  %v24326_v31 = vld [vmem:[#allocation89_spill] sm:$0xff] }
 0x56b   : > { %v21245_v12 = vand.u32 4294901760, %v8313_v5  ;;  %v21248_v54 = vsub.f32 %v8316_v63, %v21242_v38  ;;  %v24325_v63 = vld [vmem:[#allocation86_spill] sm:$0xff] }
 0x56d   : > { %v21251_v44 = vsub.f32 %v8313_v5, %v21245_v12  ;;  %8519 = vmatmul.mubr.f32.vlgmr.msra.gmra.mxu1 %v21245_v12  ;;  %v21261_v2 = vand.u32 4294901760, %v21248_v54  ;;  %v24327_v5 = vld [vmem:[#allocation93_spill] sm:$0xff] }
 0x56e   : > { %8656 = vmatpush1.msra.mxu1 %v24167_v56  ;;  %8524 = vmatprep.mubr.f32.mxu1 %v24201_v33 }
 0x56f   : > { %v21257_v52 = vand.u32 4294901760, %v21251_v44  ;;  %8658 = vmatprep.subr.mxu1 %v24169_v32  ;;  %v8405_v29 = vsub.f32 %v21248_v54, %v21261_v2 }
 0x570   : > { %8660 = vmatpush1.msra.mxu1 %v24171_v49 }
 0x571   : > { %8526 = vmatmul.mubr.f32.gmra.mxu1 %v21242_v38  ;;  %8662 = vmatprep.subr.mxu1 %v24173_v9  ;;  %v8394_v34 = vsub.f32 %v21251_v44, %v21257_v52  ;;  %v21284_v15 = vand.u32 4294901760, %v8405_v29  ;;  %v24332_v29 = vld [vmem:[#allocation92_spill] sm:$0xff] }
 0x572   : > { %8664 = vmatpush1.msra.mxu1 %v19998_v61  ;;  %8701 = vmatprep.mubr.f32.mxu1 %v24201_v33 }
 0x573   : > { %8666 = vmatprep.subr.mxu1 %v20018_v18  ;;  %v21271_v1 = vand.u32 4294901760, %v8394_v34  ;;  %v24330_v34 = vld [vmem:[#allocation82_spill] sm:$0xff] }
 0x574   : > { %8668 = vmatpush1.msra.mxu1 %v20025_v39 }
 0x575   : > { %8396 = vmatmul.mubr.f32.vlgmr.msra.gmra.mxu0 %v21271_v1  ;;  %8705 = vmatmul.mubr.f32.vlgmr.msra.gmra.mxu1 %v21257_v52 }
 0x576   : > { %8848 = vmatprep.subr.mxu1 %v24165_v62  ;;  %8561 = vmatpush1.msra.mxu0 %v24313_v24 }
 0x577   : > { %8850 = vmatpush1.msra.mxu1 %v24167_v56  ;;  %8564 = vmatprep.subr.mxu0 %v24314_v0  ;;  %v21769_v56 = vld [vmem:[%s23701_s9 + $0x18] sm:$0x1f] }
 0x578   : > { %8852 = vmatprep.subr.mxu1 %v24169_v32  ;;  %8401 = vmatprep.mubr.f32.mxu0 %v24201_v33 }
 0x579   : > { %8567 = vmatpush1.msra.mxu0 %v24315_v3  ;;  %8710 = vmatprep.mubr.f32.mxu1 %v24201_v33 }
 0x57a   : > { %8854 = vmatpush1.msra.mxu1 %v24171_v49  ;;  %8407 = vmatmul.mubr.f32.gmra.mxu0 %v21284_v15 }
 0x57b   : > { %8570 = vmatprep.subr.mxu0 %v24178_v21  ;;  %8714 = vmatmul.mubr.f32.gmra.mxu1 %v21261_v2 }
 0x57c   : > { %8856 = vmatprep.subr.mxu1 %v24173_v9  ;;  %8573 = vmatpush1.msra.mxu0 %v24179_v43 }
 0x57d   : > { %8858 = vmatpush1.msra.mxu1 %v19998_v61  ;;  %8576 = vmatprep.subr.mxu0 %v24180_v59 }
 0x57e   : > { %8860 = vmatprep.subr.mxu1 %v20018_v18  ;;  %8579 = vmatpush1.msra.mxu0 %v24181_v47 }
 0x57f   : > { %8612 = vmatprep.mubr.f32.mxu0 %v24201_v33  ;;  %8862 = vmatpush1.msra.mxu1 %v20025_v39  ;;  %v9755_v39 = vld [vmem:[%s23695_s3 + $0x8] sm:$0xff] }
 0x580   : > { %8895 = vmatprep.mubr.f32.mxu1 %v24201_v33  ;;  %8615 = vmatmul.mubr.f32.vlgmr.msra.gmra.mxu0 %v21251_v44 }
 0x581   : > { %8747 = vmatprep.subr.mxu0 %v24182_v14  ;;  %8897 = vmatmul.mubr.f32.vlgmr.msra.gmra.mxu1 %v21245_v12 }
 0x582   : > { %9034 = vmatprep.subr.mxu1 %v24185_v4  ;;  %8751 = vmatpush1.msra.mxu0 %v19971_v41 }
 0x583   : > { %9040 = vmatpush1.msra.mxu1 %v20239_v25  ;;  %8755 = vmatprep.subr.mxu0 %v24183_v30 }
 0x584   : > { %9046 = vmatprep.subr.mxu1 %v24208_v53  ;;  %8620 = vmatprep.mubr.f32.mxu0 %v24201_v33 }
 0x585   : > { %8759 = vmatpush1.msra.mxu0 %v19996_v60  ;;  %8902 = vmatprep.mubr.f32.mxu1 %v24201_v33 }
 0x586   : > { %9052 = vmatpush1.msra.mxu1 %v24210_v51  ;;  %8623 = vmatmul.mubr.f32.gmra.mxu0 %v21248_v54 }
 0x587   : > { %8763 = vmatprep.subr.mxu0 %v24209_v23  ;;  %8904 = vmatmul.mubr.f32.gmra.mxu1 %v21242_v38 }
 0x588   : > { %9058 = vmatprep.subr.mxu1 %v24212_v8  ;;  %8767 = vmatpush1.msra.mxu0 %v24211_v27  ;;  %v24376_v8 = vld [vmem:[#allocation156_spill] sm:$0xff]  ;;  %v24383_v27 = vld [vmem:[#allocation159_spill] sm:$0xff] }
 0x589   : > { %9064 = vmatpush1.msra.mxu1 %v24214_v48  ;;  %8771 = vmatprep.subr.mxu0 %v24316_v16 }
 0x58a   : > { %9070 = vmatprep.subr.mxu1 %v24317_v17  ;;  %8775 = vmatpush1.msra.mxu0 %v24318_v28 }
 0x58b   : > { %8808 = vmatprep.mubr.f32.mxu0 %v24201_v33  ;;  %9076 = vmatpush1.msra.mxu1 %v24319_v40 }
 0x58c   : > { %9109 = vmatprep.mubr.f32.mxu1 %v24201_v33  ;;  %8810 = vmatmul.mubr.f32.vlgmr.msra.gmra.mxu0 %v21245_v12 }
 0x58d   : > { %8935 = vmatprep.subr.mxu0 %v24217_v20  ;;  %9111 = vmatmul.mubr.f32.vlgmr.msra.gmra.mxu1 %v21245_v12 }
 0x58e   : > { %9246 = vmatprep.subr.mxu1 %v24217_v20  ;;  %8937 = vmatpush1.msra.mxu0 %v24219_v13 }
 0x58f   : > { %9248 = vmatpush1.msra.mxu1 %v24219_v13  ;;  %8939 = vmatprep.subr.mxu0 %v24220_v10 }
 0x590   : > { %9250 = vmatprep.subr.mxu1 %v24220_v10  ;;  %8815 = vmatprep.mubr.f32.mxu0 %v24201_v33 }
 0x591   : > { %8941 = vmatpush1.msra.mxu0 %v24243_v7  ;;  %9116 = vmatprep.mubr.f32.mxu1 %v24201_v33 }
 0x592   : > { %9252 = vmatpush1.msra.mxu1 %v24243_v7  ;;  %8817 = vmatmul.mubr.f32.gmra.mxu0 %v21242_v38 }
 0x593   : > { %8943 = vmatprep.subr.mxu0 %v24222_v45  ;;  %9118 = vmatmul.mubr.f32.gmra.mxu1 %v21242_v38 }
 0x594   : > { %9254 = vmatprep.subr.mxu1 %v24222_v45  ;;  %8945 = vmatpush1.msra.mxu0 %v24223_v6 }
 0x595   : > { %9256 = vmatpush1.msra.mxu1 %v24223_v6  ;;  %8947 = vmatprep.subr.mxu0 %v24320_v50 }
 0x596   : > { %9258 = vmatprep.subr.mxu1 %v24320_v50  ;;  %8949 = vmatpush1.msra.mxu0 %v24244_v26 }
 0x597   : > { %8982 = vmatprep.mubr.f32.mxu0 %v24201_v33  ;;  %9260 = vmatpush1.msra.mxu1 %v24244_v26 }
 0x598   : > { %9293 = vmatprep.mubr.f32.mxu1 %v24201_v33  ;;  %8988 = vmatmul.mubr.f32.vlgmr.msra.gmra.mxu0 %v21271_v1  ;;  %v24331_v1 = vld [vmem:[#allocation85_spill] sm:$0xff] }
 0x599   : > { %9150 = vmatprep.subr.mxu0 %v24321_v36  ;;  %9297 = vmatmul.mubr.f32.vlgmr.msra.gmra.mxu1 %v21257_v52  ;;  %v24328_v52 = vld [vmem:[#allocation96_spill] sm:$0xff] }
 0x59a   : > { %9440 = vmatprep.subr.mxu1 %v24217_v20  ;;  %9153 = vmatpush1.msra.mxu0 %v24322_v55  ;;  %v24375_v20 = vld [vmem:[#allocation154_spill] sm:$0xff] }
 0x59b   : > { %9442 = vmatpush1.msra.mxu1 %v24219_v13  ;;  %9156 = vmatprep.subr.mxu0 %v24323_v46  ;;  %v24372_v13 = vld [vmem:[#allocation136_spill] sm:$0xff] }
 0x59c   : > { %9444 = vmatprep.subr.mxu1 %v24220_v10  ;;  %8993 = vmatprep.mubr.f32.mxu0 %v24201_v33 }
 0x59d   : > { %9159 = vmatpush1.msra.mxu0 %v24324_v37  ;;  %9302 = vmatprep.mubr.f32.mxu1 %v24201_v33  ;;  %v24341_v37 = vld [vmem:[#allocation143_spill] sm:$0xff] }
 0x59e   : > { %9446 = vmatpush1.msra.mxu1 %v24243_v7  ;;  %8999 = vmatmul.mubr.f32.gmra.mxu0 %v21284_v15  ;;  %v24334_v15 = vld [vmem:[#allocation98_spill] sm:$0xff] }
 0x59f   : > { %9162 = vmatprep.subr.mxu0 %v24325_v63  ;;  %9306 = vmatmul.mubr.f32.gmra.mxu1 %v21261_v2  ;;  %v24329_v2 = vld [vmem:[#allocation79_spill] sm:$0xff] }
 0x5a0   : > { %9448 = vmatprep.subr.mxu1 %v24222_v45  ;;  %9165 = vmatpush1.msra.mxu0 %v24326_v31  ;;  %v24340_v31 = vld [vmem:[#allocation121_spill] sm:$0xff] }
 0x5a1   : > { %9450 = vmatpush1.msra.mxu1 %v24223_v6  ;;  %9168 = vmatprep.subr.mxu0 %v24327_v5  ;;  %v24339_v5 = vld [vmem:[#allocation146_spill] sm:$0xff] }
 0x5a2   : > { %9452 = vmatprep.subr.mxu1 %v24320_v50  ;;  %9171 = vmatpush1.msra.mxu0 %v24328_v52  ;;  %v24367_v50 = vld [vmem:[#allocation149_spill] sm:$0xff] }
 0x5a3   : > { %9204 = vmatprep.mubr.f32.mxu0 %v24201_v33  ;;  %9454 = vmatpush1.msra.mxu1 %v24244_v26  ;;  %v24366_v26 = vld [vmem:[#allocation152_spill] sm:$0xff] }
 0x5a4   : > { %9487 = vmatprep.mubr.f32.mxu1 %v24201_v33  ;;  %9207 = vmatmul.mubr.f32.vlgmr.msra.gmra.mxu0 %v21251_v44  ;;  %v24333_v44 = vld [vmem:[#allocation94_spill] sm:$0xff]  ;;  %v7248_v6 = vadd.f32 %v24367_v50, %v24366_v26  ;;  %v24373_v50 = vld [vmem:[#allocation151_spill] sm:$0xff] }
 0x5a5   : > { %9339 = vmatprep.subr.mxu0 %v24329_v2  ;;  %9489 = vmatmul.mubr.f32.vlgmr.msra.gmra.mxu1 %v21245_v12  ;;  %v24338_v2 = vld [vmem:[#allocation139_spill] sm:$0xff] }
 0x5a6   : > { %9343 = vmatpush1.msra.mxu0 %v24330_v34  ;;  %9212 = vmatprep.mubr.f32.mxu0 %v24201_v33  ;;  %v24337_v34 = vld [vmem:[#allocation124_spill] sm:$0xff] }
 0x5a7   : > { %9347 = vmatprep.subr.mxu0 %v24331_v1  ;;  %9494 = vmatprep.mubr.f32.mxu1 %v24201_v33 }
 0x5a8   : > { %9351 = vmatpush1.msra.mxu0 %v24237_v19  ;;  %v24336_v19 = vld [vmem:[#allocation118_spill] sm:$0xff] }
 0x5a9   : > { %9215 = vmatmul.mubr.f32.gmra.mxu0 %v21248_v54  ;;  %9355 = vmatprep.subr.mxu0 %v24332_v29  ;;  %v5451_v54 = vadd.f32 %v21121_v22, %v21125_v57  ;;  %v24335_v29 = vld [vmem:[#allocation142_spill] sm:$0xff]  ;;  %v24342_v22 = vld [vmem:[#allocation119_spill] sm:$0xff]  ;;  %v24343_v57 = vld [vmem:[#allocation117_spill] sm:$0xff] }
 0x5aa   : > { %9496 = vmatmul.mubr.f32.gmra.mxu1 %v21242_v38  ;;  %9359 = vmatpush1.msra.mxu0 %v24333_v44 }
 0x5ab   : > { %9363 = vmatprep.subr.mxu0 %v24334_v15  ;;  %9400 = vmatprep.mubr.f32.mxu0 %v24201_v33  ;;  %v5547_v44 = vadd.f32 %v21133_v35, %v5451_v54  ;;  %v6649_v15 = vadd.f32 %v21171_v42, %v21181_v58  ;;  %v5458_v35 = vadd.f32 %v24343_v57, %v24342_v22  ;;  %v24344_v54 = vld [vmem:[#allocation70_spill] sm:$0xff]  ;;  %v24352_v22 = vld [vmem:[#allocation141_spill] sm:$0xff] }
 0x5ac   : > { %9367 = vmatpush1.msra.mxu0 %v24241_v11  ;;  %10042 = vmatprep.mubr.f32.mxu1 %v24201_v33  ;;  %v24345_v42 = vld [vmem:[#allocation122_spill] sm:$0xff] }
 0x5ad   : > { %9402 = vmatmul.mubr.f32.vlgmr.msra.gmra.mxu0 %v21245_v12  ;;  %v6745_v11 = vadd.f32 %v24335_v29, %v6649_v15  ;;  %v5637_v1 = vadd.f32 %v24336_v19, %v5547_v44  ;;  %v5555_v58 = vadd.f32 %v24345_v42, %v5458_v35  ;;  %v24346_v29 = vld [vmem:[#allocation140_spill] sm:$0xff]  ;;  %v24347_v15 = vld [vmem:[#allocation138_spill] sm:$0xff]  ;;  %v24353_v35 = vld [vmem:[#allocation71_spill] sm:$0xff] }
 0x5ae   : > { %9407 = vmatprep.mubr.f32.mxu0 %v24201_v33  ;;  %v6656_v19 = vadd.f32 %v24347_v15, %v24346_v29  ;;  %v24354_v42 = vld [vmem:[#allocation148_spill] sm:$0xff]  ;;  %vm7680_vm9 = vcmp.gt.f32.partialorder %v24353_v35, 20.0 }
 0x5af   : > { %v5742_v12 = vadd.f32 %v24337_v34, %v5637_v1  ;;  %v6835_v52 = vadd.f32 %v24338_v2, %v6745_v11  ;;  %v24348_v34 = vld [vmem:[#allocation144_spill] sm:$0xff]  ;;  %v24349_v2 = vld [vmem:[#allocation147_spill] sm:$0xff]  ;;  %v24351_v1 = vld [vmem:[#allocation126_spill] sm:$0xff] }
 0x5b0   : > { %v6753_v11 = vadd.f32 %v24348_v34, %v6656_v19  ;;  %v24356_v19 = vld [vmem:[#allocation145_spill] sm:$0xff]  ;;  %vm7676_vm7 = vcmp.gt.f32.partialorder %v24349_v2, 20.0 }
 0x5b1   : > { %9409 = vmatmul.mubr.f32.gmra.mxu0 %v21242_v38  ;;  %v6940_v38 = vadd.f32 %v24339_v5, %v6835_v52  ;;  %v5829_v63 = vadd.f32 %v24340_v31, %v5742_v12  ;;  %v7636_v5 = vmin.f32 %v24349_v2, 20.0  ;;  %v24350_v52 = vld [vmem:[#allocation120_spill] sm:$0xff] }
 0x5b2   : > { %9855 = vmatprep.mubr.f32.mxu0 %v24201_v33  ;;  %v5646_v31 = vadd.f32 %v24350_v52, %v5555_v58  ;;  %v24357_v58 = vld [vmem:[#allocation72_spill] sm:$0xff] }
 0x5b3   : > { %v7027_v46 = vadd.f32 %v24341_v37, %v6940_v38  ;;  %v6431_v55 = vmul.f32 %v5829_v63, %v24344_v54  ;;  %v7644_v38 = vmul.f32 1.442695, %v7636_v5  ;;  %v6844_v63 = vadd.f32 %v24352_v22, %v6753_v11 }
 0x5b4   : > { %v5749_v12 = vadd.f32 %v24351_v1, %v5646_v31  ;;  %v7640_v54 = vmin.f32 %v24353_v35, 20.0  ;;  %v24359_v1 = vld [vmem:[#allocation125_spill] sm:$0xff] }
 0x5b5   : > { %v21411_v44 = vadd.f32 %v7027_v46, %v6431_v55  ;;  %v6947_v29 = vadd.f32 %v24354_v42, %v6844_v63  ;;  %v24355_v55 = vld [vmem:[#allocation123_spill] sm:$0xff]  ;;  %18944 = vpow2.f32 %v7644_v38  ;;  %v24360_v38 = vld [vmem:[#allocation130_spill] sm:$0xff] }
 0x5b6   : > { %v5836_v46 = vadd.f32 %v24355_v55, %v5749_v12  ;;  %v7652_v15 = vmul.f32 1.442695, %v7640_v54 }
 0x5b7   : > { %v7637_v37 = vmin.f32 %v21411_v44, 20.0  ;;  %v7034_v34 = vadd.f32 %v24356_v19, %v6947_v29  ;;  %v24362_v29 = vld [vmem:[#allocation132_spill] sm:$0xff]  ;;  %vm7677_vm8 = vcmp.gt.f32.partialorder %v21411_v44, 20.0 }
 0x5b8   : > { %v6435_v52 = vmul.f32 %v5836_v46, %v24357_v58  ;;  %v24363_v46 = vld [vmem:[#allocation150_spill] sm:$0xff] }
 0x5b9   : > { %v7646_v57 = vmul.f32 1.442695, %v7637_v37  ;;  %v24358_v37 = vld [vmem:[#allocation128_spill] sm:$0xff]  ;;  %v24365_v58 = vld [vmem:[#allocation134_spill] sm:$0xff] }
 0x5ba   : > { %v21424_v36 = vadd.f32 %v7034_v34, %v6435_v52  ;;  %v6043_v22 = vadd.f32 %v24359_v1, %v24358_v37 }
 0x5bb   : > { %18946 = vpow2.f32 %v7646_v57  ;;  %v24361_v57 = vld [vmem:[#allocation127_spill] sm:$0xff] }
 0x5bc   : > { %18948 = vpow2.f32 %v7652_v15  ;;  %v7641_v5 = vmin.f32 %v21424_v36, 20.0  ;;  %v6050_v54 = vadd.f32 %v24361_v57, %v24360_v38  ;;  %v6139_v55 = vadd.f32 %v24362_v29, %v6043_v22  ;;  %v24364_v15 = vld [vmem:[#allocation69_spill] sm:$0xff]  ;;  %v24369_v57 = vld [vmem:[#allocation155_spill] sm:$0xff] }
 0x5bd   : > { %v7241_v19 = vadd.f32 %v24364_v15, %v24363_v46  ;;  %v7345_v7 = vadd.f32 %v24369_v57, %v7248_v6  ;;  %v24370_v22 = vld [vmem:[#allocation129_spill] sm:$0xff]  ;;  %v24371_v15 = vld [vmem:[#allocation131_spill] sm:$0xff]  ;;  %vm7681_vm10 = vcmp.gt.f32.partialorder %v21424_v36, 20.0 }
 0x5be   : > { %v7654_v63 = vmul.f32 1.442695, %v7641_v5  ;;  %v6147_v52 = vadd.f32 %v24365_v58, %v6050_v54  ;;  %v24368_v5 = vld [vmem:[#allocation153_spill] sm:$0xff]  ;;  %v6229_v29 = vadd.f32 %v24370_v22, %v6139_v55 }
 0x5bf   : > { %v7337_v37 = vadd.f32 %v24368_v5, %v7241_v19  ;;  %v24374_v19 = vld [vmem:[#allocation137_spill] sm:$0xff]  ;;  %v7436_v28 = vadd.f32 %v24375_v20, %v7345_v7  ;;  %v24381_v20 = vld [vmem:[#allocation99_spill] sm:$0xff] }
 0x5c0   : > { %18950 = vpow2.f32 %v7654_v63  ;;  %v6238_v10 = vadd.f32 %v24371_v15, %v6147_v52  ;;  %v6334_v26 = vadd.f32 %v24372_v13, %v6229_v29  ;;  %v24378_v52 = vld [vmem:[#allocation105_spill] sm:$0xff] }
 0x5c1   : > { %v7427_v17 = vadd.f32 %v24373_v50, %v7337_v37  ;;  %v7539_v22 = vadd.f32 %v24378_v52, %v7436_v28  ;;  %v24379_v15 = vld [vmem:[#allocation133_spill] sm:$0xff] }
 0x5c2   : > { %v18945_v11 = vpop.eup %18944  ;;  %v6341_v5 = vadd.f32 %v24374_v19, %v6238_v10  ;;  %v6421_v16 = vadd.f32 %v24379_v15, %v6334_v26  ;;  %v24384_v26 = vld [vmem:[#allocation100_spill] sm:$0xff] }
 0x5c3   : > { %v7660_v34 = vadd.f32 2.0, %v18945_v11  ;;  %v7532_v51 = vadd.f32 %v24376_v8, %v7427_v17  ;;  %v24382_v17 = vld [vmem:[#allocation158_spill] sm:$0xff]  ;;  %v7626_v28 = vadd.f32 %v24383_v27, %v7539_v22 }
 0x5c4   : > { %v7642_v19 = vmin.f32 %v24382_v17, 20.0  ;;  %v6433_v15 = vmul.f32 %v6421_v16, %v24384_v26  ;;  %vm7682_vm12 = vcmp.gt.f32.partialorder %v24382_v17, 20.0 }
 0x5c5   : > { %v7668_v46 = vmul.f32 %v18945_v11, %v7660_v34  ;;  %v24377_v11 = vld [vmem:[#allocation157_spill] sm:$0xff]  ;;  %v7619_v7 = vadd.f32 %v24381_v20, %v7532_v51 }
 0x5c6   : > { %v7638_v34 = vmin.f32 %v24377_v11, 20.0  ;;  %vm7678_vm11 = vcmp.gt.f32.partialorder %v24377_v11, 20.0 }
 0x5c7   : > { %v7692_v55 = vadd.f32 2.0, %v7668_v46  ;;  %v21472_v53 = vadd.f32 %v7619_v7, %v6433_v15 }
 0x5c8   : > { %v18947_v12 = vpop.eup %18946  ;;  %v7648_v8 = vmul.f32 1.442695, %v7638_v34 }
 0x5c9   : > { %v7661_v1 = vadd.f32 2.0, %v18947_v12  ;;  %v18949_v38 = vpop.eup %18948  ;;  %18952 = vrcp.f32 %v7692_v55  ;;  %v7656_v55 = vmul.f32 1.442695, %v7642_v19  ;;  %v7639_v16 = vmin.f32 %v21472_v53, 20.0 }
 0x5ca   : > { %v7664_v48 = vadd.f32 2.0, %v18949_v38  ;;  %vm7679_vm13 = vcmp.gt.f32.partialorder %v21472_v53, 20.0 }
 0x5cb   : > { %v7669_v63 = vmul.f32 %v18947_v12, %v7661_v1  ;;  %v24380_v12 = vld [vmem:[#allocation135_spill] sm:$0xff]  ;;  %v7650_v15 = vmul.f32 1.442695, %v7639_v16 }
 0x5cc   : > { %v21457_v37 = vmul.f32 %v18949_v38, %v7664_v48  ;;  %v6428_v1 = vadd.f32 %v24380_v12, %v6341_v5  ;;  %v24385_v5 = vld [vmem:[#allocation106_spill] sm:$0xff] }
 0x5cd   : > { %v7693_v29 = vadd.f32 2.0, %v7669_v63  ;;  %v18951_v38 = vpop.eup %18950 }
 0x5ce   : > { %v7696_v48 = vadd.f32 2.0, %v21457_v37  ;;  %v6437_v12 = vmul.f32 %v6428_v1, %v24385_v5  ;;  %v7665_v27 = vadd.f32 2.0, %v18951_v38 }
 0x5cf   : > { %18954 = vrcp.f32 %v7693_v29 }
 0x5d0   : > { %18956 = vpow2.f32 %v7648_v8  ;;  %v21474_v34 = vadd.f32 %v7626_v28, %v6437_v12  ;;  %v21479_v7 = vmul.f32 %v18951_v38, %v7665_v27 }
 0x5d1   : > { %18958 = vrcp.f32 %v7696_v48 }
 0x5d2   : > { %18960 = vpow2.f32 %v7656_v55  ;;  %v7643_v29 = vmin.f32 %v21474_v34, 20.0  ;;  %v7684_v55 = vmul.f32 %v7668_v46, %v24349_v2  ;;  %v7697_v4 = vadd.f32 2.0, %v21479_v7 }
 0x5d3   : > { %18962 = vpow2.f32 %v7650_v15  ;;  %vm7683_vm14 = vcmp.gt.f32.partialorder %v21474_v34, 20.0 }
 0x5d4   : > { %v7658_v48 = vmul.f32 1.442695, %v7643_v29 }
 0x5d6   : > { %v18953_v12 = vpop.eup %18952  ;;  %18964 = vpow2.f32 %v7658_v48 }
 0x5d7   : > { %v7701_v38 = vmul.f32 %v18953_v12, %v7684_v55  ;;  %18966 = vrcp.f32 %v7697_v4 }
 0x5dc   : > { %v18955_v30 = vpop.eup %18954 }
 0x5dd   : > { %v18957_v29 = vpop.eup %18956 }
 0x5de   : > { %v7662_v4 = vadd.f32 2.0, %v18957_v29 }
 0x62d   : > { %v21427_v31 = vpop.f32.mrf.mxu1 }
 0x62f   : > { %v21433_v42 = vpop.f32.mrf.mxu1 }
 0x631   : > { %v21441_v45 = vpop.f32.mrf.mxu1 }
 0x633   : > { %v21445_v40 = vpop.f32.mrf.mxu1 }
 0x635   : > { %v8397_v54 = vpop.f32.mrf.mxu0  ;;  %v8706_v58 = vpop.f32.mrf.mxu1 }
 0x636   : > { %v8521_v26 = vadd.f32 %v21427_v31, %v8397_v54 }
 0x637   : > { %v8399_v6 = vpop.f32.mrf.mxu0  ;;  %v8708_v57 = vpop.f32.mrf.mxu1 }
 0x638   : > { %v8523_v8 = vadd.f32 %v21433_v42, %v8399_v6  ;;  %v7685_v6 = vmul.f32 %v7669_v63, %v21411_v44  ;;  %v7688_v63 = vmul.f32 %v21457_v37, %v24353_v35 }
 0x63a   : > { %v8408_v13 = vpop.f32.mrf.mxu0 }
 0x63b   : > { %v21460_v10 = vpop.f32.mrf.mxu1  ;;  %v8528_v31 = vadd.f32 %v21441_v45, %v8408_v13 }
 0x63c   : > { %v21463_v50 = vpop.f32.mrf.mxu0 }
 0x63d   : > { %v21467_v52 = vpop.f32.mrf.mxu1  ;;  %v8530_v48 = vadd.f32 %v21445_v40, %v21463_v50 }
 0x640   : > { %v8616_v51 = vpop.f32.mrf.mxu0 }
 0x641   : > { %v8898_v20 = vpop.f32.mrf.mxu1  ;;  %v8617_v19 = vadd.f32 %v8616_v51, %v8521_v26  ;;  %v7703_v26 = vmul.f32 %v18955_v30, %v7685_v6 }
 0x642   : > { %v8618_v25 = vpop.f32.mrf.mxu0 }
 0x643   : > { %v8900_v22 = vpop.f32.mrf.mxu1  ;;  %v8619_v23 = vadd.f32 %v8618_v25, %v8523_v8  ;;  %v8707_v54 = vadd.f32 %v8706_v58, %v8617_v19  ;;  %v18959_v8 = vpop.eup %18958  ;;  %v7716_v19 = vsel %vm7676_vm7, %v24349_v2, %v7701_v38  ;;  %v7717_v15 = vsel %vm7677_vm8, %v21411_v44, %v7703_v26 }
 0x644   : > { %v7670_v44 = vmul.f32 %v18957_v29, %v7662_v4 }
 0x645   : > { %v8709_v25 = vadd.f32 %v8708_v57, %v8619_v23  ;;  %v18961_v57 = vpop.eup %18960 }
 0x646   : > { %v8624_v1 = vpop.f32.mrf.mxu0  ;;  %v18963_v6 = vpop.eup %18962 }
 0x647   : > { %v8905_v28 = vpop.f32.mrf.mxu1  ;;  %v8625_v51 = vadd.f32 %v8624_v1, %v8528_v31 }
 0x648   : > { %v8626_v5 = vpop.f32.mrf.mxu0 }
 0x649   : > { %v21482_v60 = vpop.f32.mrf.mxu1  ;;  %v8716_v30 = vadd.f32 %v21460_v10, %v8625_v51  ;;  %v8627_v10 = vadd.f32 %v8626_v5, %v8530_v48 }
 0x64b   : > { %v8718_v5 = vadd.f32 %v21467_v52, %v8627_v10 }
 0x64c   : > { %v8811_v42 = vpop.f32.mrf.mxu0 }
 0x64d   : > { %v8812_v27 = vadd.f32 %v8811_v42, %v8707_v54  ;;  %v21488_v16 = vpop.f32.mrf.mxu1  ;;  %v7666_v54 = vadd.f32 2.0, %v18961_v57 }
 0x64e   : > { %v8813_v46 = vpop.f32.mrf.mxu0 }
 0x64f   : > { %v8899_v45 = vadd.f32 %v8898_v20, %v8812_v27  ;;  %v8814_v58 = vadd.f32 %v8813_v46, %v8709_v25  ;;  %v21491_v13 = vpop.f32.mrf.mxu1  ;;  %v7709_v20 = vmul.f32 %v18959_v8, %v7688_v63  ;;  %v7674_v51 = vmul.f32 %v18961_v57, %v7666_v54  ;;  %v18965_v27 = vpop.eup %18964 }
 0x650   : > { %v18967_v29 = vpop.eup %18966  ;;  %v7689_v46 = vmul.f32 %v21479_v7, %v21424_v36  ;;  %v7663_v8 = vadd.f32 2.0, %v18963_v6 }
 0x651   : > { %v21497_v1 = vadd.f32 %v8899_v45, %v7716_v19  ;;  %v8901_v23 = vadd.f32 %v8900_v22, %v8814_v58  ;;  %v7720_v40 = vsel %vm7680_vm9, %v24353_v35, %v7709_v20  ;;  %v7698_v52 = vadd.f32 2.0, %v7674_v51 }
 0x652   : > { %v8818_v12 = vpop.f32.mrf.mxu0  ;;  %v7667_v45 = vadd.f32 2.0, %v18965_v27  ;;  %v7711_v58 = vmul.f32 %v18967_v29, %v7689_v46  ;;  %v7671_v4 = vmul.f32 %v18963_v6, %v7663_v8 }
 0x653   : > { %v21503_v2 = vadd.f32 %v8901_v23, %v7717_v15  ;;  %v8819_v55 = vadd.f32 %v8818_v12, %v8716_v30  ;;  %v9119_v31 = vpop.f32.mrf.mxu1  ;;  %9695 = vrot.lane.b32.xlu1 %v21497_v1, %s19248_s22 }
 0x654   : > { %v8820_v37 = vpop.f32.mrf.mxu0  ;;  %v7675_v7 = vmul.f32 %v18965_v27, %v7667_v45  ;;  %v7721_v57 = vsel %vm7681_vm10, %v21424_v36, %v7711_v58  ;;  %v7695_v12 = vadd.f32 2.0, %v7671_v4  ;;  %v7690_v58 = vmul.f32 %v7674_v51, %v24382_v17 }
 0x655   : > { %v8906_v22 = vadd.f32 %v8905_v28, %v8819_v55  ;;  %9585 = vrot.lane.b32.xlu0 %v21503_v2, %s19249_s27  ;;  %v9121_v38 = vpop.f32.mrf.mxu1  ;;  %v7694_v28 = vadd.f32 2.0, %v7670_v44  ;;  %v8821_v35 = vadd.f32 %v8820_v37, %v8718_v5 }
 0x656   : > { %v7699_v48 = vadd.f32 2.0, %v7675_v7 }
 0x657   : > { %v21511_v50 = vadd.f32 %v8906_v22, %v7720_v40  ;;  %9636 = vrot.lane.b32.xlu1 %v21497_v1, %s19250_s19  ;;  %18968 = vrcp.f32 %v7694_v28  ;;  %v8908_v63 = vadd.f32 %v21482_v60, %v8821_v35  ;;  %v7686_v28 = vmul.f32 %v7670_v44, %v24377_v11 }
 0x658   : > { %v8989_v42 = vpop.f32.mrf.mxu0  ;;  %18970 = vrcp.f32 %v7698_v52 }
 0x659   : > { %9703 = vrot.lane.b32.xlu0 %v21511_v50, %s19248_s22  ;;  %v9298_v26 = vpop.f32.mrf.mxu1  ;;  %v21531_v15 = vadd.f32 %v8908_v63, %v7721_v57  ;;  %v9113_v55 = vadd.f32 %v21488_v16, %v8989_v42  ;;  %18972 = vrcp.f32 %v7695_v12 }
 0x65a   : > { %v8991_v25 = vpop.f32.mrf.mxu0  ;;  %18974 = vrcp.f32 %v7699_v48 }
 0x65b   : > { %9583 = vrot.lane.b32.xlu1 %v21497_v1, %s19249_s27  ;;  %v9300_v23 = vpop.f32.mrf.mxu1  ;;  %v9115_v46 = vadd.f32 %v21491_v13, %v8991_v25 }
 0x65d   : > { %9644 = vrot.lane.b32.xlu0 %v21511_v50, %s19250_s19 }
 0x65e   : > { %v9000_v19 = vpop.f32.mrf.mxu0 }
 0x65f   : > { %9697 = vrot.lane.b32.xlu1 %v21503_v2, %s19248_s22  ;;  %v9307_v20 = vpop.f32.mrf.mxu1  ;;  %v9120_v40 = vadd.f32 %v9119_v31, %v9000_v19 }
 0x660   : > { %v9002_v30 = vpop.f32.mrf.mxu0 }
 0x661   : > { %9589 = vrot.lane.b32.xlu0 %v21511_v50, %s19249_s27  ;;  %v9309_v10 = vpop.f32.mrf.mxu1  ;;  %v9122_v8 = vadd.f32 %v9121_v38, %v9002_v30 }
 0x663   : > { %9638 = vrot.lane.b32.xlu1 %v21503_v2, %s19250_s19 }
 0x664   : > { %v9208_v60 = vpop.f32.mrf.mxu0  ;;  %v18969_v54 = vpop.eup %18968 }
 0x665   : > { %9646 = vrot.lane.b32.xlu0 %v21531_v15, %s19250_s19  ;;  %v9209_v36 = vadd.f32 %v9208_v60, %v9113_v55  ;;  %v9490_v6 = vpop.f32.mrf.mxu1  ;;  %v7705_v42 = vmul.f32 %v18969_v54, %v7686_v28  ;;  %v18971_v35 = vpop.eup %18970 }
 0x666   : > { %v9210_v37 = vpop.f32.mrf.mxu0  ;;  %v18973_v51 = vpop.eup %18972 }
 0x667   : > { %9705 = vrot.lane.b32.xlu1 %v21531_v15, %s19248_s22  ;;  %v9299_v16 = vadd.f32 %v9298_v26, %v9209_v36  ;;  %v9492_v45 = vpop.f32.mrf.mxu1  ;;  %v9211_v19 = vadd.f32 %v9210_v37, %v9115_v46  ;;  %v7718_v60 = vsel %vm7678_vm11, %v24377_v11, %v7705_v42  ;;  %v7713_v26 = vmul.f32 %v18971_v35, %v7690_v58  ;;  %v18975_v37 = vpop.eup %18974 }
 0x669   : > { %v9216_v22 = vpop.f32.mrf.mxu0  ;;  %v9301_v25 = vadd.f32 %v9300_v23, %v9211_v19  ;;  %v21616_v19 = vand.u32 4294901760, %v21511_v50 }
 0x66a   : > { %v9217_v27 = vadd.f32 %v9216_v22, %v9120_v40  ;;  %v9497_v13 = vpop.f32.mrf.mxu1  ;;  %v7687_v40 = vmul.f32 %v7671_v4, %v21472_v53 }
 0x66b   : > { %v9218_v5 = vpop.f32.mrf.mxu0  ;;  %9591 = vrot.lane.b32.xlu1 %v21531_v15, %s19249_s27  ;;  %24393 = vst [vmem:[#allocation119_spill] sm:$0xff] %v21616_v19 }
 0x66c   : > { %v9219_v44 = vadd.f32 %v9218_v5, %v9122_v8  ;;  %v9308_v57 = vadd.f32 %v9307_v20, %v9217_v27  ;;  %v7722_v20 = vsel %vm7682_vm12, %v24382_v17, %v7713_v26  ;;  %v9499_v23 = vpop.f32.mrf.mxu1  ;;  %v9553_v8 = vlaneseq }
 0x66d   : > { %v9403_v29 = vpop.f32.mrf.mxu0 }
 0x66e   : > { %v9404_v52 = vadd.f32 %v9403_v29, %v9299_v16  ;;  %v9310_v36 = vadd.f32 %v9309_v10, %v9219_v44  ;;  %v7707_v10 = vmul.f32 %v18973_v51, %v7687_v40  ;;  %v9554_v44 = vshrl.u32 %v9553_v8, 7 }
 0x66f   : > { %v9405_v31 = vpop.f32.mrf.mxu0 }
 0x670   : > { %v9491_v63 = vadd.f32 %v9490_v6, %v9404_v52  ;;  %v9406_v11 = vadd.f32 %v9405_v31, %v9301_v25  ;;  %v7691_v6 = vmul.f32 %v7675_v7, %v21474_v34  ;;  %v7719_v4 = vsel %vm7679_vm13, %v21472_v53, %v7707_v10 }
 0x671   : > { %v9410_v12 = vpop.f32.mrf.mxu0  ;;  %v21611_v31 = vand.u32 4294901760, %v21503_v2 }
 0x672   : > { %v21547_v48 = vadd.f32 %v9491_v63, %v7718_v60  ;;  %v9411_v55 = vadd.f32 %v9410_v12, %v9308_v57  ;;  %v7715_v5 = vmul.f32 %v18975_v37, %v7691_v6  ;;  %v9493_v28 = vadd.f32 %v9492_v45, %v9406_v11  ;;  %v501_v12 = vld [vmem:[%s23701_s9] sm:$0x1f]  ;;  %v502_v6 = vld [vmem:[%s23701_s9 + $0x8] sm:$0x1f] }
 0x673   : > { %v9412_v38 = vpop.f32.mrf.mxu0  ;;  %v21608_v45 = vand.u32 4294901760, %v21497_v1  ;;  %24392 = vst [vmem:[#allocation143_spill] sm:$0xff] %v21611_v31  ;;  %v21619_v63 = vand.u32 4294901760, %v21531_v15  ;;  %v21625_v60 = vsub.s32 4, %v9554_v44  ;;  %v21629_v26 = vsub.f32 %v21503_v2, %v21611_v31 }
 0x674   : > { %24386 = vst [vmem:[#allocation142_spill] sm:$0xff] %v21547_v48  ;;  %v9498_v30 = vadd.f32 %v9497_v13, %v9411_v55  ;;  %9699 = vrot.lane.b32.xlu0 %v21547_v48, %s19248_s22  ;;  %v9413_v54 = vadd.f32 %v9412_v38, %v9310_v36  ;;  %v7723_v7 = vsel %vm7683_vm14, %v21474_v34, %v7715_v5  ;;  %v21644_v38 = vsub.s32 3, %v9554_v44  ;;  %v9754_v5 = vld [vmem:[%s23695_s3] sm:$0xff] }
 0x675   : > { %v21568_v27 = vadd.f32 %v9493_v28, %v7719_v4  ;;  %24391 = vst [vmem:[#allocation121_spill] sm:$0xff] %v21608_v45  ;;  %24394 = vst [vmem:[#allocation117_spill] sm:$0xff] %v21619_v63  ;;  %v21623_v57 = vsub.f32 %v21497_v1, %v21608_v45  ;;  %v21638_v13 = vsub.f32 %v21511_v50, %v21616_v19  ;;  %v23925_v36 = vand.u32 4294901760, %v21629_v26 }
 0x676   : > { %v21553_v22 = vadd.f32 %v9498_v30, %v7722_v20  ;;  %v9500_v17 = vadd.f32 %v9499_v23, %v9413_v54  ;;  %24396 = vst [vmem:[#allocation122_spill] sm:$0xff] %v21629_v26  ;;  %v9733_v30 = vrot.slane %v501_v12, %v21625_v60  ;;  %v21658_v37 = vsub.s32 1, %v9554_v44 }
 0x677   : > { %24388 = vst [vmem:[#allocation124_spill] sm:$0xff] %v21568_v27  ;;  %24395 = vst [vmem:[#allocation70_spill] sm:$0xff] %v21623_v57  ;;  %v9674_v11 = vrot.slane %v501_v12, %v21644_v38  ;;  %v21674_v10 = vsub.f32 %v21629_v26, %v23925_v36  ;;  %v9766_v41 = vsel %vm9764_vm1, %v9754_v5, 0  ;;  %v9678_v5 = vrot.slane %v502_v6, %v21644_v38 }
 0x678   : > { %24387 = vst [vmem:[#allocation118_spill] sm:$0xff] %v21553_v22  ;;  %9640 = vrot.lane.b32.xlu0 %v21547_v48, %s19250_s19  ;;  %9707 = vrot.lane.b32.xlu1 %v21553_v22, %s19248_s22  ;;  %v21570_v16 = vadd.f32 %v9500_v17, %v7723_v7  ;;  %24397 = vst [vmem:[#allocation140_spill] sm:$0xff] %v21638_v13  ;;  %v19252_v7 = vmov 3   ;;  %v9619_v36 = vrot.slane %v502_v6, %v21658_v37 }
 0x679   : > { %18917 = vset.pattern.permute.xlu0 %v19252_v7  ;;  %18918 = vset.pattern.permute.xlu1 %v19252_v7  ;;  %v19017_v7 = vld [vmem:[%s23698_s6 + $0x8] sm:$0xff] }
 0x67a   : > { %24389 = vst [vmem:[#allocation139_spill] sm:$0xff] %v21570_v16 }
 0x67c   : > { %9530 = vrot.lane.b32.xlu0 %v21511_v50, %s19251_s30  ;;  %9648 = vrot.lane.b32.xlu1 %v21553_v22, %s19250_s19  ;;  %v23926_v50 = vand.u32 4294901760, %v21638_v13 }
 0x67e   : > { %v21685_v4 = vsub.f32 %v21638_v13, %v23926_v50  ;;  %v21705_v50 = vsub.s32 0, %v9554_v44 }
 0x680   : > { %9579 = vrot.lane.b32.xlu0 %v21570_v16, %s19249_s27  ;;  %9577 = vrot.lane.b32.xlu1 %v21568_v27, %s19249_s27 }
 0x684   : > { %9514 = vrot.lane.b32.xlu0 %v21570_v16, %s19251_s30  ;;  %9532 = vrot.lane.b32.xlu1 %v21531_v15, %s19251_s30 }
 0x688   : > { %9526 = vrot.lane.b32.xlu0 %v21503_v2, %s19251_s30  ;;  %9524 = vrot.lane.b32.xlu1 %v21497_v1, %s19251_s30  ;;  %v21642_v1 = vsub.f32 %v21531_v15, %v21619_v63  ;;  %v23924_v2 = vand.u32 4294901760, %v21623_v57 }
 0x68a   : > { %24398 = vst [vmem:[#allocation138_spill] sm:$0xff] %v21642_v1  ;;  %v23930_v20 = vand.u32 4294901760, %v21642_v1  ;;  %v21666_v40 = vsub.f32 %v21623_v57, %v23924_v2 }
 0x68c   : > { %9709 = vrot.lane.b32.xlu0 %v21570_v16, %s19248_s22  ;;  %9512 = vrot.lane.b32.xlu1 %v21568_v27, %s19251_s30 }
 0x690   : > { %9650 = vrot.lane.b32.xlu0 %v21570_v16, %s19250_s19  ;;  %9701 = vrot.lane.b32.xlu1 %v21568_v27, %s19248_s22 }
 0x694   : > { %9593 = vrot.lane.b32.xlu0 %v21553_v22, %s19249_s27  ;;  %9642 = vrot.lane.b32.xlu1 %v21568_v27, %s19250_s19  ;;  %s18281_s19 = scalar_lea.sflag [#allocation4], %s19507_s18 }
 0x698   : > { %9534 = vrot.lane.b32.xlu0 %v21553_v22, %s19251_s30  ;;  %9587 = vrot.lane.b32.xlu1 %v21547_v48, %s19249_s27 }
 0x69c   : > { %9528 = vrot.lane.b32.xlu1 %v21547_v48, %s19251_s30  ;;  %s19156_s30 = scalar_lea.vmem %s23639_s21, 1024 }
 0x69d   : > { %p19157_p9 = scmp.ne.s32.totalorder %s23639_s21, %s19156_s30  ;;  %p19164_p1 = scmp.lt.s32.totalorder %s19162_s8, %s19156_s30 }
 0x69f   : > { %p19158_p0 = pnand %p19157_p9, %p24695_p13  ;;  %p19165_p4 = por %p19164_p1, %p19163_p10 }
 0x6a0   : > { %9761 = vperm.xlu1 %18918, %v19017_v7  }
 0x6a1   : > { %p19159_p2 = pneg %p19158_p0 }
 0x6a3   : > { %p19166_p6 = pnand %p19165_p4, %p19159_p2 }
 0x6c5   : > { %v21595_v53 = vpop.permute.xlu1 %9695 }
 0x6c7   : > { %v21597_v34 = vpop.permute.xlu0 %9585 }
 0x6c8   : > { %24390 = vst [vmem:[#allocation146_spill] sm:$0xff] %v21597_v34 }
 0x6c9   : > { %v21599_v42 = vpop.permute.xlu1 %9636 }
 0x6cb   : > { %v21603_v35 = vpop.permute.xlu0 %9703 }
 0x6cd   : > { %v21601_v29 = vpop.permute.xlu1 %9583 }
 0x6ce   : > { %v9596_v59 = vsel %vm9595_vm3, %v21601_v29, %v21597_v34 }
 0x6cf   : > { %v21605_v52 = vpop.permute.xlu0 %9644 }
 0x6d1   : > { %v9698_v46 = vpop.permute.xlu1 %9697 }
 0x6d2   : > { %v9712_v51 = vsel %vm9711_vm15, %v21595_v53, %v9698_v46 }
 0x6d3   : > { %v21634_v55 = vpop.permute.xlu0 %9589  ;;  %v9746_v23 = vmul.f32 %v9733_v30, %v9712_v51  ;;  %v9737_v51 = vrot.slane %v502_v6, %v21625_v60 }
 0x6d5   : > { %v21613_v58 = vpop.permute.xlu1 %9638  ;;  %v21708_v14 = vand.u32 4294901760, %v9746_v23 }
 0x6d6   : > { %v9653_v28 = vsel %vm9652_vm0, %v21599_v42, %v21613_v58 }
 0x6d7   : > { %v21661_v54 = vpop.permute.xlu0 %9646  ;;  %24399 = vst [vmem:[#allocation144_spill] sm:$0xff] %v21708_v14 }
 0x6d8   : > { %v9656_v8 = vsel %vm9652_vm0, %v21605_v52, %v21661_v54 }
 0x6d9   : > { %v21646_v25 = vpop.permute.xlu1 %9705  ;;  %v9691_v43 = vmul.f32 %v9674_v11, %v9656_v8  ;;  %v21728_v8 = vrot.slane %v501_v12, %v21705_v50 }
 0x6da   : > { %v9715_v15 = vsel %vm9711_vm15, %v21603_v35, %v21646_v25 }
 0x6db   : > { %v9750_v17 = vmul.f32 %v9733_v30, %v9715_v15  ;;  %v21696_v30 = vsub.f32 %v21642_v1, %v23930_v20  ;;  %v19016_v15 = vld [vmem:[%s23698_s6] sm:$0xff]  ;;  %v9687_v20 = vmul.f32 %v9674_v11, %v9653_v28  ;;  %v21721_v28 = vand.u32 4294901760, %v9766_v41 }
 0x6dc   : > { %9757 = vperm.xlu0 %18917, %v19016_v15   ;;  %v9615_v11 = vrot.slane %v501_v12, %v21658_v37  ;;  %v21739_v15 = vsub.f32 %v9746_v23, %v21708_v14  ;;  %v21755_v18 = vand.u32 4294901760, %v9691_v43 }
 0x6dd   : > { %v21691_v2 = vpop.permute.xlu1 %9591  ;;  %v21714_v21 = vand.u32 4294901760, %v9750_v17  ;;  %24401 = vst [vmem:[#allocation120_spill] sm:$0xff] %v21721_v28  ;;  %v21741_v44 = vand.u32 4294901760, %v9687_v20  ;;  %v21776_v62 = vsub.f32 %v9766_v41, %v21721_v28 }
 0x6de   : > { %v9599_v12 = vsel %vm9595_vm3, %v21634_v55, %v21691_v2  ;;  %24404 = vst [vmem:[#allocation71_spill] sm:$0xff] %v21755_v18  ;;  %v24412_v26 = vand.u32 4294901760, %v21739_v15 }
 0x6df   : > { %24400 = vst [vmem:[#allocation147_spill] sm:$0xff] %v21714_v21  ;;  %24402 = vst [vmem:[#allocation126_spill] sm:$0xff] %v21741_v44  ;;  %v21758_v23 = vsub.f32 %v9750_v17, %v21714_v21 }
 0x6e0   : > { %24405 = vst [vmem:[#allocation148_spill] sm:$0xff] %v21776_v62 }
 0x6e6   : > { %v21710_v47 = vpop.permute.xlu0 %9699 }
 0x6e7   : > { %v9713_v7 = vsel %vm9711_vm15, %v9698_v46, %v21710_v47  ;;  %v21731_v46 = vrot.slane %v502_v6, %v21705_v50 }
 0x6e8   : > { %v9747_v3 = vmul.f32 %v9737_v51, %v9713_v7  ;;  %v21736_v7 = vld [vmem:[%s23701_s9 + $0x10] sm:$0x1f] }
 0x6e9   : > { %v21773_v17 = vrot.slane %v21736_v7, %v21625_v60 }
 0x6ea   : > { %v21743_v0 = vand.u32 4294901760, %v9747_v3  ;;  %v21748_v24 = vpop.permute.xlu0 %9640  ;;  %v21750_v6 = vpop.permute.xlu1 %9707 }
 0x6eb   : > { %v9654_v61 = vsel %vm9652_vm0, %v21613_v58, %v21748_v24  ;;  %v9716_v9 = vsel %vm9711_vm15, %v21646_v25, %v21750_v6  ;;  %v9629_v58 = vmul.f32 %v9619_v36, %v9596_v59  ;;  %v9633_v25 = vmul.f32 %v9619_v36, %v9599_v12 }
 0x6ec   : > { %24403 = vst [vmem:[#allocation141_spill] sm:$0xff] %v21743_v0  ;;  %v9688_v49 = vmul.f32 %v9678_v5, %v9654_v61  ;;  %v9751_v32 = vmul.f32 %v9737_v51, %v9716_v9  ;;  %v21779_v27 = vsub.f32 %v9747_v3, %v21743_v0  ;;  %v21782_v61 = vsel %vm9764_vm1, %v9755_v39, 0 }
 0x6ed   : > { %v21786_v51 = vsub.f32 %v9687_v20, %v21741_v44  ;;  %v21795_v59 = vsub.f32 %v9691_v43, %v21755_v18  ;;  %v21803_v36 = vrot.slane %v21769_v56, %v21625_v60  ;;  %v21810_v9 = vand.u32 4294901760, %v21776_v62 }
 0x6ee   : > { %v21788_v16 = vand.u32 4294901760, %v9688_v49  ;;  %v21790_v48 = vand.u32 4294901760, %v9751_v32  ;;  %v9531_v22 = vpop.permute.xlu0 %9530  ;;  %v21792_v41 = vpop.permute.xlu1 %9648  ;;  %v21813_v43 = vand.u32 4294901760, %v21782_v61  ;;  %v21815_v3 = vand.u32 4294901760, %v9629_v58 }
 0x6ef   : > { %v9657_v39 = vsel %vm9652_vm0, %v21661_v54, %v21792_v41  ;;  %24408 = vst [vmem:[#allocation72_spill] sm:$0xff] %v21810_v9  ;;  %v21817_v28 = vand.u32 4294901760, %v9633_v25 }
 0x6f0   : > { %24406 = vst [vmem:[#allocation123_spill] sm:$0xff] %v21788_v16  ;;  %24407 = vst [vmem:[#allocation145_spill] sm:$0xff] %v21790_v48  ;;  %v21806_v20 = vsub.f32 %v9751_v32, %v21790_v48  ;;  %v9692_v12 = vmul.f32 %v9678_v5, %v9657_v39  ;;  %9784 = vmatprep.subr.mxu0 %v21790_v48  ;;  %v21820_v54 = vsub.f32 %v9688_v49, %v21788_v16 }
 0x6f1   : > { %24409 = vst [vmem:[#allocation128_spill] sm:$0xff] %v21817_v28  ;;  %9786 = vmatpush1.msra.mxu0 %v21714_v21  ;;  %v9911_v49 = vsub.f32 %v21739_v15, %v24412_v26  ;;  %v21855_v33 = vsub.f32 %v9629_v58, %v21815_v3 }
 0x6f2   : > { %v21825_v5 = vand.u32 4294901760, %v9692_v12  ;;  %v21827_v39 = vpop.permute.xlu0 %9579  ;;  %9788 = vmatprep.subr.mxu0 %v21743_v0  ;;  %v21830_v48 = vpop.permute.xlu1 %9577  ;;  %v24413_v0 = vand.u32 4294901760, %v21758_v23  ;;  %v24414_v21 = vand.u32 4294901760, %v21806_v20 }
 0x6f3   : > { %24411 = vst [vmem:[#allocation130_spill] sm:$0xff] %v21830_v48  ;;  %v9611_v60 = vsel %vm9595_vm3, %v21827_v39, %v21634_v55  ;;  %v9610_v32 = vsel %vm9595_vm3, %v21830_v48, %v21601_v29  ;;  %9790 = vmatpush1.msra.mxu0 %v21708_v14  ;;  %v21858_v29 = vsub.f32 %v9633_v25, %v21817_v28  ;;  %v24417_v14 = vand.u32 4294901760, %v21786_v51 }
 0x6f4   : > { %24410 = vst [vmem:[#allocation125_spill] sm:$0xff] %v21825_v5  ;;  %v9899_v57 = vsub.f32 %v21758_v23, %v24413_v0  ;;  %v21848_v13 = vsub.f32 %v9692_v12, %v21825_v5  ;;  %v9632_v26 = vmul.f32 %v9615_v11, %v9611_v60  ;;  %v9628_v1 = vmul.f32 %v9615_v11, %v9610_v32 }
 0x6f5   : > { %9792 = vmatprep.subr.mxu0 %v21825_v5  ;;  %v9893_v55 = vsub.f32 %v21806_v20, %v24414_v21  ;;  %v24415_v0 = vand.u32 4294901760, %v21779_v27  ;;  %v9912_v11 = vand.u32 4294901760, %v9911_v49  ;;  %v9935_v48 = vsub.f32 %v21786_v51, %v24417_v14 }
 0x6f6   : > { %9794 = vmatpush1.msra.mxu0 %v21755_v18  ;;  %v21865_v32 = vand.u32 4294901760, %v9632_v26  ;;  %v21867_v60 = vand.u32 4294901760, %v9628_v1  ;;  %v21869_v5 = vpop.permute.xlu0 %9514  ;;  %v21872_v21 = vpop.permute.xlu1 %9532  ;;  %v24418_v25 = vand.u32 4294901760, %v21795_v59  ;;  %v24419_v14 = vand.u32 4294901760, %v21848_v13 }
 0x6f7   : > { %v9905_v12 = vsub.f32 %v21779_v27, %v24415_v0  ;;  %24416 = vst [vmem:[#allocation127_spill] sm:$0xff] %v21869_v5  ;;  %9796 = vmatprep.subr.mxu0 %v21788_v16  ;;  %v9894_v58 = vand.u32 4294901760, %v9893_v55  ;;  %v9552_v18 = vsel %vm9536_vm4, %v21869_v5, %v9531_v22  ;;  %v9540_v0 = vsel %vm9536_vm4, %v9531_v22, %v21872_v21 }
 0x6f8   : > { %9798 = vmatpush1.msra.mxu0 %v21741_v44  ;;  %v9573_v16 = vmul.f32 %v21728_v8, %v9552_v18  ;;  %v9574_v34 = vmul.f32 %v21731_v46, %v9540_v0  ;;  %v9900_v55 = vand.u32 4294901760, %v9899_v57  ;;  %v9923_v5 = vsub.f32 %v21795_v59, %v24418_v25 }
 0x6f9   : > { %9800 = vmatprep.subr.mxu0 %v21619_v63  ;;  %v21890_v22 = vsub.f32 %v9632_v26, %v21865_v32  ;;  %9895 = vmatprep.subr.mxu1 %v9894_v58  ;;  %v9906_v49 = vand.u32 4294901760, %v9905_v12  ;;  %v9917_v18 = vsub.f32 %v21848_v13, %v24419_v14  ;;  %v24420_v0 = vand.u32 4294901760, %v21820_v54 }
 0x6fa   : > { %9802 = vmatpush1.msra.mxu0 %v21616_v19  ;;  %v21900_v57 = vsub.f32 %v9628_v1, %v21867_v60  ;;  %v21902_v44 = vand.u32 4294901760, %v9573_v16  ;;  %v21904_v25 = vand.u32 4294901760, %v9574_v34  ;;  %9901 = vmatpush1.msra.mxu1 %v9900_v55  ;;  %v21906_v26 = vpop.permute.xlu0 %9526  ;;  %v9525_v58 = vpop.permute.xlu1 %9524  ;;  %v9859_v55 = vsub.f32 %v21776_v62, %v21810_v9 }
 0x6fb   : > { %v9929_v63 = vsub.f32 %v21820_v54, %v24420_v0  ;;  %9804 = vmatprep.subr.mxu0 %v21611_v31  ;;  %9907 = vmatprep.subr.mxu1 %v9906_v49  ;;  %v9537_v14 = vsel %vm9536_vm4, %v9525_v58, %v21906_v26  ;;  %v9918_v1 = vand.u32 4294901760, %v9917_v18  ;;  %v21915_v0 = vrot.slane %v21736_v7, %v21644_v38 }
 0x6fc   : > { %9806 = vmatpush1.msra.mxu0 %v21608_v45  ;;  %v21920_v19 = vsub.f32 %v9574_v34, %v21904_v25  ;;  %9913 = vmatpush1.msra.mxu1 %v9912_v11  ;;  %v9924_v49 = vand.u32 4294901760, %v9923_v5  ;;  %v21925_v12 = vrot.slane %v21769_v56, %v21644_v38  ;;  %v21929_v18 = vsub.f32 %v21782_v61, %v21813_v43 }
 0x6fd   : > { %9808 = vmatprep.subr.mxu0 %v21817_v28  ;;  %v23996_v45 = vand.u32 4294901760, %v21890_v22  ;;  %v9570_v31 = vmul.f32 %v21731_v46, %v9537_v14  ;;  %9919 = vmatprep.subr.mxu1 %v9918_v1  ;;  %v9930_v34 = vand.u32 4294901760, %v9929_v63  ;;  %v23997_v11 = vand.u32 4294901760, %v21855_v33 }
 0x6fe   : > { %9810 = vmatpush1.msra.mxu0 %v21865_v32  ;;  %v21937_v9 = vsub.f32 %v9573_v16, %v21902_v44  ;;  %9925 = vmatpush1.msra.mxu1 %v9924_v49  ;;  %v9710_v38 = vpop.permute.xlu0 %9709  ;;  %v21939_v28 = vpop.permute.xlu1 %9512  ;;  %v9936_v61 = vand.u32 4294901760, %v9935_v48  ;;  %v24421_v46 = vand.u32 4294901760, %v21858_v29  ;;  %v21952_v49 = vand.u32 4294901760, %v9859_v55 }
 0x6ff   : > { %9812 = vmatprep.subr.mxu0 %v21815_v3  ;;  %v9717_v63 = vsel %vm9711_vm15, %v21750_v6, %v9710_v38  ;;  %v9729_v1 = vsel %vm9711_vm15, %v9710_v38, %v21603_v35  ;;  %9931 = vmatprep.subr.mxu1 %v9930_v34  ;;  %v9551_v16 = vsel %vm9536_vm4, %v21939_v28, %v9525_v58  ;;  %v21962_v35 = vand.u32 4294901760, %v9570_v31 }
 0x700   : > { %v9965_v14 = vsub.f32 %v21858_v29, %v24421_v46  ;;  %9814 = vmatpush1.msra.mxu0 %v21867_v60  ;;  %v21955_v48 = vmul.f32 %v21773_v17, %v9717_v63  ;;  %v21958_v5 = vmul.f32 %v21803_v36, %v9729_v1  ;;  %v9569_v46 = vmul.f32 %v21728_v8, %v9551_v16 }
 0x701   : > { %9937 = vmatpush1.msra.mxu1 %v9936_v61  ;;  %9816 = vmatprep.subr.mxu0 %v21904_v25  ;;  %v24423_v58 = vand.u32 4294901760, %v21696_v30  ;;  %v9971_v55 = vsub.f32 %v21890_v22, %v23996_v45  ;;  %v21972_v34 = vrot.slane %v21736_v7, %v21658_v37  ;;  %v21975_v8 = vand.u32 4294901760, %v21929_v18 }
 0x702   : > { %24422 = vst [vmem:[#allocation132_spill] sm:$0xff] %v21955_v48  ;;  %v21978_v61 = vand.u32 4294901760, %v9569_v46  ;;  %9818 = vmatpush1.msra.mxu0 %v21902_v44  ;;  %v24424_v30 = vand.u32 4294901760, %v21685_v4  ;;  %v9651_v63 = vpop.permute.xlu0 %9650  ;;  %v9702_v1 = vpop.permute.xlu1 %9701  ;;  %v9977_v16 = vsub.f32 %v21855_v33, %v23997_v11  ;;  %v24426_v48 = vand.u32 4294901760, %v21674_v10 }
 0x703   : > { %9943 = vmatprep.subr.mxu1 %v24423_v58  ;;  %v24425_v58 = vand.u32 4294901760, %v21900_v57  ;;  %v9658_v38 = vsel %vm9652_vm0, %v21792_v41, %v9651_v63  ;;  %v9670_v6 = vsel %vm9652_vm0, %v9651_v63, %v21605_v52  ;;  %v9714_v4 = vsel %vm9711_vm15, %v21710_v47, %v9702_v1  ;;  %9820 = vmatprep.subr.mxu0 %v21962_v35 }
 0x704   : > { %9949 = vmatpush1.msra.mxu1 %v24424_v30  ;;  %v9728_v30 = vsel %vm9711_vm15, %v9702_v1, %v21595_v53  ;;  %v21999_v11 = vmul.f32 %v21915_v0, %v9658_v38  ;;  %v9627_v41 = vrot.slane %v21769_v56, %v21658_v37  ;;  %v24427_v52 = vand.u32 4294901760, %v21920_v19  ;;  %9822 = vmatpush1.msra.mxu0 %v21978_v61 }
 0x705   : > { %v9983_v45 = vsub.f32 %v21900_v57, %v24425_v58  ;;  %9955 = vmatprep.subr.mxu1 %v24426_v48  ;;  %v9966_v58 = vand.u32 4294901760, %v9965_v14  ;;  %v22009_v47 = vmul.f32 %v21925_v12, %v9670_v6  ;;  %v22012_v53 = vmul.f32 %v21773_v17, %v9714_v4  ;;  %10071 = vmatprep.subr.mxu0 %v21806_v20 }
 0x706   : > { %v9989_v63 = vsub.f32 %v21920_v19, %v24427_v52  ;;  %v22015_v38 = vmul.f32 %v21803_v36, %v9728_v30  ;;  %v24428_v10 = vand.u32 4294901760, %v21666_v40  ;;  %v9972_v14 = vand.u32 4294901760, %v9971_v55  ;;  %v9594_v37 = vpop.permute.xlu0 %9593  ;;  %v9643_v48 = vpop.permute.xlu1 %9642  ;;  %9861 = vmatmul.mubr.f32.vlgmr.msra.gmra.mxu0 %v21952_v49 }
 0x707   : > { %v9978_v1 = vand.u32 4294901760, %v9977_v16  ;;  %v24429_v6 = vand.u32 4294901760, %v21937_v9  ;;  %v9870_v36 = vsub.f32 %v21929_v18, %v21975_v8  ;;  %v22027_v4 = vsub.f32 %v9570_v31, %v21962_v35  ;;  %10074 = vmatpush1.msra.mxu0 %v21758_v23 }
 0x708   : > { %9961 = vmatpush1.msra.mxu1 %v24428_v10  ;;  %v9600_v40 = vsel %vm9595_vm3, %v21691_v2, %v9594_v37  ;;  %v9984_v55 = vand.u32 4294901760, %v9983_v45  ;;  %v9564_v16 = vrot.slane %v21736_v7, %v21705_v50  ;;  %v22035_v30 = vsub.f32 %v9569_v46, %v21978_v61  ;;  %10077 = vmatprep.subr.mxu0 %v21779_v27 }
 0x709   : > { %9967 = vmatprep.subr.mxu1 %v9966_v58  ;;  %v9995_v17 = vsub.f32 %v21937_v9, %v24429_v6  ;;  %v9601_v58 = vsel %vm9595_vm3, %v9594_v37, %v21827_v39  ;;  %v22040_v52 = vmul.f32 %v21972_v34, %v9600_v40  ;;  %v9655_v31 = vsel %vm9652_vm0, %v21748_v24, %v9643_v48  ;;  %v24432_v6 = vld [vmem:[#allocation146_spill] sm:$0xff] }
 0x70a   : > { %9973 = vmatpush1.msra.mxu1 %v9972_v14  ;;  %v22044_v2 = vmul.f32 %v9627_v41, %v9601_v58  ;;  %v9990_v45 = vand.u32 4294901760, %v9989_v63  ;;  %v9568_v7 = vrot.slane %v21769_v56, %v21705_v50  ;;  %v9669_v46 = vsel %vm9652_vm0, %v9643_v48, %v21599_v42  ;;  %v9535_v24 = vpop.permute.xlu0 %9534  ;;  %v9588_v14 = vpop.permute.xlu1 %9587  ;;  %10080 = vmatpush1.msra.mxu0 %v21739_v15  ;;  %v24431_v50 = vld [vmem:[#allocation127_spill] sm:$0xff] }
 0x70b   : > { %9979 = vmatprep.subr.mxu1 %v9978_v1  ;;  %v22052_v39 = vmul.f32 %v21915_v0, %v9655_v31  ;;  %v9996_v10 = vand.u32 4294901760, %v9995_v17  ;;  %v22055_v37 = vand.u32 4294901760, %v9870_v36  ;;  %v22058_v1 = vmul.f32 %v21925_v12, %v9669_v46  ;;  %10083 = vmatprep.subr.mxu0 %v21848_v13  ;;  %v24434_v36 = vld [vmem:[#allocation130_spill] sm:$0xff] }
 0x70c   : > { %9985 = vmatpush1.msra.mxu1 %v9984_v55  ;;  %v9541_v56 = vsel %vm9536_vm4, %v21872_v21, %v9535_v24  ;;  %v23999_v42 = vand.u32 4294901760, %v22035_v30  ;;  %v9542_v0 = vsel %vm9536_vm4, %v9535_v24, %v24431_v50  ;;  %v24000_v48 = vand.u32 4294901760, %v22027_v4  ;;  %10086 = vmatpush1.msra.mxu0 %v21795_v59  ;;  %v24436_v24 = vld [vmem:[#allocation140_spill] sm:$0xff]  ;;  %v24437_v50 = vld [vmem:[#allocation122_spill] sm:$0xff] }
 0x70d   : > { %24430 = vst [vmem:[#allocation150_spill] sm:$0xff] %v22055_v37  ;;  %9991 = vmatprep.subr.mxu1 %v9990_v45  ;;  %v22067_v63 = vmul.f32 %v9564_v16, %v9541_v56  ;;  %v22070_v12 = vmul.f32 %v9568_v7, %v9542_v0  ;;  %v9597_v17 = vsel %vm9595_vm3, %v24432_v6, %v9588_v14  ;;  %v24433_v21 = vmov 0.0  }
 0x70e   : > { %9997 = vmatpush1.msra.mxu1 %v9996_v10  ;;  %9866 = vmatprep.mubr.f32.mxu0 %v24433_v21  ;;  %v9598_v40 = vsel %vm9595_vm3, %v9588_v14, %v24434_v36  ;;  %v9529_v55 = vpop.permute.xlu1 %9528  ;;  %v22081_v58 = vmul.f32 %v21972_v34, %v9597_v17  ;;  %v10001_v45 = vsub.f32 %v22027_v4, %v24000_v48  ;;  %v24435_v10 = vld [vmem:[#allocation138_spill] sm:$0xff]  ;;  %v24440_v36 = vld [vmem:[#allocation145_spill] sm:$0xff] }
 0x70f   : > { %10089 = vmatprep.subr.mxu0 %v21820_v54  ;;  %9872 = vmatmul.mubr.f32.gmra.mxu0 %v22055_v37  ;;  %v22083_v31 = vmul.f32 %v9627_v41, %v9598_v40  ;;  %v10007_v46 = vsub.f32 %v22035_v30, %v23999_v42  ;;  %v9538_v34 = vsel %vm9536_vm4, %v21906_v26, %v9529_v55  ;;  %v24438_v17 = vld [vmem:[#allocation70_spill] sm:$0xff]  ;;  %v24439_v26 = vld [vmem:[#allocation120_spill] sm:$0xff]  ;;  %v24441_v40 = vld [vmem:[#allocation147_spill] sm:$0xff]  ;;  %v24454_v37 = vand.u32 4294901760, %v21779_v27 }
 0x710   : > { %10092 = vmatpush1.msra.mxu0 %v21786_v51  ;;  %10161 = vmatprep.mubr.f32.mxu0 %v24433_v21  ;;  %v10002_v41 = vand.u32 4294901760, %v10001_v45  ;;  %v9539_v56 = vsel %vm9536_vm4, %v9529_v55, %v21939_v28  ;;  %v22100_v0 = vmul.f32 %v9564_v16, %v9538_v34  ;;  %v24442_v28 = vld [vmem:[#allocation141_spill] sm:$0xff]  ;;  %v24443_v16 = vld [vmem:[#allocation144_spill] sm:$0xff]  ;;  %v24445_v55 = vld [vmem:[#allocation71_spill] sm:$0xff]  ;;  %v24458_v27 = vand.u32 4294901760, %v21795_v59 }
 0x711   : > { %10095 = vmatprep.subr.mxu0 %v24435_v10  ;;  %v10008_v14 = vand.u32 4294901760, %v10007_v46  ;;  %v22102_v6 = vmul.f32 %v9568_v7, %v9539_v56  ;;  %v24444_v7 = vld [vmem:[#allocation125_spill] sm:$0xff]  ;;  %v24446_v45 = vld [vmem:[#allocation123_spill] sm:$0xff]  ;;  %v24447_v46 = vld [vmem:[#allocation126_spill] sm:$0xff]  ;;  %v24451_v56 = vand.u32 4294901760, %v21758_v23  ;;  %v24457_v23 = vand.u32 4294901760, %v21848_v13 }
 0x712   : > { %10098 = vmatpush1.msra.mxu0 %v24436_v24  ;;  %10003 = vmatprep.subr.mxu1 %v10002_v41  ;;  %v24448_v34 = vld [vmem:[#allocation117_spill] sm:$0xff]  ;;  %v24449_v41 = vand.u32 4294901760, %v21806_v20  ;;  %v24452_v42 = vld [vmem:[#allocation143_spill] sm:$0xff]  ;;  %v24456_v20 = vand.u32 4294901760, %v21739_v15  ;;  %v24459_v15 = vand.u32 4294901760, %v21820_v54  ;;  %v24460_v13 = vand.u32 4294901760, %v21786_v51 }
 0x713   : > { %10101 = vmatprep.subr.mxu0 %v24437_v50  ;;  %10009 = vmatpush1.msra.mxu1 %v10008_v14  ;;  %v24450_v14 = vld [vmem:[#allocation119_spill] sm:$0xff]  ;;  %v24453_v48 = vld [vmem:[#allocation121_spill] sm:$0xff]  ;;  %v24463_v59 = vand.u32 4294901760, %v24436_v24  ;;  %v24464_v54 = vand.u32 4294901760, %v24437_v50  ;;  %v24465_v51 = vand.u32 4294901760, %v24438_v17  ;;  %v22175_v24 = vand.u32 4294901760, %v21958_v5 }
 0x714   : > { %10104 = vmatpush1.msra.mxu0 %v24438_v17  ;;  %10044 = vmatmul.mubr.f32.vlgmr.msra.gmra.mxu1 %v24439_v26  ;;  %v24467_v50 = vand.u32 4294901760, %v21890_v22 }
 0x715   : > { %10107 = vmatprep.subr.mxu0 %v21858_v29  ;;  %10191 = vmatprep.subr.mxu1 %v24440_v36 }
 0x716   : > { %10110 = vmatpush1.msra.mxu0 %v21890_v22  ;;  %10193 = vmatpush1.msra.mxu1 %v24441_v40  ;;  %v24471_v22 = vand.u32 4294901760, %v21920_v19 }
 0x717   : > { %10113 = vmatprep.subr.mxu0 %v21855_v33  ;;  %10195 = vmatprep.subr.mxu1 %v24442_v28 }
 0x718   : > { %10116 = vmatpush1.msra.mxu0 %v21900_v57  ;;  %10197 = vmatpush1.msra.mxu1 %v24443_v16 }
 0x719   : > { %10119 = vmatprep.subr.mxu0 %v21920_v19  ;;  %10199 = vmatprep.subr.mxu1 %v24444_v7  ;;  %v22210_v19 = vand.u32 4294901760, %v22009_v47 }
 0x71a   : > { %10122 = vmatpush1.msra.mxu0 %v21937_v9  ;;  %10201 = vmatpush1.msra.mxu1 %v24445_v55 }
 0x71b   : > { %10125 = vmatprep.subr.mxu0 %v22027_v4  ;;  %10203 = vmatprep.subr.mxu1 %v24446_v45 }
 0x71c   : > { %10128 = vmatpush1.msra.mxu0 %v22035_v30  ;;  %10205 = vmatpush1.msra.mxu1 %v24447_v46 }
 0x71d   : > { %10164 = vmatmul.mubr.f32.vlgmr.msra.gmra.mxu0 %v21776_v62  ;;  %10207 = vmatprep.subr.mxu1 %v24448_v34  ;;  %v24455_v62 = vld [vmem:[#allocation128_spill] sm:$0xff] }
 0x71e   : > { %10296 = vmatprep.subr.mxu0 %v24449_v41  ;;  %10209 = vmatpush1.msra.mxu1 %v24450_v14  ;;  %v24462_v41 = vand.u32 4294901760, %v24435_v10  ;;  %v24466_v10 = vand.u32 4294901760, %v21858_v29  ;;  %v22187_v29 = vand.u32 4294901760, %v22015_v38 }
 0x71f   : > { %10300 = vmatpush1.msra.mxu0 %v24451_v56  ;;  %10211 = vmatprep.subr.mxu1 %v24452_v42 }
 0x720   : > { %10049 = vmatprep.mubr.f32.mxu1 %v24433_v21  ;;  %10213 = vmatpush1.msra.mxu1 %v24453_v48 }
 0x721   : > { %10304 = vmatprep.subr.mxu0 %v24454_v37  ;;  %10215 = vmatprep.subr.mxu1 %v24455_v62  ;;  %v24461_v37 = vld [vmem:[#allocation72_spill] sm:$0xff] }
 0x722   : > { %10051 = vmatmul.mubr.f32.gmra.mxu1 %v21813_v43  ;;  %10308 = vmatpush1.msra.mxu0 %v24456_v20  ;;  %v22249_v20 = vsub.f32 %v22009_v47, %v22210_v19 }
 0x723   : > { %10217 = vmatpush1.msra.mxu1 %v21865_v32  ;;  %10169 = vmatprep.mubr.f32.mxu0 %v24433_v21 }
 0x724   : > { %10219 = vmatprep.subr.mxu1 %v21815_v3  ;;  %10312 = vmatprep.subr.mxu0 %v24457_v23 }
 0x725   : > { %10221 = vmatpush1.msra.mxu1 %v21867_v60  ;;  %10172 = vmatmul.mubr.f32.gmra.mxu0 %v21929_v18 }
 0x726   : > { %10223 = vmatprep.subr.mxu1 %v21904_v25  ;;  %10316 = vmatpush1.msra.mxu0 %v24458_v27  ;;  %v24478_v27 = vld [vmem:[#allocation124_spill] sm:$0xff] }
 0x727   : > { %10225 = vmatpush1.msra.mxu1 %v21902_v44  ;;  %10320 = vmatprep.subr.mxu0 %v24459_v15  ;;  %v22263_v15 = vand.u32 4294901760, %v24478_v27 }
 0x728   : > { %10227 = vmatprep.subr.mxu1 %v21962_v35  ;;  %10262 = vmatprep.mubr.f32.mxu1 %v24433_v21 }
 0x729   : > { %10229 = vmatpush1.msra.mxu1 %v21978_v61  ;;  %10324 = vmatpush1.msra.mxu0 %v24460_v13 }
 0x72a   : > { %10266 = vmatmul.mubr.f32.vlgmr.msra.gmra.mxu1 %v24461_v37  ;;  %10328 = vmatprep.subr.mxu0 %v24462_v41 }
 0x72b   : > { %10433 = vmatprep.subr.mxu1 %v24440_v36  ;;  %10332 = vmatpush1.msra.mxu0 %v24463_v59  ;;  %v24468_v36 = vld [vmem:[#allocation132_spill] sm:$0xff]  ;;  %v24003_v59 = vand.u32 4294901760, %v22249_v20 }
 0x72c   : > { %10435 = vmatpush1.msra.mxu1 %v24441_v40  ;;  %10336 = vmatprep.subr.mxu0 %v24464_v54  ;;  %v22181_v17 = vand.u32 4294901760, %v24468_v36  ;;  %v24469_v40 = vand.u32 4294901760, %v21855_v33  ;;  %v22200_v33 = vand.u32 4294901760, %v22012_v53  ;;  %v22302_v54 = vand.u32 4294901760, %v22044_v2 }
 0x72d   : > { %10437 = vmatprep.subr.mxu1 %v24442_v28  ;;  %10271 = vmatprep.mubr.f32.mxu1 %v24433_v21  ;;  %v24470_v28 = vand.u32 4294901760, %v21900_v57 }
 0x72e   : > { %10340 = vmatpush1.msra.mxu0 %v24465_v51  ;;  %10439 = vmatpush1.msra.mxu1 %v24443_v16  ;;  %v22197_v16 = vsub.f32 %v21958_v5, %v22175_v24  ;;  %v22207_v57 = vsub.f32 %v24468_v36, %v22181_v17  ;;  %v22216_v5 = vand.u32 4294901760, %v21999_v11 }
 0x72f   : > { %10344 = vmatprep.subr.mxu0 %v24466_v10  ;;  %10275 = vmatmul.mubr.f32.gmra.mxu1 %v21975_v8  ;;  %v22311_v10 = vsub.f32 %v24478_v27, %v22263_v15 }
 0x730   : > { %10441 = vmatprep.subr.mxu1 %v24444_v7  ;;  %10348 = vmatpush1.msra.mxu0 %v24467_v50  ;;  %v24472_v7 = vand.u32 4294901760, %v21937_v9  ;;  %v22220_v9 = vsub.f32 %v22015_v38, %v22187_v29  ;;  %v22238_v38 = vsub.f32 %v22012_v53, %v22200_v33  ;;  %v24011_v56 = vand.u32 4294901760, %v22207_v57  ;;  %v24477_v53 = vld [vmem:[#allocation139_spill] sm:$0xff] }
 0x731   : > { %10443 = vmatpush1.msra.mxu1 %v24445_v55  ;;  %10352 = vmatprep.subr.mxu0 %v24469_v40  ;;  %v24473_v55 = vand.u32 4294901760, %v22027_v4  ;;  %v24475_v4 = vld [vmem:[#allocation118_spill] sm:$0xff]  ;;  %v22254_v23 = vand.u32 4294901760, %v24477_v53  ;;  %v22314_v50 = vand.u32 4294901760, %v22040_v52 }
 0x732   : > { %10445 = vmatprep.subr.mxu1 %v24446_v45  ;;  %10356 = vmatpush1.msra.mxu0 %v24470_v28  ;;  %v24474_v45 = vand.u32 4294901760, %v22035_v30  ;;  %v22241_v30 = vand.u32 4294901760, %v22052_v39  ;;  %v24009_v47 = vand.u32 4294901760, %v22220_v9  ;;  %v24008_v13 = vand.u32 4294901760, %v22238_v38 }
 0x733   : > { %10447 = vmatpush1.msra.mxu1 %v24447_v46  ;;  %10360 = vmatprep.subr.mxu0 %v24471_v22  ;;  %v22226_v46 = vand.u32 4294901760, %v22058_v1  ;;  %v22323_v22 = vand.u32 4294901760, %v22083_v31 }
 0x734   : > { %10449 = vmatprep.subr.mxu1 %v24448_v34  ;;  %10364 = vmatpush1.msra.mxu0 %v24472_v7  ;;  %v24476_v34 = vld [vmem:[#allocation142_spill] sm:$0xff]  ;;  %v22283_v41 = vsub.f32 %v22052_v39, %v22241_v30  ;;  %v22298_v39 = vsub.f32 %v24477_v53, %v22254_v23  ;;  %v10653_v51 = vsub.f32 %v22220_v9, %v24009_v47  ;;  %v22344_v53 = vand.u32 4294901760, %v22070_v12 }
 0x735   : > { %10451 = vmatpush1.msra.mxu1 %v24450_v14  ;;  %10368 = vmatprep.subr.mxu0 %v24473_v55  ;;  %v22234_v14 = vand.u32 4294901760, %v24476_v34  ;;  %v22331_v55 = vand.u32 4294901760, %v22081_v58 }
 0x736   : > { %10453 = vmatprep.subr.mxu1 %v24452_v42  ;;  %10372 = vmatpush1.msra.mxu0 %v24474_v45  ;;  %v22231_v42 = vand.u32 4294901760, %v24475_v4  ;;  %v24007_v28 = vand.u32 4294901760, %v22283_v41  ;;  %v10654_v27 = vand.u32 4294901760, %v10653_v51  ;;  %v24012_v51 = vand.u32 4294901760, %v22311_v10 }
 0x737   : > { %10405 = vmatprep.mubr.f32.mxu0 %v24433_v21  ;;  %10455 = vmatpush1.msra.mxu1 %v24453_v48  ;;  %v10640_v48 = vand.u32 4294901760, %v22197_v16 }
 0x738   : > { %10407 = vmatmul.mubr.f32.vlgmr.msra.gmra.mxu0 %v24439_v26  ;;  %10457 = vmatprep.subr.mxu1 %v24455_v62  ;;  %v22258_v62 = vsub.f32 %v21999_v11, %v22216_v5  ;;  %v22274_v11 = vsub.f32 %v24475_v4, %v22231_v42  ;;  %v10665_v4 = vsub.f32 %v22249_v20, %v24003_v59  ;;  %v22363_v59 = vand.u32 4294901760, %v22067_v63 }
 0x739   : > { %10532 = vmatprep.subr.mxu0 %v22175_v24  ;;  %10459 = vmatpush1.msra.mxu1 %v21865_v32  ;;  %v22268_v32 = vsub.f32 %v22058_v1, %v22226_v46  ;;  %v10647_v1 = vsub.f32 %v22207_v57, %v24011_v56 }
 0x73a   : > { %10534 = vmatpush1.msra.mxu0 %v22181_v17  ;;  %10461 = vmatprep.subr.mxu1 %v21815_v3  ;;  %v22278_v3 = vsub.f32 %v24476_v34, %v22234_v14  ;;  %v22341_v34 = vsub.f32 %v22044_v2, %v22302_v54 }
 0x73b   : > { %10536 = vmatprep.subr.mxu0 %v22187_v29  ;;  %10412 = vmatprep.mubr.f32.mxu0 %v24433_v21  ;;  %v24004_v36 = vand.u32 4294901760, %v22268_v32  ;;  %v10648_v45 = vand.u32 4294901760, %v10647_v1  ;;  %v22352_v1 = vsub.f32 %v22040_v52, %v22314_v50  ;;  %v22367_v52 = vsub.f32 %v22083_v31, %v22323_v22 }
 0x73c   : > { %10463 = vmatpush1.msra.mxu1 %v21867_v60  ;;  %10538 = vmatpush1.msra.mxu0 %v22200_v33  ;;  %v10641_v60 = vsub.f32 %v22197_v16, %v10640_v48  ;;  %v10706_v40 = vand.u32 4294901760, %v22278_v3  ;;  %v10666_v31 = vand.u32 4294901760, %v10665_v4 }
 0x73d   : > { %10465 = vmatprep.subr.mxu1 %v21904_v25  ;;  %10414 = vmatmul.mubr.f32.gmra.mxu0 %v21813_v43  ;;  %v24006_v25 = vand.u32 4294901760, %v22258_v62  ;;  %v10677_v2 = vsub.f32 %v22268_v32, %v24004_v36  ;;  %v10683_v36 = vsub.f32 %v22283_v41, %v24007_v28  ;;  %v22390_v28 = vand.u32 4294901760, %v22100_v0 }
 0x73e   : > { %10540 = vmatprep.subr.mxu0 %v22210_v19  ;;  %10467 = vmatpush1.msra.mxu1 %v21902_v44  ;;  %v24005_v44 = vand.u32 4294901760, %v22274_v11  ;;  %v10642_v7 = vand.u32 4294901760, %v10641_v60  ;;  %v24013_v47 = vand.u32 4294901760, %v22352_v1 }
 0x73f   : > { %10542 = vmatpush1.msra.mxu0 %v22216_v5  ;;  %10469 = vmatprep.subr.mxu1 %v21962_v35  ;;  %v10659_v35 = vsub.f32 %v22238_v38, %v24008_v13  ;;  %v10671_v60 = vsub.f32 %v22258_v62, %v24006_v25  ;;  %v22378_v25 = vand.u32 4294901760, %v22102_v6  ;;  %v10712_v13 = vand.u32 4294901760, %v22341_v34 }
 0x740   : > { %10544 = vmatprep.subr.mxu0 %v22226_v46  ;;  %10471 = vmatpush1.msra.mxu1 %v21978_v61  ;;  %v24010_v61 = vand.u32 4294901760, %v22298_v39  ;;  %v10678_v4 = vand.u32 4294901760, %v10677_v2 }
 0x741   : > { %10504 = vmatprep.mubr.f32.mxu1 %v24433_v21  ;;  %10546 = vmatpush1.msra.mxu0 %v22241_v30 }
 0x742   : > { %10506 = vmatmul.mubr.f32.vlgmr.msra.gmra.mxu1 %v24439_v26  ;;  %10548 = vmatprep.subr.mxu0 %v22254_v23 }
 0x743   : > { %10643 = vmatprep.subr.mxu1 %v10642_v7  ;;  %10550 = vmatpush1.msra.mxu0 %v22231_v42  ;;  %v10695_v7 = vsub.f32 %v22274_v11, %v24005_v44  ;;  %v22375_v44 = vsub.f32 %v22081_v58, %v22331_v55  ;;  %v10672_v58 = vand.u32 4294901760, %v10671_v60  ;;  %v10684_v60 = vand.u32 4294901760, %v10683_v36 }
 0x744   : > { %10649 = vmatpush1.msra.mxu1 %v10648_v45  ;;  %10552 = vmatprep.subr.mxu0 %v22263_v15  ;;  %v10660_v45 = vand.u32 4294901760, %v10659_v35  ;;  %v10689_v35 = vsub.f32 %v22298_v39, %v24010_v61  ;;  %v22401_v61 = vsub.f32 %v22067_v63, %v22363_v59  ;;  %v10707_v63 = vsub.f32 %v22278_v3, %v10706_v40 }
 0x745   : > { %10655 = vmatprep.subr.mxu1 %v10654_v27  ;;  %10511 = vmatprep.mubr.f32.mxu1 %v24433_v21  ;;  %v22387_v27 = vsub.f32 %v22070_v12, %v22344_v53  ;;  %v10701_v12 = vsub.f32 %v22311_v10, %v24012_v51  ;;  %v24015_v56 = vand.u32 4294901760, %v22375_v44  ;;  %v10696_v36 = vand.u32 4294901760, %v10695_v7 }
 0x746   : > { %10554 = vmatpush1.msra.mxu0 %v22234_v14  ;;  %10661 = vmatpush1.msra.mxu1 %v10660_v45  ;;  %v24014_v45 = vand.u32 4294901760, %v22367_v52  ;;  %v10690_v2 = vand.u32 4294901760, %v10689_v35 }
 0x747   : > { %10556 = vmatprep.subr.mxu0 %v22302_v54  ;;  %10513 = vmatmul.mubr.f32.gmra.mxu1 %v21813_v43  ;;  %v24016_v51 = vand.u32 4294901760, %v22387_v27  ;;  %v10702_v35 = vand.u32 4294901760, %v10701_v12  ;;  %v10731_v12 = vsub.f32 %v22375_v44, %v24015_v56 }
 0x748   : > { %10667 = vmatprep.subr.mxu1 %v10666_v31  ;;  %10558 = vmatpush1.msra.mxu0 %v22314_v50  ;;  %v22408_v31 = vsub.f32 %v22102_v6, %v22378_v25  ;;  %v10713_v6 = vsub.f32 %v22341_v34, %v10712_v13  ;;  %v10725_v7 = vsub.f32 %v22367_v52, %v24014_v45 }
 0x749   : > { %10673 = vmatpush1.msra.mxu1 %v10672_v58  ;;  %10560 = vmatprep.subr.mxu0 %v22323_v22  ;;  %v22416_v58 = vsub.f32 %v22100_v0, %v22390_v28  ;;  %v10742_v0 = vand.u32 4294901760, %v22401_v61  ;;  %v10737_v45 = vsub.f32 %v22387_v27, %v24016_v51 }
 0x74a   : > { %10679 = vmatprep.subr.mxu1 %v10678_v4  ;;  %10562 = vmatpush1.msra.mxu0 %v22331_v55  ;;  %v10719_v4 = vsub.f32 %v22352_v1, %v24013_v47 }
 0x74b   : > { %10685 = vmatpush1.msra.mxu1 %v10684_v60  ;;  %10564 = vmatprep.subr.mxu0 %v22344_v53  ;;  %v10708_v60 = vand.u32 4294901760, %v10707_v63  ;;  %v10754_v47 = vand.u32 4294901760, %v22416_v58  ;;  %v10743_v56 = vsub.f32 %v22401_v61, %v10742_v0 }
 0x74c   : > { %10691 = vmatprep.subr.mxu1 %v10690_v2  ;;  %10566 = vmatpush1.msra.mxu0 %v22363_v59  ;;  %v10748_v2 = vand.u32 4294901760, %v22408_v31  ;;  %v10720_v63 = vand.u32 4294901760, %v10719_v4 }
 0x74d   : > { %10697 = vmatpush1.msra.mxu1 %v10696_v36  ;;  %10568 = vmatprep.subr.mxu0 %v22378_v25  ;;  %v10714_v36 = vand.u32 4294901760, %v10713_v6  ;;  %v10732_v6 = vand.u32 4294901760, %v10731_v12  ;;  %v10755_v4 = vsub.f32 %v22416_v58, %v10754_v47 }
 0x74e   : > { %10703 = vmatprep.subr.mxu1 %v10702_v35  ;;  %10570 = vmatpush1.msra.mxu0 %v22390_v28  ;;  %v10726_v35 = vand.u32 4294901760, %v10725_v7  ;;  %v10749_v51 = vsub.f32 %v22408_v31, %v10748_v2  ;;  %v10744_v7 = vand.u32 4294901760, %v10743_v56  ;;  %v24480_v56 = vld [vmem:[#allocation148_spill] sm:$0xff] }
 0x74f   : > { %10603 = vmatprep.mubr.f32.mxu0 %v24433_v21  ;;  %10709 = vmatpush1.msra.mxu1 %v10708_v60  ;;  %v24479_v60 = vld [vmem:[#allocation150_spill] sm:$0xff] }
 0x750   : > { %10609 = vmatmul.mubr.f32.vlgmr.msra.gmra.mxu0 %v21952_v49  ;;  %10715 = vmatprep.subr.mxu1 %v10714_v36  ;;  %v10738_v49 = vand.u32 4294901760, %v10737_v45  ;;  %v10750_v12 = vand.u32 4294901760, %v10749_v51  ;;  %v10756_v45 = vand.u32 4294901760, %v10755_v4  ;;  %v24481_v51 = vand.u32 4294901760, %v22207_v57 }
 0x751   : > { %10819 = vmatprep.subr.mxu0 %v22197_v16  ;;  %10721 = vmatpush1.msra.mxu1 %v10720_v63  ;;  %v24482_v36 = vand.u32 4294901760, %v22220_v9  ;;  %v24483_v63 = vand.u32 4294901760, %v22238_v38  ;;  %v24484_v16 = vand.u32 4294901760, %v22249_v20 }
 0x752   : > { %10822 = vmatpush1.msra.mxu0 %v22207_v57  ;;  %10727 = vmatprep.subr.mxu1 %v10726_v35  ;;  %v24485_v57 = vand.u32 4294901760, %v22258_v62 }
 0x753   : > { %10825 = vmatprep.subr.mxu0 %v22220_v9  ;;  %10614 = vmatprep.mubr.f32.mxu0 %v24433_v21  ;;  %v24486_v9 = vand.u32 4294901760, %v22268_v32 }
 0x754   : > { %10733 = vmatpush1.msra.mxu1 %v10732_v6  ;;  %10828 = vmatpush1.msra.mxu0 %v22238_v38  ;;  %v24487_v38 = vand.u32 4294901760, %v22283_v41 }
 0x755   : > { %10739 = vmatprep.subr.mxu1 %v10738_v49  ;;  %10620 = vmatmul.mubr.f32.gmra.mxu0 %v24479_v60 }
 0x756   : > { %10831 = vmatprep.subr.mxu0 %v22249_v20  ;;  %10745 = vmatpush1.msra.mxu1 %v10744_v7  ;;  %v24490_v20 = vand.u32 4294901760, %v22311_v10 }
 0x757   : > { %10834 = vmatpush1.msra.mxu0 %v22258_v62  ;;  %10751 = vmatprep.subr.mxu1 %v10750_v12  ;;  %v24504_v62 = vld [vmem:[#allocation63_spill] sm:$0xff] }
 0x758   : > { %10837 = vmatprep.subr.mxu0 %v22268_v32  ;;  %10757 = vmatpush1.msra.mxu1 %v10756_v45  ;;  %v24508_v32 = vld [vmem:[#allocation67_spill] sm:$0xff] }
 0x759   : > { %10790 = vmatprep.mubr.f32.mxu1 %v24433_v21  ;;  %10840 = vmatpush1.msra.mxu0 %v22283_v41 }
 0x75a   : > { %10792 = vmatmul.mubr.f32.vlgmr.msra.gmra.mxu1 %v24439_v26  ;;  %10843 = vmatprep.subr.mxu0 %v22298_v39 }
 0x75b   : > { %10939 = vmatprep.subr.mxu1 %v22175_v24  ;;  %10846 = vmatpush1.msra.mxu0 %v22274_v11 }
 0x75c   : > { %10941 = vmatpush1.msra.mxu1 %v22181_v17  ;;  %10849 = vmatprep.subr.mxu0 %v22311_v10 }
 0x75d   : > { %10943 = vmatprep.subr.mxu1 %v22187_v29  ;;  %10797 = vmatprep.mubr.f32.mxu1 %v24433_v21 }
 0x75e   : > { %10852 = vmatpush1.msra.mxu0 %v22278_v3  ;;  %10945 = vmatpush1.msra.mxu1 %v22200_v33  ;;  %v24510_v3 = vld [vmem:[#allocation38_spill] sm:$0xff] }
 0x75f   : > { %10855 = vmatprep.subr.mxu0 %v22341_v34  ;;  %10799 = vmatmul.mubr.f32.gmra.mxu1 %v21813_v43  ;;  %v22596_v34 = vpop.permute.xlu1 %9761 }
 0x760   : > { %10947 = vmatprep.subr.mxu1 %v22210_v19  ;;  %10858 = vmatpush1.msra.mxu0 %v22352_v1 }
 0x761   : > { %10949 = vmatpush1.msra.mxu1 %v22216_v5  ;;  %10861 = vmatprep.subr.mxu0 %v22367_v52 }
 0x762   : > { %10951 = vmatprep.subr.mxu1 %v22226_v46  ;;  %10864 = vmatpush1.msra.mxu0 %v22375_v44 }
 0x763   : > { %10953 = vmatpush1.msra.mxu1 %v22241_v30  ;;  %10867 = vmatprep.subr.mxu0 %v22387_v27 }
 0x764   : > { %10955 = vmatprep.subr.mxu1 %v22254_v23  ;;  %10870 = vmatpush1.msra.mxu0 %v22401_v61 }
 0x765   : > { %10957 = vmatpush1.msra.mxu1 %v22231_v42  ;;  %10873 = vmatprep.subr.mxu0 %v22408_v31 }
 0x766   : > { %10959 = vmatprep.subr.mxu1 %v22263_v15  ;;  %10876 = vmatpush1.msra.mxu0 %v22416_v58 }
 0x767   : > { %10909 = vmatprep.mubr.f32.mxu0 %v24433_v21  ;;  %10961 = vmatpush1.msra.mxu1 %v22234_v14 }
 0x768   : > { %10912 = vmatmul.mubr.f32.vlgmr.msra.gmra.mxu0 %v24480_v56  ;;  %10963 = vmatprep.subr.mxu1 %v22302_v54 }
 0x769   : > { %11044 = vmatprep.subr.mxu0 %v10640_v48  ;;  %10965 = vmatpush1.msra.mxu1 %v22314_v50  ;;  %v24489_v48 = vand.u32 4294901760, %v22274_v11  ;;  %v24509_v11 = vld [vmem:[#allocation60_spill] sm:$0xff] }
 0x76a   : > { %11048 = vmatpush1.msra.mxu0 %v24481_v51  ;;  %10967 = vmatprep.subr.mxu1 %v22323_v22 }
 0x76b   : > { %11052 = vmatprep.subr.mxu0 %v24482_v36  ;;  %10917 = vmatprep.mubr.f32.mxu0 %v24433_v21 }
 0x76c   : > { %10969 = vmatpush1.msra.mxu1 %v22331_v55  ;;  %11056 = vmatpush1.msra.mxu0 %v24483_v63 }
 0x76d   : > { %10971 = vmatprep.subr.mxu1 %v22344_v53  ;;  %10920 = vmatmul.mubr.f32.gmra.mxu0 %v21929_v18  ;;  %v24488_v18 = vand.u32 4294901760, %v22298_v39 }
 0x76e   : > { %11060 = vmatprep.subr.mxu0 %v24484_v16  ;;  %10973 = vmatpush1.msra.mxu1 %v22363_v59 }
 0x76f   : > { %11064 = vmatpush1.msra.mxu0 %v24485_v57  ;;  %10975 = vmatprep.subr.mxu1 %v22378_v25 }
 0x770   : > { %11068 = vmatprep.subr.mxu0 %v24486_v9  ;;  %10977 = vmatpush1.msra.mxu1 %v22390_v28 }
 0x771   : > { %11010 = vmatprep.mubr.f32.mxu1 %v24433_v21  ;;  %11072 = vmatpush1.msra.mxu0 %v24487_v38 }
 0x772   : > { %11014 = vmatmul.mubr.f32.vlgmr.msra.gmra.mxu1 %v24461_v37  ;;  %11076 = vmatprep.subr.mxu0 %v24488_v18  ;;  %v24491_v37 = vand.u32 4294901760, %v22352_v1 }
 0x773   : > { %11181 = vmatprep.subr.mxu1 %v22175_v24  ;;  %11080 = vmatpush1.msra.mxu0 %v24489_v48  ;;  %v24492_v24 = vand.u32 4294901760, %v22367_v52 }
 0x774   : > { %11183 = vmatpush1.msra.mxu1 %v22181_v17  ;;  %11084 = vmatprep.subr.mxu0 %v24490_v20  ;;  %v24493_v17 = vand.u32 4294901760, %v22375_v44 }
 0x775   : > { %11185 = vmatprep.subr.mxu1 %v22187_v29  ;;  %11019 = vmatprep.mubr.f32.mxu1 %v24433_v21  ;;  %v24494_v29 = vand.u32 4294901760, %v22387_v27 }
 0x776   : > { %11088 = vmatpush1.msra.mxu0 %v10706_v40  ;;  %11187 = vmatpush1.msra.mxu1 %v22200_v33  ;;  %v24496_v33 = vld [vmem:[#allocation39_spill] sm:$0xff] }
 0x777   : > { %11092 = vmatprep.subr.mxu0 %v10712_v13  ;;  %11023 = vmatmul.mubr.f32.gmra.mxu1 %v21975_v8  ;;  %v24495_v8 = vld [vmem:[#allocation37_spill] sm:$0xff]  ;;  %v24511_v13 = vld [vmem:[#allocation68_spill] sm:$0xff] }
 0x778   : > { %11189 = vmatprep.subr.mxu1 %v22210_v19  ;;  %11096 = vmatpush1.msra.mxu0 %v24491_v37  ;;  %v24497_v19 = vld [vmem:[#allocation42_spill] sm:$0xff] }
 0x779   : > { %11191 = vmatpush1.msra.mxu1 %v22216_v5  ;;  %11100 = vmatprep.subr.mxu0 %v24492_v24  ;;  %v24498_v5 = vld [vmem:[#allocation45_spill] sm:$0xff] }
 0x77a   : > { %11193 = vmatprep.subr.mxu1 %v22226_v46  ;;  %11104 = vmatpush1.msra.mxu0 %v24493_v17  ;;  %v24499_v46 = vld [vmem:[#allocation50_spill] sm:$0xff] }
 0x77b   : > { %11195 = vmatpush1.msra.mxu1 %v22241_v30  ;;  %11108 = vmatprep.subr.mxu0 %v24494_v29  ;;  %v24502_v30 = vld [vmem:[#allocation49_spill] sm:$0xff] }
 0x77c   : > { %11197 = vmatprep.subr.mxu1 %v22254_v23  ;;  %11112 = vmatpush1.msra.mxu0 %v10742_v0  ;;  %v24503_v23 = vld [vmem:[#allocation58_spill] sm:$0xff] }
 0x77d   : > { %11199 = vmatpush1.msra.mxu1 %v22231_v42  ;;  %11116 = vmatprep.subr.mxu0 %v10748_v2  ;;  %v24500_v42 = vld [vmem:[#allocation55_spill] sm:$0xff] }
 0x77e   : > { %11201 = vmatprep.subr.mxu1 %v22263_v15  ;;  %11120 = vmatpush1.msra.mxu0 %v10754_v47  ;;  %v24505_v15 = vld [vmem:[#allocation52_spill] sm:$0xff]  ;;  %v24507_v47 = vld [vmem:[#allocation65_spill] sm:$0xff] }
 0x77f   : > { %11153 = vmatprep.mubr.f32.mxu0 %v24433_v21  ;;  %11203 = vmatpush1.msra.mxu1 %v22234_v14  ;;  %v24501_v14 = vld [vmem:[#allocation44_spill] sm:$0xff] }
 0x780   : > { %11155 = vmatmul.mubr.f32.vlgmr.msra.gmra.mxu0 %v24439_v26  ;;  %11205 = vmatprep.subr.mxu1 %v22302_v54 }
 0x781   : > { %11160 = vmatprep.mubr.f32.mxu0 %v24433_v21  ;;  %11207 = vmatpush1.msra.mxu1 %v22314_v50 }
 0x782   : > { %11252 = vmatprep.mubr.f32.mxu1 %v24433_v21  ;;  %11209 = vmatprep.subr.mxu1 %v22323_v22 }
 0x783   : > { %11292 = vmatprep.subr.mxu0 %v24495_v8  ;;  %11211 = vmatpush1.msra.mxu1 %v22331_v55 }
 0x784   : > { %11162 = vmatmul.mubr.f32.gmra.mxu0 %v21813_v43  ;;  %11213 = vmatprep.subr.mxu1 %v22344_v53 }
 0x785   : > { %11294 = vmatpush1.xpose.msra.mxu0 %v24496_v33  ;;  %11215 = vmatpush1.msra.mxu1 %v22363_v59 }
 0x786   : > { %11296 = vmatprep.subr.mxu0 %v24497_v19  ;;  %11217 = vmatprep.subr.mxu1 %v22378_v25 }
 0x787   : > { %11219 = vmatpush1.msra.mxu1 %v22390_v28  ;;  %v22593_v28 = vpop.permute.xlu0 %9757 }
 0x788   : > { %11254 = vmatmul.mubr.f32.vlgmr.msra.gmra.mxu1 %v24439_v26  ;;  %11399 = vmatprep.subr.mxu1 %v24498_v5  ;;  %v24506_v26 = vld [vmem:[#allocation57_spill] sm:$0xff] }
 0x789   : > { %11259 = vmatprep.mubr.f32.mxu1 %v24433_v21  ;;  %11405 = vmatpush1.xpose.msra.mxu1 %v24499_v46  ;;  %v24543_v21 = vld [vmem:[#allocation81_spill] sm:$0xff] }
 0x78a   : > { %11411 = vmatprep.subr.mxu1 %v24500_v42  ;;  %11298 = vmatpush1.xpose.msra.mxu0 %v24501_v14 }
 0x78b   : > { %11300 = vmatprep.subr.mxu0 %v24502_v30 }
 0x78c   : > { %11261 = vmatmul.mubr.f32.gmra.mxu1 %v21813_v43 }
 0x78d   : > { %11417 = vmatpush1.xpose.msra.mxu1 %v24503_v23 }
 0x78e   : > { %11423 = vmatprep.subr.mxu1 %v24504_v62  ;;  %11302 = vmatpush1.xpose.msra.mxu0 %v24505_v15 }
 0x78f   : > { %11304 = vmatprep.subr.mxu0 %v24506_v26 }
 0x791   : > { %11429 = vmatpush1.xpose.msra.mxu1 %v24507_v47 }
 0x792   : > { %11435 = vmatprep.subr.mxu1 %v24508_v32  ;;  %11306 = vmatpush1.xpose.msra.mxu0 %v24509_v11 }
 0x793   : > { %11515 = vmatprep.subr.mxu0 %v24510_v3 }
 0x795   : > { %11441 = vmatpush1.xpose.msra.mxu1 %v24511_v13 }
 0x796   : > { %11613 = vmatprep.subr.mxu1 %v24495_v8 }
 0x7c6   : > { %v9862_v43 = vpop.f32.mrf.mxu0 }
 0x7c7   : > { %v9863_v61 = vadd.f32 %v9862_v43, %v22593_v28 }
 0x7c8   : > { %v9864_v41 = vpop.f32.mrf.mxu0 }
 0x7c9   : > { %v9865_v52 = vadd.f32 %v9864_v41, %v22593_v28 }
 0x7cf   : > { %v9873_v59 = vpop.f32.mrf.mxu0 }
 0x7d0   : > { %v9874_v58 = vadd.f32 %v9873_v59, %v22596_v34 }
 0x7d1   : > { %v9875_v25 = vpop.f32.mrf.mxu0 }
 0x7d2   : > { %v9876_v6 = vadd.f32 %v9875_v25, %v22596_v34 }
 0x7d4   : > { %v10045_v39 = vpop.f32.mrf.mxu1 }
 0x7d5   : > { %v10046_v31 = vadd.f32 %v10045_v39, %v9863_v61 }
 0x7d6   : > { %v10047_v54 = vpop.f32.mrf.mxu1 }
 0x7d7   : > { %v10048_v2 = vadd.f32 %v10047_v54, %v9865_v52 }
 0x7dd   : > { %v10165_v10 = vpop.f32.mrf.mxu0 }
 0x7de   : > { %v10166_v35 = vadd.f32 %v10165_v10, %v10046_v31 }
 0x7df   : > { %v10167_v44 = vpop.f32.mrf.mxu0 }
 0x7e0   : > { %v10168_v4 = vadd.f32 %v10167_v44, %v10048_v2 }
 0x7e2   : > { %v10052_v50 = vpop.f32.mrf.mxu1 }
 0x7e3   : > { %v10053_v7 = vadd.f32 %v10052_v50, %v9874_v58 }
 0x7e4   : > { %v10054_v40 = vpop.f32.mrf.mxu1 }
 0x7e5   : > { %v10173_v22 = vpop.f32.mrf.mxu0  ;;  %v10055_v45 = vadd.f32 %v10054_v40, %v9876_v6  ;;  %v24516_v6 = vld [vmem:[#allocation41_spill] sm:$0xff] }
 0x7e6   : > { %v10174_v16 = vadd.f32 %v10173_v22, %v10053_v7 }
 0x7e7   : > { %v10175_v53 = vpop.f32.mrf.mxu0 }
 0x7e8   : > { %v10176_v18 = vadd.f32 %v10175_v53, %v10055_v45  ;;  %v24520_v45 = vld [vmem:[#allocation54_spill] sm:$0xff] }
 0x7ea   : > { %v10267_v55 = vpop.f32.mrf.mxu1 }
 0x7eb   : > { %v10268_v60 = vadd.f32 %v10267_v55, %v10166_v35 }
 0x7ec   : > { %v10269_v1 = vpop.f32.mrf.mxu1 }
 0x7ed   : > { %v10270_v56 = vadd.f32 %v10269_v1, %v10168_v4  ;;  %v24517_v4 = vld [vmem:[#allocation46_spill] sm:$0xff] }
 0x7ef   : > { %v10276_v0 = vpop.f32.mrf.mxu1 }
 0x7f0   : > { %v10277_v48 = vadd.f32 %v10276_v0, %v10174_v16  ;;  %v24524_v16 = vld [vmem:[#allocation43_spill] sm:$0xff] }
 0x7f1   : > { %v10278_v12 = vpop.f32.mrf.mxu1 }
 0x7f2   : > { %v10279_v17 = vadd.f32 %v10278_v12, %v10176_v18  ;;  %v24519_v12 = vld [vmem:[#allocation53_spill] sm:$0xff]  ;;  %v24526_v18 = vld [vmem:[#allocation91_spill] sm:$0xff] }
 0x7f8   : > { %v10408_v27 = vpop.f32.mrf.mxu0 }
 0x7f9   : > { %v10409_v51 = vadd.f32 %v10408_v27, %v10268_v60  ;;  %v24518_v60 = vld [vmem:[#allocation47_spill] sm:$0xff] }
 0x7fa   : > { %v10410_v49 = vpop.f32.mrf.mxu0 }
 0x7fb   : > { %v10411_v57 = vadd.f32 %v10410_v49, %v10270_v56  ;;  %v24521_v56 = vld [vmem:[#allocation61_spill] sm:$0xff] }
 0x7fd   : > { %v10415_v36 = vpop.f32.mrf.mxu0 }
 0x7fe   : > { %v10416_v29 = vadd.f32 %v10415_v36, %v10277_v48  ;;  %v24523_v36 = vld [vmem:[#allocation40_spill] sm:$0xff]  ;;  %v24527_v48 = vld [vmem:[#allocation51_spill] sm:$0xff] }
 0x7ff   : > { %v10417_v24 = vpop.f32.mrf.mxu0 }
 0x800   : > { %v10418_v39 = vadd.f32 %v10417_v24, %v10279_v17  ;;  %v24528_v24 = vld [vmem:[#allocation56_spill] sm:$0xff]  ;;  %v24529_v17 = vld [vmem:[#allocation95_spill] sm:$0xff] }
 0x802   : > { %v10507_v63 = vpop.f32.mrf.mxu1 }
 0x803   : > { %v22601_v9 = vadd.f32 %v10507_v63, %v10409_v51  ;;  %v24522_v51 = vld [vmem:[#allocation62_spill] sm:$0xff] }
 0x804   : > { %v10509_v38 = vpop.f32.mrf.mxu1 }
 0x805   : > { %24512 = vst [vmem:[#allocation69_spill] sm:$0xff] %v22601_v9  ;;  %v22604_v20 = vand.u32 4294901760, %v22601_v9  ;;  %v22606_v37 = vadd.f32 %v10509_v38, %v10411_v57  ;;  %v24525_v57 = vld [vmem:[#allocation48_spill] sm:$0xff] }
 0x807   : > { %24513 = vst [vmem:[#allocation134_spill] sm:$0xff] %v22606_v37  ;;  %v11346_v43 = vsub.f32 %v22601_v9, %v22604_v20  ;;  %v22611_v41 = vand.u32 4294901760, %v22606_v37  ;;  %v10514_v59 = vpop.f32.mrf.mxu1 }
 0x808   : > { %v22613_v54 = vadd.f32 %v10514_v59, %v10416_v29 }
 0x809   : > { %v11347_v25 = vand.u32 4294901760, %v11346_v43  ;;  %11475 = vmatprep.mubr.f32.mxu1 %v22611_v41  ;;  %v11340_v10 = vsub.f32 %v22606_v37, %v22611_v41  ;;  %v10516_v50 = vpop.f32.mrf.mxu1 }
 0x80a   : > { %24514 = vst [vmem:[#allocation152_spill] sm:$0xff] %v22613_v54  ;;  %11477 = vmatmul.mubr.f32.vlgmr.msra.gmra.mxu1 %v22604_v20  ;;  %v22619_v44 = vadd.f32 %v10516_v50, %v10418_v39  ;;  %v22624_v40 = vand.u32 4294901760, %v22613_v54  ;;  %v24531_v39 = vld [vmem:[#allocation59_spill] sm:$0xff] }
 0x80b   : > { %11615 = vmatpush1.xpose.msra.mxu1 %v24496_v33  ;;  %v11341_v22 = vand.u32 4294901760, %v11340_v10  ;;  %v11348_v55 = vsub.f32 %v11346_v43, %v11347_v25  ;;  %v24534_v50 = vld [vmem:[#allocation103_spill] sm:$0xff] }
 0x80c   : > { %24515 = vst [vmem:[#allocation149_spill] sm:$0xff] %v22619_v44  ;;  %11617 = vmatprep.subr.mxu1 %v24497_v19  ;;  %v22627_v61 = vand.u32 4294901760, %v22619_v44  ;;  %v11361_v1 = vsub.f32 %v22613_v54, %v22624_v40 }
 0x80d   : > { %v11342_v53 = vsub.f32 %v11340_v10, %v11341_v22  ;;  %v11349_v58 = vand.u32 4294901760, %v11348_v55  ;;  %v24535_v55 = vld [vmem:[#allocation66_spill] sm:$0xff] }
 0x80e   : > { %11482 = vmatprep.mubr.f32.mxu1 %v22627_v61  ;;  %v11355_v52 = vsub.f32 %v22619_v44, %v22627_v61  ;;  %v11362_v31 = vand.u32 4294901760, %v11361_v1 }
 0x80f   : > { %11619 = vmatpush1.xpose.msra.mxu1 %v24501_v14  ;;  %v11343_v27 = vand.u32 4294901760, %v11342_v53 }
 0x810   : > { %11484 = vmatmul.mubr.f32.gmra.mxu1 %v22624_v40  ;;  %11621 = vmatprep.subr.mxu1 %v24502_v30  ;;  %v11356_v0 = vand.u32 4294901760, %v11355_v52  ;;  %v11363_v2 = vsub.f32 %v11361_v1, %v11362_v31  ;;  %v10610_v63 = vpop.f32.mrf.mxu0 }
 0x811   : > { %11663 = vmatprep.mubr.f32.mxu1 %v11341_v22  ;;  %11344 = vmatprep.mubr.f32.mxu0 %v11343_v27  ;;  %v24538_v27 = vld [vmem:[#allocation107_spill] sm:$0xff] }
 0x812   : > { %11350 = vmatmul.mubr.f32.vlgmr.msra.gmra.mxu0 %v11349_v58  ;;  %v11357_v35 = vsub.f32 %v11355_v52, %v11356_v0  ;;  %v11364_v7 = vand.u32 4294901760, %v11363_v2  ;;  %v10612_v38 = vpop.f32.mrf.mxu0  ;;  %v24539_v58 = vld [vmem:[#allocation74_spill] sm:$0xff]  ;;  %v24540_v2 = vld [vmem:[#allocation76_spill] sm:$0xff] }
 0x813   : > { %11623 = vmatpush1.xpose.msra.mxu1 %v24505_v15  ;;  %11518 = vmatpush1.xpose.msra.mxu0 %v24516_v6 }
 0x814   : > { %11625 = vmatprep.subr.mxu1 %v24506_v26  ;;  %v11358_v49 = vand.u32 4294901760, %v11357_v35  ;;  %11521 = vmatprep.subr.mxu0 %v24517_v4  ;;  %v24541_v35 = vld [vmem:[#allocation108_spill] sm:$0xff] }
 0x815   : > { %v10621_v29 = vpop.f32.mrf.mxu0 }
 0x816   : > { %11359 = vmatprep.mubr.f32.mxu0 %v11358_v49 }
 0x817   : > { %11627 = vmatpush1.xpose.msra.mxu1 %v24509_v11  ;;  %11365 = vmatmul.mubr.f32.gmra.mxu0 %v11364_v7  ;;  %v24542_v7 = vld [vmem:[#allocation78_spill] sm:$0xff] }
 0x818   : > { %11811 = vmatprep.subr.mxu1 %v24495_v8  ;;  %11524 = vmatpush1.xpose.msra.mxu0 %v24518_v60 }
 0x819   : > { %11571 = vmatprep.mubr.f32.mxu0 %v11340_v10  ;;  %11527 = vmatprep.subr.mxu0 %v24519_v12  ;;  %v24533_v10 = vld [vmem:[#allocation101_spill] sm:$0xff] }
 0x81a   : > { %11667 = vmatmul.mubr.f32.vlgmr.msra.gmra.mxu1 %v11347_v25  ;;  %v10793_v59 = vpop.f32.mrf.mxu1  ;;  %v24532_v25 = vld [vmem:[#allocation64_spill] sm:$0xff] }
 0x81b   : > { %11674 = vmatprep.mubr.f32.mxu1 %v11356_v0  ;;  %11813 = vmatpush1.xpose.msra.mxu1 %v24496_v33 }
 0x81c   : > { %11815 = vmatprep.subr.mxu1 %v24497_v19  ;;  %11530 = vmatpush1.xpose.msra.mxu0 %v24520_v45  ;;  %v10795_v22 = vpop.f32.mrf.mxu1 }
 0x81d   : > { %11533 = vmatprep.subr.mxu0 %v24521_v56 }
 0x81e   : > { %11678 = vmatmul.mubr.f32.gmra.mxu1 %v11362_v31 }
 0x81f   : > { %11817 = vmatpush1.xpose.msra.mxu1 %v24501_v14  ;;  %11859 = vmatprep.mubr.f32.mxu1 %v22611_v41  ;;  %v10800_v31 = vpop.f32.mrf.mxu1 }
 0x820   : > { %11819 = vmatprep.subr.mxu1 %v24502_v30  ;;  %11536 = vmatpush1.xpose.msra.mxu0 %v24522_v51 }
 0x821   : > { %11710 = vmatprep.subr.mxu0 %v24523_v36  ;;  %v10802_v49 = vpop.f32.mrf.mxu1 }
 0x823   : > { %11821 = vmatpush1.xpose.msra.mxu1 %v24505_v15  ;;  %11574 = vmatmul.mubr.f32.vlgmr.msra.gmra.mxu0 %v11346_v43  ;;  %v24530_v43 = vld [vmem:[#allocation97_spill] sm:$0xff] }
 0x824   : > { %11823 = vmatprep.subr.mxu1 %v24506_v26  ;;  %11580 = vmatprep.mubr.f32.mxu0 %v11355_v52  ;;  %v24537_v52 = vld [vmem:[#allocation104_spill] sm:$0xff] }
 0x825   : > { %11714 = vmatpush1.xpose.msra.mxu0 %v24524_v16 }
 0x826   : > { %11718 = vmatprep.subr.mxu0 %v24525_v57 }
 0x827   : > { %11825 = vmatpush1.xpose.msra.mxu1 %v24509_v11  ;;  %11583 = vmatmul.mubr.f32.gmra.mxu0 %v11361_v1  ;;  %v24536_v1 = vld [vmem:[#allocation73_spill] sm:$0xff] }
 0x828   : > { %12005 = vmatprep.subr.mxu1 %v24526_v18  ;;  %11772 = vmatprep.mubr.f32.mxu0 %v22611_v41  ;;  %v10623_v41 = vpop.f32.mrf.mxu0 }
 0x829   : > { %11722 = vmatpush1.xpose.msra.mxu0 %v24527_v48  ;;  %v10624_v16 = vadd.f32 %v10623_v41, %v22596_v34 }
 0x82a   : > { %11726 = vmatprep.subr.mxu0 %v24528_v24  ;;  %11861 = vmatmul.mubr.f32.vlgmr.msra.gmra.mxu1 %v22604_v20  ;;  %v10913_v53 = vpop.f32.mrf.mxu0  ;;  %v10622_v24 = vadd.f32 %v10621_v29, %v22596_v34 }
 0x82b   : > { %11866 = vmatprep.mubr.f32.mxu1 %v22627_v61  ;;  %12011 = vmatpush1.xpose.msra.mxu1 %v24529_v17  ;;  %v10803_v12 = vadd.f32 %v10802_v49, %v10624_v16 }
 0x82c   : > { %12017 = vmatprep.subr.mxu1 %v24530_v43  ;;  %v10915_v0 = vpop.f32.mrf.mxu0  ;;  %v10801_v36 = vadd.f32 %v10800_v31, %v10622_v24 }
 0x82d   : > { %11730 = vmatpush1.xpose.msra.mxu0 %v24531_v39  ;;  %v24547_v39 = vld [vmem:[#allocation75_spill] sm:$0xff] }
 0x82e   : > { %11734 = vmatprep.subr.mxu0 %v24532_v25  ;;  %11868 = vmatmul.mubr.f32.gmra.mxu1 %v22624_v40  ;;  %v24546_v25 = vld [vmem:[#allocation90_spill] sm:$0xff] }
 0x82f   : > { %12023 = vmatpush1.xpose.msra.mxu1 %v24533_v10  ;;  %v10611_v10 = vadd.f32 %v10610_v63, %v22593_v28 }
 0x830   : > { %12029 = vmatprep.subr.mxu1 %v24534_v50  ;;  %v24545_v50 = vld [vmem:[#allocation87_spill] sm:$0xff] }
 0x831   : > { %11738 = vmatpush1.xpose.msra.mxu0 %v24535_v55  ;;  %v10794_v43 = vadd.f32 %v10793_v59, %v10611_v10 }
 0x832   : > { %11898 = vmatprep.subr.mxu0 %v24536_v1 }
 0x833   : > { %12035 = vmatpush1.xpose.msra.mxu1 %v24537_v52  ;;  %v24544_v52 = vld [vmem:[#allocation84_spill] sm:$0xff]  ;;  %v10914_v57 = vadd.f32 %v10913_v53, %v10794_v43 }
 0x834   : > { %11774 = vmatmul.mubr.f32.vlgmr.msra.gmra.mxu0 %v22604_v20  ;;  %12041 = vmatprep.subr.mxu1 %v24538_v27  ;;  %v10921_v20 = vpop.f32.mrf.mxu0  ;;  %v11015_v27 = vpop.f32.mrf.mxu1 }
 0x835   : > { %11779 = vmatprep.mubr.f32.mxu0 %v22627_v61  ;;  %11900 = vmatpush1.xpose.msra.mxu0 %v24539_v58  ;;  %v11016_v56 = vadd.f32 %v11015_v27, %v10914_v57  ;;  %v10922_v60 = vadd.f32 %v10921_v20, %v10801_v36 }
 0x836   : > { %11902 = vmatprep.subr.mxu0 %v24540_v2  ;;  %v10923_v61 = vpop.f32.mrf.mxu0  ;;  %v11017_v55 = vpop.f32.mrf.mxu1 }
 0x837   : > { %12047 = vmatpush1.xpose.msra.mxu1 %v24541_v35  ;;  %v10924_v59 = vadd.f32 %v10923_v61, %v10803_v12 }
 0x838   : > { %11781 = vmatmul.mubr.f32.gmra.mxu0 %v22624_v40  ;;  %12219 = vmatprep.subr.mxu1 %v24536_v1  ;;  %v10613_v40 = vadd.f32 %v10612_v38, %v22593_v28  ;;  %v11024_v17 = vpop.f32.mrf.mxu1 }
 0x839   : > { %11904 = vmatpush1.xpose.msra.mxu0 %v24542_v7  ;;  %v11025_v10 = vadd.f32 %v11024_v17, %v10922_v60 }
 0x83a   : > { %11906 = vmatprep.subr.mxu0 %v24543_v21  ;;  %v10796_v48 = vadd.f32 %v10795_v22, %v10613_v40  ;;  %v11026_v63 = vpop.f32.mrf.mxu1 }
 0x83b   : > { %v11027_v43 = vadd.f32 %v11026_v63, %v10924_v59  ;;  %v24552_v63 = vld [vmem:[#allocation77_spill] sm:$0xff]  ;;  %v24554_v59 = vld [vmem:[#allocation83_spill] sm:$0xff] }
 0x83c   : > { %v10916_v51 = vadd.f32 %v10915_v0, %v10796_v48 }
 0x83d   : > { %11908 = vmatpush1.xpose.msra.mxu0 %v24544_v52 }
 0x83e   : > { %11910 = vmatprep.subr.mxu0 %v24545_v50  ;;  %v11018_v4 = vadd.f32 %v11017_v55, %v10916_v51 }
 0x840   : > { %v11156_v35 = vpop.f32.mrf.mxu0 }
 0x841   : > { %11912 = vmatpush1.xpose.msra.mxu0 %v24546_v25  ;;  %v11157_v28 = vadd.f32 %v11156_v35, %v11016_v56 }
 0x842   : > { %12121 = vmatprep.subr.mxu0 %v24547_v39  ;;  %v11158_v18 = vpop.f32.mrf.mxu0 }
 0x843   : > { %v11159_v39 = vadd.f32 %v11158_v18, %v11018_v4 }
 0x844   : > { %v11163_v45 = vpop.f32.mrf.mxu0 }
 0x845   : > { %v11164_v53 = vadd.f32 %v11163_v45, %v11025_v10  ;;  %v24555_v10 = vld [vmem:[#allocation86_spill] sm:$0xff] }
 0x846   : > { %v11165_v29 = vpop.f32.mrf.mxu0 }
 0x847   : > { %v11166_v16 = vadd.f32 %v11165_v29, %v11027_v43  ;;  %v24556_v29 = vld [vmem:[#allocation89_spill] sm:$0xff]  ;;  %v24558_v43 = vld [vmem:[#allocation96_spill] sm:$0xff] }
 0x848   : > { %v11255_v38 = vpop.f32.mrf.mxu1 }
 0x849   : > { %v22693_v6 = vadd.f32 %v11255_v38, %v11157_v28  ;;  %v24553_v28 = vld [vmem:[#allocation80_spill] sm:$0xff] }
 0x84a   : > { %v11257_v22 = vpop.f32.mrf.mxu1 }
 0x84b   : > { %24548 = vst [vmem:[#allocation153_spill] sm:$0xff] %v22693_v6  ;;  %v22696_v34 = vand.u32 4294901760, %v22693_v6  ;;  %v22698_v57 = vadd.f32 %v11257_v22, %v11159_v39  ;;  %v24557_v22 = vld [vmem:[#allocation93_spill] sm:$0xff] }
 0x84c   : > { %v11262_v48 = vpop.f32.mrf.mxu1 }
 0x84d   : > { %24549 = vst [vmem:[#allocation155_spill] sm:$0xff] %v22698_v57  ;;  %v11952_v56 = vsub.f32 %v22693_v6, %v22696_v34  ;;  %v22702_v51 = vadd.f32 %v11262_v48, %v11164_v53  ;;  %v22705_v4 = vand.u32 4294901760, %v22698_v57  ;;  %v24559_v53 = vld [vmem:[#allocation79_spill] sm:$0xff]  ;;  %v12480_v48 = vmul.f32 %v22606_v37, %v22606_v37 }
 0x84e   : > { %v11264_v60 = vpop.f32.mrf.mxu1 }
 0x84f   : > { %24550 = vst [vmem:[#allocation129_spill] sm:$0xff] %v22702_v51  ;;  %v11953_v12 = vand.u32 4294901760, %v11952_v56  ;;  %v22707_v36 = vadd.f32 %v11264_v60, %v11166_v16  ;;  %12081 = vmatprep.mubr.f32.mxu1 %v22705_v4  ;;  %v22712_v45 = vand.u32 4294901760, %v22702_v51  ;;  %v11946_v18 = vsub.f32 %v22698_v57, %v22705_v4  ;;  %v24560_v16 = vld [vmem:[#allocation82_spill] sm:$0xff]  ;;  %v24561_v60 = vld [vmem:[#allocation85_spill] sm:$0xff] }
 0x850   : > { %12083 = vmatmul.mubr.f32.vlgmr.msra.gmra.mxu1 %v22696_v34 }
 0x851   : > { %24551 = vst [vmem:[#allocation131_spill] sm:$0xff] %v22707_v36  ;;  %12221 = vmatpush1.xpose.msra.mxu1 %v24539_v58  ;;  %v22718_v24 = vand.u32 4294901760, %v22707_v36  ;;  %v11947_v17 = vand.u32 4294901760, %v11946_v18  ;;  %v11967_v39 = vsub.f32 %v22702_v51, %v22712_v45  ;;  %v11954_v41 = vsub.f32 %v11952_v56, %v11953_v12 }
 0x852   : > { %12223 = vmatprep.subr.mxu1 %v24540_v2 }
 0x853   : > { %12088 = vmatprep.mubr.f32.mxu1 %v22718_v24  ;;  %v11961_v55 = vsub.f32 %v22707_v36, %v22718_v24  ;;  %v11948_v27 = vsub.f32 %v11946_v18, %v11947_v17  ;;  %v11968_v31 = vand.u32 4294901760, %v11967_v39  ;;  %v11955_v49 = vand.u32 4294901760, %v11954_v41  ;;  %v24565_v41 = vld [vmem:[#allocation98_spill] sm:$0xff] }
 0x854   : > { %12090 = vmatmul.mubr.f32.gmra.mxu1 %v22712_v45 }
 0x855   : > { %12225 = vmatpush1.xpose.msra.mxu1 %v24542_v7  ;;  %12269 = vmatprep.mubr.f32.mxu1 %v11947_v17  ;;  %v11962_v0 = vand.u32 4294901760, %v11961_v55  ;;  %v11949_v35 = vand.u32 4294901760, %v11948_v27  ;;  %v11969_v61 = vsub.f32 %v11967_v39, %v11968_v31  ;;  %v24563_v17 = vld [vmem:[#allocation92_spill] sm:$0xff]  ;;  %v12484_v27 = vmul.f32 %v22619_v44, %v22619_v44 }
 0x856   : > { %12227 = vmatprep.subr.mxu1 %v24543_v21 }
 0x857   : > { %v11963_v20 = vsub.f32 %v11961_v55, %v11962_v0  ;;  %11950 = vmatprep.mubr.f32.mxu0 %v11949_v35  ;;  %v11970_v38 = vand.u32 4294901760, %v11969_v61  ;;  %v12483_v35 = vmul.f32 %v22613_v54, %v22613_v54  ;;  %v24567_v54 = vld [vmem:[#allocation41_spill] sm:$0xff] }
 0x858   : > { %11956 = vmatmul.mubr.f32.vlgmr.msra.gmra.mxu0 %v11955_v49 }
 0x859   : > { %12229 = vmatpush1.xpose.msra.mxu1 %v24544_v52  ;;  %v11964_v40 = vand.u32 4294901760, %v11963_v20  ;;  %12124 = vmatpush1.xpose.msra.mxu0 %v24552_v63  ;;  %v22784_v20 = vand.u32 4294901760, %v12484_v27 }
 0x85a   : > { %12231 = vmatprep.subr.mxu1 %v24545_v50  ;;  %12127 = vmatprep.subr.mxu0 %v24553_v28 }
 0x85b   : > { %11965 = vmatprep.mubr.f32.mxu0 %v11964_v40  ;;  %v22793_v40 = vand.u32 4294901760, %v12483_v35 }
 0x85c   : > { %11971 = vmatmul.mubr.f32.gmra.mxu0 %v11970_v38 }
 0x85d   : > { %12233 = vmatpush1.xpose.msra.mxu1 %v24546_v25  ;;  %12130 = vmatpush1.xpose.msra.mxu0 %v24554_v59 }
 0x85e   : > { %12177 = vmatprep.mubr.f32.mxu0 %v11946_v18  ;;  %12133 = vmatprep.subr.mxu0 %v24555_v10  ;;  %v24562_v18 = vld [vmem:[#allocation88_spill] sm:$0xff] }
 0x85f   : > { %12417 = vmatprep.subr.mxu1 %v24536_v1 }
 0x860   : > { %12273 = vmatmul.mubr.f32.vlgmr.msra.gmra.mxu1 %v11953_v12  ;;  %v22752_v12 = vand.u32 4294901760, %v12480_v48 }
 0x861   : > { %12280 = vmatprep.mubr.f32.mxu1 %v11962_v0  ;;  %12419 = vmatpush1.xpose.msra.mxu1 %v24539_v58 }
 0x862   : > { %12136 = vmatpush1.xpose.msra.mxu0 %v24556_v29  ;;  %12421 = vmatprep.subr.mxu1 %v24540_v2 }
 0x863   : > { %12139 = vmatprep.subr.mxu0 %v24557_v22 }
 0x864   : > { %12284 = vmatmul.mubr.f32.gmra.mxu1 %v11968_v31  ;;  %v24566_v31 = vld [vmem:[#allocation102_spill] sm:$0xff] }
 0x865   : > { %12423 = vmatpush1.xpose.msra.mxu1 %v24542_v7  ;;  %12465 = vmatprep.mubr.f32.mxu1 %v22705_v4 }
 0x866   : > { %12142 = vmatpush1.xpose.msra.mxu0 %v24558_v43  ;;  %12425 = vmatprep.subr.mxu1 %v24543_v21 }
 0x867   : > { %12316 = vmatprep.subr.mxu0 %v24559_v53 }
 0x869   : > { %12180 = vmatmul.mubr.f32.vlgmr.msra.gmra.mxu0 %v11952_v56  ;;  %12427 = vmatpush1.xpose.msra.mxu1 %v24544_v52  ;;  %v22761_v56 = vsub.f32 %v12480_v48, %v22752_v12  ;;  %v12575_v48 = vsub.f32 %v12484_v27, %v22784_v20 }
 0x86a   : > { %12186 = vmatprep.mubr.f32.mxu0 %v11961_v55  ;;  %12320 = vmatpush1.xpose.msra.mxu0 %v24560_v16 }
 0x86b   : > { %12324 = vmatprep.subr.mxu0 %v24561_v60  ;;  %12429 = vmatprep.subr.mxu1 %v24545_v50  ;;  %v12561_v55 = vand.u32 4294901760, %v22761_v56 }
 0x86d   : > { %12189 = vmatmul.mubr.f32.gmra.mxu0 %v11967_v39  ;;  %12431 = vmatpush1.xpose.msra.mxu1 %v24546_v25  ;;  %v24564_v39 = vld [vmem:[#allocation94_spill] sm:$0xff]  ;;  %v12562_v49 = vsub.f32 %v22761_v56, %v12561_v55 }
 0x86e   : > { %12328 = vmatpush1.xpose.msra.mxu0 %v24562_v18  ;;  %12378 = vmatprep.mubr.f32.mxu0 %v22705_v4  ;;  %v12479_v4 = vmul.f32 %v22601_v9, %v22601_v9  ;;  %v24568_v9 = vld [vmem:[#allocation46_spill] sm:$0xff] }
 0x86f   : > { %12332 = vmatprep.subr.mxu0 %v24563_v17  ;;  %12619 = vmatprep.subr.mxu1 %v24498_v5  ;;  %v12563_v38 = vand.u32 4294901760, %v12562_v49 }
 0x870   : > { %12467 = vmatmul.mubr.f32.vlgmr.msra.gmra.mxu1 %v22696_v34  ;;  %v22778_v0 = vand.u32 4294901760, %v12479_v4 }
 0x871   : > { %12472 = vmatprep.mubr.f32.mxu1 %v22718_v24  ;;  %12625 = vmatpush1.xpose.msra.mxu1 %v24499_v46 }
 0x872   : > { %12336 = vmatpush1.xpose.msra.mxu0 %v24564_v39  ;;  %12631 = vmatprep.subr.mxu1 %v24500_v42  ;;  %v12566_v61 = vsub.f32 %v12479_v4, %v22778_v0  ;;  %v12576_v4 = vand.u32 4294901760, %v12575_v48 }
 0x873   : > { %12340 = vmatprep.subr.mxu0 %v24565_v41 }
 0x874   : > { %12474 = vmatmul.mubr.f32.gmra.mxu1 %v22712_v45  ;;  %v12577_v49 = vsub.f32 %v12575_v48, %v12576_v4 }
 0x875   : > { %12637 = vmatpush1.xpose.msra.mxu1 %v24503_v23  ;;  %12695 = vmatprep.mubr.f32.mxu1 %v22752_v12 }
 0x876   : > { %12344 = vmatpush1.xpose.msra.mxu0 %v24566_v31  ;;  %12643 = vmatprep.subr.mxu1 %v24504_v62  ;;  %v12578_v44 = vand.u32 4294901760, %v12577_v49  ;;  %v24572_v49 = vld [vmem:[#allocation61_spill] sm:$0xff] }
 0x877   : > { %12512 = vmatprep.subr.mxu0 %v24495_v8 }
 0x879   : > { %12380 = vmatmul.mubr.f32.vlgmr.msra.gmra.mxu0 %v22696_v34  ;;  %12649 = vmatpush1.xpose.msra.mxu1 %v24507_v47  ;;  %v12567_v34 = vand.u32 4294901760, %v12566_v61 }
 0x87a   : > { %12385 = vmatprep.mubr.f32.mxu0 %v22718_v24  ;;  %12514 = vmatpush1.xpose.msra.mxu0 %v24496_v33  ;;  %v12581_v24 = vsub.f32 %v12483_v35, %v22793_v40 }
 0x87b   : > { %12516 = vmatprep.subr.mxu0 %v24497_v19  ;;  %12655 = vmatprep.subr.mxu1 %v24508_v32 }
 0x87c   : > { %v12582_v27 = vand.u32 4294901760, %v12581_v24 }
 0x87d   : > { %12387 = vmatmul.mubr.f32.gmra.mxu0 %v22712_v45  ;;  %12661 = vmatpush1.xpose.msra.mxu1 %v24511_v13  ;;  %v12568_v45 = vsub.f32 %v12566_v61, %v12567_v34 }
 0x87e   : > { %12518 = vmatpush1.xpose.msra.mxu0 %v24501_v14  ;;  %12564 = vmatprep.mubr.f32.mxu0 %v12563_v38  ;;  %v12583_v38 = vsub.f32 %v12581_v24, %v12582_v27 }
 0x87f   : > { %12520 = vmatprep.subr.mxu0 %v24502_v30  ;;  %12833 = vmatprep.subr.mxu1 %v24495_v8  ;;  %v12569_v35 = vand.u32 4294901760, %v12568_v45  ;;  %v24570_v45 = vld [vmem:[#allocation53_spill] sm:$0xff] }
 0x880   : > { %12697 = vmatmul.mubr.f32.vlgmr.msra.gmra.mxu1 %v22778_v0  ;;  %v12584_v37 = vand.u32 4294901760, %v12583_v38  ;;  %v24577_v38 = vld [vmem:[#allocation51_spill] sm:$0xff] }
 0x881   : > { %12702 = vmatprep.mubr.f32.mxu1 %v22784_v20  ;;  %12835 = vmatpush1.xpose.msra.mxu1 %v24496_v33 }
 0x882   : > { %12522 = vmatpush1.xpose.msra.mxu0 %v24505_v15  ;;  %12837 = vmatprep.subr.mxu1 %v24497_v19 }
 0x883   : > { %12524 = vmatprep.subr.mxu0 %v24506_v26 }
 0x884   : > { %12704 = vmatmul.mubr.f32.gmra.mxu1 %v22793_v40 }
 0x885   : > { %12839 = vmatpush1.xpose.msra.mxu1 %v24501_v14  ;;  %12883 = vmatprep.mubr.f32.mxu1 %v12561_v55  ;;  %v24569_v55 = vld [vmem:[#allocation47_spill] sm:$0xff] }
 0x886   : > { %12526 = vmatpush1.xpose.msra.mxu0 %v24509_v11  ;;  %12841 = vmatprep.subr.mxu1 %v24502_v30 }
 0x887   : > { %12735 = vmatprep.subr.mxu0 %v24510_v3 }
 0x889   : > { %12570 = vmatmul.mubr.f32.vlgmr.msra.gmra.mxu0 %v12569_v35  ;;  %12843 = vmatpush1.xpose.msra.mxu1 %v24505_v15 }
 0x88a   : > { %12579 = vmatprep.mubr.f32.mxu0 %v12578_v44  ;;  %12738 = vmatpush1.xpose.msra.mxu0 %v24567_v54  ;;  %v24571_v44 = vld [vmem:[#allocation54_spill] sm:$0xff] }
 0x88b   : > { %12741 = vmatprep.subr.mxu0 %v24568_v9  ;;  %12845 = vmatprep.subr.mxu1 %v24506_v26 }
 0x88d   : > { %12585 = vmatmul.mubr.f32.gmra.mxu0 %v12584_v37  ;;  %12847 = vmatpush1.xpose.msra.mxu1 %v24509_v11  ;;  %v24573_v37 = vld [vmem:[#allocation62_spill] sm:$0xff] }
 0x88e   : > { %12744 = vmatpush1.xpose.msra.mxu0 %v24569_v55  ;;  %12791 = vmatprep.mubr.f32.mxu0 %v22761_v56  ;;  %v24574_v56 = vld [vmem:[#allocation40_spill] sm:$0xff] }
 0x88f   : > { %12747 = vmatprep.subr.mxu0 %v24570_v45  ;;  %13031 = vmatprep.subr.mxu1 %v24495_v8 }
 0x890   : > { %12887 = vmatmul.mubr.f32.vlgmr.msra.gmra.mxu1 %v12567_v34  ;;  %v12482_v34 = vmul.f32 %v22698_v57, %v22698_v57  ;;  %v24578_v57 = vld [vmem:[#allocation56_spill] sm:$0xff] }
 0x891   : > { %12894 = vmatprep.mubr.f32.mxu1 %v12576_v4  ;;  %13033 = vmatpush1.xpose.msra.mxu1 %v24496_v33  ;;  %v24575_v4 = vld [vmem:[#allocation43_spill] sm:$0xff] }
 0x892   : > { %12750 = vmatpush1.xpose.msra.mxu0 %v24571_v44  ;;  %13035 = vmatprep.subr.mxu1 %v24497_v19  ;;  %v22837_v35 = vand.u32 4294901760, %v12482_v34 }
 0x893   : > { %12753 = vmatprep.subr.mxu0 %v24572_v49 }
 0x894   : > { %12898 = vmatmul.mubr.f32.gmra.mxu1 %v12582_v27  ;;  %v24576_v27 = vld [vmem:[#allocation48_spill] sm:$0xff] }
 0x895   : > { %13037 = vmatpush1.xpose.msra.mxu1 %v24501_v14  ;;  %13079 = vmatprep.mubr.f32.mxu1 %v22752_v12 }
 0x896   : > { %12756 = vmatpush1.xpose.msra.mxu0 %v24573_v37  ;;  %13039 = vmatprep.subr.mxu1 %v24502_v30 }
 0x897   : > { %12930 = vmatprep.subr.mxu0 %v24574_v56 }
 0x899   : > { %12794 = vmatmul.mubr.f32.vlgmr.msra.gmra.mxu0 %v12566_v61  ;;  %13041 = vmatpush1.xpose.msra.mxu1 %v24505_v15  ;;  %v24579_v61 = vld [vmem:[#allocation91_spill] sm:$0xff] }
 0x89a   : > { %12800 = vmatprep.mubr.f32.mxu0 %v12575_v48  ;;  %12934 = vmatpush1.xpose.msra.mxu0 %v24575_v4  ;;  %v22846_v48 = vsub.f32 %v12482_v34, %v22837_v35  ;;  %v24582_v4 = vld [vmem:[#allocation97_spill] sm:$0xff]  ;;  %v12486_v34 = vmul.f32 %v22707_v36, %v22707_v36  ;;  %v24587_v36 = vld [vmem:[#allocation104_spill] sm:$0xff] }
 0x89b   : > { %12938 = vmatprep.subr.mxu0 %v24576_v27  ;;  %13043 = vmatprep.subr.mxu1 %v24506_v26  ;;  %v24580_v27 = vld [vmem:[#allocation95_spill] sm:$0xff] }
 0x89c   : > { %v22869_v56 = vand.u32 4294901760, %v12486_v34 }
 0x89d   : > { %12803 = vmatmul.mubr.f32.gmra.mxu0 %v12581_v24  ;;  %13045 = vmatpush1.xpose.msra.mxu1 %v24509_v11  ;;  %v24581_v24 = vld [vmem:[#allocation59_spill] sm:$0xff] }
 0x89e   : > { %12942 = vmatpush1.xpose.msra.mxu0 %v24577_v38  ;;  %12992 = vmatprep.mubr.f32.mxu0 %v22752_v12  ;;  %v12481_v12 = vmul.f32 %v22693_v6, %v22693_v6  ;;  %v24583_v38 = vld [vmem:[#allocation64_spill] sm:$0xff]  ;;  %v12485_v6 = vmul.f32 %v22702_v51, %v22702_v51  ;;  %v13181_v37 = vsub.f32 %v12486_v34, %v22869_v56  ;;  %v24590_v34 = vld [vmem:[#allocation75_spill] sm:$0xff] }
 0x89f   : > { %12946 = vmatprep.subr.mxu0 %v24578_v57  ;;  %13225 = vmatprep.subr.mxu1 %v24579_v61  ;;  %v13167_v57 = vand.u32 4294901760, %v22846_v48  ;;  %v24584_v61 = vld [vmem:[#allocation101_spill] sm:$0xff] }
 0x8a0   : > { %13081 = vmatmul.mubr.f32.vlgmr.msra.gmra.mxu1 %v22778_v0  ;;  %v22878_v51 = vand.u32 4294901760, %v12485_v6 }
 0x8a1   : > { %13086 = vmatprep.mubr.f32.mxu1 %v22784_v20  ;;  %13231 = vmatpush1.xpose.msra.mxu1 %v24580_v27  ;;  %v24585_v27 = vld [vmem:[#allocation66_spill] sm:$0xff] }
 0x8a2   : > { %12950 = vmatpush1.xpose.msra.mxu0 %v24581_v24  ;;  %13237 = vmatprep.subr.mxu1 %v24582_v4  ;;  %v24586_v24 = vld [vmem:[#allocation103_spill] sm:$0xff]  ;;  %v22863_v4 = vand.u32 4294901760, %v12481_v12 }
 0x8a3   : > { %12954 = vmatprep.subr.mxu0 %v24583_v38  ;;  %v13168_v38 = vsub.f32 %v22846_v48, %v13167_v57 }
 0x8a4   : > { %13088 = vmatmul.mubr.f32.gmra.mxu1 %v22793_v40 }
 0x8a5   : > { %13243 = vmatpush1.xpose.msra.mxu1 %v24584_v61  ;;  %13301 = vmatprep.mubr.f32.mxu1 %v22837_v35  ;;  %v13169_v61 = vand.u32 4294901760, %v13168_v38 }
 0x8a6   : > { %12958 = vmatpush1.xpose.msra.mxu0 %v24585_v27  ;;  %13249 = vmatprep.subr.mxu1 %v24586_v24  ;;  %v13172_v27 = vsub.f32 %v12481_v12, %v22863_v4  ;;  %v24588_v24 = vld [vmem:[#allocation107_spill] sm:$0xff]  ;;  %v13187_v12 = vsub.f32 %v12485_v6, %v22878_v51 }
 0x8a7   : > { %13118 = vmatprep.subr.mxu0 %v24536_v1 }
 0x8a8   : > { %v13188_v38 = vand.u32 4294901760, %v13187_v12 }
 0x8a9   : > { %12994 = vmatmul.mubr.f32.vlgmr.msra.gmra.mxu0 %v22778_v0  ;;  %13255 = vmatpush1.xpose.msra.mxu1 %v24587_v36  ;;  %v24589_v0 = vld [vmem:[#allocation108_spill] sm:$0xff] }
 0x8aa   : > { %12999 = vmatprep.mubr.f32.mxu0 %v22784_v20  ;;  %13120 = vmatpush1.xpose.msra.mxu0 %v24539_v58  ;;  %v13173_v20 = vand.u32 4294901760, %v13172_v27 }
 0x8ab   : > { %13122 = vmatprep.subr.mxu0 %v24540_v2  ;;  %13261 = vmatprep.subr.mxu1 %v24588_v24  ;;  %v13182_v24 = vand.u32 4294901760, %v13181_v37 }
 0x8ad   : > { %13001 = vmatmul.mubr.f32.gmra.mxu0 %v22793_v40  ;;  %13267 = vmatpush1.xpose.msra.mxu1 %v24589_v0  ;;  %v13174_v40 = vsub.f32 %v13172_v27, %v13173_v20  ;;  %v13189_v0 = vsub.f32 %v13187_v12, %v13188_v38 }
 0x8ae   : > { %13124 = vmatpush1.xpose.msra.mxu0 %v24542_v7  ;;  %13170 = vmatprep.mubr.f32.mxu0 %v13169_v61  ;;  %v13183_v61 = vsub.f32 %v13181_v37, %v13182_v24 }
 0x8af   : > { %13126 = vmatprep.subr.mxu0 %v24543_v21  ;;  %13439 = vmatprep.subr.mxu1 %v24536_v1  ;;  %v13175_v6 = vand.u32 4294901760, %v13174_v40  ;;  %v13190_v49 = vand.u32 4294901760, %v13189_v0  ;;  %v24591_v0 = vld [vmem:[#allocation109_spill] sm:$0xff] }
 0x8b0   : > { %13303 = vmatmul.mubr.f32.vlgmr.msra.gmra.mxu1 %v22863_v4  ;;  %v13184_v36 = vand.u32 4294901760, %v13183_v61 }
 0x8b1   : > { %13308 = vmatprep.mubr.f32.mxu1 %v22869_v56  ;;  %13441 = vmatpush1.xpose.msra.mxu1 %v24539_v58 }
 0x8b2   : > { %13128 = vmatpush1.xpose.msra.mxu0 %v24544_v52  ;;  %13443 = vmatprep.subr.mxu1 %v24540_v2 }
 0x8b3   : > { %13130 = vmatprep.subr.mxu0 %v24545_v50 }
 0x8b4   : > { %13310 = vmatmul.mubr.f32.gmra.mxu1 %v22878_v51 }
 0x8b5   : > { %13445 = vmatpush1.xpose.msra.mxu1 %v24542_v7  ;;  %13489 = vmatprep.mubr.f32.mxu1 %v13167_v57 }
 0x8b6   : > { %13132 = vmatpush1.xpose.msra.mxu0 %v24546_v25  ;;  %13447 = vmatprep.subr.mxu1 %v24543_v21 }
 0x8b7   : > { %13341 = vmatprep.subr.mxu0 %v24590_v34 }
 0x8b9   : > { %13176 = vmatmul.mubr.f32.vlgmr.msra.gmra.mxu0 %v13175_v6  ;;  %13449 = vmatpush1.xpose.msra.mxu1 %v24544_v52  ;;  %v24592_v6 = vld [vmem:[#allocation112_spill] sm:$0xff] }
 0x8ba   : > { %13185 = vmatprep.mubr.f32.mxu0 %v13184_v36  ;;  %13344 = vmatpush1.xpose.msra.mxu0 %v24552_v63 }
 0x8bb   : > { %13347 = vmatprep.subr.mxu0 %v24553_v28  ;;  %13451 = vmatprep.subr.mxu1 %v24545_v50 }
 0x8bd   : > { %13191 = vmatmul.mubr.f32.gmra.mxu0 %v13190_v49  ;;  %13453 = vmatpush1.xpose.msra.mxu1 %v24546_v25 }
 0x8be   : > { %13350 = vmatpush1.xpose.msra.mxu0 %v24554_v59  ;;  %13397 = vmatprep.mubr.f32.mxu0 %v22846_v48 }
 0x8bf   : > { %13353 = vmatprep.subr.mxu0 %v24555_v10  ;;  %13637 = vmatprep.subr.mxu1 %v24536_v1 }
 0x8c0   : > { %13493 = vmatmul.mubr.f32.vlgmr.msra.gmra.mxu1 %v13173_v20 }
 0x8c1   : > { %13500 = vmatprep.mubr.f32.mxu1 %v13182_v24  ;;  %13639 = vmatpush1.xpose.msra.mxu1 %v24539_v58 }
 0x8c2   : > { %13356 = vmatpush1.xpose.msra.mxu0 %v24556_v29  ;;  %13641 = vmatprep.subr.mxu1 %v24540_v2 }
 0x8c3   : > { %13359 = vmatprep.subr.mxu0 %v24557_v22 }
 0x8c4   : > { %13504 = vmatmul.mubr.f32.gmra.mxu1 %v13188_v38 }
 0x8c5   : > { %13643 = vmatpush1.xpose.msra.mxu1 %v24542_v7  ;;  %13685 = vmatprep.mubr.f32.mxu1 %v22837_v35 }
 0x8c6   : > { %13362 = vmatpush1.xpose.msra.mxu0 %v24558_v43  ;;  %13645 = vmatprep.subr.mxu1 %v24543_v21 }
 0x8c7   : > { %13536 = vmatprep.subr.mxu0 %v24559_v53 }
 0x8c9   : > { %13400 = vmatmul.mubr.f32.vlgmr.msra.gmra.mxu0 %v13172_v27  ;;  %13647 = vmatpush1.xpose.msra.mxu1 %v24544_v52 }
 0x8ca   : > { %v11478_v57 = vpop.f32.mrf.mxu1  ;;  %13406 = vmatprep.mubr.f32.mxu0 %v13181_v37  ;;  %13540 = vmatpush1.xpose.msra.mxu0 %v24560_v16 }
 0x8cb   : > { %13544 = vmatprep.subr.mxu0 %v24561_v60  ;;  %13649 = vmatprep.subr.mxu1 %v24545_v50 }
 0x8cc   : > { %v11480_v36 = vpop.f32.mrf.mxu1 }
 0x8cd   : > { %13409 = vmatmul.mubr.f32.gmra.mxu0 %v13187_v12  ;;  %13651 = vmatpush1.xpose.msra.mxu1 %v24546_v25 }
 0x8ce   : > { %13548 = vmatpush1.xpose.msra.mxu0 %v24562_v18  ;;  %13598 = vmatprep.mubr.f32.mxu0 %v22837_v35 }
 0x8cf   : > { %13552 = vmatprep.subr.mxu0 %v24563_v17 }
 0x8d0   : > { %v11485_v49 = vpop.f32.mrf.mxu1  ;;  %13687 = vmatmul.mubr.f32.vlgmr.msra.gmra.mxu1 %v22863_v4 }
 0x8d1   : > { %13692 = vmatprep.mubr.f32.mxu1 %v22869_v56 }
 0x8d2   : > { %v11487_v37 = vpop.f32.mrf.mxu1  ;;  %13556 = vmatpush1.xpose.msra.mxu0 %v24564_v39  ;;  %v11351_v27 = vpop.f32.mrf.mxu0 }
 0x8d3   : > { %13560 = vmatprep.subr.mxu0 %v24565_v41  ;;  %v11479_v48 = vadd.f32 %v11478_v57, %v11351_v27 }
 0x8d4   : > { %13694 = vmatmul.mubr.f32.gmra.mxu1 %v22878_v51  ;;  %v11353_v24 = vpop.f32.mrf.mxu0 }
 0x8d5   : > { %18734 = vmatprep.mubr.f32.mxu1 %v24591_v0 }
 0x8d6   : > { %13564 = vmatpush1.xpose.msra.mxu0 %v24566_v31 }
 0x8d7   : > { %v11366_v35 = vpop.f32.mrf.mxu0 }
 0x8d8   : > { %v11486_v20 = vadd.f32 %v11485_v49, %v11366_v35 }
 0x8d9   : > { %13600 = vmatmul.mubr.f32.vlgmr.msra.gmra.mxu0 %v22863_v4  ;;  %v11368_v12 = vpop.f32.mrf.mxu0 }
 0x8da   : > { %v11668_v40 = vpop.f32.mrf.mxu1  ;;  %13605 = vmatprep.mubr.f32.mxu0 %v22869_v56 }
 0x8dc   : > { %v11670_v38 = vpop.f32.mrf.mxu1 }
 0x8dd   : > { %13607 = vmatmul.mubr.f32.gmra.mxu0 %v22878_v51 }
 0x8de   : > { %v11679_v61 = vpop.f32.mrf.mxu1  ;;  %18727 = vmatprep.mubr.f32.mxu0 %v24592_v6 }
 0x8e0   : > { %v11681_v57 = vpop.f32.mrf.mxu1 }
 0x8e3   : > { %v11575_v36 = vpop.f32.mrf.mxu0 }
 0x8e4   : > { %v11576_v37 = vadd.f32 %v11575_v36, %v11479_v48 }
 0x8e5   : > { %v11577_v27 = vpop.f32.mrf.mxu0 }
 0x8e6   : > { %v11669_v24 = vadd.f32 %v11668_v40, %v11576_v37 }
 0x8e7   : > { %v11584_v31 = vpop.f32.mrf.mxu0 }
 0x8e8   : > { %v11585_v41 = vadd.f32 %v11584_v31, %v11486_v20 }
 0x8e9   : > { %v11586_v49 = vpop.f32.mrf.mxu0 }
 0x8ea   : > { %v11862_v35 = vpop.f32.mrf.mxu1  ;;  %v11680_v4 = vadd.f32 %v11679_v61, %v11585_v41 }
 0x8ec   : > { %v11864_v12 = vpop.f32.mrf.mxu1 }
 0x8ee   : > { %v11869_v39 = vpop.f32.mrf.mxu1 }
 0x8f0   : > { %v11871_v17 = vpop.f32.mrf.mxu1 }
 0x8f4   : > { %v11775_v56 = vpop.f32.mrf.mxu0 }
 0x8f5   : > { %v11776_v38 = vadd.f32 %v11775_v56, %v11669_v24 }
 0x8f6   : > { %v11777_v18 = vpop.f32.mrf.mxu0 }
 0x8f7   : > { %v11863_v51 = vadd.f32 %v11862_v35, %v11776_v38 }
 0x8f8   : > { %v11782_v60 = vpop.f32.mrf.mxu0 }
 0x8f9   : > { %v11783_v16 = vadd.f32 %v11782_v60, %v11680_v4 }
 0x8fa   : > { %v11784_v53 = vpop.f32.mrf.mxu0 }
 0x8fb   : > { %v11870_v57 = vadd.f32 %v11869_v39, %v11783_v16 }
 0x910   : > { %v12084_v43 = vpop.f32.mrf.mxu1 }
 0x912   : > { %v12086_v48 = vpop.f32.mrf.mxu1 }
 0x914   : > { %v12091_v36 = vpop.f32.mrf.mxu1 }
 0x916   : > { %v12093_v40 = vpop.f32.mrf.mxu1 }
 0x918   : > { %v11957_v37 = vpop.f32.mrf.mxu0 }
 0x919   : > { %v11958_v35 = vadd.f32 %v11957_v37, %v11863_v51  ;;  %v19018_v51 = vld [vmem:[%s23698_s6] sm:$0xff] }
 0x91a   : > { %v11959_v31 = vpop.f32.mrf.mxu0 }
 0x91b   : > { %v12085_v16 = vadd.f32 %v12084_v43, %v11958_v35  ;;  %v19019_v43 = vld [vmem:[%s23698_s6 + $0x8] sm:$0xff] }
 0x91c   : > { %v11972_v20 = vpop.f32.mrf.mxu0 }
 0x91d   : > { %v11973_v53 = vadd.f32 %v11972_v20, %v11870_v57 }
 0x91e   : > { %v11974_v27 = vpop.f32.mrf.mxu0 }
 0x91f   : > { %v12092_v48 = vadd.f32 %v12091_v36, %v11973_v53 }
 0x920   : > { %v12274_v41 = vpop.f32.mrf.mxu1 }
 0x922   : > { %v12276_v61 = vpop.f32.mrf.mxu1 }
 0x923   : > { %v19253_v61 = vmov 4  }
 0x924   : > { %v12285_v49 = vpop.f32.mrf.mxu1  ;;  %18919 = vset.pattern.permute.xlu1 %v19253_v61  ;;  %18920 = vset.pattern.permute.xlu0 %v19253_v61 }
 0x925   : > { %14714 = vperm.xlu1 %18919, %v19018_v51   ;;  %14718 = vperm.xlu0 %18920, %v19019_v43  }
 0x926   : > { %v12287_v17 = vpop.f32.mrf.mxu1 }
 0x929   : > { %v12181_v12 = vpop.f32.mrf.mxu0 }
 0x92a   : > { %v12182_v4 = vadd.f32 %v12181_v12, %v12085_v16  ;;  %v19254_v12 = vmov 5  }
 0x92b   : > { %v12183_v24 = vpop.f32.mrf.mxu0  ;;  %18921 = vset.pattern.permute.xlu1 %v19254_v12  ;;  %v24597_v12 = vld [vmem:[#allocation111_spill] sm:$0xff] }
 0x92c   : > { %v12275_v22 = vadd.f32 %v12274_v41, %v12182_v4  ;;  %14726 = vperm.xlu1 %18921, %v19018_v51  }
 0x92d   : > { %v12190_v18 = vpop.f32.mrf.mxu0 }
 0x92e   : > { %v12191_v31 = vadd.f32 %v12190_v18, %v12092_v48 }
 0x92f   : > { %v12192_v56 = vpop.f32.mrf.mxu0 }
 0x930   : > { %v12468_v60 = vpop.f32.mrf.mxu1  ;;  %v12286_v36 = vadd.f32 %v12285_v49, %v12191_v31  ;;  %14730 = vperm.xlu1 %18921, %v19019_v43   ;;  %v24594_v31 = vld [vmem:[#allocation110_spill] sm:$0xff] }
 0x932   : > { %v12470_v39 = vpop.f32.mrf.mxu1 }
 0x934   : > { %v12475_v38 = vpop.f32.mrf.mxu1 }
 0x936   : > { %v12477_v40 = vpop.f32.mrf.mxu1 }
 0x939   : > { %v12381_v27 = vpop.f32.mrf.mxu0 }
 0x93a   : > { %v12382_v29 = vadd.f32 %v12381_v27, %v12275_v22 }
 0x93b   : > { %v12383_v17 = vpop.f32.mrf.mxu0 }
 0x93c   : > { %v12469_v57 = vadd.f32 %v12468_v60, %v12382_v29  ;;  %v24593_v60 = vld [vmem:[#allocation116_spill] sm:$0xff] }
 0x93d   : > { %v12388_v37 = vpop.f32.mrf.mxu0 }
 0x93e   : > { %v13731_v20 = vand.u32 4294901760, %v12469_v57  ;;  %v12389_v41 = vadd.f32 %v12388_v37, %v12286_v36 }
 0x93f   : > { %v12390_v22 = vpop.f32.mrf.mxu0 }
 0x940   : > { %v13823_v24 = vsub.f32 %v12469_v57, %v13731_v20  ;;  %v12476_v18 = vadd.f32 %v12475_v38, %v12389_v41  ;;  %v12698_v35 = vpop.f32.mrf.mxu1  ;;  %v24595_v57 = vld [vmem:[#allocation114_spill] sm:$0xff]  ;;  %v24596_v41 = vld [vmem:[#allocation113_spill] sm:$0xff] }
 0x942   : > { %v13728_v56 = vand.u32 4294901760, %v12476_v18  ;;  %v12700_v53 = vpop.f32.mrf.mxu1  ;;  %v13824_v4 = vand.u32 4294901760, %v13823_v24 }
 0x944   : > { %v13816_v16 = vsub.f32 %v12476_v18, %v13728_v56  ;;  %18723 = vmatprep.subr.mxu0 %v13728_v56  ;;  %v22941_v39 = vpop.f32.mrf.mxu1  ;;  %v13825_v38 = vsub.f32 %v13823_v24, %v13824_v4  ;;  %v24598_v18 = vld [vmem:[#allocation115_spill] sm:$0xff] }
 0x945   : > { %18724 = vmatpush3.msra.mxu0 %v13728_v56 }
 0x946   : > { %18725 = vmatprep.subr.mxu0 %v13731_v20  ;;  %v12707_v29 = vpop.f32.mrf.mxu1  ;;  %v13817_v49 = vand.u32 4294901760, %v13816_v16  ;;  %v13826_v51 = vand.u32 4294901760, %v13825_v38 }
 0x947   : > { %18726 = vmatpush3.msra.mxu0 %v13731_v20 }
 0x948   : > { %18737 = vmatprep.subr.mxu0 %v13816_v16  ;;  %18728 = vmatmul.mubr.f32.vlgmr.msra.gmra.mxu0 %v24593_v60  ;;  %v13818_v48 = vsub.f32 %v13816_v16, %v13817_v49 }
 0x949   : > { %v12571_v40 = vpop.f32.mrf.mxu0  ;;  %18738 = vmatpush3.msra.mxu0 %v13816_v16  ;;  %18741 = vmatprep.mubr.f32.mxu0 %v24594_v31 }
 0x94a   : > { %v12699_v27 = vadd.f32 %v12698_v35, %v12571_v40  ;;  %18739 = vmatprep.subr.mxu0 %v13823_v24  ;;  %v13819_v61 = vand.u32 4294901760, %v13818_v48 }
 0x94b   : > { %v12573_v17 = vpop.f32.mrf.mxu0  ;;  %18740 = vmatpush3.msra.mxu0 %v13823_v24 }
 0x94c   : > { %18730 = vmatprep.subr.mxu1 %v13819_v61  ;;  %18751 = vmatprep.subr.mxu0 %v13817_v49 }
 0x94d   : > { %v12586_v43 = vpop.f32.mrf.mxu0  ;;  %18731 = vmatpush3.msra.mxu1 %v13819_v61  ;;  %18742 = vmatmul.mubr.f32.vlgmr.msra.gmra.mxu0 %v24595_v57 }
 0x94e   : > { %18752 = vmatpush3.msra.mxu0 %v13817_v49  ;;  %18732 = vmatprep.subr.mxu1 %v13826_v51 }
 0x94f   : > { %18753 = vmatprep.subr.mxu0 %v13824_v4  ;;  %v12588_v36 = vpop.f32.mrf.mxu0  ;;  %18733 = vmatpush3.msra.mxu1 %v13826_v51 }
 0x950   : > { %18754 = vmatpush3.msra.mxu0 %v13824_v4  ;;  %18744 = vmatprep.subr.mxu1 %v13728_v56  ;;  %v12888_v37 = vpop.f32.mrf.mxu1 }
 0x951   : > { %18735 = vmatmul.mubr.f32.vlgmr.msra.gmra.mxu1 %v24596_v41  ;;  %18755 = vmatprep.mubr.f32.mxu0 %v24591_v0 }
 0x952   : > { %18745 = vmatpush3.msra.mxu1 %v13728_v56  ;;  %v12890_v22 = vpop.f32.mrf.mxu1  ;;  %18748 = vmatprep.mubr.f32.mxu1 %v24597_v12 }
 0x953   : > { %18746 = vmatprep.subr.mxu1 %v13731_v20  ;;  %18756 = vmatmul.mubr.f32.vlgmr.msra.gmra.mxu0 %v24596_v41 }
 0x954   : > { %18747 = vmatpush3.msra.mxu1 %v13731_v20  ;;  %v12899_v24 = vpop.f32.mrf.mxu1  ;;  %18769 = vmatprep.mubr.f32.mxu0 %v24592_v6 }
 0x955   : > { %18758 = vmatprep.subr.mxu1 %v13728_v56  ;;  %18749 = vmatmul.mubr.f32.vlgmr.msra.gmra.mxu1 %v24598_v18 }
 0x956   : > { %18759 = vmatpush3.msra.mxu1 %v13728_v56  ;;  %v12901_v35 = vpop.f32.mrf.mxu1  ;;  %18762 = vmatprep.mubr.f32.mxu1 %v24591_v0 }
 0x957   : > { %18760 = vmatprep.subr.mxu1 %v13731_v20 }
 0x958   : > { %18761 = vmatpush3.msra.mxu1 %v13731_v20 }
 0x959   : > { %v12795_v53 = vpop.f32.mrf.mxu0  ;;  %18763 = vmatmul.mubr.f32.vlgmr.msra.gmra.mxu1 %v24596_v41 }
 0x95a   : > { %v12796_v16 = vadd.f32 %v12795_v53, %v12699_v27  ;;  %18776 = vmatprep.mubr.f32.mxu1 %v24591_v0 }
 0x95b   : > { %v12797_v4 = vpop.f32.mrf.mxu0 }
 0x95c   : > { %v12889_v29 = vadd.f32 %v12888_v37, %v12796_v16  ;;  %v12706_v16 = vadd.f32 %v22941_v39, %v12586_v43 }
 0x95d   : > { %v12804_v49 = vpop.f32.mrf.mxu0 }
 0x95f   : > { %v12806_v48 = vpop.f32.mrf.mxu0 }
 0x960   : > { %v13082_v6 = vpop.f32.mrf.mxu1 }
 0x962   : > { %v13084_v38 = vpop.f32.mrf.mxu1 }
 0x963   : > { %v12805_v38 = vadd.f32 %v12804_v49, %v12706_v16 }
 0x964   : > { %v13089_v40 = vpop.f32.mrf.mxu1 }
 0x966   : > { %v13091_v61 = vpop.f32.mrf.mxu1 }
 0x969   : > { %v12995_v56 = vpop.f32.mrf.mxu0 }
 0x96a   : > { %v12996_v61 = vadd.f32 %v12995_v56, %v12889_v29 }
 0x96b   : > { %v12997_v17 = vpop.f32.mrf.mxu0 }
 0x96c   : > { %v12900_v17 = vadd.f32 %v12899_v24, %v12805_v38  ;;  %v13083_v50 = vadd.f32 %v13082_v6, %v12996_v61 }
 0x96d   : > { %v13002_v51 = vpop.f32.mrf.mxu0 }
 0x96f   : > { %v13004_v36 = vpop.f32.mrf.mxu0 }
 0x970   : > { %v13304_v22 = vpop.f32.mrf.mxu1  ;;  %v13003_v36 = vadd.f32 %v13002_v51, %v12900_v17 }
 0x972   : > { %v13306_v20 = vpop.f32.mrf.mxu1  ;;  %v13090_v21 = vadd.f32 %v13089_v40, %v13003_v36 }
 0x974   : > { %v13311_v35 = vpop.f32.mrf.mxu1 }
 0x976   : > { %v13313_v10 = vpop.f32.mrf.mxu1 }
 0x979   : > { %v13177_v59 = vpop.f32.mrf.mxu0 }
 0x97a   : > { %v13178_v52 = vadd.f32 %v13177_v59, %v13083_v50 }
 0x97b   : > { %v13179_v27 = vpop.f32.mrf.mxu0 }
 0x97d   : > { %v13192_v53 = vpop.f32.mrf.mxu0 }
 0x97e   : > { %v13193_v7 = vadd.f32 %v13192_v53, %v13090_v21 }
 0x97f   : > { %v13194_v28 = vpop.f32.mrf.mxu0 }
 0x980   : > { %v13494_v4 = vpop.f32.mrf.mxu1  ;;  %v13305_v28 = vadd.f32 %v13304_v22, %v13178_v52  ;;  %v13312_v39 = vadd.f32 %v13311_v35, %v13193_v7 }
 0x982   : > { %v13496_v37 = vpop.f32.mrf.mxu1 }
 0x984   : > { %v13505_v48 = vpop.f32.mrf.mxu1 }
 0x986   : > { %v13507_v63 = vpop.f32.mrf.mxu1 }
 0x989   : > { %v13401_v34 = vpop.f32.mrf.mxu0 }
 0x98a   : > { %v13402_v37 = vadd.f32 %v13401_v34, %v13305_v28 }
 0x98b   : > { %v13403_v25 = vpop.f32.mrf.mxu0 }
 0x98c   : > { %v13495_v63 = vadd.f32 %v13494_v4, %v13402_v37 }
 0x98d   : > { %v13410_v20 = vpop.f32.mrf.mxu0 }
 0x98e   : > { %v13411_v49 = vadd.f32 %v13410_v20, %v13312_v39 }
 0x98f   : > { %v13412_v10 = vpop.f32.mrf.mxu0 }
 0x990   : > { %v13688_v27 = vpop.f32.mrf.mxu1  ;;  %v13506_v51 = vadd.f32 %v13505_v48, %v13411_v49 }
 0x992   : > { %v13690_v2 = vpop.f32.mrf.mxu1 }
 0x994   : > { %v13695_v58 = vpop.f32.mrf.mxu1 }
 0x996   : > { %v13697_v43 = vpop.f32.mrf.mxu1 }
 0x999   : > { %v13601_v29 = vpop.f32.mrf.mxu0 }
 0x99a   : > { %v13602_v56 = vadd.f32 %v13601_v29, %v13495_v63 }
 0x99b   : > { %v13603_v24 = vpop.f32.mrf.mxu0 }
 0x99c   : > { %v13689_v25 = vadd.f32 %v13688_v27, %v13602_v56 }
 0x99d   : > { %v13608_v6 = vpop.f32.mrf.mxu0 }
 0x99e   : > { %v14233_v16 = vand.u32 4294901760, %v13689_v25  ;;  %v13609_v50 = vadd.f32 %v13608_v6, %v13506_v51 }
 0x99f   : > { %v13610_v59 = vpop.f32.mrf.mxu0 }
 0x9a0   : > { %v14325_v40 = vsub.f32 %v13689_v25, %v14233_v16  ;;  %v13696_v38 = vadd.f32 %v13695_v58, %v13609_v50 }
 0x9a2   : > { %v14230_v21 = vand.u32 4294901760, %v13696_v38  ;;  %v14326_v2 = vand.u32 4294901760, %v14325_v40 }
 0x9a4   : > { %v14318_v52 = vsub.f32 %v13696_v38, %v14230_v21  ;;  %18765 = vmatprep.subr.mxu0 %v14230_v21  ;;  %v14327_v22 = vsub.f32 %v14325_v40, %v14326_v2 }
 0x9a5   : > { %18766 = vmatpush3.msra.mxu0 %v14230_v21 }
 0x9a6   : > { %18767 = vmatprep.subr.mxu0 %v14233_v16  ;;  %v14319_v7 = vand.u32 4294901760, %v14318_v52  ;;  %v14328_v58 = vand.u32 4294901760, %v14327_v22 }
 0x9a7   : > { %18768 = vmatpush3.msra.mxu0 %v14233_v16 }
 0x9a8   : > { %18779 = vmatprep.subr.mxu0 %v14318_v52  ;;  %18770 = vmatmul.mubr.f32.vlgmr.msra.gmra.mxu0 %v24593_v60  ;;  %v14320_v34 = vsub.f32 %v14318_v52, %v14319_v7  ;;  %v24599_v60 = vmov 0.0  }
 0x9a9   : > { %18780 = vmatpush3.msra.mxu0 %v14318_v52  ;;  %18783 = vmatprep.mubr.f32.mxu0 %v24594_v31 }
 0x9aa   : > { %18781 = vmatprep.subr.mxu0 %v14325_v40  ;;  %v14321_v35 = vand.u32 4294901760, %v14320_v34 }
 0x9ab   : > { %18782 = vmatpush3.msra.mxu0 %v14325_v40 }
 0x9ac   : > { %18772 = vmatprep.subr.mxu1 %v14321_v35  ;;  %18793 = vmatprep.subr.mxu0 %v14319_v7 }
 0x9ad   : > { %18773 = vmatpush3.msra.mxu1 %v14321_v35  ;;  %18784 = vmatmul.mubr.f32.vlgmr.msra.gmra.mxu0 %v24595_v57 }
 0x9ae   : > { %18794 = vmatpush3.msra.mxu0 %v14319_v7  ;;  %18774 = vmatprep.subr.mxu1 %v14328_v58 }
 0x9af   : > { %18795 = vmatprep.subr.mxu0 %v14326_v2  ;;  %18775 = vmatpush3.msra.mxu1 %v14328_v58 }
 0x9b0   : > { %18796 = vmatpush3.msra.mxu0 %v14326_v2  ;;  %18777 = vmatmul.mubr.f32.vlgmr.msra.gmra.mxu1 %v24596_v41 }
 0x9b1   : > { %18786 = vmatprep.subr.mxu1 %v14230_v21  ;;  %18790 = vmatprep.mubr.f32.mxu1 %v24597_v12 }
 0x9b2   : > { %18787 = vmatpush3.msra.mxu1 %v14230_v21  ;;  %18797 = vmatprep.mubr.f32.mxu0 %v24591_v0 }
 0x9b3   : > { %18788 = vmatprep.subr.mxu1 %v14233_v16  ;;  %18798 = vmatmul.mubr.f32.vlgmr.msra.gmra.mxu0 %v24596_v41 }
 0x9b4   : > { %18789 = vmatpush3.msra.mxu1 %v14233_v16  ;;  %14766 = vmatprep.subr.mxu0 %v24495_v8 }
 0x9b5   : > { %18791 = vmatmul.mubr.f32.vlgmr.msra.gmra.mxu1 %v24598_v18  ;;  %18800 = vmatprep.subr.mxu1 %v14230_v21 }
 0x9b6   : > { %18801 = vmatpush3.msra.mxu1 %v14230_v21  ;;  %18804 = vmatprep.mubr.f32.mxu1 %v24591_v0 }
 0x9b7   : > { %18802 = vmatprep.subr.mxu1 %v14233_v16  ;;  %14768 = vmatpush1.msra.mxu0 %v24496_v33 }
 0x9b8   : > { %18803 = vmatpush3.msra.mxu1 %v14233_v16  ;;  %14770 = vmatprep.subr.mxu0 %v24497_v19 }
 0x9b9   : > { %18805 = vmatmul.mubr.f32.vlgmr.msra.gmra.mxu1 %v24596_v41  ;;  %14865 = vmatprep.subr.mxu1 %v24498_v5 }
 0x9ba   : > { %14871 = vmatpush1.msra.mxu1 %v24499_v46  ;;  %14940 = vmatprep.mubr.f32.mxu1 %v24599_v60 }
 0x9bb   : > { %14877 = vmatprep.subr.mxu1 %v24500_v42  ;;  %14772 = vmatpush1.msra.mxu0 %v24501_v14 }
 0x9bc   : > { %14883 = vmatpush1.msra.mxu1 %v24503_v23  ;;  %14774 = vmatprep.subr.mxu0 %v24502_v30 }
 0x9bd   : > { %14889 = vmatprep.subr.mxu1 %v24504_v62  ;;  %14776 = vmatpush1.msra.mxu0 %v24505_v15 }
 0x9be   : > { %14895 = vmatpush1.msra.mxu1 %v24507_v47  ;;  %14778 = vmatprep.subr.mxu0 %v24506_v26 }
 0x9bf   : > { %14901 = vmatprep.subr.mxu1 %v24508_v32  ;;  %14780 = vmatpush1.msra.mxu0 %v24509_v11 }
 0x9c0   : > { %14907 = vmatpush1.msra.mxu1 %v24511_v13  ;;  %14813 = vmatprep.mubr.f32.mxu0 %v24599_v60 }
 0x9c1   : > { %15077 = vmatprep.subr.mxu1 %v24495_v8  ;;  %14981 = vmatprep.subr.mxu0 %v24510_v3 }
 0xa08   : > { %v18729_v0 = vpop.f32.mrf.mxu0 }
 0xa0a   : > { %v13772_v31 = vpop.f32.mrf.mxu0 }
 0xa0d   : > { %v18743_v41 = vpop.f32.mrf.mxu0 }
 0xa0f   : > { %v13945_v18 = vpop.f32.mrf.mxu0 }
 0xa11   : > { %v18736_v57 = vpop.f32.mrf.mxu1 }
 0xa12   : > { %v13870_v48 = vadd.f32 %v18736_v57, %v18729_v0 }
 0xa13   : > { %v13863_v12 = vpop.f32.mrf.mxu1  ;;  %v18757_v4 = vpop.f32.mrf.mxu0 }
 0xa14   : > { %v13864_v36 = vadd.f32 %v13863_v12, %v13772_v31  ;;  %v13953_v10 = vadd.f32 %v18743_v41, %v13870_v48 }
 0xa15   : > { %v18750_v53 = vpop.f32.mrf.mxu1  ;;  %v14112_v17 = vpop.f32.mrf.mxu0 }
 0xa16   : > { %v13946_v37 = vadd.f32 %v13945_v18, %v13864_v36  ;;  %v14036_v43 = vadd.f32 %v18750_v53, %v13953_v10 }
 0xa17   : > { %v14027_v61 = vpop.f32.mrf.mxu1 }
 0xa18   : > { %v14028_v63 = vadd.f32 %v14027_v61, %v13946_v37  ;;  %v14119_v25 = vadd.f32 %v18757_v4, %v14036_v43  ;;  %v14715_v37 = vpop.permute.xlu1 %14714 }
 0xa19   : > { %v18764_v27 = vpop.f32.mrf.mxu1 }
 0xa1a   : > { %v14113_v50 = vadd.f32 %v14112_v17, %v14028_v63  ;;  %v22986_v21 = vadd.f32 %v18764_v27, %v14119_v25 }
 0xa1b   : > { %v14191_v49 = vpop.f32.mrf.mxu1 }
 0xa1c   : > { %v22988_v7 = vadd.f32 %v14191_v49, %v14113_v50  ;;  %v14704_v0 = vmul.f32 %v22986_v21, %v22986_v21 }
 0xa1e   : > { %v14703_v12 = vmul.f32 %v22988_v7, %v22988_v7 }
 0xa68   : > { %v18771_v20 = vpop.f32.mrf.mxu0 }
 0xa6a   : > { %v14274_v28 = vpop.f32.mrf.mxu0 }
 0xa6d   : > { %v18785_v39 = vpop.f32.mrf.mxu0 }
 0xa6f   : > { %v14447_v24 = vpop.f32.mrf.mxu0 }
 0xa70   : > { %v18778_v29 = vpop.f32.mrf.mxu1 }
 0xa71   : > { %v14372_v56 = vadd.f32 %v18778_v29, %v18771_v20  ;;  %v14719_v20 = vpop.permute.xlu0 %14718 }
 0xa72   : > { %v14365_v51 = vpop.f32.mrf.mxu1 }
 0xa73   : > { %v14455_v6 = vadd.f32 %v18785_v39, %v14372_v56  ;;  %v14366_v16 = vadd.f32 %v14365_v51, %v14274_v28  ;;  %v18799_v38 = vpop.f32.mrf.mxu0 }
 0xa75   : > { %v14448_v59 = vadd.f32 %v14447_v24, %v14366_v16  ;;  %v18792_v40 = vpop.f32.mrf.mxu1  ;;  %v14614_v35 = vpop.f32.mrf.mxu0 }
 0xa76   : > { %v14538_v52 = vadd.f32 %v18792_v40, %v14455_v6  ;;  %v24600_v40 = vld [vmem:[#allocation61_spill] sm:$0xff] }
 0xa77   : > { %v14529_v2 = vpop.f32.mrf.mxu1 }
 0xa78   : > { %v14621_v34 = vadd.f32 %v18799_v38, %v14538_v52  ;;  %v14530_v22 = vadd.f32 %v14529_v2, %v14448_v59  ;;  %v24601_v38 = vld [vmem:[#allocation62_spill] sm:$0xff]  ;;  %v24602_v52 = vld [vmem:[#allocation40_spill] sm:$0xff]  ;;  %v24603_v2 = vld [vmem:[#allocation91_spill] sm:$0xff] }
 0xa79   : > { %v18806_v58 = vpop.f32.mrf.mxu1 }
 0xa7a   : > { %v14615_v31 = vadd.f32 %v14614_v35, %v14530_v22  ;;  %v14700_v57 = vadd.f32 %v18806_v58, %v14621_v34  ;;  %v24604_v34 = vld [vmem:[#allocation43_spill] sm:$0xff]  ;;  %v24606_v35 = vld [vmem:[#allocation48_spill] sm:$0xff]  ;;  %v24607_v58 = vld [vmem:[#allocation97_spill] sm:$0xff] }
 0xa7b   : > { %v14693_v41 = vpop.f32.mrf.mxu1  ;;  %v24605_v22 = vld [vmem:[#allocation95_spill] sm:$0xff] }
 0xa7c   : > { %v14706_v18 = vsub.f32 %v14700_v57, %v14704_v0  ;;  %v14694_v53 = vadd.f32 %v14693_v41, %v14615_v31  ;;  %v24608_v0 = vld [vmem:[#allocation51_spill] sm:$0xff]  ;;  %v24609_v31 = vld [vmem:[#allocation101_spill] sm:$0xff]  ;;  %v24610_v57 = vld [vmem:[#allocation56_spill] sm:$0xff] }
 0xa7d   : > { %v24611_v41 = vld [vmem:[#allocation103_spill] sm:$0xff] }
 0xa7e   : > { %v14708_v4 = vmax.f32 %v14706_v18, 0.0  ;;  %v14705_v48 = vsub.f32 %v14694_v53, %v14703_v12  ;;  %v24612_v12 = vld [vmem:[#allocation59_spill] sm:$0xff]  ;;  %v24613_v18 = vld [vmem:[#allocation104_spill] sm:$0xff] }
 0xa7f   : > { %v24614_v53 = vld [vmem:[#allocation64_spill] sm:$0xff] }
 0xa80   : > { %v14710_v61 = vadd.f32 1e-05, %v14708_v4  ;;  %v14707_v17 = vmax.f32 %v14705_v48, 0.0  ;;  %v24615_v4 = vld [vmem:[#allocation107_spill] sm:$0xff]  ;;  %v24616_v48 = vld [vmem:[#allocation66_spill] sm:$0xff] }
 0xa82   : > { %18976 = vrsqrt.f32 %v14710_v61  ;;  %v14709_v36 = vadd.f32 1e-05, %v14707_v17  ;;  %v24617_v61 = vld [vmem:[#allocation108_spill] sm:$0xff]  ;;  %v24618_v17 = vld [vmem:[#allocation74_spill] sm:$0xff] }
 0xa84   : > { %18978 = vrsqrt.f32 %v14709_v36  ;;  %v24619_v36 = vld [vmem:[#allocation76_spill] sm:$0xff] }
 0xa8f   : > { %v18977_v10 = vpop.eup %18976 }
 0xa90   : > { %v22994_v27 = vmul.f32 %v18977_v10, %v14719_v20  ;;  %v24620_v20 = vld [vmem:[#allocation78_spill] sm:$0xff]  ;;  %v24621_v10 = vld [vmem:[#allocation81_spill] sm:$0xff] }
 0xa91   : > { %v18979_v28 = vpop.eup %18978 }
 0xa92   : > { %v22996_v39 = vmul.f32 %v18979_v28, %v14715_v37  ;;  %v14739_v43 = vsel %vm5239_vm2, %v22994_v27, 0  ;;  %v24622_v28 = vld [vmem:[#allocation84_spill] sm:$0xff]  ;;  %v24623_v37 = vld [vmem:[#allocation87_spill] sm:$0xff] }
 0xa93   : > { %v23000_v49 = vand.u32 4294901760, %v14739_v43 }
 0xa94   : > { %v14736_v63 = vsel %vm5239_vm2, %v22996_v39, 0 }
 0xa95   : > { %v23004_v29 = vand.u32 4294901760, %v14736_v63  ;;  %v23007_v56 = vsub.f32 %v14739_v43, %v23000_v49  ;;  %v24624_v43 = vld [vmem:[#allocation90_spill] sm:$0xff] }
 0xa97   : > { %v23010_v24 = vsub.f32 %v14736_v63, %v23004_v29  ;;  %14942 = vmatmul.mubr.f32.vlgmr.msra.gmra.mxu1 %v23004_v29  ;;  %v23020_v51 = vand.u32 4294901760, %v23007_v56  ;;  %v24625_v63 = vld [vmem:[#allocation75_spill] sm:$0xff] }
 0xa98   : > { %15079 = vmatpush1.msra.mxu1 %v24496_v33  ;;  %14947 = vmatprep.mubr.f32.mxu1 %v24599_v60 }
 0xa99   : > { %v23016_v25 = vand.u32 4294901760, %v23010_v24  ;;  %15081 = vmatprep.subr.mxu1 %v24497_v19  ;;  %v14828_v50 = vsub.f32 %v23007_v56, %v23020_v51 }
 0xa9a   : > { %15083 = vmatpush1.msra.mxu1 %v24501_v14 }
 0xa9b   : > { %v14817_v6 = vsub.f32 %v23010_v24, %v23016_v25  ;;  %14949 = vmatmul.mubr.f32.gmra.mxu1 %v23000_v49  ;;  %15085 = vmatprep.subr.mxu1 %v24502_v30  ;;  %v23043_v59 = vand.u32 4294901760, %v14828_v50  ;;  %v24627_v50 = vld [vmem:[#allocation80_spill] sm:$0xff] }
 0xa9c   : > { %15087 = vmatpush1.msra.mxu1 %v24505_v15  ;;  %15124 = vmatprep.mubr.f32.mxu1 %v24599_v60 }
 0xa9d   : > { %15089 = vmatprep.subr.mxu1 %v24506_v26  ;;  %v23030_v16 = vand.u32 4294901760, %v14817_v6  ;;  %v24626_v6 = vld [vmem:[#allocation77_spill] sm:$0xff] }
 0xa9e   : > { %15091 = vmatpush1.msra.mxu1 %v24509_v11 }
 0xa9f   : > { %14819 = vmatmul.mubr.f32.vlgmr.msra.gmra.mxu0 %v23030_v16  ;;  %15128 = vmatmul.mubr.f32.vlgmr.msra.gmra.mxu1 %v23016_v25 }
 0xaa0   : > { %15271 = vmatprep.subr.mxu1 %v24495_v8  ;;  %14984 = vmatpush1.msra.mxu0 %v24567_v54 }
 0xaa1   : > { %15273 = vmatpush1.msra.mxu1 %v24496_v33  ;;  %14987 = vmatprep.subr.mxu0 %v24568_v9 }
 0xaa2   : > { %15275 = vmatprep.subr.mxu1 %v24497_v19  ;;  %14824 = vmatprep.mubr.f32.mxu0 %v24599_v60 }
 0xaa3   : > { %14990 = vmatpush1.msra.mxu0 %v24569_v55  ;;  %15133 = vmatprep.mubr.f32.mxu1 %v24599_v60 }
 0xaa4   : > { %15277 = vmatpush1.msra.mxu1 %v24501_v14  ;;  %14830 = vmatmul.mubr.f32.gmra.mxu0 %v23043_v59 }
 0xaa5   : > { %14993 = vmatprep.subr.mxu0 %v24570_v45  ;;  %15137 = vmatmul.mubr.f32.gmra.mxu1 %v23020_v51 }
 0xaa6   : > { %15279 = vmatprep.subr.mxu1 %v24502_v30  ;;  %14996 = vmatpush1.msra.mxu0 %v24571_v44 }
 0xaa7   : > { %15281 = vmatpush1.msra.mxu1 %v24505_v15  ;;  %14999 = vmatprep.subr.mxu0 %v24600_v40 }
 0xaa8   : > { %15283 = vmatprep.subr.mxu1 %v24506_v26  ;;  %15002 = vmatpush1.msra.mxu0 %v24601_v38 }
 0xaa9   : > { %15035 = vmatprep.mubr.f32.mxu0 %v24599_v60  ;;  %15285 = vmatpush1.msra.mxu1 %v24509_v11 }
 0xaaa   : > { %15318 = vmatprep.mubr.f32.mxu1 %v24599_v60  ;;  %15038 = vmatmul.mubr.f32.vlgmr.msra.gmra.mxu0 %v23010_v24 }
 0xaab   : > { %15170 = vmatprep.subr.mxu0 %v24602_v52  ;;  %15320 = vmatmul.mubr.f32.vlgmr.msra.gmra.mxu1 %v23004_v29 }
 0xaac   : > { %15457 = vmatprep.subr.mxu1 %v24603_v2  ;;  %15174 = vmatpush1.msra.mxu0 %v24604_v34 }
 0xaad   : > { %15463 = vmatpush1.msra.mxu1 %v24605_v22  ;;  %15178 = vmatprep.subr.mxu0 %v24606_v35 }
 0xaae   : > { %15469 = vmatprep.subr.mxu1 %v24607_v58  ;;  %15043 = vmatprep.mubr.f32.mxu0 %v24599_v60 }
 0xaaf   : > { %15182 = vmatpush1.msra.mxu0 %v24608_v0  ;;  %15325 = vmatprep.mubr.f32.mxu1 %v24599_v60 }
 0xab0   : > { %15475 = vmatpush1.msra.mxu1 %v24609_v31  ;;  %15046 = vmatmul.mubr.f32.gmra.mxu0 %v23007_v56 }
 0xab1   : > { %15186 = vmatprep.subr.mxu0 %v24610_v57  ;;  %15327 = vmatmul.mubr.f32.gmra.mxu1 %v23000_v49 }
 0xab2   : > { %15481 = vmatprep.subr.mxu1 %v24611_v41  ;;  %15190 = vmatpush1.msra.mxu0 %v24612_v12 }
 0xab3   : > { %15487 = vmatpush1.msra.mxu1 %v24613_v18  ;;  %15194 = vmatprep.subr.mxu0 %v24614_v53 }
 0xab4   : > { %15493 = vmatprep.subr.mxu1 %v24615_v4  ;;  %15198 = vmatpush1.msra.mxu0 %v24616_v48 }
 0xab5   : > { %15231 = vmatprep.mubr.f32.mxu0 %v24599_v60  ;;  %15499 = vmatpush1.msra.mxu1 %v24617_v61  ;;  %v24628_v61 = vld [vmem:[#allocation83_spill] sm:$0xff] }
 0xab6   : > { %15532 = vmatprep.mubr.f32.mxu1 %v24599_v60  ;;  %15233 = vmatmul.mubr.f32.vlgmr.msra.gmra.mxu0 %v23004_v29 }
 0xab7   : > { %15358 = vmatprep.subr.mxu0 %v24536_v1  ;;  %15534 = vmatmul.mubr.f32.vlgmr.msra.gmra.mxu1 %v23004_v29 }
 0xab8   : > { %15669 = vmatprep.subr.mxu1 %v24536_v1  ;;  %15360 = vmatpush1.msra.mxu0 %v24618_v17 }
 0xab9   : > { %15671 = vmatpush1.msra.mxu1 %v24618_v17  ;;  %15362 = vmatprep.subr.mxu0 %v24619_v36 }
 0xaba   : > { %15673 = vmatprep.subr.mxu1 %v24619_v36  ;;  %15238 = vmatprep.mubr.f32.mxu0 %v24599_v60 }
 0xabb   : > { %15364 = vmatpush1.msra.mxu0 %v24620_v20  ;;  %15539 = vmatprep.mubr.f32.mxu1 %v24599_v60 }
 0xabc   : > { %15675 = vmatpush1.msra.mxu1 %v24620_v20  ;;  %15240 = vmatmul.mubr.f32.gmra.mxu0 %v23000_v49 }
 0xabd   : > { %15366 = vmatprep.subr.mxu0 %v24621_v10  ;;  %15541 = vmatmul.mubr.f32.gmra.mxu1 %v23000_v49 }
 0xabe   : > { %15677 = vmatprep.subr.mxu1 %v24621_v10  ;;  %15368 = vmatpush1.msra.mxu0 %v24622_v28 }
 0xabf   : > { %15679 = vmatpush1.msra.mxu1 %v24622_v28  ;;  %15370 = vmatprep.subr.mxu0 %v24623_v37 }
 0xac0   : > { %15681 = vmatprep.subr.mxu1 %v24623_v37  ;;  %15372 = vmatpush1.msra.mxu0 %v24624_v43 }
 0xac1   : > { %15405 = vmatprep.mubr.f32.mxu0 %v24599_v60  ;;  %15683 = vmatpush1.msra.mxu1 %v24624_v43 }
 0xac2   : > { %15716 = vmatprep.mubr.f32.mxu1 %v24599_v60  ;;  %15411 = vmatmul.mubr.f32.vlgmr.msra.gmra.mxu0 %v23030_v16  ;;  %v24629_v16 = vld [vmem:[#allocation86_spill] sm:$0xff] }
 0xac3   : > { %15573 = vmatprep.subr.mxu0 %v24625_v63  ;;  %15720 = vmatmul.mubr.f32.vlgmr.msra.gmra.mxu1 %v23016_v25  ;;  %v14723_v25 = vmul.f32 %v22996_v39, %v22988_v7  ;;  %v24632_v63 = vld [vmem:[#allocation96_spill] sm:$0xff]  ;;  %v14724_v7 = vmul.f32 %v22994_v27, %v22986_v21  ;;  %v24633_v39 = vld [vmem:[#allocation79_spill] sm:$0xff] }
 0xac4   : > { %15863 = vmatprep.subr.mxu1 %v24536_v1  ;;  %15576 = vmatpush1.msra.mxu0 %v24626_v6  ;;  %v24630_v6 = vld [vmem:[#allocation89_spill] sm:$0xff]  ;;  %v24636_v27 = vld [vmem:[#allocation88_spill] sm:$0xff] }
 0xac5   : > { %15865 = vmatpush1.msra.mxu1 %v24618_v17  ;;  %15579 = vmatprep.subr.mxu0 %v24627_v50  ;;  %v14727_v50 = vpop.permute.xlu1 %14726 }
 0xac6   : > { %15867 = vmatprep.subr.mxu1 %v24619_v36  ;;  %15416 = vmatprep.mubr.f32.mxu0 %v24599_v60 }
 0xac7   : > { %15582 = vmatpush1.msra.mxu0 %v24628_v61  ;;  %15725 = vmatprep.mubr.f32.mxu1 %v24599_v60  ;;  %v24631_v61 = vld [vmem:[#allocation93_spill] sm:$0xff] }
 0xac8   : > { %15869 = vmatpush1.msra.mxu1 %v24620_v20  ;;  %15422 = vmatmul.mubr.f32.gmra.mxu0 %v23043_v59  ;;  %v14733_v59 = vsub.f32 %v14727_v50, %v14723_v25  ;;  %v24635_v25 = vld [vmem:[#allocation85_spill] sm:$0xff] }
 0xac9   : > { %15585 = vmatprep.subr.mxu0 %v24629_v16  ;;  %15729 = vmatmul.mubr.f32.gmra.mxu1 %v23020_v51  ;;  %v14731_v51 = vpop.permute.xlu1 %14730 }
 0xaca   : > { %15871 = vmatprep.subr.mxu1 %v24621_v10  ;;  %15588 = vmatpush1.msra.mxu0 %v24630_v6  ;;  %v15934_v50 = vsel %vm5239_vm2, %v14733_v59, 0  ;;  %v14734_v21 = vsub.f32 %v14731_v51, %v14724_v7  ;;  %v24639_v59 = vld [vmem:[#allocation98_spill] sm:$0xff] }
 0xacb   : > { %15873 = vmatpush1.msra.mxu1 %v24622_v28  ;;  %15591 = vmatprep.subr.mxu0 %v24631_v61 }
 0xacc   : > { %15875 = vmatprep.subr.mxu1 %v24623_v37  ;;  %15594 = vmatpush1.msra.mxu0 %v24632_v63  ;;  %v24634_v63 = vld [vmem:[#allocation82_spill] sm:$0xff] }
 0xacd   : > { %15627 = vmatprep.mubr.f32.mxu0 %v24599_v60  ;;  %15877 = vmatpush1.msra.mxu1 %v24624_v43 }
 0xace   : > { %15910 = vmatprep.mubr.f32.mxu1 %v24599_v60  ;;  %15630 = vmatmul.mubr.f32.vlgmr.msra.gmra.mxu0 %v23010_v24  ;;  %v23148_v24 = vand.u32 4294901760, %v15934_v50 }
 0xacf   : > { %15762 = vmatprep.subr.mxu0 %v24633_v39  ;;  %15912 = vmatmul.mubr.f32.vlgmr.msra.gmra.mxu1 %v23004_v29 }
 0xad0   : > { %16063 = vmatprep.subr.mxu1 %v24498_v5  ;;  %15766 = vmatpush1.msra.mxu0 %v24634_v63  ;;  %v24637_v5 = vld [vmem:[#allocation92_spill] sm:$0xff]  ;;  %v23160_v7 = vsub.f32 %v15934_v50, %v23148_v24 }
 0xad1   : > { %16069 = vmatpush1.msra.mxu1 %v24499_v46  ;;  %15770 = vmatprep.subr.mxu0 %v24635_v25  ;;  %v24638_v46 = vld [vmem:[#allocation94_spill] sm:$0xff] }
 0xad2   : > { %16075 = vmatprep.subr.mxu1 %v24500_v42  ;;  %15635 = vmatprep.mubr.f32.mxu0 %v24599_v60  ;;  %v15937_v42 = vsel %vm5239_vm2, %v14734_v21, 0  ;;  %vm17229_vm2 = vcmask 64512  }
 0xad3   : > { %15774 = vmatpush1.msra.mxu0 %v24636_v27  ;;  %15917 = vmatprep.mubr.f32.mxu1 %v24599_v60 }
 0xad4   : > { %16081 = vmatpush1.msra.mxu1 %v24503_v23  ;;  %15638 = vmatmul.mubr.f32.gmra.mxu0 %v23007_v56  ;;  %v24640_v23 = vld [vmem:[#allocation102_spill] sm:$0xff] }
 0xad5   : > { %15778 = vmatprep.subr.mxu0 %v24637_v5  ;;  %15919 = vmatmul.mubr.f32.gmra.mxu1 %v23000_v49 }
 0xad6   : > { %16087 = vmatprep.subr.mxu1 %v24504_v62  ;;  %15782 = vmatpush1.msra.mxu0 %v24638_v46  ;;  %v23166_v62 = vand.u32 4294901760, %v15937_v42 }
 0xad7   : > { %16093 = vmatpush1.msra.mxu1 %v24507_v47  ;;  %15786 = vmatprep.subr.mxu0 %v24639_v59  ;;  %v23173_v47 = vand.u32 4294901760, %v23160_v7 }
 0xad8   : > { %16099 = vmatprep.subr.mxu1 %v24508_v32  ;;  %15790 = vmatpush1.msra.mxu0 %v24640_v23  ;;  %v23180_v32 = vsub.f32 %v15937_v42, %v23166_v62 }
 0xad9   : > { %15823 = vmatprep.mubr.f32.mxu0 %v24599_v60  ;;  %16105 = vmatpush1.msra.mxu1 %v24511_v13  ;;  %v16015_v13 = vsub.f32 %v23160_v7, %v23173_v47 }
 0xada   : > { %16138 = vmatprep.mubr.f32.mxu1 %v24599_v60  ;;  %15825 = vmatmul.mubr.f32.vlgmr.msra.gmra.mxu0 %v23004_v29  ;;  %v23193_v29 = vand.u32 4294901760, %v23180_v32 }
 0xadb   : > { %15964 = vmatprep.subr.mxu0 %v24495_v8  ;;  %16140 = vmatmul.mubr.f32.vlgmr.msra.gmra.mxu1 %v23148_v24  ;;  %v23199_v56 = vand.u32 4294901760, %v16015_v13 }
 0xadc   : > { %16275 = vmatprep.subr.mxu1 %v24495_v8  ;;  %15966 = vmatpush1.msra.mxu0 %v24496_v33 }
 0xadd   : > { %16277 = vmatpush1.msra.mxu1 %v24496_v33  ;;  %15968 = vmatprep.subr.mxu0 %v24497_v19 }
 0xade   : > { %16279 = vmatprep.subr.mxu1 %v24497_v19  ;;  %15830 = vmatprep.mubr.f32.mxu0 %v24599_v60 }
 0xadf   : > { %15970 = vmatpush1.msra.mxu0 %v24501_v14  ;;  %16145 = vmatprep.mubr.f32.mxu1 %v24599_v60 }
 0xae0   : > { %16281 = vmatpush1.msra.mxu1 %v24501_v14  ;;  %15832 = vmatmul.mubr.f32.gmra.mxu0 %v23000_v49  ;;  %v16026_v49 = vsub.f32 %v23180_v32, %v23193_v29 }
 0xae1   : > { %15972 = vmatprep.subr.mxu0 %v24502_v30  ;;  %16147 = vmatmul.mubr.f32.gmra.mxu1 %v23166_v62 }
 0xae2   : > { %16283 = vmatprep.subr.mxu1 %v24502_v30  ;;  %15974 = vmatpush1.msra.mxu0 %v24505_v15  ;;  %v23217_v51 = vand.u32 4294901760, %v16026_v49 }
 0xae3   : > { %16285 = vmatpush1.msra.mxu1 %v24505_v15  ;;  %15976 = vmatprep.subr.mxu0 %v24506_v26 }
 0xae4   : > { %16287 = vmatprep.subr.mxu1 %v24506_v26  ;;  %15978 = vmatpush1.msra.mxu0 %v24509_v11 }
 0xae5   : > { %16011 = vmatprep.mubr.f32.mxu0 %v24599_v60  ;;  %16289 = vmatpush1.msra.mxu1 %v24509_v11 }
 0xae6   : > { %16322 = vmatprep.mubr.f32.mxu1 %v24599_v60  ;;  %16017 = vmatmul.mubr.f32.vlgmr.msra.gmra.mxu0 %v23199_v56 }
 0xae7   : > { %16179 = vmatprep.subr.mxu0 %v24510_v3  ;;  %16326 = vmatmul.mubr.f32.vlgmr.msra.gmra.mxu1 %v23173_v47 }
 0xae8   : > { %16469 = vmatprep.subr.mxu1 %v24495_v8  ;;  %16182 = vmatpush1.msra.mxu0 %v24567_v54  ;;  %v24641_v8 = vld [vmem:[#allocation108_spill] sm:$0xff] }
 0xae9   : > { %16471 = vmatpush1.msra.mxu1 %v24496_v33  ;;  %16185 = vmatprep.subr.mxu0 %v24568_v9  ;;  %v24642_v33 = vld [vmem:[#allocation75_spill] sm:$0xff]  ;;  %v24646_v9 = vld [vmem:[#allocation96_spill] sm:$0xff] }
 0xaea   : > { %16473 = vmatprep.subr.mxu1 %v24497_v19  ;;  %16022 = vmatprep.mubr.f32.mxu0 %v24599_v60  ;;  %v24643_v19 = vld [vmem:[#allocation77_spill] sm:$0xff] }
 0xaeb   : > { %16188 = vmatpush1.msra.mxu0 %v24569_v55  ;;  %16331 = vmatprep.mubr.f32.mxu1 %v24599_v60 }
 0xaec   : > { %16475 = vmatpush1.msra.mxu1 %v24501_v14  ;;  %16028 = vmatmul.mubr.f32.gmra.mxu0 %v23217_v51  ;;  %v24644_v14 = vld [vmem:[#allocation80_spill] sm:$0xff] }
 0xaed   : > { %16191 = vmatprep.subr.mxu0 %v24570_v45  ;;  %16335 = vmatmul.mubr.f32.gmra.mxu1 %v23193_v29  ;;  %v24647_v45 = vld [vmem:[#allocation27_spill] sm:$0xff] }
 0xaee   : > { %16477 = vmatprep.subr.mxu1 %v24502_v30  ;;  %16194 = vmatpush1.msra.mxu0 %v24571_v44  ;;  %v17219_v30 = vld [vmem:[%s23697_s5] sm:$0xff] }
 0xaef   : > { %16479 = vmatpush1.msra.mxu1 %v24505_v15  ;;  %16197 = vmatprep.subr.mxu0 %v24600_v40  ;;  %v24645_v15 = vld [vmem:[#allocation83_spill] sm:$0xff] }
 0xaf0   : > { %16481 = vmatprep.subr.mxu1 %v24506_v26  ;;  %16200 = vmatpush1.msra.mxu0 %v24601_v38  ;;  %v17231_v26 = vsel %vm17229_vm2, %v17219_v30, 0  ;;  %v24648_v38 = vld [vmem:[#allocation28_spill] sm:$0xff] }
 0xaf1   : > { %16233 = vmatprep.mubr.f32.mxu0 %v24599_v60  ;;  %16483 = vmatpush1.msra.mxu1 %v24509_v11  ;;  %v17220_v11 = vld [vmem:[%s23697_s5 + $0x8] sm:$0xff]  ;;  %v23308_v3 = vand.u32 4294901760, %v17231_v26 }
 0xaf2   : > { %16516 = vmatprep.mubr.f32.mxu1 %v24599_v60  ;;  %16236 = vmatmul.mubr.f32.vlgmr.msra.gmra.mxu0 %v23160_v7  ;;  %v17234_v54 = vsel %vm17229_vm2, %v17220_v11, 0 }
 0xaf3   : > { %16368 = vmatprep.subr.mxu0 %v24602_v52  ;;  %16518 = vmatmul.mubr.f32.vlgmr.msra.gmra.mxu1 %v23148_v24  ;;  %v23322_v55 = vand.u32 4294901760, %v17234_v54  ;;  %v24649_v52 = vld [vmem:[#allocation21_spill] sm:$0xff] }
 0xaf4   : > { %16655 = vmatprep.subr.mxu1 %v24603_v2  ;;  %16372 = vmatpush1.msra.mxu0 %v24604_v34 }
 0xaf5   : > { %16661 = vmatpush1.msra.mxu1 %v24605_v22  ;;  %16376 = vmatprep.subr.mxu0 %v24606_v35  ;;  %v23336_v40 = vsub.f32 %v17234_v54, %v23322_v55  ;;  %v24650_v22 = vld [vmem:[#allocation22_spill] sm:$0xff]  ;;  %v24651_v35 = vld [vmem:[#allocation23_spill] sm:$0xff] }
 0xaf6   : > { %16667 = vmatprep.subr.mxu1 %v24607_v58  ;;  %16241 = vmatprep.mubr.f32.mxu0 %v24599_v60 }
 0xaf7   : > { %16380 = vmatpush1.msra.mxu0 %v24608_v0  ;;  %16523 = vmatprep.mubr.f32.mxu1 %v24599_v60  ;;  %v23349_v34 = vand.u32 4294901760, %v23336_v40 }
 0xaf8   : > { %16673 = vmatpush1.msra.mxu1 %v24609_v31  ;;  %16244 = vmatmul.mubr.f32.gmra.mxu0 %v23180_v32  ;;  %v19255_v31 = vmov 7  }
 0xaf9   : > { %16384 = vmatprep.subr.mxu0 %v24610_v57  ;;  %16525 = vmatmul.mubr.f32.gmra.mxu1 %v23166_v62  ;;  %v17317_v0 = vsub.f32 %v23336_v40, %v23349_v34  ;;  %v19020_v57 = vld [vmem:[%s23698_s6] sm:$0xff] }
 0xafa   : > { %16679 = vmatprep.subr.mxu1 %v24611_v41  ;;  %16388 = vmatpush1.msra.mxu0 %v24612_v12  ;;  %v24652_v12 = vld [vmem:[#allocation24_spill] sm:$0xff] }
 0xafb   : > { %16685 = vmatpush1.msra.mxu1 %v24613_v18  ;;  %16392 = vmatprep.subr.mxu0 %v24614_v53  ;;  %v17318_v41 = vand.u32 4294901760, %v17317_v0  ;;  %v24653_v18 = vld [vmem:[#allocation25_spill] sm:$0xff]  ;;  %v19021_v53 = vld [vmem:[%s23698_s6 + $0x8] sm:$0xff] }
 0xafc   : > { %16691 = vmatprep.subr.mxu1 %v24615_v4  ;;  %16396 = vmatpush1.msra.mxu0 %v24616_v48  ;;  %v24654_v4 = vld [vmem:[#allocation35_spill] sm:$0xff]  ;;  %v24655_v48 = vld [vmem:[#allocation26_spill] sm:$0xff] }
 0xafd   : > { %16429 = vmatprep.mubr.f32.mxu0 %v24599_v60  ;;  %16697 = vmatpush1.msra.mxu1 %v24641_v8 }
 0xafe   : > { %16730 = vmatprep.mubr.f32.mxu1 %v24599_v60  ;;  %16431 = vmatmul.mubr.f32.vlgmr.msra.gmra.mxu0 %v23148_v24 }
 0xaff   : > { %16556 = vmatprep.subr.mxu0 %v24536_v1  ;;  %16732 = vmatmul.mubr.f32.vlgmr.msra.gmra.mxu1 %v23148_v24 }
 0xb00   : > { %16867 = vmatprep.subr.mxu1 %v24536_v1  ;;  %16558 = vmatpush1.msra.mxu0 %v24618_v17 }
 0xb01   : > { %16869 = vmatpush1.msra.mxu1 %v24618_v17  ;;  %16560 = vmatprep.subr.mxu0 %v24619_v36 }
 0xb02   : > { %16871 = vmatprep.subr.mxu1 %v24619_v36  ;;  %16436 = vmatprep.mubr.f32.mxu0 %v24599_v60 }
 0xb03   : > { %16562 = vmatpush1.msra.mxu0 %v24620_v20  ;;  %16737 = vmatprep.mubr.f32.mxu1 %v24599_v60 }
 0xb04   : > { %16873 = vmatpush1.msra.mxu1 %v24620_v20  ;;  %16438 = vmatmul.mubr.f32.gmra.mxu0 %v23166_v62 }
 0xb05   : > { %16564 = vmatprep.subr.mxu0 %v24621_v10  ;;  %16739 = vmatmul.mubr.f32.gmra.mxu1 %v23166_v62 }
 0xb06   : > { %16875 = vmatprep.subr.mxu1 %v24621_v10  ;;  %16566 = vmatpush1.msra.mxu0 %v24622_v28 }
 0xb07   : > { %16877 = vmatpush1.msra.mxu1 %v24622_v28  ;;  %16568 = vmatprep.subr.mxu0 %v24623_v37 }
 0xb08   : > { %16879 = vmatprep.subr.mxu1 %v24623_v37  ;;  %16570 = vmatpush1.msra.mxu0 %v24624_v43 }
 0xb09   : > { %16603 = vmatprep.mubr.f32.mxu0 %v24599_v60  ;;  %16881 = vmatpush1.msra.mxu1 %v24624_v43 }
 0xb0a   : > { %16914 = vmatprep.mubr.f32.mxu1 %v24599_v60  ;;  %16609 = vmatmul.mubr.f32.vlgmr.msra.gmra.mxu0 %v23199_v56 }
 0xb0b   : > { %16771 = vmatprep.subr.mxu0 %v24642_v33  ;;  %16918 = vmatmul.mubr.f32.vlgmr.msra.gmra.mxu1 %v23173_v47 }
 0xb0c   : > { %17061 = vmatprep.subr.mxu1 %v24536_v1  ;;  %16774 = vmatpush1.msra.mxu0 %v24643_v19  ;;  %v23320_v1 = vsub.f32 %v17231_v26, %v23308_v3 }
 0xb0d   : > { %17063 = vmatpush1.msra.mxu1 %v24618_v17  ;;  %16777 = vmatprep.subr.mxu0 %v24644_v14  ;;  %v24657_v17 = vld [vmem:[#allocation36_spill] sm:$0xff] }
 0xb0e   : > { %17065 = vmatprep.subr.mxu1 %v24619_v36  ;;  %16614 = vmatprep.mubr.f32.mxu0 %v24599_v60  ;;  %v23333_v44 = vand.u32 4294901760, %v23320_v1  ;;  %v24658_v36 = vld [vmem:[#allocation30_spill] sm:$0xff] }
 0xb0f   : > { %16780 = vmatpush1.msra.mxu0 %v24645_v15  ;;  %16923 = vmatprep.mubr.f32.mxu1 %v24599_v60 }
 0xb10   : > { %17067 = vmatpush1.msra.mxu1 %v24620_v20  ;;  %16620 = vmatmul.mubr.f32.gmra.mxu0 %v23217_v51  ;;  %v17306_v2 = vsub.f32 %v23320_v1, %v23333_v44  ;;  %v24659_v20 = vld [vmem:[#allocation31_spill] sm:$0xff] }
 0xb11   : > { %16783 = vmatprep.subr.mxu0 %v24629_v16  ;;  %16927 = vmatmul.mubr.f32.gmra.mxu1 %v23193_v29 }
 0xb12   : > { %17069 = vmatprep.subr.mxu1 %v24621_v10  ;;  %16786 = vmatpush1.msra.mxu0 %v24630_v6  ;;  %v17307_v58 = vand.u32 4294901760, %v17306_v2  ;;  %v24660_v10 = vld [vmem:[#allocation32_spill] sm:$0xff] }
 0xb13   : > { %17071 = vmatpush1.msra.mxu1 %v24622_v28  ;;  %16789 = vmatprep.subr.mxu0 %v24631_v61  ;;  %v24656_v61 = vld [vmem:[#allocation29_spill] sm:$0xff] }
 0xb14   : > { %17073 = vmatprep.subr.mxu1 %v24623_v37  ;;  %16792 = vmatpush1.msra.mxu0 %v24646_v9  ;;  %v24661_v28 = vld [vmem:[#allocation33_spill] sm:$0xff]  ;;  %v24662_v37 = vld [vmem:[#allocation34_spill] sm:$0xff] }
 0xb15   : > { %16825 = vmatprep.mubr.f32.mxu0 %v24599_v60  ;;  %17075 = vmatpush1.msra.mxu1 %v24624_v43 }
 0xb16   : > { %17108 = vmatprep.mubr.f32.mxu1 %v24599_v60  ;;  %16828 = vmatmul.mubr.f32.vlgmr.msra.gmra.mxu0 %v23160_v7 }
 0xb17   : > { %16960 = vmatprep.subr.mxu0 %v24633_v39  ;;  %17110 = vmatmul.mubr.f32.vlgmr.msra.gmra.mxu1 %v23148_v24 }
 0xb18   : > { %16964 = vmatpush1.msra.mxu0 %v24634_v63  ;;  %16833 = vmatprep.mubr.f32.mxu0 %v24599_v60 }
 0xb19   : > { %16968 = vmatprep.subr.mxu0 %v24635_v25  ;;  %17115 = vmatprep.mubr.f32.mxu1 %v24599_v60 }
 0xb1a   : > { %16972 = vmatpush1.msra.mxu0 %v24636_v27  ;;  %17360 = vmatprep.subr.mxu1 %v24647_v45 }
 0xb1b   : > { %16836 = vmatmul.mubr.f32.gmra.mxu0 %v23180_v32  ;;  %16976 = vmatprep.subr.mxu0 %v24637_v5 }
 0xb1c   : > { %17117 = vmatmul.mubr.f32.gmra.mxu1 %v23166_v62  ;;  %16980 = vmatpush1.msra.mxu0 %v24638_v46 }
 0xb1d   : > { %16984 = vmatprep.subr.mxu0 %v24639_v59  ;;  %17021 = vmatprep.mubr.f32.mxu0 %v24599_v60 }
 0xb1e   : > { %16988 = vmatpush1.msra.mxu0 %v24640_v23  ;;  %17366 = vmatpush1.msra.mxu1 %v24648_v38 }
 0xb1f   : > { %17023 = vmatmul.mubr.f32.vlgmr.msra.gmra.mxu0 %v23148_v24  ;;  %17267 = vmatprep.subr.mxu0 %v24649_v52 }
 0xb20   : > { %17269 = vmatpush1.msra.mxu0 %v24650_v22  ;;  %17028 = vmatprep.mubr.f32.mxu0 %v24599_v60 }
 0xb21   : > { %17399 = vmatprep.mubr.f32.mxu1 %v24599_v60  ;;  %17446 = vmatprep.subr.mxu0 %v24651_v35 }
 0xb22   : > { %17401 = vmatmul.mubr.f32.vlgmr.msra.gmra.mxu1 %v23308_v3  ;;  %17530 = vmatprep.subr.mxu1 %v24649_v52 }
 0xb23   : > { %17030 = vmatmul.mubr.f32.gmra.mxu0 %v23166_v62  ;;  %17532 = vmatpush1.msra.mxu1 %v24650_v22 }
 0xb24   : > { %17302 = vmatprep.mubr.f32.mxu0 %v24599_v60  ;;  %17406 = vmatprep.mubr.f32.mxu1 %v24599_v60 }
 0xb25   : > { %17700 = vmatprep.subr.mxu1 %v24649_v52  ;;  %18922 = vset.pattern.permute.xlu0 %v19255_v31 }
 0xb26   : > { %17408 = vmatmul.mubr.f32.gmra.mxu1 %v23322_v55  ;;  %17222 = vperm.xlu0 %18922, %v19020_v57  }
 0xb27   : > { %17308 = vmatmul.mubr.f32.vlgmr.msra.gmra.mxu0 %v17307_v58  ;;  %17565 = vmatprep.mubr.f32.mxu1 %v24599_v60 }
 0xb28   : > { %17449 = vmatpush1.msra.mxu0 %v24652_v12  ;;  %17313 = vmatprep.mubr.f32.mxu0 %v24599_v60 }
 0xb29   : > { %17617 = vmatprep.subr.mxu0 %v24653_v18  ;;  %18923 = vset.pattern.permute.xlu1 %v19255_v31 }
 0xb2a   : > { %17569 = vmatmul.mubr.f32.vlgmr.msra.gmra.mxu1 %v23333_v44  ;;  %17226 = vperm.xlu1 %18923, %v19021_v53  }
 0xb2b   : > { %17319 = vmatmul.mubr.f32.gmra.mxu0 %v17318_v41  ;;  %17702 = vmatpush1.msra.mxu1 %v24650_v22 }
 0xb2c   : > { %17482 = vmatprep.mubr.f32.mxu0 %v24599_v60  ;;  %17574 = vmatprep.mubr.f32.mxu1 %v24599_v60 }
 0xb2d   : > { %17874 = vmatprep.subr.mxu1 %v24654_v4 }
 0xb2e   : > { %17578 = vmatmul.mubr.f32.gmra.mxu1 %v23349_v34 }
 0xb2f   : > { %17485 = vmatmul.mubr.f32.vlgmr.msra.gmra.mxu0 %v23320_v1  ;;  %17735 = vmatprep.mubr.f32.mxu1 %v24599_v60 }
 0xb30   : > { %17621 = vmatpush1.msra.mxu0 %v24655_v48  ;;  %17490 = vmatprep.mubr.f32.mxu0 %v24599_v60 }
 0xb31   : > { %17781 = vmatprep.subr.mxu0 %v24656_v61 }
 0xb32   : > { %17737 = vmatmul.mubr.f32.vlgmr.msra.gmra.mxu1 %v23308_v3 }
 0xb33   : > { %17493 = vmatmul.mubr.f32.gmra.mxu0 %v23336_v40  ;;  %17880 = vmatpush1.msra.mxu1 %v24657_v17 }
 0xb34   : > { %17654 = vmatprep.mubr.f32.mxu0 %v24599_v60  ;;  %17742 = vmatprep.mubr.f32.mxu1 %v24599_v60 }
 0xb35   : > { %18044 = vmatprep.subr.mxu1 %v24656_v61 }
 0xb36   : > { %17744 = vmatmul.mubr.f32.gmra.mxu1 %v23322_v55 }
 0xb37   : > { %17656 = vmatmul.mubr.f32.vlgmr.msra.gmra.mxu0 %v23308_v3  ;;  %17913 = vmatprep.mubr.f32.mxu1 %v24599_v60 }
 0xb38   : > { %17783 = vmatpush1.msra.mxu0 %v24658_v36  ;;  %17661 = vmatprep.mubr.f32.mxu0 %v24599_v60 }
 0xb39   : > { %17960 = vmatprep.subr.mxu0 %v24659_v20 }
 0xb3a   : > { %17915 = vmatmul.mubr.f32.vlgmr.msra.gmra.mxu1 %v23308_v3 }
 0xb3b   : > { %17663 = vmatmul.mubr.f32.gmra.mxu0 %v23322_v55  ;;  %18046 = vmatpush1.msra.mxu1 %v24658_v36 }
 0xb3c   : > { %17816 = vmatprep.mubr.f32.mxu0 %v24599_v60  ;;  %17920 = vmatprep.mubr.f32.mxu1 %v24599_v60 }
 0xb3d   : > { %18214 = vmatprep.subr.mxu1 %v24656_v61 }
 0xb3e   : > { %17922 = vmatmul.mubr.f32.gmra.mxu1 %v23322_v55 }
 0xb3f   : > { %17822 = vmatmul.mubr.f32.vlgmr.msra.gmra.mxu0 %v17307_v58  ;;  %18079 = vmatprep.mubr.f32.mxu1 %v24599_v60 }
 0xb40   : > { %17963 = vmatpush1.msra.mxu0 %v24660_v10  ;;  %17827 = vmatprep.mubr.f32.mxu0 %v24599_v60 }
 0xb41   : > { %18131 = vmatprep.subr.mxu0 %v24661_v28 }
 0xb42   : > { %18083 = vmatmul.mubr.f32.vlgmr.msra.gmra.mxu1 %v23333_v44 }
 0xb43   : > { %17833 = vmatmul.mubr.f32.gmra.mxu0 %v17318_v41  ;;  %18216 = vmatpush1.msra.mxu1 %v24658_v36 }
 0xb44   : > { %17996 = vmatprep.mubr.f32.mxu0 %v24599_v60  ;;  %18088 = vmatprep.mubr.f32.mxu1 %v24599_v60 }
 0xb46   : > { %18092 = vmatmul.mubr.f32.gmra.mxu1 %v23349_v34 }
 0xb47   : > { %17999 = vmatmul.mubr.f32.vlgmr.msra.gmra.mxu0 %v23320_v1  ;;  %18249 = vmatprep.mubr.f32.mxu1 %v24599_v60 }
 0xb48   : > { %18135 = vmatpush1.msra.mxu0 %v24662_v37  ;;  %18004 = vmatprep.mubr.f32.mxu0 %v24599_v60 }
 0xb4a   : > { %18251 = vmatmul.mubr.f32.vlgmr.msra.gmra.mxu1 %v23308_v3 }
 0xb4b   : > { %18007 = vmatmul.mubr.f32.gmra.mxu0 %v23336_v40  ;;  %18256 = vmatprep.mubr.f32.mxu1 %v24599_v60 }
 0xb4c   : > { %18168 = vmatprep.mubr.f32.mxu0 %v24599_v60 }
 0xb4e   : > { %18258 = vmatmul.mubr.f32.gmra.mxu1 %v23322_v55 }
 0xb4f   : > { %18170 = vmatmul.mubr.f32.vlgmr.msra.gmra.mxu0 %v23308_v3 }
 0xb50   : > { %18175 = vmatprep.mubr.f32.mxu0 %v24599_v60 }
 0xb53   : > { %18177 = vmatmul.mubr.f32.gmra.mxu0 %v23322_v55 }
 0xb57   : > { %v14943_v43 = vpop.f32.mrf.mxu1 }
 0xb59   : > { %v14945_v63 = vpop.f32.mrf.mxu1 }
 0xb5b   : > { %v23426_v6 = vpop.f32.mrf.mxu1 }
 0xb5d   : > { %v23428_v16 = vpop.f32.mrf.mxu1 }
 0xb5f   : > { %v14820_v39 = vpop.f32.mrf.mxu0  ;;  %v23430_v50 = vpop.f32.mrf.mxu1 }
 0xb60   : > { %v14944_v20 = vadd.f32 %v14943_v43, %v14820_v39 }
 0xb61   : > { %v14822_v25 = vpop.f32.mrf.mxu0  ;;  %v23432_v21 = vpop.f32.mrf.mxu1 }
 0xb62   : > { %v14946_v10 = vadd.f32 %v14945_v63, %v14822_v25 }
 0xb64   : > { %v14831_v27 = vpop.f32.mrf.mxu0 }
 0xb65   : > { %v23434_v24 = vpop.f32.mrf.mxu1 }
 0xb66   : > { %v14833_v5 = vpop.f32.mrf.mxu0 }
 0xb67   : > { %v23436_v46 = vpop.f32.mrf.mxu1 }
 0xb6a   : > { %v15039_v60 = vpop.f32.mrf.mxu0 }
 0xb6b   : > { %v23438_v42 = vpop.f32.mrf.mxu1  ;;  %v15040_v37 = vadd.f32 %v15039_v60, %v14944_v20 }
 0xb6c   : > { %v15041_v59 = vpop.f32.mrf.mxu0 }
 0xb6d   : > { %v23440_v7 = vpop.f32.mrf.mxu1 }
 0xb70   : > { %v15047_v23 = vpop.f32.mrf.mxu0 }
 0xb71   : > { %v23442_v62 = vpop.f32.mrf.mxu1 }
 0xb72   : > { %v15049_v47 = vpop.f32.mrf.mxu0 }
 0xb73   : > { %v23444_v32 = vpop.f32.mrf.mxu1 }
 0xb76   : > { %v15234_v13 = vpop.f32.mrf.mxu0 }
 0xb77   : > { %v23446_v29 = vpop.f32.mrf.mxu1 }
 0xb78   : > { %v15236_v56 = vpop.f32.mrf.mxu0 }
 0xb79   : > { %v23448_v49 = vpop.f32.mrf.mxu1 }
 0xb7c   : > { %v23450_v51 = vpop.f32.mrf.mxu0 }
 0xb7d   : > { %v23452_v8 = vpop.f32.mrf.mxu1 }
 0xb7e   : > { %v23454_v33 = vpop.f32.mrf.mxu0 }
 0xb7f   : > { %v23456_v19 = vpop.f32.mrf.mxu1 }
 0xb82   : > { %v23458_v14 = vpop.f32.mrf.mxu0 }
 0xb83   : > { %v23460_v30 = vpop.f32.mrf.mxu1 }
 0xb84   : > { %v23462_v15 = vpop.f32.mrf.mxu0 }
 0xb85   : > { %v23464_v26 = vpop.f32.mrf.mxu1 }
 0xb86   : > { %24663 = vst [vmem:[#allocation136_spill] sm:$0xff] %v23464_v26 }
 0xb88   : > { %v23466_v11 = vpop.f32.mrf.mxu0 }
 0xb89   : > { %v23468_v3 = vpop.f32.mrf.mxu1 }
 0xb8a   : > { %24664 = vst [vmem:[#allocation151_spill] sm:$0xff] %v23468_v3  ;;  %v23470_v9 = vpop.f32.mrf.mxu0  ;;  %v14953_v3 = vadd.f32 %v23428_v16, %v14833_v5 }
 0xb8b   : > { %v23472_v54 = vpop.f32.mrf.mxu1 }
 0xb8c   : > { %24665 = vst [vmem:[#allocation137_spill] sm:$0xff] %v23472_v54  ;;  %v14951_v54 = vadd.f32 %v23426_v6, %v14831_v27  ;;  %v15050_v25 = vadd.f32 %v15049_v47, %v14953_v3 }
 0xb8e   : > { %v23474_v1 = vpop.f32.mrf.mxu0  ;;  %v15141_v5 = vadd.f32 %v23436_v46, %v15050_v25 }
 0xb8f   : > { %v23476_v55 = vpop.f32.mrf.mxu1 }
 0xb90   : > { %24666 = vst [vmem:[#allocation154_spill] sm:$0xff] %v23476_v55  ;;  %v23478_v45 = vpop.f32.mrf.mxu0 }
 0xb91   : > { %v23480_v44 = vpop.f32.mrf.mxu1 }
 0xb92   : > { %24667 = vst [vmem:[#allocation156_spill] sm:$0xff] %v23480_v44 }
 0xb94   : > { %v23482_v40 = vpop.f32.mrf.mxu0 }
 0xb95   : > { %v23484_v38 = vpop.f32.mrf.mxu1 }
 0xb96   : > { %24668 = vst [vmem:[#allocation157_spill] sm:$0xff] %v23484_v38  ;;  %v23486_v52 = vpop.f32.mrf.mxu0  ;;  %v15042_v38 = vadd.f32 %v15041_v59, %v14946_v10 }
 0xb97   : > { %24669 = vst [vmem:[#allocation105_spill] sm:$0xff] %v23486_v52  ;;  %v23488_v2 = vpop.f32.mrf.mxu1 }
 0xb98   : > { %24670 = vst [vmem:[#allocation133_spill] sm:$0xff] %v23488_v2 }
 0xb9a   : > { %v23490_v34 = vpop.f32.mrf.mxu0 }
 0xb9b   : > { %24671 = vst [vmem:[#allocation135_spill] sm:$0xff] %v23490_v34  ;;  %v16141_v22 = vpop.f32.mrf.mxu1  ;;  %v15132_v34 = vadd.f32 %v23432_v21, %v15042_v38 }
 0xb9c   : > { %v23492_v35 = vpop.f32.mrf.mxu0 }
 0xb9d   : > { %24672 = vst [vmem:[#allocation99_spill] sm:$0xff] %v23492_v35  ;;  %v16143_v58 = vpop.f32.mrf.mxu1  ;;  %v15048_v35 = vadd.f32 %v15047_v23, %v14951_v54  ;;  %v15237_v60 = vadd.f32 %v15236_v56, %v15132_v34 }
 0xb9f   : > { %v15139_v6 = vadd.f32 %v23434_v24, %v15048_v35  ;;  %v15324_v16 = vadd.f32 %v23440_v7, %v15237_v60  ;;  %v24675_v24 = vld [vmem:[#allocation69_spill] sm:$0xff] }
 0xba0   : > { %v23494_v0 = vpop.f32.mrf.mxu0 }
 0xba1   : > { %24673 = vst [vmem:[#allocation158_spill] sm:$0xff] %v23494_v0  ;;  %v16148_v31 = vpop.f32.mrf.mxu1  ;;  %v15242_v21 = vadd.f32 %v23450_v51, %v15139_v6  ;;  %v24676_v51 = vld [vmem:[#allocation134_spill] sm:$0xff] }
 0xba2   : > { %v23496_v57 = vpop.f32.mrf.mxu0 }
 0xba3   : > { %24674 = vst [vmem:[#allocation159_spill] sm:$0xff] %v23496_v57  ;;  %v16150_v41 = vpop.f32.mrf.mxu1  ;;  %v15130_v57 = vadd.f32 %v23430_v50, %v15040_v37  ;;  %v15329_v7 = vadd.f32 %v23442_v62, %v15242_v21 }
 0xba5   : > { %v15235_v52 = vadd.f32 %v15234_v13, %v15130_v57 }
 0xba6   : > { %v16018_v12 = vpop.f32.mrf.mxu0 }
 0xba7   : > { %v16327_v18 = vpop.f32.mrf.mxu1  ;;  %v16142_v0 = vadd.f32 %v16141_v22, %v16018_v12  ;;  %v15322_v50 = vadd.f32 %v23438_v42, %v15235_v52 }
 0xba8   : > { %v16020_v53 = vpop.f32.mrf.mxu0 }
 0xba9   : > { %v16329_v4 = vpop.f32.mrf.mxu1  ;;  %v16144_v43 = vadd.f32 %v16143_v58, %v16020_v53  ;;  %v15925_v34 = vmul.f32 %v15322_v50, %v24675_v24 }
 0xbac   : > { %v16029_v48 = vpop.f32.mrf.mxu0 }
 0xbad   : > { %v16336_v61 = vpop.f32.mrf.mxu1  ;;  %v16149_v27 = vadd.f32 %v16148_v31, %v16029_v48 }
 0xbae   : > { %v16031_v17 = vpop.f32.mrf.mxu0 }
 0xbaf   : > { %v16338_v36 = vpop.f32.mrf.mxu1  ;;  %v16151_v13 = vadd.f32 %v16150_v41, %v16031_v17 }
 0xbb2   : > { %v16237_v28 = vpop.f32.mrf.mxu0 }
 0xbb3   : > { %v16519_v2 = vpop.f32.mrf.mxu1  ;;  %v16238_v63 = vadd.f32 %v16237_v28, %v16142_v0  ;;  %v15926_v0 = vmul.f32 %v15324_v16, %v24676_v51 }
 0xbb4   : > { %v16239_v44 = vpop.f32.mrf.mxu0 }
 0xbb5   : > { %v16521_v55 = vpop.f32.mrf.mxu1  ;;  %v16240_v20 = vadd.f32 %v16239_v44, %v16144_v43  ;;  %v16328_v22 = vadd.f32 %v16327_v18, %v16238_v63  ;;  %v15244_v44 = vadd.f32 %v23454_v33, %v15141_v5 }
 0xbb7   : > { %v16330_v3 = vadd.f32 %v16329_v4, %v16240_v20  ;;  %v15331_v57 = vadd.f32 %v23444_v32, %v15244_v44  ;;  %v24677_v4 = vld [vmem:[#allocation152_spill] sm:$0xff] }
 0xbb8   : > { %v16245_v26 = vpop.f32.mrf.mxu0  ;;  %v15929_v48 = vmul.f32 %v15329_v7, %v24677_v4  ;;  %v24680_v7 = vld [vmem:[#allocation136_spill] sm:$0xff]  ;;  %v24684_v4 = vld [vmem:[#allocation158_spill] sm:$0xff] }
 0xbb9   : > { %v16526_v39 = vpop.f32.mrf.mxu1  ;;  %v16246_v54 = vadd.f32 %v16245_v26, %v16149_v27 }
 0xbba   : > { %v16247_v59 = vpop.f32.mrf.mxu0 }
 0xbbb   : > { %v16528_v10 = vpop.f32.mrf.mxu1  ;;  %v16248_v42 = vadd.f32 %v16247_v59, %v16151_v13  ;;  %v16337_v26 = vadd.f32 %v16336_v61, %v16246_v54  ;;  %v24678_v61 = vld [vmem:[#allocation149_spill] sm:$0xff]  ;;  %v15538_v13 = vadd.f32 %v23448_v49, %v23462_v15 }
 0xbbc   : > { %v15930_v63 = vmul.f32 %v15331_v57, %v24678_v61  ;;  %v24682_v57 = vld [vmem:[#allocation99_spill] sm:$0xff] }
 0xbbd   : > { %v15634_v44 = vadd.f32 %v23478_v45, %v15538_v13  ;;  %v24681_v45 = vld [vmem:[#allocation135_spill] sm:$0xff] }
 0xbbe   : > { %v16432_v23 = vpop.f32.mrf.mxu0 }
 0xbbf   : > { %v16433_v47 = vadd.f32 %v16432_v23, %v16328_v22  ;;  %v16733_v56 = vpop.f32.mrf.mxu1  ;;  %v15724_v51 = vadd.f32 %v24680_v7, %v15634_v44 }
 0xbc0   : > { %v16434_v38 = vpop.f32.mrf.mxu0 }
 0xbc1   : > { %v16520_v52 = vadd.f32 %v16519_v2, %v16433_v47  ;;  %v16435_v35 = vadd.f32 %v16434_v38, %v16330_v3  ;;  %v16735_v58 = vpop.f32.mrf.mxu1  ;;  %v16339_v2 = vadd.f32 %v16338_v36, %v16248_v42  ;;  %v15543_v3 = vadd.f32 %v23452_v8, %v23466_v11 }
 0xbc3   : > { %v23511_v46 = vadd.f32 %v16520_v52, %v15925_v34  ;;  %v16522_v31 = vadd.f32 %v16521_v55, %v16435_v35  ;;  %v15545_v34 = vadd.f32 %v23456_v19, %v23470_v9  ;;  %v24679_v35 = vld [vmem:[#allocation105_spill] sm:$0xff]  ;;  %v15829_v19 = vadd.f32 %v24682_v57, %v15724_v51  ;;  %v24683_v9 = vld [vmem:[#allocation151_spill] sm:$0xff] }
 0xbc4   : > { %v16439_v41 = vpop.f32.mrf.mxu0 }
 0xbc5   : > { %v17131_v33 = vmin.f32 %v23511_v46, 20.0  ;;  %v23515_v12 = vadd.f32 %v16522_v31, %v15926_v0  ;;  %v16440_v18 = vadd.f32 %v16439_v41, %v16337_v26  ;;  %v16740_v53 = vpop.f32.mrf.mxu1  ;;  %vm17171_vm5 = vcmp.gt.f32.partialorder %v23511_v46, 20.0 }
 0xbc6   : > { %v16441_v17 = vpop.f32.mrf.mxu0 }
 0xbc7   : > { %v17139_v62 = vmul.f32 1.442695, %v17131_v33  ;;  %v17132_v28 = vmin.f32 %v23515_v12, 20.0  ;;  %v16527_v37 = vadd.f32 %v16526_v39, %v16440_v18  ;;  %v16442_v43 = vadd.f32 %v16441_v17, %v16339_v2  ;;  %v16742_v55 = vpop.f32.mrf.mxu1  ;;  %v24685_v17 = vld [vmem:[#allocation137_spill] sm:$0xff] }
 0xbc8   : > { %vm17172_vm6 = vcmp.gt.f32.partialorder %v23515_v12, 20.0 }
 0xbc9   : > { %18980 = vpow2.f32 %v17139_v62  ;;  %v17141_v32 = vmul.f32 1.442695, %v17132_v28  ;;  %v23520_v25 = vadd.f32 %v16527_v37, %v15929_v48  ;;  %v16529_v60 = vadd.f32 %v16528_v10, %v16442_v43 }
 0xbca   : > { %v16610_v59 = vpop.f32.mrf.mxu0  ;;  %v15536_v10 = vadd.f32 %v23446_v29, %v23458_v14  ;;  %v15640_v29 = vadd.f32 %v23482_v40, %v15543_v3  ;;  %v24689_v3 = vld [vmem:[#allocation157_spill] sm:$0xff] }
 0xbcb   : > { %18982 = vpow2.f32 %v17141_v32  ;;  %v17135_v36 = vmin.f32 %v23520_v25, 20.0  ;;  %v23523_v20 = vadd.f32 %v16529_v60, %v15930_v63  ;;  %v16919_v6 = vpop.f32.mrf.mxu1  ;;  %v16734_v15 = vadd.f32 %v16733_v56, %v16610_v59  ;;  %v24687_v59 = vld [vmem:[#allocation156_spill] sm:$0xff] }
 0xbcc   : > { %v16612_v50 = vpop.f32.mrf.mxu0  ;;  %v15632_v47 = vadd.f32 %v23474_v1, %v15536_v10  ;;  %v15642_v1 = vadd.f32 %v24679_v35, %v15545_v34  ;;  %v15731_v40 = vadd.f32 %v24683_v9, %v15640_v29  ;;  %v24692_v35 = vld [vmem:[#allocation133_spill] sm:$0xff]  ;;  %vm17175_vm7 = vcmp.gt.f32.partialorder %v23520_v25, 20.0 }
 0xbcd   : > { %v17147_v27 = vmul.f32 1.442695, %v17135_v36  ;;  %v17136_v39 = vmin.f32 %v23523_v20, 20.0  ;;  %v16921_v22 = vpop.f32.mrf.mxu1  ;;  %v16736_v31 = vadd.f32 %v16735_v58, %v16612_v50  ;;  %v24686_v58 = vld [vmem:[#allocation154_spill] sm:$0xff]  ;;  %v15916_v36 = vadd.f32 %v24687_v59, %v15829_v19  ;;  %v24688_v50 = vld [vmem:[#allocation159_spill] sm:$0xff] }
 0xbce   : > { %v15722_v49 = vadd.f32 %v23460_v30, %v15632_v47  ;;  %v15834_v48 = vadd.f32 %v24684_v4, %v15731_v40  ;;  %v15733_v62 = vadd.f32 %v24685_v17, %v15642_v1  ;;  %vm17176_vm8 = vcmp.gt.f32.partialorder %v23523_v20, 20.0 }
 0xbcf   : > { %18984 = vpow2.f32 %v17147_v27  ;;  %v17149_v16 = vmul.f32 1.442695, %v17136_v39 }
 0xbd0   : > { %v16621_v21 = vpop.f32.mrf.mxu0  ;;  %v15827_v0 = vadd.f32 %v24681_v45, %v15722_v49  ;;  %v15836_v27 = vadd.f32 %v24688_v50, %v15733_v62  ;;  %v15921_v44 = vadd.f32 %v24689_v3, %v15834_v48 }
 0xbd1   : > { %18986 = vpow2.f32 %v17149_v16  ;;  %v16928_v5 = vpop.f32.mrf.mxu1  ;;  %v16741_v30 = vadd.f32 %v16740_v53, %v16621_v21 }
 0xbd2   : > { %v16623_v23 = vpop.f32.mrf.mxu0  ;;  %v15914_v61 = vadd.f32 %v24686_v58, %v15827_v0  ;;  %v15923_v1 = vadd.f32 %v24692_v35, %v15836_v27 }
 0xbd3   : > { %v23530_v54 = vpop.f32.mrf.mxu1  ;;  %v16743_v63 = vadd.f32 %v16742_v55, %v16623_v23  ;;  %v24690_v23 = vld [vmem:[#allocation153_spill] sm:$0xff] }
 0xbd6   : > { %v18981_v38 = vpop.eup %18980  ;;  %v16829_v24 = vpop.f32.mrf.mxu0 }
 0xbd7   : > { %v17111_v14 = vpop.f32.mrf.mxu1  ;;  %v17155_v11 = vadd.f32 2.0, %v18981_v38  ;;  %v16830_v26 = vadd.f32 %v16829_v24, %v16734_v15 }
 0xbd8   : > { %v18983_v42 = vpop.eup %18982  ;;  %v16831_v52 = vpop.f32.mrf.mxu0 }
 0xbd9   : > { %v17113_v8 = vpop.f32.mrf.mxu1  ;;  %v17156_v33 = vadd.f32 2.0, %v18983_v42  ;;  %v16832_v56 = vadd.f32 %v16831_v52, %v16736_v31  ;;  %v23547_v37 = vmul.f32 %v18981_v38, %v17155_v11  ;;  %v16920_v60 = vadd.f32 %v16919_v6, %v16830_v26  ;;  %v24691_v52 = vld [vmem:[#allocation155_spill] sm:$0xff] }
 0xbda   : > { %v15927_v6 = vmul.f32 %v15914_v61, %v24690_v23 }
 0xbdb   : > { %v16837_v41 = vpop.f32.mrf.mxu0  ;;  %v23552_v39 = vmul.f32 %v18983_v42, %v17156_v33  ;;  %v16922_v47 = vadd.f32 %v16921_v22, %v16832_v56  ;;  %v17187_v24 = vadd.f32 2.0, %v23547_v37  ;;  %v15928_v42 = vmul.f32 %v15916_v36, %v24691_v52 }
 0xbdc   : > { %v18985_v18 = vpop.eup %18984  ;;  %v17118_v2 = vpop.f32.mrf.mxu1  ;;  %v16838_v32 = vadd.f32 %v16837_v41, %v16741_v30  ;;  %v24694_v30 = vld [vmem:[#allocation131_spill] sm:$0xff] }
 0xbdd   : > { %v16839_v28 = vpop.f32.mrf.mxu0  ;;  %v17159_v16 = vadd.f32 2.0, %v18985_v18  ;;  %v17188_v51 = vadd.f32 2.0, %v23552_v39  ;;  %18988 = vrcp.f32 %v17187_v24  ;;  %v15932_v56 = vmul.f32 %v15923_v1, %v24694_v30 }
 0xbde   : > { %v18987_v43 = vpop.eup %18986  ;;  %v16840_v21 = vadd.f32 %v16839_v28, %v16743_v63  ;;  %v17120_v10 = vpop.f32.mrf.mxu1  ;;  %v16929_v49 = vadd.f32 %v16928_v5, %v16838_v32 }
 0xbdf   : > { %v17024_v53 = vpop.f32.mrf.mxu0  ;;  %v17160_v55 = vadd.f32 2.0, %v18987_v43  ;;  %v23560_v22 = vmul.f32 %v18985_v18, %v17159_v16  ;;  %18990 = vrcp.f32 %v17188_v51 }
 0xbe0   : > { %v17025_v13 = vadd.f32 %v17024_v53, %v16920_v60  ;;  %v16931_v31 = vadd.f32 %v23530_v54, %v16840_v21  ;;  %v23584_v53 = vpop.permute.xlu1 %17226 }
 0xbe1   : > { %v17026_v38 = vpop.f32.mrf.mxu0  ;;  %v23566_v19 = vmul.f32 %v18987_v43, %v17160_v55  ;;  %v17191_v54 = vadd.f32 2.0, %v23560_v22  ;;  %v23576_v43 = vpop.permute.xlu0 %17222 }
 0xbe2   : > { %v17112_v34 = vadd.f32 %v17111_v14, %v17025_v13  ;;  %v17027_v29 = vadd.f32 %v17026_v38, %v16922_v47  ;;  %v17402_v15 = vpop.f32.mrf.mxu1  ;;  %v24693_v14 = vld [vmem:[#allocation129_spill] sm:$0xff] }
 0xbe3   : > { %v17031_v7 = vpop.f32.mrf.mxu0  ;;  %v15931_v57 = vmul.f32 %v15921_v44, %v24693_v14 }
 0xbe4   : > { %v23562_v11 = vadd.f32 %v17112_v34, %v15927_v6  ;;  %v17114_v45 = vadd.f32 %v17113_v8, %v17027_v29  ;;  %v17032_v0 = vadd.f32 %v17031_v7, %v16929_v49  ;;  %v17404_v26 = vpop.f32.mrf.mxu1 }
 0xbe5   : > { %v17033_v5 = vpop.f32.mrf.mxu0 }
 0xbe6   : > { %v17133_v9 = vmin.f32 %v23562_v11, 20.0  ;;  %v23569_v40 = vadd.f32 %v17114_v45, %v15928_v42  ;;  %v17119_v41 = vadd.f32 %v17118_v2, %v17032_v0  ;;  %v17034_v33 = vadd.f32 %v17033_v5, %v16931_v31  ;;  %v17409_v18 = vpop.f32.mrf.mxu1 }
 0xbe7   : > { %v17309_v8 = vpop.f32.mrf.mxu0  ;;  %v17192_v2 = vadd.f32 2.0, %v23566_v19  ;;  %v17179_v0 = vmul.f32 %v23547_v37, %v23511_v46  ;;  %vm17173_vm9 = vcmp.gt.f32.partialorder %v23562_v11, 20.0 }
 0xbe8   : > { %v17143_v4 = vmul.f32 1.442695, %v17133_v9  ;;  %v17134_v48 = vmin.f32 %v23569_v40, 20.0  ;;  %v23574_v17 = vadd.f32 %v17119_v41, %v15931_v57  ;;  %v17121_v62 = vadd.f32 %v17120_v10, %v17034_v33  ;;  %v17411_v28 = vpop.f32.mrf.mxu1 }
 0xbe9   : > { %v17311_v58 = vpop.f32.mrf.mxu0  ;;  %v17310_v27 = vadd.f32 %v17309_v8, %v23576_v43  ;;  %vm17174_vm10 = vcmp.gt.f32.partialorder %v23569_v40, 20.0 }
 0xbea   : > { %18992 = vpow2.f32 %v17143_v4  ;;  %v17145_v61 = vmul.f32 1.442695, %v17134_v48  ;;  %v17137_v63 = vmin.f32 %v23574_v17, 20.0  ;;  %v23580_v32 = vadd.f32 %v17121_v62, %v15932_v56  ;;  %v17570_v60 = vpop.f32.mrf.mxu1  ;;  %v18989_v23 = vpop.eup %18988 }
 0xbeb   : > { %v17320_v59 = vpop.f32.mrf.mxu0  ;;  %18994 = vrcp.f32 %v17191_v54  ;;  %v17312_v13 = vadd.f32 %v17311_v58, %v23576_v43  ;;  %v17403_v38 = vadd.f32 %v17402_v15, %v17310_v27  ;;  %v17180_v15 = vmul.f32 %v23552_v39, %v23515_v12 }
 0xbec   : > { %18996 = vpow2.f32 %v17145_v61  ;;  %v17151_v36 = vmul.f32 1.442695, %v17137_v63  ;;  %v17138_v50 = vmin.f32 %v23580_v32, 20.0  ;;  %v17572_v16 = vpop.f32.mrf.mxu1  ;;  %v17321_v3 = vadd.f32 %v17320_v59, %v23584_v53  ;;  %v18991_v35 = vpop.eup %18990 }
 0xbed   : > { %v17322_v21 = vpop.f32.mrf.mxu0  ;;  %18998 = vrcp.f32 %v17192_v2  ;;  %v17405_v6 = vadd.f32 %v17404_v26, %v17312_v13  ;;  %v17196_v9 = vmul.f32 %v18989_v23, %v17179_v0  ;;  %v17198_v41 = vmul.f32 %v18991_v35, %v17180_v15 }
 0xbee   : > { %19000 = vpow2.f32 %v17151_v36  ;;  %v17153_v10 = vmul.f32 1.442695, %v17138_v50  ;;  %v17579_v47 = vpop.f32.mrf.mxu1  ;;  %v17323_v34 = vadd.f32 %v17322_v21, %v23584_v53  ;;  %v17410_v52 = vadd.f32 %v17409_v18, %v17321_v3 }
 0xbef   : > { %v17486_v44 = vpop.f32.mrf.mxu0  ;;  %v17183_v39 = vmul.f32 %v23560_v22, %v23520_v25  ;;  %v17211_v59 = vsel %vm17171_vm5, %v23511_v46, %v17196_v9  ;;  %v17212_v36 = vsel %vm17172_vm6, %v23515_v12, %v17198_v41  ;;  %v17184_v22 = vmul.f32 %v23566_v19, %v23523_v20 }
 0xbf0   : > { %19002 = vpow2.f32 %v17153_v10  ;;  %v17581_v24 = vpop.f32.mrf.mxu1  ;;  %v17487_v29 = vadd.f32 %v17486_v44, %v17403_v38  ;;  %v17412_v31 = vadd.f32 %v17411_v28, %v17323_v34  ;;  %vm17177_vm11 = vcmp.gt.f32.partialorder %v23574_v17, 20.0 }
 0xbf1   : > { %v17488_v55 = vpop.f32.mrf.mxu0  ;;  %vm17178_vm12 = vcmp.gt.f32.partialorder %v23580_v32, 20.0 }
 0xbf2   : > { %v17738_v49 = vpop.f32.mrf.mxu1  ;;  %v17489_v1 = vadd.f32 %v17488_v55, %v17405_v6  ;;  %v17571_v26 = vadd.f32 %v17570_v60, %v17487_v29 }
 0xbf3   : > { %v17494_v42 = vpop.f32.mrf.mxu0 }
 0xbf4   : > { %v17740_v7 = vpop.f32.mrf.mxu1  ;;  %v17495_v51 = vadd.f32 %v17494_v42, %v17410_v52  ;;  %v17573_v18 = vadd.f32 %v17572_v16, %v17489_v1 }
 0xbf5   : > { %v17496_v45 = vpop.f32.mrf.mxu0 }
 0xbf6   : > { %v17745_v14 = vpop.f32.mrf.mxu1  ;;  %v17497_v30 = vadd.f32 %v17496_v45, %v17412_v31  ;;  %v17580_v4 = vadd.f32 %v17579_v47, %v17495_v51 }
 0xbf7   : > { %v18993_v57 = vpop.eup %18992  ;;  %v17657_v5 = vpop.f32.mrf.mxu0 }
 0xbf8   : > { %v18995_v33 = vpop.eup %18994  ;;  %v17658_v56 = vadd.f32 %v17657_v5, %v17571_v26  ;;  %v17747_v8 = vpop.f32.mrf.mxu1  ;;  %v17157_v54 = vadd.f32 2.0, %v18993_v57  ;;  %v17582_v16 = vadd.f32 %v17581_v24, %v17497_v30 }
 0xbf9   : > { %v18997_v37 = vpop.eup %18996  ;;  %v17659_v48 = vpop.f32.mrf.mxu0  ;;  %v17204_v27 = vmul.f32 %v18995_v33, %v17183_v39 }
 0xbfa   : > { %v18999_v62 = vpop.eup %18998  ;;  %v17739_v28 = vadd.f32 %v17738_v49, %v17658_v56  ;;  %v17660_v58 = vadd.f32 %v17659_v48, %v17573_v18  ;;  %v17916_v2 = vpop.f32.mrf.mxu1  ;;  %v23599_v61 = vmul.f32 %v18993_v57, %v17157_v54  ;;  %v17158_v63 = vadd.f32 2.0, %v18997_v37 }
 0xbfb   : > { %v19001_v60 = vpop.eup %19000  ;;  %v17664_v50 = vpop.f32.mrf.mxu0  ;;  %v17206_v38 = vmul.f32 %v18999_v62, %v17184_v22  ;;  %v17215_v29 = vsel %vm17175_vm7, %v23520_v25, %v17204_v27 }
 0xbfc   : > { %v18264_v21 = vadd.f32 %v17739_v28, %v17211_v59  ;;  %v17741_v10 = vadd.f32 %v17740_v7, %v17660_v58  ;;  %v17665_v13 = vadd.f32 %v17664_v50, %v17580_v4  ;;  %v17918_v47 = vpop.f32.mrf.mxu1  ;;  %v17189_v55 = vadd.f32 2.0, %v23599_v61 }
 0xbfd   : > { %v19003_v3 = vpop.eup %19002  ;;  %v17666_v44 = vpop.f32.mrf.mxu0  ;;  %v17166_v23 = vmul.f32 %v18997_v37, %v17158_v63  ;;  %v17161_v46 = vadd.f32 2.0, %v19001_v60  ;;  %v17216_v45 = vsel %vm17176_vm8, %v23523_v20, %v17206_v38 }
 0xbfe   : > { %18272 = vst [vmem:[%s23610_s7] sm:$0xff] %v18264_v21  ;;  %v18265_v12 = vadd.f32 %v17741_v10, %v17212_v36  ;;  %v17746_v19 = vadd.f32 %v17745_v14, %v17665_v13  ;;  %v17667_v24 = vadd.f32 %v17666_v44, %v17582_v16  ;;  %v17923_v6 = vpop.f32.mrf.mxu1  ;;  %v17162_v34 = vadd.f32 2.0, %v19003_v3 }
 0xbff   : > { %v17823_v49 = vpop.f32.mrf.mxu0  ;;  %19004 = vrcp.f32 %v17189_v55  ;;  %v17190_v52 = vadd.f32 2.0, %v17166_v23  ;;  %v17169_v42 = vmul.f32 %v19001_v60, %v17161_v46  ;;  %v17182_v22 = vmul.f32 %v17166_v23, %v23569_v40 }
 0xc00   : > { %18273 = vst [vmem:[%s23610_s7 + $0x8] sm:$0xff] %v18265_v12  ;;  %v18268_v35 = vadd.f32 %v17746_v19, %v17215_v29  ;;  %v17748_v1 = vadd.f32 %v17747_v8, %v17667_v24  ;;  %v17925_v7 = vpop.f32.mrf.mxu1  ;;  %v17170_v51 = vmul.f32 %v19003_v3, %v17162_v34  ;;  %v17824_v57 = vadd.f32 %v17823_v49, %v23576_v43 }
 0xc01   : > { %v17825_v0 = vpop.f32.mrf.mxu0  ;;  %19006 = vrcp.f32 %v17190_v52  ;;  %v17193_v15 = vadd.f32 2.0, %v17169_v42  ;;  %v17185_v44 = vmul.f32 %v17169_v42, %v23574_v17 }
 0xc02   : > { %18276 = vst [vmem:[%s23610_s7 + $0x20] sm:$0xff] %v18268_v35  ;;  %v18269_v31 = vadd.f32 %v17748_v1, %v17216_v45  ;;  %v18084_v25 = vpop.f32.mrf.mxu1  ;;  %v17194_v14 = vadd.f32 2.0, %v17170_v51  ;;  %v17826_v41 = vadd.f32 %v17825_v0, %v23576_v43  ;;  %v17917_v20 = vadd.f32 %v17916_v2, %v17824_v57 }
 0xc03   : > { %v17834_v26 = vpop.f32.mrf.mxu0  ;;  %19008 = vrcp.f32 %v17193_v15  ;;  %v17181_v43 = vmul.f32 %v23599_v61, %v23562_v11 }
 0xc04   : > { %18277 = vst [vmem:[%s23610_s7 + $0x28] sm:$0xff] %v18269_v31  ;;  %v18086_v5 = vpop.f32.mrf.mxu1  ;;  %19010 = vrcp.f32 %v17194_v14  ;;  %v17835_v30 = vadd.f32 %v17834_v26, %v23584_v53  ;;  %v17919_v54 = vadd.f32 %v17918_v47, %v17826_v41 }
 0xc05   : > { %v17836_v9 = vpop.f32.mrf.mxu0 }
 0xc06   : > { %v18093_v33 = vpop.f32.mrf.mxu1  ;;  %v17837_v37 = vadd.f32 %v17836_v9, %v23584_v53  ;;  %v17924_v28 = vadd.f32 %v17923_v6, %v17835_v30  ;;  %v17186_v6 = vmul.f32 %v17170_v51, %v23580_v32 }
 0xc07   : > { %v18000_v18 = vpop.f32.mrf.mxu0 }
 0xc08   : > { %v18095_v56 = vpop.f32.mrf.mxu1  ;;  %v18001_v4 = vadd.f32 %v18000_v18, %v17917_v20  ;;  %v17926_v59 = vadd.f32 %v17925_v7, %v17837_v37 }
 0xc09   : > { %v18002_v8 = vpop.f32.mrf.mxu0 }
 0xc0a   : > { %v18252_v39 = vpop.f32.mrf.mxu1  ;;  %v18003_v58 = vadd.f32 %v18002_v8, %v17919_v54  ;;  %v18085_v2 = vadd.f32 %v18084_v25, %v18001_v4 }
 0xc0b   : > { %v18008_v48 = vpop.f32.mrf.mxu0 }
 0xc0c   : > { %v19005_v62 = vpop.eup %19004  ;;  %v18009_v36 = vadd.f32 %v18008_v48, %v17924_v28  ;;  %v18254_v16 = vpop.f32.mrf.mxu1  ;;  %v18087_v21 = vadd.f32 %v18086_v5, %v18003_v58 }
 0xc0d   : > { %v18010_v63 = vpop.f32.mrf.mxu0  ;;  %v17200_v27 = vmul.f32 %v19005_v62, %v17181_v43 }
 0xc0e   : > { %v19007_v60 = vpop.eup %19006  ;;  %v18011_v10 = vadd.f32 %v18010_v63, %v17926_v59  ;;  %v18094_v61 = vadd.f32 %v18093_v33, %v18009_v36  ;;  %v18259_v24 = vpop.f32.mrf.mxu1 }
 0xc0f   : > { %v18171_v50 = vpop.f32.mrf.mxu0  ;;  %v17202_v3 = vmul.f32 %v19007_v60, %v17182_v22  ;;  %v17213_v12 = vsel %vm17173_vm9, %v23562_v11, %v17200_v27 }
 0xc10   : > { %v19009_v53 = vpop.eup %19008  ;;  %v18172_v13 = vadd.f32 %v18171_v50, %v18085_v2  ;;  %v18096_v34 = vadd.f32 %v18095_v56, %v18011_v10  ;;  %v18261_v0 = vpop.f32.mrf.mxu1 }
 0xc11   : > { %v18173_v47 = vpop.f32.mrf.mxu0  ;;  %v19011_v38 = vpop.eup %19010  ;;  %v17208_v19 = vmul.f32 %v19009_v53, %v17185_v44  ;;  %v17214_v42 = vsel %vm17174_vm10, %v23569_v40, %v17202_v3 }
 0xc12   : > { %v18253_v55 = vadd.f32 %v18252_v39, %v18172_v13  ;;  %v18174_v46 = vadd.f32 %v18173_v47, %v18087_v21  ;;  %v17210_v1 = vmul.f32 %v19011_v38, %v17186_v6 }
 0xc13   : > { %v18178_v23 = vpop.f32.mrf.mxu0  ;;  %v17217_v51 = vsel %vm17177_vm11, %v23574_v17, %v17208_v19 }
 0xc14   : > { %v18266_v29 = vadd.f32 %v18253_v55, %v17213_v12  ;;  %v18255_v49 = vadd.f32 %v18254_v16, %v18174_v46  ;;  %v18179_v52 = vadd.f32 %v18178_v23, %v18094_v61  ;;  %v17218_v31 = vsel %vm17178_vm12, %v23580_v32, %v17210_v1 }
 0xc15   : > { %v18180_v35 = vpop.f32.mrf.mxu0 }
 0xc16   : > { %18274 = vst [vmem:[%s23610_s7 + $0x10] sm:$0xff] %v18266_v29  ;;  %v18267_v11 = vadd.f32 %v18255_v49, %v17214_v42  ;;  %v18260_v7 = vadd.f32 %v18259_v24, %v18179_v52  ;;  %v18181_v45 = vadd.f32 %v18180_v35, %v18096_v34 }
 0xc18   : > { %18275 = vst [vmem:[%s23610_s7 + $0x18] sm:$0xff] %v18267_v11  ;;  %v18270_v40 = vadd.f32 %v18260_v7, %v17217_v51  ;;  %v18262_v15 = vadd.f32 %v18261_v0, %v18181_v45 }
 0xc1a   : > { %18278 = vst [vmem:[%s23610_s7 + $0x30] sm:$0xff] %v18270_v40  ;;  %v18271_v17 = vadd.f32 %v18262_v15, %v17218_v31 }
 0xc1c   : > { %18279 = vst [vmem:[%s23610_s7 + $0x38] sm:$0xff] %v18271_v17 }
 0xc1d   : > { %19169 = shalt.err (!%p19166_p6)
}
 0xc1e   : > { %s19170_s0 = scalar_lea.hbm %s23647_s17, 1024  ;;  %s19174_s28 = scalar_lea.hbm %s23702_s10, 2048 }
 0xc1f   : > { %p19171_p7 = scmp.ne.s32.totalorder %s23647_s17, %s19170_s0  ;;  %p19175_p11 = scmp.lt.s32.totalorder %s23647_s17, %s23702_s10 }
 0xc20   : > { %p19176_p3 = scmp.lt.s32.totalorder %s19174_s28, %s19170_s0 }
 0xc21   : > { %p19172_p5 = pnand %p19171_p7, %p24695_p13 }
 0xc22   : > { %p19177_p12 = por %p19176_p3, %p19175_p11 }
 0xc23   : > { %p19173_p8 = pneg %p19172_p5 }
 0xc25   : > { %p19178_p9 = pnand %p19177_p12, %p19173_p8 }
 0xc27   : > { %19181 = shalt.err (!%p19178_p9)
}
 0xc28   : > { %s19257_s11 = smov 512   ;;  %s19258_s4 = smov 32  }
 0xc29   : > { %18826 = dma.vmem_to_hbm [thread:$0]  (%p24695_p13), %s23639_s21, 1024, %s23647_s17, %s18281_s19, %s19257_s11, %s19257_s11, %s19258_s4  }
 0xc2a PF: > { %s24696_s7 = sld [smem:[#allocation18_spill]]  ;;  %s18309_s29 = sand.u32 1, %s19220_s13  }
 0xc2b   : > { %p24698_p2 = scmp.ge.s32.totalorder %s19232_s16, 2  ;;  %s18310_s22 = scalar_lea.sflag [#allocation4], %s18309_s29 }
 0xc30   : > { %p24697_p0 = scmp.ne.s32.totalorder %s24696_s7, 0 }
 0xc32   : > { %p18846_p10 = pnand %p24698_p2, %p24697_p0 }
 0xc34   : > { %p18847_p1 = pneg %p18846_p10 }
 0xc36   : > { %19215 = dma.done.wait (%p18847_p1), %s18310_s22, 1024  }
 0xc37   : > { %19217 = vsyncadd (%p18847_p1), %s18310_s22, 4294966272  ;;  %s24699_s16 = sld [smem:[#allocation19_spill]]  ;;  %s24702_s13 = smov %s19224_s14 }
 0xc38   : > { %s24700_s27 = sld [smem:[#allocation17_spill]] }
 0xc39   : > { %s24701_s15 = sld [smem:[#allocation20_spill]] }
 0xc3d   : > { %p27_p4 = scmp.ge.s32.totalorder %s24699_s16, 4  }
 0xc3e   : > { %s24703_s14 = smov %s24700_s27 }
 0xc3f   :  { %29 = sbr.rel (!%p27_p4) target bundleno = 13 (0xd), region = 130 }
 0xc44   :  { %18315 = vsyncpa [#allocation3], 1 }
 0xc45   :  { %18317 = vsyncpa [#allocation3 + $0x1], 1 }
 0xc46   :  { %18318 = vsyncpa [#allocation6], 1 }
 0xc47   :  { %18320 = vsyncpa [#allocation6 + $0x1], 1 }
 0xc48   :  { %18321 = vsyncpa [#allocation9], 1 }
 0xc49   :  { %18322 = vsyncpa [#allocation4], 1 }
 0xc4a   :  { %18324 = vsyncpa [#allocation4 + $0x1], 1 }

</bundles_post_ra>
